<compile_context>
chip_gen: v5e
topology: v5e:2x2
jax: 0.10.0
libtpu: 0.0.40
codegen_flags: <defaults>
</compile_context>

<pallas_src>
import jax
import jax.numpy as jnp
from jax.experimental import pallas as pl
from jax.experimental.pallas import tpu as pltpu


IM_DIM = 784
HIDDEN = 128
D1, D2, D3 = HIDDEN * 4, HIDDEN * 2, HIDDEN      # 512, 256, 128
B = 256                                          # demo batch -> grid=(1,)

MAX_SINGLE_TILE = 512      # single grid step up to this many rows
LARGE_TILE = 512           # batch-tile size for large (training) batches


def _round_up(x, m):
    return ((x + m - 1) // m) * m


def _leaky_relu(x, slope=0.1):
    return jnp.where(x > 0, x, slope * x)


def disc_kernel(x_ref, w1_ref, w2_ref, w3_ref, w4_ref, bcat_ref, b4_ref,
                o_ref):
    # x arrives as f32 (tm, 784); cast to bf16 on the VPU (hidden under MXU).
    x_bf = x_ref[...].astype(jnp.bfloat16)

    # Block 1: Linear(784 -> 512) + LeakyReLU(0.1)   (bf16 MXU, f32 accumulate)
    h = jnp.dot(x_bf, w1_ref[...], preferred_element_type=jnp.float32)
    h = _leaky_relu(h + bcat_ref[:, 0:D1])

    # Block 2: Linear(512 -> 256) + LeakyReLU(0.1)
    h = jnp.dot(h.astype(jnp.bfloat16), w2_ref[...],
                preferred_element_type=jnp.float32)
    h = _leaky_relu(h + bcat_ref[:, D1:D1 + D2])

    # Block 3: Linear(256 -> 128) + LeakyReLU(0.1)
    h = jnp.dot(h.astype(jnp.bfloat16), w3_ref[...],
                preferred_element_type=jnp.float32)
    h = _leaky_relu(h + bcat_ref[:, D1 + D2:D1 + D2 + D3])

    # Head: Linear(128 -> 1) as f32 VPU multiply + lane reduction (an N=1 MXU
    # pass would waste a full matmul issue).
    out = jnp.sum(h * w4_ref[...], axis=-1, keepdims=True) + b4_ref[0]
    # NOTE: 1-lane-wide output is fine at this size; if this head ever feeds
    # further kernels, switch to a lane-dense output layout.
    o_ref[...] = out.astype(o_ref.dtype)


def prepare_discriminator_params(params):
    """One-time precision/layout prep, hoisted out of the per-call wrapper."""
    (w1, b1), (w2, b2), (w3, b3), (w4, b4) = params
    assert w1.shape == (IM_DIM, D1) and w2.shape == (D1, D2)
    assert w3.shape == (D2, D3) and w4.shape == (D3, 1)
    return dict(
        w1=w1.astype(jnp.bfloat16),
        w2=w2.astype(jnp.bfloat16),
        w3=w3.astype(jnp.bfloat16),
        w4=w4.reshape(1, D3).astype(jnp.float32),        # head stays f32 (VPU)
        bcat=jnp.concatenate(
            [b1.reshape(1, D1), b2.reshape(1, D2), b3.reshape(1, D3)],
            axis=1).astype(jnp.float32),                 # (1, 896)
        b4=b4.reshape(1).astype(jnp.float32),            # SMEM scalar
    )


def _pick_tiling(batch):
    # bf16 LHS packs 16 sublanes per vreg -> keep tiles multiples of 16.
    batch_pad = _round_up(batch, 16)
    if batch_pad <= MAX_SINGLE_TILE:
        return batch_pad, batch_pad
    tm = LARGE_TILE
    return tm, _round_up(batch_pad, tm)


def discriminator_forward(x, prepped):
    batch, im_dim = x.shape
    assert im_dim == IM_DIM, im_dim
    tm, batch_pad = _pick_tiling(batch)

    x_p = x if batch_pad == batch else jnp.pad(
        x, ((0, batch_pad - batch), (0, 0)))

    grid = (batch_pad // tm,)
    # Use both TensorCores (v7x) only when the batch is big enough that the
    # per-core x traffic dwarfs the duplicated weight fetch.
    semantics = ("parallel",) if batch_pad >= 2048 else ("arbitrary",)

    flops = 2 * batch_pad * (IM_DIM * D1 + D1 * D2 + D2 * D3 + D3)
    bytes_accessed = (
        batch_pad * IM_DIM * 4
        + (prepped["w1"].size + prepped["w2"].size + prepped["w3"].size) * 2
        + (prepped["w4"].size + prepped["bcat"].size + prepped["b4"].size) * 4
        + batch_pad * 4)

    out = pl.pallas_call(
        disc_kernel,
        out_shape=jax.ShapeDtypeStruct((batch_pad, 1), jnp.float32),
        grid_spec=pltpu.PrefetchScalarGridSpec(
            num_scalar_prefetch=0,
            grid=grid,
            in_specs=[
                # x tile: pipelined per grid step (f32, K=784 == full dim).
                pl.BlockSpec((tm, IM_DIM), lambda i: (i, 0)),
                # Weights / biases: constant block index -> fetched from HBM
                # once and VMEM-resident across grid steps.
                pl.BlockSpec((IM_DIM, D1), lambda i: (0, 0)),
                pl.BlockSpec((D1, D2), lambda i: (0, 0)),
                pl.BlockSpec((D2, D3), lambda i: (0, 0)),
                pl.BlockSpec((1, D3), lambda i: (0, 0)),
                pl.BlockSpec((1, D1 + D2 + D3), lambda i: (0, 0)),
                # b4: single scalar, keep it in SMEM.
                pl.BlockSpec(memory_space=pltpu.MemorySpace.SMEM),
            ],
            out_specs=pl.BlockSpec((tm, 1), lambda i: (i, 0)),
        ),
        compiler_params=pltpu.CompilerParams(dimension_semantics=semantics),
        cost_estimate=pl.CostEstimate(
            flops=flops, transcendentals=0, bytes_accessed=bytes_accessed),
    )(x_p, prepped["w1"], prepped["w2"], prepped["w3"], prepped["w4"],
      prepped["bcat"], prepped["b4"])
    return out[:batch]


# ----------------------------- init & references -----------------------------

def init_linear(key, in_dim, out_dim):
    # PyTorch nn.Linear default init: U(-1/sqrt(in), 1/sqrt(in))
    kw, kb = jax.random.split(key)
    bound = 1.0 / jnp.sqrt(jnp.float32(in_dim))
    w = jax.random.uniform(kw, (in_dim, out_dim), jnp.float32, -bound, bound)
    b = jax.random.uniform(kb, (1, out_dim), jnp.float32, -bound, bound)
    return w, b


def init_discriminator(key, im_dim=IM_DIM, hidden_dim=HIDDEN):
    keys = jax.random.split(key, 4)
    dims = [(im_dim, hidden_dim * 4),
            (hidden_dim * 4, hidden_dim * 2),
            (hidden_dim * 2, hidden_dim),
            (hidden_dim, 1)]
    return [init_linear(k, i, o) for k, (i, o) in zip(keys, dims)]


def reference_forward_f32(x, params):
    h = x
    for i, (w, b) in enumerate(params):
        h = h @ w + b
        if i < len(params) - 1:
            h = _leaky_relu(h)
    return h


def reference_forward_mixed(x, params):
    """Mirrors the kernel's precision: bf16 MXU inputs, f32 accumulate/VPU."""
    (w1, b1), (w2, b2), (w3, b3), (w4, b4) = params
    h_bf = x.astype(jnp.bfloat16)
    h = None
    for (w, b) in [(w1, b1), (w2, b2), (w3, b3)]:
        z = jnp.dot(h_bf, w.astype(jnp.bfloat16),
                    preferred_element_type=jnp.float32) + b
        h = _leaky_relu(z)
        h_bf = h.astype(jnp.bfloat16)
    return jnp.sum(h * w4.reshape(1, -1), axis=-1, keepdims=True) + b4.reshape(1, 1)


if __name__ == "__main__":
    key = jax.random.PRNGKey(0)
    k_params, k_x = jax.random.split(key)
    params = init_discriminator(k_params)
    x = jax.random.normal(k_x, (B, IM_DIM), jnp.float32)

    # Hoisted one-time weight prep (bf16 casts, bias concat, head layout).
    prepped = prepare_discriminator_params(params)
    prepped = jax.tree_util.tree_map(jax.block_until_ready, prepped)

    fwd = jax.jit(discriminator_forward)
    out = jax.block_until_ready(fwd(x, prepped))
    assert out.shape == (B, 1), out.shape

    # Check against a reference using the same mixed precision as the kernel.
    ref_mixed = reference_forward_mixed(x, params)
    err_mixed = jnp.max(jnp.abs(out - ref_mixed))
    assert jnp.allclose(out, ref_mixed, atol=1e-2, rtol=1e-2), (
        f"mixed-precision max err {err_mixed}")

    # Semantics check against the full-f32 PyTorch-equivalent forward
    # (looser tolerance because MXU inputs are bf16).
    ref_f32 = reference_forward_f32(x, params)
    err_f32 = jnp.max(jnp.abs(out - ref_f32))
    assert jnp.allclose(out, ref_f32, atol=5e-2, rtol=5e-2), (
        f"f32 max err {err_f32}")

    print("KERNEL_OK")
</pallas_src>

<mosaic_0001>
module attributes {stable_mosaic.version = 11 : i64} {
  func.func @disc_kernel(%arg0: i32, %arg1: memref<256x784xf32, #tpu.memory_space<vmem>>, %arg2: memref<784x512xbf16, #tpu.memory_space<vmem>>, %arg3: memref<512x256xbf16, #tpu.memory_space<vmem>>, %arg4: memref<256x128xbf16, #tpu.memory_space<vmem>>, %arg5: memref<1x128xf32, #tpu.memory_space<vmem>>, %arg6: memref<1x896xf32, #tpu.memory_space<vmem>>, %arg7: memref<1xf32, #tpu.memory_space<smem>>, %arg8: memref<256x1xf32, #tpu.memory_space<vmem>>) attributes {dimension_semantics = [#tpu.dimension_semantics<arbitrary>], iteration_bounds = array<i64: 1>, scalar_prefetch = 0 : i64, scratch_operands = 0 : i64, tpu.core_type = #tpu.core_type<tc>, window_params = [{transform_indices = @transform_0, window_bounds = array<i64: 256, 784>}, {pipeline_mode = #tpu.pipeline_mode<synchronous>, transform_indices = @transform_1, window_bounds = array<i64: 784, 512>}, {pipeline_mode = #tpu.pipeline_mode<synchronous>, transform_indices = @transform_2, window_bounds = array<i64: 512, 256>}, {pipeline_mode = #tpu.pipeline_mode<synchronous>, transform_indices = @transform_3, window_bounds = array<i64: 256, 128>}, {pipeline_mode = #tpu.pipeline_mode<synchronous>, transform_indices = @transform_4, window_bounds = array<i64: 1, 128>}, {pipeline_mode = #tpu.pipeline_mode<synchronous>, transform_indices = @transform_5, window_bounds = array<i64: 1, 896>}, {transform_indices = @transform_6, window_bounds = array<i64: 1>}, {transform_indices = @transform_7, window_bounds = array<i64: 256, 1>}]} {
    %c0 = arith.constant 0 : index
    %c0_0 = arith.constant 0 : index
    %0 = vector.load %arg1[%c0, %c0_0] : memref<256x784xf32, #tpu.memory_space<vmem>>, vector<256x784xf32>
    %1 = arith.truncf %0 : vector<256x784xf32> to vector<256x784xbf16>
    %c0_1 = arith.constant 0 : index
    %c0_2 = arith.constant 0 : index
    %2 = vector.load %arg2[%c0_1, %c0_2] : memref<784x512xbf16, #tpu.memory_space<vmem>>, vector<784x512xbf16>
    %cst = arith.constant dense<0.000000e+00> : vector<256x512xf32>
    %3 = tpu.matmul %1, %2, %cst {dimension_numbers = #tpu.dot_dimension_numbers<[1], [0], [0], [1], [0, 0, 1, 1], [], []>} : vector<256x784xbf16>, vector<784x512xbf16>, vector<256x512xf32> -> vector<256x512xf32>
    %c0_3 = arith.constant 0 : index
    %c0_4 = arith.constant 0 : index
    %4 = vector.load %arg6[%c0_3, %c0_4] : memref<1x896xf32, #tpu.memory_space<vmem>>, vector<1x512xf32>
    %5 = vector.broadcast %4 : vector<1x512xf32> to vector<256x512xf32>
    %6 = arith.addf %3, %5 : vector<256x512xf32>
    %cst_5 = arith.constant 0.000000e+00 : f32
    %7 = vector.broadcast %cst_5 : f32 to vector<256x512xf32>
    %8 = arith.cmpf ogt, %6, %7 : vector<256x512xf32>
    %cst_6 = arith.constant 1.000000e-01 : f32
    %9 = vector.broadcast %cst_6 : f32 to vector<256x512xf32>
    %10 = arith.mulf %9, %6 : vector<256x512xf32>
    %11 = arith.select %8, %6, %10 : vector<256x512xi1>, vector<256x512xf32>
    %12 = arith.truncf %11 : vector<256x512xf32> to vector<256x512xbf16>
    %c0_7 = arith.constant 0 : index
    %c0_8 = arith.constant 0 : index
    %13 = vector.load %arg3[%c0_7, %c0_8] : memref<512x256xbf16, #tpu.memory_space<vmem>>, vector<512x256xbf16>
    %cst_9 = arith.constant dense<0.000000e+00> : vector<256x256xf32>
    %14 = tpu.matmul %12, %13, %cst_9 {dimension_numbers = #tpu.dot_dimension_numbers<[1], [0], [0], [1], [0, 0, 1, 1], [], []>} : vector<256x512xbf16>, vector<512x256xbf16>, vector<256x256xf32> -> vector<256x256xf32>
    %c0_10 = arith.constant 0 : index
    %c512 = arith.constant 512 : index
    %15 = vector.load %arg6[%c0_10, %c512] : memref<1x896xf32, #tpu.memory_space<vmem>>, vector<1x256xf32>
    %16 = vector.broadcast %15 : vector<1x256xf32> to vector<256x256xf32>
    %17 = arith.addf %14, %16 : vector<256x256xf32>
    %cst_11 = arith.constant 0.000000e+00 : f32
    %18 = vector.broadcast %cst_11 : f32 to vector<256x256xf32>
    %19 = arith.cmpf ogt, %17, %18 : vector<256x256xf32>
    %cst_12 = arith.constant 1.000000e-01 : f32
    %20 = vector.broadcast %cst_12 : f32 to vector<256x256xf32>
    %21 = arith.mulf %20, %17 : vector<256x256xf32>
    %22 = arith.select %19, %17, %21 : vector<256x256xi1>, vector<256x256xf32>
    %23 = arith.truncf %22 : vector<256x256xf32> to vector<256x256xbf16>
    %c0_13 = arith.constant 0 : index
    %c0_14 = arith.constant 0 : index
    %24 = vector.load %arg4[%c0_13, %c0_14] : memref<256x128xbf16, #tpu.memory_space<vmem>>, vector<256x128xbf16>
    %cst_15 = arith.constant dense<0.000000e+00> : vector<256x128xf32>
    %25 = tpu.matmul %23, %24, %cst_15 {dimension_numbers = #tpu.dot_dimension_numbers<[1], [0], [0], [1], [0, 0, 1, 1], [], []>} : vector<256x256xbf16>, vector<256x128xbf16>, vector<256x128xf32> -> vector<256x128xf32>
    %c0_16 = arith.constant 0 : index
    %c768 = arith.constant 768 : index
    %26 = vector.load %arg6[%c0_16, %c768] : memref<1x896xf32, #tpu.memory_space<vmem>>, vector<1x128xf32>
    %27 = vector.broadcast %26 : vector<1x128xf32> to vector<256x128xf32>
    %28 = arith.addf %25, %27 : vector<256x128xf32>
    %cst_17 = arith.constant 0.000000e+00 : f32
    %29 = vector.broadcast %cst_17 : f32 to vector<256x128xf32>
    %30 = arith.cmpf ogt, %28, %29 : vector<256x128xf32>
    %cst_18 = arith.constant 1.000000e-01 : f32
    %31 = vector.broadcast %cst_18 : f32 to vector<256x128xf32>
    %32 = arith.mulf %31, %28 : vector<256x128xf32>
    %33 = arith.select %30, %28, %32 : vector<256x128xi1>, vector<256x128xf32>
    %c0_19 = arith.constant 0 : index
    %c0_20 = arith.constant 0 : index
    %34 = vector.load %arg5[%c0_19, %c0_20] : memref<1x128xf32, #tpu.memory_space<vmem>>, vector<1x128xf32>
    %35 = vector.broadcast %34 : vector<1x128xf32> to vector<256x128xf32>
    %36 = arith.mulf %33, %35 : vector<256x128xf32>
    %cst_21 = arith.constant dense<0.000000e+00> : vector<256xf32>
    %37 = vector.multi_reduction <add>, %36, %cst_21 [1] : vector<256x128xf32> to vector<256xf32>
    %38 = vector.shape_cast %37 : vector<256xf32> to vector<256x1xf32>
    %c0_22 = arith.constant 0 : index
    %39 = memref.load %arg7[%c0_22] : memref<1xf32, #tpu.memory_space<smem>>
    %40 = vector.broadcast %39 : f32 to vector<256x1xf32>
    %41 = arith.addf %38, %40 : vector<256x1xf32>
    %c0_23 = arith.constant 0 : index
    %c0_24 = arith.constant 0 : index
    %42 = vector.load %arg8[%c0_23, %c0_24] : memref<256x1xf32, #tpu.memory_space<vmem>>, vector<256x1xf32>
    tpu.vector_store %arg8[%c0_23, %c0_24], %41 {strides = array<i32>} : memref<256x1xf32, #tpu.memory_space<vmem>>, vector<256x1xf32>,
    return
  }
  func.func @transform_0(%arg0: i32) -> (i32, i32) {
    %c0_i32 = arith.constant 0 : i32
    %c0_i32_0 = arith.constant 0 : i32
    return %arg0, %c0_i32 : i32, i32
  }
  func.func @transform_1(%arg0: i32) -> (i32, i32) {
    %c0_i32 = arith.constant 0 : i32
    %c0_i32_0 = arith.constant 0 : i32
    %c0_i32_1 = arith.constant 0 : i32
    return %c0_i32, %c0_i32_0 : i32, i32
  }
  func.func @transform_2(%arg0: i32) -> (i32, i32) {
    %c0_i32 = arith.constant 0 : i32
    %c0_i32_0 = arith.constant 0 : i32
    %c0_i32_1 = arith.constant 0 : i32
    return %c0_i32, %c0_i32_0 : i32, i32
  }
  func.func @transform_3(%arg0: i32) -> (i32, i32) {
    %c0_i32 = arith.constant 0 : i32
    %c0_i32_0 = arith.constant 0 : i32
    %c0_i32_1 = arith.constant 0 : i32
    return %c0_i32, %c0_i32_0 : i32, i32
  }
  func.func @transform_4(%arg0: i32) -> (i32, i32) {
    %c0_i32 = arith.constant 0 : i32
    %c0_i32_0 = arith.constant 0 : i32
    %c0_i32_1 = arith.constant 0 : i32
    return %c0_i32, %c0_i32_0 : i32, i32
  }
  func.func @transform_5(%arg0: i32) -> (i32, i32) {
    %c0_i32 = arith.constant 0 : i32
    %c0_i32_0 = arith.constant 0 : i32
    %c0_i32_1 = arith.constant 0 : i32
    return %c0_i32, %c0_i32_0 : i32, i32
  }
  func.func @transform_6(%arg0: i32) -> i32 {
    %c0_i32 = arith.constant 0 : i32
    %c0_i32_0 = arith.constant 0 : i32
    return %c0_i32 : i32
  }
  func.func @transform_7(%arg0: i32) -> (i32, i32) {
    %c0_i32 = arith.constant 0 : i32
    %c0_i32_0 = arith.constant 0 : i32
    return %arg0, %c0_i32 : i32, i32
  }
}

</mosaic_0001>

<bundles_post_ra>
// kernel: discriminator_forward.1
= control target key start
LH: loop header
LB: loop body
LE: loop exit
PB: predicated region body
PF: predicated region fallthrough
CT: control target
= control target key end

     0   :  { %vm1550_vm0 = vcmask 130048   ;;  %s12683_s1 = inlined_call_operand.vmem [shape: bf16[784,512], index: 1, kind: input, shape index: {}]   ;;  %s12684_s5 = inlined_call_operand.vmem [shape: f32[1,896], index: 5, kind: input, shape index: {}]   ;;  %s12685_s0 = inlined_call_operand.vmem [shape: f32[256,784], index: 0, kind: input, shape index: {}]   ;;  %s12686_s2 = inlined_call_operand.vmem [shape: bf16[512,256], index: 2, kind: input, shape index: {}]   ;;  %s12687_s3 = inlined_call_operand.vmem [shape: bf16[256,128], index: 3, kind: input, shape index: {}]   ;;  %s12688_s4 = inlined_call_operand.vmem [shape: f32[1,128], index: 4, kind: input, shape index: {}]   ;;  %s12689_s6 = inlined_call_operand.<no memory space> [shape: f32[1], index: 6, kind: input, shape index: {}]   ;;  %s12690_s7 = inlined_call_operand.vmem [shape: f32[256,1], index: 7, kind: output, shape index: {}]  }
   0x1   :  { %v6556_v0 = vld [vmem:[%s12683_s1 + $0xe0] sm:$0xf]  ;;  %v7640_v1 = vld [vmem:[%s12683_s1 + $0xec] sm:$0xf0]  ;;  %v35_v47 = vld [vmem:[%s12685_s0 + $0x38] sm:$0xff] }
   0x2   :  { %v6684_v2 = vld [vmem:[%s12683_s1 + $0x1e0] sm:$0xf]  ;;  %v6557_v3 = vor.u32 %v7640_v1, %v6556_v0  ;;  %v7672_v4 = vld [vmem:[%s12683_s1 + $0x1ec] sm:$0xf0]  ;;  %v147_v54 = vld [vmem:[%s12685_s0 + $0x3b8] sm:$0xff] }
   0x3   :  { %v6540_v5 = vld [vmem:[%s12683_s1 + $0xc0] sm:$0xf]  ;;  %v7636_v6 = vld [vmem:[%s12683_s1 + $0xcc] sm:$0xf0]  ;;  %v6685_v7 = vor.u32 %v7672_v4, %v6684_v2  ;;  %v29_v55 = vld [vmem:[%s12685_s0 + $0x8] sm:$0xff] }
   0x4   :  { %v6668_v8 = vld [vmem:[%s12683_s1 + $0x1c0] sm:$0xf]  ;;  %v7668_v9 = vld [vmem:[%s12683_s1 + $0x1cc] sm:$0xf0]  ;;  %1599 = vmatpush.bf16.msra.mxu0 %v6557_v3  ;;  %7886 = vmatpush.bf16.msra.mxu2 %v6557_v3  ;;  %v6541_v10 = vor.u32 %v7636_v6, %v6540_v5  ;;  %v141_v58 = vld [vmem:[%s12685_s0 + $0x388] sm:$0xff] }
   0x5   :  { %1688 = vmatpush.bf16.msra.mxu1 %v6685_v7  ;;  %7894 = vmatpush.bf16.msra.mxu3 %v6685_v7  ;;  %v6669_v11 = vor.u32 %v7668_v9, %v6668_v8  ;;  %v6524_v12 = vld [vmem:[%s12683_s1 + $0xa0] sm:$0xf]  ;;  %v7632_v13 = vld [vmem:[%s12683_s1 + $0xac] sm:$0xf0] }
   0x6   :  { %v6652_v14 = vld [vmem:[%s12683_s1 + $0x1a0] sm:$0xf]  ;;  %v7664_v15 = vld [vmem:[%s12683_s1 + $0x1ac] sm:$0xf0]  ;;  %v6525_v16 = vor.u32 %v7632_v13, %v6524_v12 }
   0x7   :  { %v6653_v17 = vor.u32 %v7664_v15, %v6652_v14  ;;  %v6508_v18 = vld [vmem:[%s12683_s1 + $0x80] sm:$0xf]  ;;  %v7628_v19 = vld [vmem:[%s12683_s1 + $0x8c] sm:$0xf0]  ;;  %v49_v15 = vld [vmem:[%s12685_s0 + $0xa8] sm:$0xff] }
   0x8   :  { %1600 = vmatpush.bf16.msra.mxu0 %v6541_v10  ;;  %7887 = vmatpush.bf16.msra.mxu2 %v6541_v10  ;;  %v6636_v20 = vld [vmem:[%s12683_s1 + $0x180] sm:$0xf]  ;;  %v7660_v21 = vld [vmem:[%s12683_s1 + $0x18c] sm:$0xf0]  ;;  %v6509_v22 = vor.u32 %v7628_v19, %v6508_v18  ;;  %v43_v18 = vld [vmem:[%s12685_s0 + $0x78] sm:$0xff] }
   0x9   :  { %1689 = vmatpush.bf16.msra.mxu1 %v6669_v11  ;;  %7895 = vmatpush.bf16.msra.mxu3 %v6669_v11  ;;  %v6637_v23 = vor.u32 %v7660_v21, %v6636_v20  ;;  %v6492_v24 = vld [vmem:[%s12683_s1 + $0x60] sm:$0xf]  ;;  %v7624_v25 = vld [vmem:[%s12683_s1 + $0x6c] sm:$0xf0]  ;;  %v155_v20 = vld [vmem:[%s12685_s0 + $0x3f8] sm:$0xff] }
   0xa   :  { %v6620_v26 = vld [vmem:[%s12683_s1 + $0x160] sm:$0xf]  ;;  %v7656_v27 = vld [vmem:[%s12683_s1 + $0x16c] sm:$0xf0]  ;;  %v6493_v28 = vor.u32 %v7624_v25, %v6492_v24 }
   0xb   :  { %v6621_v29 = vor.u32 %v7656_v27, %v6620_v26  ;;  %v6476_v30 = vld [vmem:[%s12683_s1 + $0x40] sm:$0xf]  ;;  %v7620_v31 = vld [vmem:[%s12683_s1 + $0x4c] sm:$0xf0] }
   0xc   :  { %1601 = vmatpush.bf16.msra.mxu0 %v6525_v16  ;;  %7888 = vmatpush.bf16.msra.mxu2 %v6525_v16  ;;  %v6604_v32 = vld [vmem:[%s12683_s1 + $0x140] sm:$0xf]  ;;  %v7652_v33 = vld [vmem:[%s12683_s1 + $0x14c] sm:$0xf0]  ;;  %v6477_v34 = vor.u32 %v7620_v31, %v6476_v30 }
   0xd   :  { %1690 = vmatpush.bf16.msra.mxu1 %v6653_v17  ;;  %7896 = vmatpush.bf16.msra.mxu3 %v6653_v17  ;;  %v6605_v35 = vor.u32 %v7652_v33, %v6604_v32  ;;  %v6460_v36 = vld [vmem:[%s12683_s1 + $0x20] sm:$0xf]  ;;  %v7616_v37 = vld [vmem:[%s12683_s1 + $0x2c] sm:$0xf0]  ;;  %v161_v17 = vld [vmem:[%s12685_s0 + $0x428] sm:$0xff] }
   0xe   :  { %v6588_v38 = vld [vmem:[%s12683_s1 + $0x120] sm:$0xf]  ;;  %v7648_v39 = vld [vmem:[%s12683_s1 + $0x12c] sm:$0xf0]  ;;  %v6461_v40 = vor.u32 %v7616_v37, %v6460_v36  ;;  %v63_v33 = vld [vmem:[%s12685_s0 + $0x118] sm:$0xff] }
   0xf   :  { %v6444_v41 = vld [vmem:[%s12683_s1] sm:$0xf]  ;;  %v6589_v42 = vor.u32 %v7648_v39, %v6588_v38  ;;  %v7612_v43 = vld [vmem:[%s12683_s1 + $0xc] sm:$0xf0]  ;;  %v57_v36 = vld [vmem:[%s12685_s0 + $0xe8] sm:$0xff] }
  0x10   :  { %1602 = vmatpush.bf16.msra.mxu0 %v6509_v22  ;;  %7889 = vmatpush.bf16.msra.mxu2 %v6509_v22  ;;  %v6572_v44 = vld [vmem:[%s12683_s1 + $0x100] sm:$0xf]  ;;  %v7644_v45 = vld [vmem:[%s12683_s1 + $0x10c] sm:$0xf0]  ;;  %v6445_v52 = vor.u32 %v7612_v43, %v6444_v41  ;;  %v169_v38 = vld [vmem:[%s12685_s0 + $0x468] sm:$0xff] }
  0x11   :  { %1691 = vmatpush.bf16.msra.mxu1 %v6637_v23  ;;  %7897 = vmatpush.bf16.msra.mxu3 %v6637_v23  ;;  %v28_v46 = vld [vmem:[%s12685_s0] sm:$0xff]  ;;  %v7704_v49 = vld [vmem:[%s12683_s1 + $0x2ec] sm:$0xf0]  ;;  %v6573_v56 = vor.u32 %v7644_v45, %v6572_v44 }
  0x12   :  { %v6812_v48 = vld [vmem:[%s12683_s1 + $0x2e0] sm:$0xf]  ;;  %v7736_v51 = vld [vmem:[%s12683_s1 + $0x3ec] sm:$0xf0]  ;;  %v8083_v63 = vpack.c.bf16 %v35_v47, %v28_v46 }
  0x13   :  { %v6940_v50 = vld [vmem:[%s12683_s1 + $0x3e0] sm:$0xf]  ;;  %v6813_v60 = vor.u32 %v7704_v49, %v6812_v48  ;;  %v7700_v1 = vld [vmem:[%s12683_s1 + $0x2cc] sm:$0xf0] }
  0x14   :  { %1603 = vmatpush.bf16.msra.mxu0 %v6493_v28  ;;  %7890 = vmatpush.bf16.msra.mxu2 %v6493_v28  ;;  %v140_v53 = vld [vmem:[%s12685_s0 + $0x380] sm:$0xff]  ;;  %v6941_v61 = vor.u32 %v7736_v51, %v6940_v50  ;;  %12984 = vst [vmem:[#allocation3_spill] sm:$0xff] %v8083_v63  ;;  %v7732_v3 = vld [vmem:[%s12683_s1 + $0x3cc] sm:$0xf0]  ;;  %v77_v51 = vld [vmem:[%s12685_s0 + $0x188] sm:$0xff] }
  0x15   :  { %1692 = vmatpush.bf16.msra.mxu1 %v6621_v29  ;;  %7898 = vmatpush.bf16.msra.mxu3 %v6621_v29  ;;  %v36_v57 = vld [vmem:[%s12685_s0 + $0x40] sm:$0xff]  ;;  %v8085_v0 = vpack.c.bf16 %v147_v54, %v140_v53  ;;  %v7696_v9 = vld [vmem:[%s12683_s1 + $0x2ac] sm:$0xf0]  ;;  %v189_v53 = vld [vmem:[%s12685_s0 + $0x508] sm:$0xff] }
  0x16   :  { %v148_v59 = vld [vmem:[%s12685_s0 + $0x3c0] sm:$0xff]  ;;  %v8096_v4 = vpack.c.bf16 %v36_v57, %v29_v55  ;;  %v7728_v11 = vld [vmem:[%s12683_s1 + $0x3ac] sm:$0xf0]  ;;  %v71_v54 = vld [vmem:[%s12685_s0 + $0x158] sm:$0xff] }
  0x17   :  { %v6796_v62 = vld [vmem:[%s12683_s1 + $0x2c0] sm:$0xf]  ;;  %12985 = vst [vmem:[#allocation4_spill] sm:$0xff] %v8085_v0  ;;  %v8098_v5 = vpack.c.bf16 %v148_v59, %v141_v58  ;;  %v42_v14 = vld [vmem:[%s12685_s0 + $0x70] sm:$0xff] }
  0x18   :  { %1604 = vmatpush.bf16.msra.mxu0 %v6477_v34  ;;  %7891 = vmatpush.bf16.msra.mxu2 %v6477_v34  ;;  %v6924_v2 = vld [vmem:[%s12683_s1 + $0x3c0] sm:$0xf]  ;;  %12986 = vst [vmem:[#allocation5_spill] sm:$0xff] %v8096_v4  ;;  %v6797_v6 = vor.u32 %v7700_v1, %v6796_v62  ;;  %v154_v16 = vld [vmem:[%s12685_s0 + $0x3f0] sm:$0xff]  ;;  %v8140_v22 = vpack.c.bf16 %v49_v15, %v42_v14  ;;  %v197_v14 = vld [vmem:[%s12685_s0 + $0x548] sm:$0xff] }
  0x19   :  { %1693 = vmatpush.bf16.msra.mxu1 %v6605_v35  ;;  %7899 = vmatpush.bf16.msra.mxu3 %v6605_v35  ;;  %12987 = vst [vmem:[#allocation6_spill] sm:$0xff] %v8098_v5  ;;  %v6925_v7 = vor.u32 %v7732_v3, %v6924_v2  ;;  %v6780_v8 = vld [vmem:[%s12683_s1 + $0x2a0] sm:$0xf]  ;;  %v50_v19 = vld [vmem:[%s12685_s0 + $0xb0] sm:$0xff]  ;;  %v8142_v23 = vpack.c.bf16 %v161_v17, %v154_v16  ;;  %v175_v35 = vld [vmem:[%s12685_s0 + $0x498] sm:$0xff] }
  0x1a   :  { %v6908_v10 = vld [vmem:[%s12683_s1 + $0x3a0] sm:$0xf]  ;;  %v6781_v12 = vor.u32 %v7696_v9, %v6780_v8  ;;  %v162_v21 = vld [vmem:[%s12685_s0 + $0x430] sm:$0xff]  ;;  %12988 = vst [vmem:[#allocation7_spill] sm:$0xff] %v8140_v22  ;;  %v8144_v24 = vpack.c.bf16 %v50_v19, %v43_v18  ;;  %v91_v9 = vld [vmem:[%s12685_s0 + $0x1f8] sm:$0xff] }
  0x1b   :  { %v6909_v13 = vor.u32 %v7728_v11, %v6908_v10  ;;  %12989 = vst [vmem:[#allocation8_spill] sm:$0xff] %v8142_v23  ;;  %v8146_v25 = vpack.c.bf16 %v162_v21, %v155_v20  ;;  %v6764_v26 = vld [vmem:[%s12683_s1 + $0x280] sm:$0xf]  ;;  %v7692_v27 = vld [vmem:[%s12683_s1 + $0x28c] sm:$0xf0]  ;;  %v203_v11 = vld [vmem:[%s12685_s0 + $0x578] sm:$0xff] }
  0x1c   :  { %1605 = vmatpush.bf16.msra.mxu0 %v6461_v40  ;;  %7892 = vmatpush.bf16.msra.mxu2 %v6461_v40  ;;  %12990 = vst [vmem:[#allocation9_spill] sm:$0xff] %v8144_v24  ;;  %v6892_v28 = vld [vmem:[%s12683_s1 + $0x380] sm:$0xf]  ;;  %v6765_v29 = vor.u32 %v7692_v27, %v6764_v26  ;;  %v7724_v30 = vld [vmem:[%s12683_s1 + $0x38c] sm:$0xf0] }
  0x1d   :  { %1694 = vmatpush.bf16.msra.mxu1 %v6589_v42  ;;  %7900 = vmatpush.bf16.msra.mxu3 %v6589_v42  ;;  %12991 = vst [vmem:[#allocation10_spill] sm:$0xff] %v8146_v25  ;;  %v6893_v31 = vor.u32 %v7724_v30, %v6892_v28  ;;  %v56_v32 = vld [vmem:[%s12685_s0 + $0xe0] sm:$0xff]  ;;  %v7688_v45 = vld [vmem:[%s12683_s1 + $0x26c] sm:$0xf0] }
  0x1e   :  { %v168_v34 = vld [vmem:[%s12685_s0 + $0x460] sm:$0xff]  ;;  %v8188_v40 = vpack.c.bf16 %v63_v33, %v56_v32  ;;  %v7720_v48 = vld [vmem:[%s12683_s1 + $0x36c] sm:$0xf0] }
  0x1f   :  { %v64_v37 = vld [vmem:[%s12685_s0 + $0x120] sm:$0xff]  ;;  %v8190_v41 = vpack.c.bf16 %v175_v35, %v168_v34  ;;  %v70_v50 = vld [vmem:[%s12685_s0 + $0x150] sm:$0xff] }
  0x20   :  { %1606 = vmatpush.bf16.msra.mxu0 %v6445_v52  ;;  %7893 = vmatpush.bf16.msra.mxu2 %v6445_v52  ;;  %v176_v39 = vld [vmem:[%s12685_s0 + $0x4a0] sm:$0xff]  ;;  %12992 = vst [vmem:[#allocation11_spill] sm:$0xff] %v8188_v40  ;;  %v8192_v42 = vpack.c.bf16 %v64_v37, %v57_v36  ;;  %v182_v52 = vld [vmem:[%s12685_s0 + $0x4d0] sm:$0xff]  ;;  %v8236_v58 = vpack.c.bf16 %v77_v51, %v70_v50 }
  0x21   :  { %1695 = vmatpush.bf16.msra.mxu1 %v6573_v56  ;;  %7901 = vmatpush.bf16.msra.mxu3 %v6573_v56  ;;  %12993 = vst [vmem:[#allocation12_spill] sm:$0xff] %v8190_v41  ;;  %v8194_v43 = vpack.c.bf16 %v176_v39, %v169_v38  ;;  %v6748_v44 = vld [vmem:[%s12683_s1 + $0x260] sm:$0xf]  ;;  %v78_v55 = vld [vmem:[%s12685_s0 + $0x190] sm:$0xff]  ;;  %v183_v56 = vld [vmem:[%s12685_s0 + $0x4d8] sm:$0xff]  ;;  %v8238_v59 = vpack.c.bf16 %v189_v53, %v182_v52 }
  0x22   :  { %12994 = vst [vmem:[#allocation13_spill] sm:$0xff] %v8192_v42  ;;  %v6876_v46 = vld [vmem:[%s12683_s1 + $0x360] sm:$0xf]  ;;  %v6749_v47 = vor.u32 %v7688_v45, %v6748_v44  ;;  %v190_v57 = vld [vmem:[%s12685_s0 + $0x510] sm:$0xff]  ;;  %v105_v52 = vld [vmem:[%s12685_s0 + $0x268] sm:$0xff] }
  0x23   :  { %1607 = vmatmul.bf16.vlgmr.msra.gmra.mxu0 %v8083_v63  ;;  %1647 = vmatmul.bf16.vlgmr.msra.gmra.mxu2 %v8085_v0  ;;  %12995 = vst [vmem:[#allocation14_spill] sm:$0xff] %v8194_v43  ;;  %v6877_v49 = vor.u32 %v7720_v48, %v6876_v46  ;;  %v6732_v62 = vld [vmem:[%s12683_s1 + $0x240] sm:$0xf]  ;;  %v7684_v1 = vld [vmem:[%s12683_s1 + $0x24c] sm:$0xf0] }
  0x24   :  { %1777 = vmatpush.bf16.msrb.mxu2 %v6813_v60  ;;  %1696 = vmatmul.bf16.vlgmr.msra.gmra.mxu1 %v8096_v4  ;;  %12996 = vst [vmem:[#allocation15_spill] sm:$0xff] %v8236_v58  ;;  %v8240_v60 = vpack.c.bf16 %v78_v55, %v71_v54  ;;  %v6860_v2 = vld [vmem:[%s12683_s1 + $0x340] sm:$0xf]  ;;  %v6733_v3 = vor.u32 %v7684_v1, %v6732_v62  ;;  %v7768_v21 = vld [vmem:[%s12683_s1 + $0x4ec] sm:$0xf0]  ;;  %v99_v62 = vld [vmem:[%s12685_s0 + $0x238] sm:$0xff] }
  0x25   :  { %1866 = vmatpush.bf16.msrb.mxu3 %v6941_v61  ;;  %12997 = vst [vmem:[#allocation16_spill] sm:$0xff] %v8238_v59  ;;  %v8242_v61 = vpack.c.bf16 %v190_v57, %v183_v56  ;;  %v84_v8 = vld [vmem:[%s12685_s0 + $0x1c0] sm:$0xff]  ;;  %v7680_v28 = vld [vmem:[%s12683_s1 + $0x22c] sm:$0xf0]  ;;  %v217_v57 = vld [vmem:[%s12685_s0 + $0x5e8] sm:$0xff] }
  0x26   :  { %1736 = vmatmul.bf16.vlgmr.msra.gmra.mxu3 %v8098_v5  ;;  %12998 = vst [vmem:[#allocation17_spill] sm:$0xff] %v8240_v60  ;;  %v196_v10 = vld [vmem:[%s12685_s0 + $0x540] sm:$0xff]  ;;  %v8284_v16 = vpack.c.bf16 %v91_v9, %v84_v8  ;;  %v7800_v30 = vld [vmem:[%s12683_s1 + $0x5ec] sm:$0xf0] }
  0x27   :  { %12999 = vst [vmem:[#allocation18_spill] sm:$0xff] %v8242_v61  ;;  %v204_v15 = vld [vmem:[%s12685_s0 + $0x580] sm:$0xff]  ;;  %v8286_v17 = vpack.c.bf16 %v203_v11, %v196_v10  ;;  %v7712_v34 = vld [vmem:[%s12683_s1 + $0x32c] sm:$0xf0] }
  0x28   :  { %1778 = vmatpush.bf16.msrb.mxu2 %v6797_v6  ;;  %v7716_v6 = vld [vmem:[%s12683_s1 + $0x34c] sm:$0xf0]  ;;  %13000 = vst [vmem:[#allocation19_spill] sm:$0xff] %v8284_v16  ;;  %v8290_v19 = vpack.c.bf16 %v204_v15, %v197_v14  ;;  %v7068_v20 = vld [vmem:[%s12683_s1 + $0x4e0] sm:$0xf] }
  0x29   :  { %1867 = vmatpush.bf16.msrb.mxu3 %v6925_v7  ;;  %v6861_v7 = vor.u32 %v7716_v6, %v6860_v2  ;;  %13001 = vst [vmem:[#allocation20_spill] sm:$0xff] %v8286_v17  ;;  %v7196_v26 = vld [vmem:[%s12683_s1 + $0x5e0] sm:$0xf]  ;;  %v7764_v37 = vld [vmem:[%s12683_s1 + $0x4cc] sm:$0xf0]  ;;  %v211_v2 = vld [vmem:[%s12685_s0 + $0x5b8] sm:$0xff] }
  0x2a   :  { %13003 = vst [vmem:[#allocation22_spill] sm:$0xff] %v8290_v19  ;;  %v6716_v27 = vld [vmem:[%s12683_s1 + $0x220] sm:$0xf]  ;;  %v7197_v32 = vor.u32 %v7800_v30, %v7196_v26  ;;  %v7796_v39 = vld [vmem:[%s12683_s1 + $0x5cc] sm:$0xf0] }
  0x2b   :  { %v6844_v33 = vld [vmem:[%s12683_s1 + $0x320] sm:$0xf]  ;;  %v98_v50 = vld [vmem:[%s12685_s0 + $0x230] sm:$0xff] }
  0x2c   :  { %1779 = vmatpush.bf16.msrb.mxu2 %v6781_v12  ;;  %v85_v12 = vld [vmem:[%s12685_s0 + $0x1c8] sm:$0xff]  ;;  %v7052_v35 = vld [vmem:[%s12683_s1 + $0x4c0] sm:$0xf]  ;;  %v6845_v36 = vor.u32 %v7712_v34, %v6844_v33  ;;  %2044 = vmatpush.bf16.msrb.mxu1 %v7197_v32  ;;  %v7756_v55 = vld [vmem:[%s12683_s1 + $0x48c] sm:$0xf0]  ;;  %v8380_v9 = vpack.c.bf16 %v105_v52, %v98_v50 }
  0x2d   :  { %1868 = vmatpush.bf16.msrb.mxu3 %v6909_v13  ;;  %v92_v13 = vld [vmem:[%s12685_s0 + $0x200] sm:$0xff]  ;;  %v7053_v44 = vor.u32 %v7764_v37, %v7052_v35  ;;  %v210_v56 = vld [vmem:[%s12685_s0 + $0x5b0] sm:$0xff]  ;;  %v119_v50 = vld [vmem:[%s12685_s0 + $0x2d8] sm:$0xff] }
  0x2e   :  { %v8288_v18 = vpack.c.bf16 %v92_v13, %v85_v12  ;;  %v7180_v38 = vld [vmem:[%s12683_s1 + $0x5c0] sm:$0xf]  ;;  %v106_v1 = vld [vmem:[%s12685_s0 + $0x270] sm:$0xff]  ;;  %13004 = vst [vmem:[#allocation23_spill] sm:$0xff] %v8380_v9  ;;  %v8382_v10 = vpack.c.bf16 %v217_v57, %v210_v56  ;;  %v231_v52 = vld [vmem:[%s12685_s0 + $0x658] sm:$0xff] }
  0x2f   :  { %v7181_v45 = vor.u32 %v7796_v39, %v7180_v38  ;;  %v7036_v46 = vld [vmem:[%s12683_s1 + $0x4a0] sm:$0xf]  ;;  %v7788_v8 = vld [vmem:[%s12683_s1 + $0x58c] sm:$0xf0]  ;;  %v8384_v11 = vpack.c.bf16 %v106_v1, %v99_v62 }
  0x30   :  { %1780 = vmatpush.bf16.msrb.mxu2 %v6765_v29  ;;  %13002 = vst [vmem:[#allocation21_spill] sm:$0xff] %v8288_v18  ;;  %v7069_v29 = vor.u32 %v7768_v21, %v7068_v20  ;;  %v7164_v48 = vld [vmem:[%s12683_s1 + $0x5a0] sm:$0xf]  ;;  %v7752_v15 = vld [vmem:[%s12683_s1 + $0x46c] sm:$0xf0] }
  0x31   :  { %1869 = vmatpush.bf16.msrb.mxu3 %v6893_v31  ;;  %v6717_v31 = vor.u32 %v7680_v28, %v6716_v27  ;;  %2045 = vmatpush.bf16.msrb.mxu1 %v7181_v45  ;;  %v7020_v54 = vld [vmem:[%s12683_s1 + $0x480] sm:$0xf]  ;;  %13005 = vst [vmem:[#allocation24_spill] sm:$0xff] %v8382_v10  ;;  %v7676_v26 = vld [vmem:[%s12683_s1 + $0x20c] sm:$0xf0] }
  0x32   :  { %1955 = vmatpush.bf16.msrb.mxu0 %v7069_v29  ;;  %v7021_v6 = vor.u32 %v7756_v55, %v7020_v54  ;;  %13006 = vst [vmem:[#allocation25_spill] sm:$0xff] %v8384_v11  ;;  %v7004_v14 = vld [vmem:[%s12683_s1 + $0x460] sm:$0xf]  ;;  %v7784_v28 = vld [vmem:[%s12683_s1 + $0x56c] sm:$0xf0]  ;;  %v225_v55 = vld [vmem:[%s12685_s0 + $0x628] sm:$0xff] }
  0x33   :  { %1612 = vmatmul.bf16.gmra.mxu0 %v8140_v22  ;;  %1652 = vmatmul.bf16.gmra.mxu2 %v8142_v23  ;;  %v7132_v20 = vld [vmem:[%s12683_s1 + $0x560] sm:$0xf]  ;;  %v7005_v27 = vor.u32 %v7752_v15, %v7004_v14  ;;  %v7708_v32 = vld [vmem:[%s12683_s1 + $0x30c] sm:$0xf0] }
  0x34   :  { %1701 = vmatmul.bf16.gmra.mxu1 %v8144_v24  ;;  %1781 = vmatpush.bf16.msrb.mxu2 %v6749_v47  ;;  %v7760_v47 = vld [vmem:[%s12683_s1 + $0x4ac] sm:$0xf0]  ;;  %v6700_v21 = vld [vmem:[%s12683_s1 + $0x200] sm:$0xf]  ;;  %v7133_v30 = vor.u32 %v7784_v28, %v7132_v20  ;;  %v6558_v28 = vld [vmem:[%s12683_s1 + $0xf0] sm:$0xf0] }
  0x35   :  { %1870 = vmatpush.bf16.msrb.mxu3 %v6877_v49  ;;  %v7792_v49 = vld [vmem:[%s12683_s1 + $0x5ac] sm:$0xf0]  ;;  %v7037_v51 = vor.u32 %v7760_v47, %v7036_v46  ;;  %v6701_v29 = vor.u32 %v7676_v26, %v6700_v21  ;;  %v6988_v33 = vld [vmem:[%s12683_s1 + $0x440] sm:$0xf]  ;;  %v7638_v26 = vld [vmem:[%s12683_s1 + $0xe4] sm:$0xf] }
  0x36   :  { %1741 = vmatmul.bf16.gmra.mxu3 %v8146_v25  ;;  %1956 = vmatpush.bf16.msrb.mxu0 %v7053_v44  ;;  %v7165_v53 = vor.u32 %v7792_v49, %v7164_v48  ;;  %v7748_v35 = vld [vmem:[%s12683_s1 + $0x44c] sm:$0xf0]  ;;  %v6972_v39 = vld [vmem:[%s12683_s1 + $0x420] sm:$0xf] }
  0x37   :  { %v7780_v37 = vld [vmem:[%s12683_s1 + $0x54c] sm:$0xf0]  ;;  %v6989_v38 = vor.u32 %v7748_v35, %v6988_v33  ;;  %v7100_v47 = vld [vmem:[%s12683_s1 + $0x520] sm:$0xf]  ;;  %v245_v33 = vld [vmem:[%s12685_s0 + $0x6c8] sm:$0xff] }
  0x38   :  { %1782 = vmatpush.bf16.msrb.mxu2 %v6733_v3  ;;  %v218_v3 = vld [vmem:[%s12685_s0 + $0x5f0] sm:$0xff]  ;;  %2046 = vmatpush.bf16.msrb.mxu1 %v7165_v53  ;;  %v112_v49 = vld [vmem:[%s12685_s0 + $0x2a0] sm:$0xff]  ;;  %v113_v53 = vld [vmem:[%s12685_s0 + $0x2a8] sm:$0xff] }
  0x39   :  { %1871 = vmatpush.bf16.msrb.mxu3 %v6861_v7  ;;  %v7148_v7 = vld [vmem:[%s12683_s1 + $0x580] sm:$0xf]  ;;  %v8386_v12 = vpack.c.bf16 %v218_v3, %v211_v2  ;;  %v7744_v44 = vld [vmem:[%s12683_s1 + $0x42c] sm:$0xf0]  ;;  %v8473_v3 = vpack.c.bf16 %v119_v50, %v112_v49  ;;  %v31_v49 = vld [vmem:[%s12685_s0 + $0x18] sm:$0xff] }
  0x3a   :  { %1957 = vmatpush.bf16.msrb.mxu0 %v7037_v51  ;;  %v7149_v13 = vor.u32 %v7788_v8, %v7148_v7  ;;  %v6973_v46 = vor.u32 %v7744_v44, %v6972_v39  ;;  %v7776_v48 = vld [vmem:[%s12683_s1 + $0x52c] sm:$0xf0]  ;;  %v224_v51 = vld [vmem:[%s12685_s0 + $0x620] sm:$0xff] }
  0x3b   :  { %13007 = vst [vmem:[#allocation26_spill] sm:$0xff] %v8386_v12  ;;  %v120_v54 = vld [vmem:[%s12685_s0 + $0x2e0] sm:$0xff]  ;;  %v7101_v57 = vor.u32 %v7776_v48, %v7100_v47  ;;  %v7740_v1 = vld [vmem:[%s12683_s1 + $0x40c] sm:$0xf0]  ;;  %v37_v48 = vld [vmem:[%s12685_s0 + $0x48] sm:$0xff] }
  0x3c   :  { %1783 = vmatpush.bf16.msrb.mxu2 %v6717_v31  ;;  %2047 = vmatpush.bf16.msrb.mxu1 %v7149_v13  ;;  %v6828_v31 = vld [vmem:[%s12683_s1 + $0x300] sm:$0xf]  ;;  %13008 = vst [vmem:[#allocation27_spill] sm:$0xff] %v8473_v3  ;;  %v7772_v8 = vld [vmem:[%s12683_s1 + $0x50c] sm:$0xf0]  ;;  %v8480_v13 = vpack.c.bf16 %v120_v54, %v113_v53  ;;  %v33_v53 = vld [vmem:[%s12685_s0 + $0x28] sm:$0xff] }
  0x3d   :  { %1872 = vmatpush.bf16.msrb.mxu3 %v6845_v36  ;;  %v6829_v34 = vor.u32 %v7708_v32, %v6828_v31  ;;  %v7116_v36 = vld [vmem:[%s12683_s1 + $0x540] sm:$0xf]  ;;  %v7804_v21 = vld [vmem:[%s12683_s1 + $0x60c] sm:$0xf0]  ;;  %v133_v31 = vld [vmem:[%s12685_s0 + $0x348] sm:$0xff] }
  0x3e   :  { %1958 = vmatpush.bf16.msrb.mxu0 %v7021_v6  ;;  %v7117_v45 = vor.u32 %v7780_v37, %v7116_v36  ;;  %v232_v56 = vld [vmem:[%s12685_s0 + $0x660] sm:$0xff]  ;;  %v8475_v6 = vpack.c.bf16 %v231_v52, %v224_v51  ;;  %13010 = vst [vmem:[#allocation29_spill] sm:$0xff] %v8480_v13  ;;  %v238_v32 = vld [vmem:[%s12685_s0 + $0x690] sm:$0xff]  ;;  %v239_v36 = vld [vmem:[%s12685_s0 + $0x698] sm:$0xff] }
  0x3f   :  { %v6956_v62 = vld [vmem:[%s12683_s1 + $0x400] sm:$0xf]  ;;  %v8482_v14 = vpack.c.bf16 %v232_v56, %v225_v55  ;;  %v134_v35 = vld [vmem:[%s12685_s0 + $0x350] sm:$0xff]  ;;  %v8526_v39 = vpack.c.bf16 %v245_v33, %v238_v32  ;;  %v39_v51 = vld [vmem:[%s12685_s0 + $0x58] sm:$0xff] }
  0x40   :  { %1784 = vmatpush.bf16.msrb.mxu2 %v6701_v29  ;;  %2048 = vmatpush.bf16.msrb.mxu1 %v7133_v30  ;;  %v7084_v2 = vld [vmem:[%s12683_s1 + $0x500] sm:$0xf]  ;;  %13009 = vst [vmem:[#allocation28_spill] sm:$0xff] %v8475_v6  ;;  %v6957_v7 = vor.u32 %v7740_v1, %v6956_v62  ;;  %v6561_v29 = vor.u32 %v7638_v26, %v6558_v28  ;;  %v126_v30 = vld [vmem:[%s12685_s0 + $0x310] sm:$0xff] }
  0x41   :  { %1873 = vmatpush.bf16.msrb.mxu3 %v6829_v34  ;;  %13011 = vst [vmem:[#allocation30_spill] sm:$0xff] %v8482_v14  ;;  %v7085_v15 = vor.u32 %v7772_v8, %v7084_v2  ;;  %v7212_v20 = vld [vmem:[%s12683_s1 + $0x600] sm:$0xf]  ;;  %v127_v34 = vld [vmem:[%s12685_s0 + $0x318] sm:$0xff]  ;;  %v246_v37 = vld [vmem:[%s12685_s0 + $0x6d0] sm:$0xff] }
  0x42   :  { %1959 = vmatpush.bf16.msrb.mxu0 %v7005_v27  ;;  %v7213_v27 = vor.u32 %v7804_v21, %v7212_v20  ;;  %13013 = vst [vmem:[#allocation32_spill] sm:$0xff] %v8526_v39  ;;  %v8528_v44 = vpack.c.bf16 %v134_v35, %v127_v34  ;;  %v30_v47 = vld [vmem:[%s12685_s0 + $0x10] sm:$0xff]  ;;  %v32_v50 = vld [vmem:[%s12685_s0 + $0x20] sm:$0xff] }
  0x43   :  { %1617 = vmatmul.bf16.gmra.mxu0 %v8188_v40  ;;  %1657 = vmatmul.bf16.gmra.mxu2 %v8190_v41  ;;  %v38_v52 = vld [vmem:[%s12685_s0 + $0x50] sm:$0xff]  ;;  %v40_v54 = vld [vmem:[%s12685_s0 + $0x60] sm:$0xff]  ;;  %v8565_v56 = vpack.c.bf16 %v37_v48, %v30_v47  ;;  %v53_v47 = vld [vmem:[%s12685_s0 + $0xc8] sm:$0xff] }
  0x44   :  { %1706 = vmatmul.bf16.gmra.mxu1 %v8192_v42  ;;  %2140 = vmatpush.bf16.msra.mxu2 %v7213_v27  ;;  %13014 = vst [vmem:[#allocation33_spill] sm:$0xff] %v8528_v44  ;;  %v8569_v1 = vpack.c.bf16 %v38_v52, %v31_v49  ;;  %v8571_v2 = vpack.c.bf16 %v40_v54, %v33_v53  ;;  %v7634_v20 = vld [vmem:[%s12683_s1 + $0xc4] sm:$0xf]  ;;  %v6542_v21 = vld [vmem:[%s12683_s1 + $0xd0] sm:$0xf0]  ;;  %v47_v49 = vld [vmem:[%s12685_s0 + $0x98] sm:$0xff] }
  0x45   :  { %2049 = vmatpush.bf16.msrb.mxu1 %v7117_v45  ;;  %2222 = vmatpush.bf16.msra.mxu3 %v6561_v29  ;;  %v8530_v45 = vpack.c.bf16 %v246_v37, %v239_v36  ;;  %13016 = vst [vmem:[#allocation35_spill] sm:$0xff] %v8565_v56  ;;  %v6545_v26 = vor.u32 %v7634_v20, %v6542_v21  ;;  %v44_v35 = vld [vmem:[%s12685_s0 + $0x80] sm:$0xff]  ;;  %v51_v36 = vld [vmem:[%s12685_s0 + $0xb8] sm:$0xff]  ;;  %v45_v37 = vld [vmem:[%s12685_s0 + $0x88] sm:$0xff] }
  0x46   :  { %1746 = vmatmul.bf16.gmra.mxu3 %v8194_v43  ;;  %1960 = vmatpush.bf16.msrb.mxu0 %v6989_v38  ;;  %v8524_v38 = vpack.c.bf16 %v133_v31, %v126_v30  ;;  %13018 = vst [vmem:[#allocation37_spill] sm:$0xff] %v8569_v1  ;;  %v52_v48 = vld [vmem:[%s12685_s0 + $0xc0] sm:$0xff]  ;;  %v8617_v54 = vpack.c.bf16 %v51_v36, %v44_v35 }
  0x47   :  { %13015 = vst [vmem:[#allocation34_spill] sm:$0xff] %v8530_v45 }
  0x48   :  { %13012 = vst [vmem:[#allocation31_spill] sm:$0xff] %v8524_v38 }
  0x49   :  { %2050 = vmatpush.bf16.msrb.mxu1 %v7101_v57  ;;  %v8567_v57 = vpack.c.bf16 %v39_v51, %v32_v50  ;;  %13019 = vst [vmem:[#allocation38_spill] sm:$0xff] %v8571_v2  ;;  %2223 = vmatpush.bf16.msra.mxu3 %v6545_v26  ;;  %v54_v50 = vld [vmem:[%s12685_s0 + $0xd0] sm:$0xff] }
  0x4a   :  { %1961 = vmatpush.bf16.msrb.mxu0 %v6973_v46  ;;  %v560_v46 = vld [vmem:[%s12684_s5] sm:$0xf]  ;;  %13020 = vst [vmem:[#allocation39_spill] sm:$0xff] %v8617_v54  ;;  %v8623_v20 = vpack.c.bf16 %v54_v50, %v47_v49  ;;  %v59_v49 = vld [vmem:[%s12685_s0 + $0xf8] sm:$0xff] }
  0x4b   :  { %v8563_v55 = vperm.slane %v560_v46, 0  ;;  %13017 = vst [vmem:[#allocation36_spill] sm:$0xff] %v8567_v57  ;;  %v46_v46 = vld [vmem:[%s12685_s0 + $0x90] sm:$0xff]  ;;  %v60_v50 = vld [vmem:[%s12685_s0 + $0x100] sm:$0xff] }
  0x4c   :  { %13023 = vst [vmem:[#allocation42_spill] sm:$0xff] %v8623_v20 }
  0x4d   :  { %2051 = vmatpush.bf16.msrb.mxu1 %v7085_v15 }
  0x4e   :  { %1962 = vmatpush.bf16.msrb.mxu0 %v6957_v7 }
  0x53   :  { %1622 = vmatmul.bf16.gmra.mxu0 %v8236_v58  ;;  %1662 = vmatmul.bf16.gmra.mxu2 %v8238_v59 }
  0x54   :  { %1711 = vmatmul.bf16.gmra.mxu1 %v8240_v60 }
  0x56   :  { %1751 = vmatmul.bf16.gmra.mxu3 %v8242_v61 }
  0x63   :  { %1627 = vmatmul.bf16.gmra.mxu0 %v8284_v16  ;;  %1667 = vmatmul.bf16.gmra.mxu2 %v8286_v17 }
  0x64   :  { %1716 = vmatmul.bf16.gmra.mxu1 %v8288_v18 }
  0x66   :  { %1756 = vmatmul.bf16.gmra.mxu3 %v8290_v19 }
  0x73   :  { %1632 = vmatmul.bf16.gmra.mxu0 %v8380_v9  ;;  %1672 = vmatmul.bf16.gmra.mxu2 %v8382_v10 }
  0x74   :  { %1721 = vmatmul.bf16.gmra.mxu1 %v8384_v11 }
  0x76   :  { %1761 = vmatmul.bf16.gmra.mxu3 %v8386_v12 }
  0x83   :  { %1637 = vmatmul.bf16.gmra.mxu0 %v8473_v3  ;;  %1677 = vmatmul.bf16.gmra.mxu2 %v8475_v6 }
  0x84   :  { %1726 = vmatmul.bf16.gmra.mxu1 %v8480_v13 }
  0x86   :  { %1766 = vmatmul.bf16.gmra.mxu3 %v8482_v14 }
  0x93   :  { %1642 = vmatmul.bf16.gmra.mxu0 %v8524_v38  ;;  %1682 = vmatmul.bf16.gmra.mxu2 %v8526_v39 }
  0x94   :  { %1731 = vmatmul.bf16.gmra.mxu1 %v8528_v44 }
  0x96   :  { %1771 = vmatmul.bf16.gmra.mxu3 %v8530_v45 }
  0xa0   :  { %v1608_v62 = vpop.f32.mrf.mxu0 }
  0xa1   :  { %v1609_v7 = vadd.f32 %v1608_v62, %v8563_v55  ;;  %v1697_v8 = vpop.f32.mrf.mxu1  ;;  %v8619_v62 = vpack.c.bf16 %v53_v47, %v46_v46  ;;  %v58_v47 = vld [vmem:[%s12685_s0 + $0xf0] sm:$0xff] }
  0xa3   :  { %v8574_v15 = vadd.f32 %v1697_v8, %v1609_v7  ;;  %1785 = vmatmul.bf16.vlgmr.msrb.gmra.mxu2 %v8565_v56  ;;  %1963 = vmatmul.bf16.vlgmr.msrb.gmra.mxu0 %v8567_v57  ;;  %13021 = vst [vmem:[#allocation40_spill] sm:$0xff] %v8619_v62  ;;  %v8621_v8 = vpack.c.bf16 %v52_v48, %v45_v37  ;;  %v65_v48 = vld [vmem:[%s12685_s0 + $0x128] sm:$0xff] }
  0xa4   :  { %2052 = vmatmul.bf16.vlgmr.msrb.gmra.mxu1 %v8571_v2 }
  0xa5   :  { %13022 = vst [vmem:[#allocation41_spill] sm:$0xff] %v8621_v8 }
  0xa6   :  { %1874 = vmatmul.bf16.vlgmr.msrb.gmra.mxu3 %v8569_v1  ;;  %v1648_v27 = vpop.f32.mrf.mxu2 }
  0xa7   :  { %v1649_v28 = vadd.f32 %v1648_v27, %v8563_v55 }
  0xa8   :  { %v1610_v30 = vpop.f32.mrf.mxu0 }
  0xa9   :  { %v1737_v29 = vpop.f32.mrf.mxu3  ;;  %v1611_v32 = vadd.f32 %v1610_v30, %v8563_v55  ;;  %v1699_v33 = vpop.f32.mrf.mxu1 }
  0xaa   :  { %v8587_v31 = vadd.f32 %v1737_v29, %v1649_v28 }
  0xab   :  { %v8590_v34 = vadd.f32 %v1699_v33, %v1611_v32 }
  0xae   :  { %v1650_v51 = vpop.f32.mrf.mxu2 }
  0xaf   :  { %v1651_v52 = vadd.f32 %v1650_v51, %v8563_v55  ;;  %v67_v51 = vld [vmem:[%s12685_s0 + $0x138] sm:$0xff] }
  0xb0   :  { %v1613_v7 = vpop.f32.mrf.mxu0 }
  0xb1   :  { %v1739_v53 = vpop.f32.mrf.mxu3  ;;  %v1614_v26 = vadd.f32 %v1613_v7, %v8563_v55  ;;  %v1702_v27 = vpop.f32.mrf.mxu1  ;;  %v68_v7 = vld [vmem:[%s12685_s0 + $0x140] sm:$0xff] }
  0xb2   :  { %v8625_v21 = vadd.f32 %v1739_v53, %v1651_v52  ;;  %v66_v52 = vld [vmem:[%s12685_s0 + $0x130] sm:$0xff]  ;;  %v61_v53 = vld [vmem:[%s12685_s0 + $0x108] sm:$0xff] }
  0xb3   :  { %v8628_v28 = vadd.f32 %v1702_v27, %v1614_v26  ;;  %1790 = vmatmul.bf16.gmra.mxu2 %v8617_v54  ;;  %1968 = vmatmul.bf16.gmra.mxu0 %v8619_v62 }
  0xb4   :  { %2057 = vmatmul.bf16.gmra.mxu1 %v8623_v20 }
  0xb6   :  { %1879 = vmatmul.bf16.gmra.mxu3 %v8621_v8  ;;  %v1653_v29 = vpop.f32.mrf.mxu2 }
  0xb7   :  { %v1654_v30 = vadd.f32 %v1653_v29, %v8563_v55 }
  0xb8   :  { %v1615_v33 = vpop.f32.mrf.mxu0 }
  0xb9   :  { %v1742_v32 = vpop.f32.mrf.mxu3  ;;  %v1616_v36 = vadd.f32 %v1615_v33, %v8563_v55  ;;  %v1704_v37 = vpop.f32.mrf.mxu1 }
  0xba   :  { %v8635_v35 = vadd.f32 %v1742_v32, %v1654_v30  ;;  %v8665_v30 = vpack.c.bf16 %v65_v48, %v58_v47  ;;  %v8667_v32 = vpack.c.bf16 %v67_v51, %v60_v50  ;;  %v7630_v47 = vld [vmem:[%s12683_s1 + $0xa4] sm:$0xf]  ;;  %v6526_v48 = vld [vmem:[%s12683_s1 + $0xb0] sm:$0xf0] }
  0xbb   :  { %v8638_v46 = vadd.f32 %v1704_v37, %v1616_v36  ;;  %v8669_v36 = vpack.c.bf16 %v66_v52, %v59_v49  ;;  %v8671_v37 = vpack.c.bf16 %v68_v7, %v61_v53  ;;  %v6529_v49 = vor.u32 %v7630_v47, %v6526_v48  ;;  %v74_v47 = vld [vmem:[%s12685_s0 + $0x170] sm:$0xff]  ;;  %v81_v48 = vld [vmem:[%s12685_s0 + $0x1a8] sm:$0xff] }
  0xbc   :  { %13024 = vst [vmem:[#allocation43_spill] sm:$0xff] %v8665_v30 }
  0xbd   :  { %13025 = vst [vmem:[#allocation44_spill] sm:$0xff] %v8667_v32  ;;  %2224 = vmatpush.bf16.msra.mxu3 %v6529_v49  ;;  %v80_v49 = vld [vmem:[%s12685_s0 + $0x1a0] sm:$0xff] }
  0xbe   :  { %v1655_v26 = vpop.f32.mrf.mxu2  ;;  %13026 = vst [vmem:[#allocation45_spill] sm:$0xff] %v8669_v36 }
  0xbf   :  { %v1656_v27 = vadd.f32 %v1655_v26, %v8563_v55  ;;  %13027 = vst [vmem:[#allocation46_spill] sm:$0xff] %v8671_v37 }
  0xc0   :  { %v1618_v33 = vpop.f32.mrf.mxu0 }
  0xc1   :  { %v1744_v29 = vpop.f32.mrf.mxu3  ;;  %v1619_v20 = vadd.f32 %v1618_v33, %v8563_v55  ;;  %v1707_v8 = vpop.f32.mrf.mxu1  ;;  %v73_v33 = vld [vmem:[%s12685_s0 + $0x168] sm:$0xff] }
  0xc2   :  { %v8673_v62 = vadd.f32 %v1744_v29, %v1656_v27  ;;  %v72_v27 = vld [vmem:[%s12685_s0 + $0x160] sm:$0xff]  ;;  %v79_v29 = vld [vmem:[%s12685_s0 + $0x198] sm:$0xff] }
  0xc3   :  { %v8676_v57 = vadd.f32 %v1707_v8, %v1619_v20  ;;  %1795 = vmatmul.bf16.gmra.mxu2 %v8665_v30  ;;  %1973 = vmatmul.bf16.gmra.mxu0 %v8667_v32  ;;  %v8721_v32 = vpack.c.bf16 %v81_v48, %v74_v47 }
  0xc4   :  { %2062 = vmatmul.bf16.gmra.mxu1 %v8671_v37 }
  0xc5   :  { %13029 = vst [vmem:[#allocation48_spill] sm:$0xff] %v8721_v32 }
  0xc6   :  { %1884 = vmatmul.bf16.gmra.mxu3 %v8669_v36  ;;  %v1658_v50 = vpop.f32.mrf.mxu2  ;;  %v8723_v36 = vpack.c.bf16 %v80_v49, %v73_v33 }
  0xc7   :  { %v1659_v8 = vadd.f32 %v1658_v50, %v8563_v55  ;;  %v75_v50 = vld [vmem:[%s12685_s0 + $0x178] sm:$0xff] }
  0xc8   :  { %v1620_v51 = vpop.f32.mrf.mxu0  ;;  %13030 = vst [vmem:[#allocation49_spill] sm:$0xff] %v8723_v36 }
  0xc9   :  { %v1747_v20 = vpop.f32.mrf.mxu3  ;;  %v1621_v53 = vadd.f32 %v1620_v51, %v8563_v55  ;;  %v1709_v7 = vpop.f32.mrf.mxu1 }
  0xca   :  { %v8689_v52 = vadd.f32 %v1747_v20, %v1659_v8  ;;  %v82_v8 = vld [vmem:[%s12685_s0 + $0x1b0] sm:$0xff] }
  0xcb   :  { %v8692_v26 = vadd.f32 %v1709_v7, %v1621_v53  ;;  %v8719_v7 = vpack.c.bf16 %v79_v29, %v72_v27  ;;  %v8725_v2 = vpack.c.bf16 %v82_v8, %v75_v50  ;;  %v93_v50 = vld [vmem:[%s12685_s0 + $0x208] sm:$0xff]  ;;  %v87_v8 = vld [vmem:[%s12685_s0 + $0x1d8] sm:$0xff] }
  0xcd   :  { %13028 = vst [vmem:[#allocation47_spill] sm:$0xff] %v8719_v7 }
  0xce   :  { %v1660_v20 = vpop.f32.mrf.mxu2  ;;  %13031 = vst [vmem:[#allocation50_spill] sm:$0xff] %v8725_v2 }
  0xcf   :  { %v1661_v51 = vadd.f32 %v1660_v20, %v8563_v55  ;;  %v88_v20 = vld [vmem:[%s12685_s0 + $0x1e0] sm:$0xff] }
  0xd0   :  { %v1623_v37 = vpop.f32.mrf.mxu0 }
  0xd1   :  { %v1749_v53 = vpop.f32.mrf.mxu3  ;;  %v1624_v39 = vadd.f32 %v1623_v37, %v8563_v55  ;;  %v1712_v45 = vpop.f32.mrf.mxu1 }
  0xd2   :  { %v8727_v1 = vadd.f32 %v1749_v53, %v1661_v51  ;;  %v95_v51 = vld [vmem:[%s12685_s0 + $0x218] sm:$0xff]  ;;  %v94_v53 = vld [vmem:[%s12685_s0 + $0x210] sm:$0xff] }
  0xd3   :  { %v8730_v6 = vadd.f32 %v1712_v45, %v1624_v39  ;;  %1800 = vmatmul.bf16.gmra.mxu2 %v8719_v7  ;;  %1978 = vmatmul.bf16.gmra.mxu0 %v8721_v32  ;;  %v86_v45 = vld [vmem:[%s12685_s0 + $0x1d0] sm:$0xff]  ;;  %v8769_v32 = vpack.c.bf16 %v95_v51, %v88_v20 }
  0xd4   :  { %2067 = vmatmul.bf16.gmra.mxu1 %v8725_v2 }
  0xd5   :  { %13033 = vst [vmem:[#allocation52_spill] sm:$0xff] %v8769_v32 }
  0xd6   :  { %1889 = vmatmul.bf16.gmra.mxu3 %v8723_v36  ;;  %v1663_v27 = vpop.f32.mrf.mxu2  ;;  %v8771_v36 = vpack.c.bf16 %v94_v53, %v87_v8 }
  0xd7   :  { %v1664_v29 = vadd.f32 %v1663_v27, %v8563_v55  ;;  %v89_v27 = vld [vmem:[%s12685_s0 + $0x1e8] sm:$0xff] }
  0xd8   :  { %v1625_v47 = vpop.f32.mrf.mxu0  ;;  %13034 = vst [vmem:[#allocation53_spill] sm:$0xff] %v8771_v36 }
  0xd9   :  { %v1752_v33 = vpop.f32.mrf.mxu3  ;;  %v1626_v37 = vadd.f32 %v1625_v47, %v8563_v55  ;;  %v1714_v49 = vpop.f32.mrf.mxu1 }
  0xda   :  { %v8737_v48 = vadd.f32 %v1752_v33, %v1664_v29  ;;  %v96_v29 = vld [vmem:[%s12685_s0 + $0x220] sm:$0xff] }
  0xdb   :  { %v8740_v39 = vadd.f32 %v1714_v49, %v1626_v37  ;;  %v8767_v49 = vpack.c.bf16 %v93_v50, %v86_v45  ;;  %v8773_v14 = vpack.c.bf16 %v96_v29, %v89_v27  ;;  %v7626_v45 = vld [vmem:[%s12683_s1 + $0x84] sm:$0xf]  ;;  %v6510_v50 = vld [vmem:[%s12683_s1 + $0x90] sm:$0xf0] }
  0xdd   :  { %13032 = vst [vmem:[#allocation51_spill] sm:$0xff] %v8767_v49 }
  0xde   :  { %v1665_v33 = vpop.f32.mrf.mxu2  ;;  %13035 = vst [vmem:[#allocation54_spill] sm:$0xff] %v8773_v14 }
  0xdf   :  { %v1666_v47 = vadd.f32 %v1665_v33, %v8563_v55  ;;  %v100_v33 = vld [vmem:[%s12685_s0 + $0x240] sm:$0xff] }
  0xe0   :  { %v1628_v2 = vpop.f32.mrf.mxu0 }
  0xe1   :  { %v1754_v37 = vpop.f32.mrf.mxu3  ;;  %v1629_v12 = vadd.f32 %v1628_v2, %v8563_v55  ;;  %v1717_v17 = vpop.f32.mrf.mxu1  ;;  %v6513_v2 = vor.u32 %v7626_v45, %v6510_v50  ;;  %v102_v45 = vld [vmem:[%s12685_s0 + $0x250] sm:$0xff]  ;;  %v109_v50 = vld [vmem:[%s12685_s0 + $0x288] sm:$0xff] }
  0xe2   :  { %v8775_v10 = vadd.f32 %v1754_v37, %v1666_v47  ;;  %v107_v47 = vld [vmem:[%s12685_s0 + $0x278] sm:$0xff]  ;;  %v101_v37 = vld [vmem:[%s12685_s0 + $0x248] sm:$0xff] }
  0xe3   :  { %v8778_v19 = vadd.f32 %v1717_v17, %v1629_v12  ;;  %1805 = vmatmul.bf16.gmra.mxu2 %v8767_v49  ;;  %1983 = vmatmul.bf16.gmra.mxu0 %v8769_v32  ;;  %v8823_v32 = vpack.c.bf16 %v109_v50, %v102_v45 }
  0xe4   :  { %2072 = vmatmul.bf16.gmra.mxu1 %v8773_v14  ;;  %2225 = vmatpush.bf16.msra.mxu3 %v6513_v2  ;;  %v108_v2 = vld [vmem:[%s12685_s0 + $0x280] sm:$0xff] }
  0xe5   :  { %13037 = vst [vmem:[#allocation56_spill] sm:$0xff] %v8823_v32 }
  0xe6   :  { %1894 = vmatmul.bf16.gmra.mxu3 %v8771_v36  ;;  %v1668_v8 = vpop.f32.mrf.mxu2  ;;  %v8825_v36 = vpack.c.bf16 %v108_v2, %v101_v37 }
  0xe7   :  { %v1669_v17 = vadd.f32 %v1668_v8, %v8563_v55  ;;  %v103_v8 = vld [vmem:[%s12685_s0 + $0x258] sm:$0xff] }
  0xe8   :  { %v1630_v20 = vpop.f32.mrf.mxu0  ;;  %13038 = vst [vmem:[#allocation57_spill] sm:$0xff] %v8825_v36 }
  0xe9   :  { %v1757_v12 = vpop.f32.mrf.mxu3  ;;  %v1631_v53 = vadd.f32 %v1630_v20, %v8563_v55  ;;  %v1719_v27 = vpop.f32.mrf.mxu1 }
  0xea   :  { %v8791_v51 = vadd.f32 %v1757_v12, %v1669_v17  ;;  %v110_v17 = vld [vmem:[%s12685_s0 + $0x290] sm:$0xff] }
  0xeb   :  { %v8794_v29 = vadd.f32 %v1719_v27, %v1631_v53  ;;  %v8821_v27 = vpack.c.bf16 %v107_v47, %v100_v33  ;;  %v8827_v59 = vpack.c.bf16 %v110_v17, %v103_v8  ;;  %v121_v8 = vld [vmem:[%s12685_s0 + $0x2e8] sm:$0xff]  ;;  %v115_v17 = vld [vmem:[%s12685_s0 + $0x2b8] sm:$0xff] }
  0xed   :  { %13036 = vst [vmem:[#allocation55_spill] sm:$0xff] %v8821_v27 }
  0xee   :  { %v1670_v12 = vpop.f32.mrf.mxu2  ;;  %13039 = vst [vmem:[#allocation58_spill] sm:$0xff] %v8827_v59 }
  0xef   :  { %v1671_v20 = vadd.f32 %v1670_v12, %v8563_v55  ;;  %v116_v12 = vld [vmem:[%s12685_s0 + $0x2c0] sm:$0xff] }
  0xf0   :  { %v1633_v14 = vpop.f32.mrf.mxu0 }
  0xf1   :  { %v1759_v53 = vpop.f32.mrf.mxu3  ;;  %v1634_v41 = vadd.f32 %v1633_v14, %v8563_v55  ;;  %v1722_v43 = vpop.f32.mrf.mxu1 }
  0xf2   :  { %v8829_v61 = vadd.f32 %v1759_v53, %v1671_v20  ;;  %v123_v20 = vld [vmem:[%s12685_s0 + $0x2f8] sm:$0xff]  ;;  %v122_v53 = vld [vmem:[%s12685_s0 + $0x2f0] sm:$0xff] }
  0xf3   :  { %v8832_v23 = vadd.f32 %v1722_v43, %v1634_v41  ;;  %1810 = vmatmul.bf16.gmra.mxu2 %v8821_v27  ;;  %1988 = vmatmul.bf16.gmra.mxu0 %v8823_v32  ;;  %v114_v43 = vld [vmem:[%s12685_s0 + $0x2b0] sm:$0xff]  ;;  %v8871_v32 = vpack.c.bf16 %v123_v20, %v116_v12 }
  0xf4   :  { %13040 = vst [vmem:[#allocation59_spill] sm:$0xff] %v8829_v61  ;;  %2077 = vmatmul.bf16.gmra.mxu1 %v8827_v59 }
  0xf5   :  { %13043 = vst [vmem:[#allocation62_spill] sm:$0xff] %v8871_v32 }
  0xf6   :  { %1899 = vmatmul.bf16.gmra.mxu3 %v8825_v36  ;;  %v1673_v33 = vpop.f32.mrf.mxu2  ;;  %v8873_v36 = vpack.c.bf16 %v122_v53, %v115_v17 }
  0xf7   :  { %v1674_v47 = vadd.f32 %v1673_v33, %v8563_v55  ;;  %v117_v33 = vld [vmem:[%s12685_s0 + $0x2c8] sm:$0xff] }
  0xf8   :  { %v1635_v45 = vpop.f32.mrf.mxu0  ;;  %13044 = vst [vmem:[#allocation63_spill] sm:$0xff] %v8873_v36 }
  0xf9   :  { %v1762_v37 = vpop.f32.mrf.mxu3  ;;  %v1636_v14 = vadd.f32 %v1635_v45, %v8563_v55  ;;  %v1724_v2 = vpop.f32.mrf.mxu1 }
  0xfa   :  { %v8839_v50 = vadd.f32 %v1762_v37, %v1674_v47  ;;  %v124_v47 = vld [vmem:[%s12685_s0 + $0x300] sm:$0xff] }
  0xfb   :  { %v8842_v41 = vadd.f32 %v1724_v2, %v1636_v14  ;;  %v8869_v2 = vpack.c.bf16 %v121_v8, %v114_v43  ;;  %v8875_v25 = vpack.c.bf16 %v124_v47, %v117_v33  ;;  %v7622_v43 = vld [vmem:[%s12683_s1 + $0x64] sm:$0xf]  ;;  %v6494_v8 = vld [vmem:[%s12683_s1 + $0x70] sm:$0xf0] }
  0xfc   :  { %13041 = vst [vmem:[#allocation60_spill] sm:$0xff] %v8839_v50 }
  0xfd   :  { %13042 = vst [vmem:[#allocation61_spill] sm:$0xff] %v8869_v2 }
  0xfe   :  { %v1675_v37 = vpop.f32.mrf.mxu2  ;;  %13045 = vst [vmem:[#allocation64_spill] sm:$0xff] %v8875_v25 }
  0xff   :  { %v1676_v45 = vadd.f32 %v1675_v37, %v8563_v55  ;;  %v128_v37 = vld [vmem:[%s12685_s0 + $0x320] sm:$0xff] }
 0x100   :  { %v1638_v59 = vpop.f32.mrf.mxu0 }
 0x101   :  { %v1764_v14 = vpop.f32.mrf.mxu3  ;;  %v1639_v5 = vadd.f32 %v1638_v59, %v8563_v55  ;;  %v1727_v38 = vpop.f32.mrf.mxu1  ;;  %v6497_v59 = vor.u32 %v7622_v43, %v6494_v8  ;;  %v130_v43 = vld [vmem:[%s12685_s0 + $0x330] sm:$0xff]  ;;  %v137_v8 = vld [vmem:[%s12685_s0 + $0x368] sm:$0xff] }
 0x102   :  { %v8877_v0 = vadd.f32 %v1764_v14, %v1676_v45  ;;  %v135_v45 = vld [vmem:[%s12685_s0 + $0x358] sm:$0xff]  ;;  %v129_v14 = vld [vmem:[%s12685_s0 + $0x328] sm:$0xff] }
 0x103   :  { %v8880_v44 = vadd.f32 %v1727_v38, %v1639_v5  ;;  %1815 = vmatmul.bf16.gmra.mxu2 %v8869_v2  ;;  %1993 = vmatmul.bf16.gmra.mxu0 %v8871_v32  ;;  %v8925_v32 = vpack.c.bf16 %v137_v8, %v130_v43 }
 0x104   :  { %13046 = vst [vmem:[#allocation65_spill] sm:$0xff] %v8877_v0  ;;  %2082 = vmatmul.bf16.gmra.mxu1 %v8875_v25  ;;  %2226 = vmatpush.bf16.msra.mxu3 %v6497_v59  ;;  %v136_v59 = vld [vmem:[%s12685_s0 + $0x360] sm:$0xff] }
 0x105   :  { %13049 = vst [vmem:[#allocation68_spill] sm:$0xff] %v8925_v32 }
 0x106   :  { %1904 = vmatmul.bf16.gmra.mxu3 %v8873_v36  ;;  %v1678_v17 = vpop.f32.mrf.mxu2  ;;  %v8927_v36 = vpack.c.bf16 %v136_v59, %v129_v14 }
 0x107   :  { %v1679_v5 = vadd.f32 %v1678_v17, %v8563_v55  ;;  %v131_v17 = vld [vmem:[%s12685_s0 + $0x338] sm:$0xff] }
 0x108   :  { %v1640_v12 = vpop.f32.mrf.mxu0  ;;  %13050 = vst [vmem:[#allocation69_spill] sm:$0xff] %v8927_v36 }
 0x109   :  { %v1767_v38 = vpop.f32.mrf.mxu3  ;;  %v1641_v53 = vadd.f32 %v1640_v12, %v8563_v55  ;;  %v1729_v33 = vpop.f32.mrf.mxu1 }
 0x10a   :  { %v8893_v20 = vadd.f32 %v1767_v38, %v1679_v5  ;;  %v138_v5 = vld [vmem:[%s12685_s0 + $0x370] sm:$0xff] }
 0x10b   :  { %v8896_v47 = vadd.f32 %v1729_v33, %v1641_v53  ;;  %v8923_v33 = vpack.c.bf16 %v135_v45, %v128_v37 }
 0x10c   :  { %13047 = vst [vmem:[#allocation66_spill] sm:$0xff] %v8893_v20  ;;  %v8929_v20 = vpack.c.bf16 %v138_v5, %v131_v17  ;;  %v143_v5 = vld [vmem:[%s12685_s0 + $0x398] sm:$0xff] }
 0x10d   :  { %13048 = vst [vmem:[#allocation67_spill] sm:$0xff] %v8923_v33 }
 0x10e   :  { %v1680_v38 = vpop.f32.mrf.mxu2  ;;  %13051 = vst [vmem:[#allocation70_spill] sm:$0xff] %v8929_v20 }
 0x10f   :  { %v1681_v12 = vadd.f32 %v1680_v38, %v8563_v55  ;;  %v7670_v38 = vld [vmem:[%s12683_s1 + $0x1e4] sm:$0xf] }
 0x110   :  { %v1643_v25 = vpop.f32.mrf.mxu0 }
 0x111   :  { %v1769_v53 = vpop.f32.mrf.mxu3  ;;  %v1644_v3 = vadd.f32 %v1643_v25, %v8563_v55  ;;  %v1732_v13 = vpop.f32.mrf.mxu1 }
 0x112   :  { %v8931_v2 = vadd.f32 %v1769_v53, %v1681_v12  ;;  %v6686_v12 = vld [vmem:[%s12683_s1 + $0x1f0] sm:$0xf0]  ;;  %v7702_v53 = vld [vmem:[%s12683_s1 + $0x2e4] sm:$0xf] }
 0x113   :  { %v8934_v0 = vadd.f32 %v1732_v13, %v1644_v3  ;;  %1820 = vmatmul.bf16.gmra.mxu2 %v8923_v33  ;;  %1998 = vmatmul.bf16.gmra.mxu0 %v8925_v32  ;;  %v142_v3 = vld [vmem:[%s12685_s0 + $0x390] sm:$0xff]  ;;  %v149_v13 = vld [vmem:[%s12685_s0 + $0x3c8] sm:$0xff]  ;;  %v152_v32 = vld [vmem:[%s12685_s0 + $0x3e0] sm:$0xff] }
 0x114   :  { %13052 = vst [vmem:[#allocation71_spill] sm:$0xff] %v8931_v2  ;;  %2087 = vmatmul.bf16.gmra.mxu1 %v8929_v20 }
 0x116   :  { %1909 = vmatmul.bf16.gmra.mxu3 %v8927_v36  ;;  %v1683_v37 = vpop.f32.mrf.mxu2 }
 0x117   :  { %v1684_v45 = vadd.f32 %v1683_v37, %v8563_v55  ;;  %v144_v37 = vld [vmem:[%s12685_s0 + $0x3a0] sm:$0xff] }
 0x118   :  { %v1645_v43 = vpop.f32.mrf.mxu0 }
 0x119   :  { %v1772_v14 = vpop.f32.mrf.mxu3  ;;  %v1646_v25 = vadd.f32 %v1645_v43, %v8563_v55  ;;  %v1734_v59 = vpop.f32.mrf.mxu1  ;;  %v6814_v43 = vld [vmem:[%s12683_s1 + $0x2f0] sm:$0xf0] }
 0x11a   :  { %v8941_v8 = vadd.f32 %v1772_v14, %v1684_v45  ;;  %v151_v45 = vld [vmem:[%s12685_s0 + $0x3d8] sm:$0xff]  ;;  %v6689_v14 = vor.u32 %v7670_v38, %v6686_v12  ;;  %v6817_v20 = vor.u32 %v7702_v53, %v6814_v43 }
 0x11b   :  { %v8950_v17 = vadd.f32 %v1734_v59, %v1646_v25  ;;  %v150_v25 = vld [vmem:[%s12685_s0 + $0x3d0] sm:$0xff]  ;;  %v145_v59 = vld [vmem:[%s12685_s0 + $0x3a8] sm:$0xff]  ;;  %v8985_v33 = vpack.c.bf16 %v151_v45, %v144_v37  ;;  %v163_v43 = vld [vmem:[%s12685_s0 + $0x438] sm:$0xff] }
 0x11c   :  { %13053 = vst [vmem:[#allocation72_spill] sm:$0xff] %v8941_v8  ;;  %2311 = vmatpush.bf16.msra.mxu0 %v6689_v14  ;;  %v8983_v8 = vpack.c.bf16 %v149_v13, %v142_v3  ;;  %2400 = vmatpush.bf16.msra.mxu1 %v6817_v20  ;;  %v8987_v50 = vpack.c.bf16 %v150_v25, %v143_v5  ;;  %v156_v14 = vld [vmem:[%s12685_s0 + $0x400] sm:$0xff]  ;;  %v157_v25 = vld [vmem:[%s12685_s0 + $0x408] sm:$0xff] }
 0x11d   :  { %13055 = vst [vmem:[#allocation74_spill] sm:$0xff] %v8985_v33  ;;  %v8989_v27 = vpack.c.bf16 %v152_v32, %v145_v59  ;;  %v6478_v32 = vld [vmem:[%s12683_s1 + $0x50] sm:$0xf0]  ;;  %v164_v59 = vld [vmem:[%s12685_s0 + $0x440] sm:$0xff] }
 0x11e   :  { %v1685_v36 = vpop.f32.mrf.mxu2  ;;  %13054 = vst [vmem:[#allocation73_spill] sm:$0xff] %v8983_v8 }
 0x11f   :  { %v1686_v38 = vadd.f32 %v1685_v36, %v8563_v55  ;;  %13056 = vst [vmem:[#allocation75_spill] sm:$0xff] %v8987_v50  ;;  %v7618_v55 = vld [vmem:[%s12683_s1 + $0x44] sm:$0xf] }
 0x120   :  { %v1964_v2 = vpop.f32.mrf.mxu0  ;;  %13057 = vst [vmem:[#allocation76_spill] sm:$0xff] %v8989_v27  ;;  %v6481_v36 = vor.u32 %v7618_v55, %v6478_v32 }
 0x121   :  { %v1774_v12 = vpop.f32.mrf.mxu3  ;;  %v2053_v11 = vpop.f32.mrf.mxu1 }
 0x122   :  { %v8991_v9 = vadd.f32 %v1774_v12, %v1686_v38  ;;  %2227 = vmatpush.bf16.msra.mxu3 %v6481_v36  ;;  %v159_v38 = vld [vmem:[%s12685_s0 + $0x418] sm:$0xff]  ;;  %v166_v12 = vld [vmem:[%s12685_s0 + $0x450] sm:$0xff] }
 0x123   :  { %1825 = vmatmul.bf16.gmra.mxu2 %v8983_v8  ;;  %2003 = vmatmul.bf16.gmra.mxu0 %v8985_v33  ;;  %v9035_v33 = vpack.c.bf16 %v164_v59, %v157_v25  ;;  %v7698_v59 = vld [vmem:[%s12683_s1 + $0x2c4] sm:$0xf] }
 0x124   :  { %13058 = vst [vmem:[#allocation77_spill] sm:$0xff] %v8991_v9  ;;  %2092 = vmatmul.bf16.gmra.mxu1 %v8989_v27  ;;  %v9037_v27 = vpack.c.bf16 %v166_v12, %v159_v38  ;;  %v172_v38 = vld [vmem:[%s12685_s0 + $0x480] sm:$0xff]  ;;  %v179_v12 = vld [vmem:[%s12685_s0 + $0x4b8] sm:$0xff] }
 0x125   :  { %13062 = vst [vmem:[#allocation81_spill] sm:$0xff] %v9035_v33 }
 0x126   :  { %1914 = vmatmul.bf16.gmra.mxu3 %v8987_v50  ;;  %v1786_v20 = vpop.f32.mrf.mxu2  ;;  %13063 = vst [vmem:[#allocation82_spill] sm:$0xff] %v9037_v27 }
 0x127   :  { %v1787_v3 = vadd.f32 %v1786_v20, %v8574_v15  ;;  %v158_v15 = vld [vmem:[%s12685_s0 + $0x410] sm:$0xff] }
 0x128   :  { %v1966_v5 = vpop.f32.mrf.mxu0 }
 0x129   :  { %v1875_v13 = vpop.f32.mrf.mxu3  ;;  %v2055_v37 = vpop.f32.mrf.mxu1 }
 0x12a   :  { %v1876_v53 = vadd.f32 %v1875_v13, %v1787_v3  ;;  %v9031_v3 = vpack.c.bf16 %v163_v43, %v156_v14 }
 0x12c   :  { %v1965_v45 = vadd.f32 %v1964_v2, %v1876_v53  ;;  %v165_v2 = vld [vmem:[%s12685_s0 + $0x448] sm:$0xff]  ;;  %13060 = vst [vmem:[#allocation79_spill] sm:$0xff] %v9031_v3 }
 0x12d   :  { %v9033_v13 = vpack.c.bf16 %v165_v2, %v158_v15 }
 0x12e   :  { %v9028_v55 = vadd.f32 %v2053_v11, %v1965_v45  ;;  %v1788_v32 = vpop.f32.mrf.mxu2 }
 0x12f   :  { %v1789_v36 = vadd.f32 %v1788_v32, %v8590_v34  ;;  %13061 = vst [vmem:[#allocation80_spill] sm:$0xff] %v9033_v13 }
 0x130   :  { %13059 = vst [vmem:[#allocation78_spill] sm:$0xff] %v9028_v55  ;;  %v1969_v53 = vpop.f32.mrf.mxu0 }
 0x131   :  { %v1877_v20 = vpop.f32.mrf.mxu3  ;;  %v2058_v8 = vpop.f32.mrf.mxu1 }
 0x132   :  { %v1878_v50 = vadd.f32 %v1877_v20, %v1789_v36  ;;  %v6798_v36 = vld [vmem:[%s12683_s1 + $0x2d0] sm:$0xf0] }
 0x133   :  { %1830 = vmatmul.bf16.gmra.mxu2 %v9031_v3  ;;  %2008 = vmatmul.bf16.gmra.mxu0 %v9033_v13  ;;  %v178_v20 = vld [vmem:[%s12685_s0 + $0x4b0] sm:$0xff] }
 0x134   :  { %v1967_v9 = vadd.f32 %v1966_v5, %v1878_v50  ;;  %2097 = vmatmul.bf16.gmra.mxu1 %v9037_v27  ;;  %v170_v50 = vld [vmem:[%s12685_s0 + $0x470] sm:$0xff]  ;;  %v177_v5 = vld [vmem:[%s12685_s0 + $0x4a8] sm:$0xff]  ;;  %v9087_v27 = vpack.c.bf16 %v179_v12, %v172_v38 }
 0x135   :  { %v9085_v13 = vpack.c.bf16 %v177_v5, %v170_v50 }
 0x136   :  { %1919 = vmatmul.bf16.gmra.mxu3 %v9035_v33  ;;  %v9043_v11 = vadd.f32 %v2055_v37, %v1967_v9  ;;  %v1791_v34 = vpop.f32.mrf.mxu2  ;;  %v171_v9 = vld [vmem:[%s12685_s0 + $0x478] sm:$0xff]  ;;  %v6670_v37 = vld [vmem:[%s12683_s1 + $0x1d0] sm:$0xf0]  ;;  %13066 = vst [vmem:[#allocation85_spill] sm:$0xff] %v9087_v27 }
 0x137   :  { %v1792_v45 = vadd.f32 %v1791_v34, %v8628_v28  ;;  %v7666_v28 = vld [vmem:[%s12683_s1 + $0x1c4] sm:$0xf]  ;;  %13065 = vst [vmem:[#allocation84_spill] sm:$0xff] %v9085_v13  ;;  %v9089_v3 = vpack.c.bf16 %v178_v20, %v171_v9  ;;  %v191_v20 = vld [vmem:[%s12685_s0 + $0x518] sm:$0xff] }
 0x138   :  { %13064 = vst [vmem:[#allocation83_spill] sm:$0xff] %v9043_v11  ;;  %v1971_v43 = vpop.f32.mrf.mxu0  ;;  %v6673_v32 = vor.u32 %v7666_v28, %v6670_v37  ;;  %v180_v34 = vld [vmem:[%s12685_s0 + $0x4c0] sm:$0xff] }
 0x139   :  { %v1880_v14 = vpop.f32.mrf.mxu3  ;;  %v2060_v15 = vpop.f32.mrf.mxu1  ;;  %13067 = vst [vmem:[#allocation86_spill] sm:$0xff] %v9089_v3 }
 0x13a   :  { %v1881_v25 = vadd.f32 %v1880_v14, %v1792_v45  ;;  %v6801_v45 = vor.u32 %v7698_v59, %v6798_v36  ;;  %2312 = vmatpush.bf16.msra.mxu0 %v6673_v32  ;;  %v184_v36 = vld [vmem:[%s12685_s0 + $0x4e0] sm:$0xff] }
 0x13c   :  { %v1970_v2 = vadd.f32 %v1969_v53, %v1881_v25  ;;  %v173_v53 = vld [vmem:[%s12685_s0 + $0x488] sm:$0xff]  ;;  %2401 = vmatpush.bf16.msra.mxu1 %v6801_v45  ;;  %v194_v45 = vld [vmem:[%s12685_s0 + $0x530] sm:$0xff] }
 0x13d   :  { %v9091_v11 = vpack.c.bf16 %v180_v34, %v173_v53  ;;  %v192_v53 = vld [vmem:[%s12685_s0 + $0x520] sm:$0xff]  ;;  %v187_v34 = vld [vmem:[%s12685_s0 + $0x4f8] sm:$0xff] }
 0x13e   :  { %v9082_v14 = vadd.f32 %v2058_v8, %v1970_v2  ;;  %v1793_v25 = vpop.f32.mrf.mxu2  ;;  %v6462_v8 = vld [vmem:[%s12683_s1 + $0x30] sm:$0xf0] }
 0x13f   :  { %v1794_v28 = vadd.f32 %v1793_v25, %v8638_v46  ;;  %13068 = vst [vmem:[#allocation87_spill] sm:$0xff] %v9091_v11  ;;  %v7614_v46 = vld [vmem:[%s12683_s1 + $0x24] sm:$0xf] }
 0x140   :  { %v1974_v33 = vpop.f32.mrf.mxu0  ;;  %v6465_v50 = vor.u32 %v7614_v46, %v6462_v8  ;;  %v9133_v46 = vpack.c.bf16 %v191_v20, %v184_v36 }
 0x141   :  { %v1882_v37 = vpop.f32.mrf.mxu3  ;;  %v2063_v61 = vpop.f32.mrf.mxu1 }
 0x142   :  { %v1883_v55 = vadd.f32 %v1882_v37, %v1794_v28  ;;  %2228 = vmatpush.bf16.msra.mxu3 %v6465_v50  ;;  %13069 = vst [vmem:[#allocation88_spill] sm:$0xff] %v9133_v46 }
 0x143   :  { %1835 = vmatmul.bf16.gmra.mxu2 %v9085_v13  ;;  %2013 = vmatmul.bf16.gmra.mxu0 %v9087_v27 }
 0x144   :  { %v1972_v59 = vadd.f32 %v1971_v43, %v1883_v55  ;;  %2102 = vmatmul.bf16.gmra.mxu1 %v9091_v11 }
 0x146   :  { %1924 = vmatmul.bf16.gmra.mxu3 %v9089_v3  ;;  %v9103_v5 = vadd.f32 %v2060_v15, %v1972_v59  ;;  %v1796_v55 = vpop.f32.mrf.mxu2  ;;  %v185_v15 = vld [vmem:[%s12685_s0 + $0x4e8] sm:$0xff] }
 0x147   :  { %v1797_v43 = vadd.f32 %v1796_v55, %v8676_v57  ;;  %v186_v57 = vld [vmem:[%s12685_s0 + $0x4f0] sm:$0xff]  ;;  %v9137_v55 = vpack.c.bf16 %v192_v53, %v185_v15 }
 0x148   :  { %v1976_v9 = vpop.f32.mrf.mxu0 }
 0x149   :  { %v1885_v2 = vpop.f32.mrf.mxu3  ;;  %v2065_v12 = vpop.f32.mrf.mxu1  ;;  %13071 = vst [vmem:[#allocation90_spill] sm:$0xff] %v9137_v55 }
 0x14a   :  { %v1886_v38 = vadd.f32 %v1885_v2, %v1797_v43  ;;  %v9139_v43 = vpack.c.bf16 %v194_v45, %v187_v34  ;;  %v7694_v34 = vld [vmem:[%s12683_s1 + $0x2a4] sm:$0xf] }
 0x14b   :  { %v200_v45 = vld [vmem:[%s12685_s0 + $0x560] sm:$0xff] }
 0x14c   :  { %v1975_v32 = vadd.f32 %v1974_v33, %v1886_v38  ;;  %v193_v33 = vld [vmem:[%s12685_s0 + $0x528] sm:$0xff]  ;;  %13072 = vst [vmem:[#allocation91_spill] sm:$0xff] %v9139_v43 }
 0x14d   :  { %v9135_v8 = vpack.c.bf16 %v193_v33, %v186_v57  ;;  %v205_v33 = vld [vmem:[%s12685_s0 + $0x588] sm:$0xff] }
 0x14e   :  { %v9130_v25 = vadd.f32 %v2063_v61, %v1975_v32  ;;  %v1798_v28 = vpop.f32.mrf.mxu2 }
 0x14f   :  { %v1799_v37 = vadd.f32 %v1798_v28, %v8692_v26  ;;  %13070 = vst [vmem:[#allocation89_spill] sm:$0xff] %v9135_v8  ;;  %v207_v28 = vld [vmem:[%s12685_s0 + $0x598] sm:$0xff] }
 0x150   :  { %v1979_v50 = vpop.f32.mrf.mxu0 }
 0x151   :  { %v1887_v59 = vpop.f32.mrf.mxu3  ;;  %v2068_v38 = vpop.f32.mrf.mxu1 }
 0x152   :  { %v1888_v2 = vadd.f32 %v1887_v59, %v1799_v37  ;;  %v6782_v59 = vld [vmem:[%s12683_s1 + $0x2b0] sm:$0xf0] }
 0x153   :  { %1840 = vmatmul.bf16.gmra.mxu2 %v9133_v46  ;;  %2018 = vmatmul.bf16.gmra.mxu0 %v9135_v8 }
 0x154   :  { %v1977_v27 = vadd.f32 %v1976_v9, %v1888_v2  ;;  %2107 = vmatmul.bf16.gmra.mxu1 %v9139_v43  ;;  %v198_v9 = vld [vmem:[%s12685_s0 + $0x550] sm:$0xff]  ;;  %v201_v2 = vld [vmem:[%s12685_s0 + $0x568] sm:$0xff]  ;;  %v9189_v43 = vpack.c.bf16 %v207_v28, %v200_v45 }
 0x155   :  { %v9187_v8 = vpack.c.bf16 %v205_v33, %v198_v9 }
 0x156   :  { %1929 = vmatmul.bf16.gmra.mxu3 %v9137_v55  ;;  %v9145_v61 = vadd.f32 %v2065_v12, %v1977_v27  ;;  %v1801_v26 = vpop.f32.mrf.mxu2  ;;  %v199_v27 = vld [vmem:[%s12685_s0 + $0x558] sm:$0xff]  ;;  %v6654_v12 = vld [vmem:[%s12683_s1 + $0x1b0] sm:$0xf0]  ;;  %13075 = vst [vmem:[#allocation94_spill] sm:$0xff] %v9189_v43 }
 0x157   :  { %v1802_v32 = vadd.f32 %v1801_v26, %v8730_v6  ;;  %v7662_v6 = vld [vmem:[%s12683_s1 + $0x1a4] sm:$0xf]  ;;  %13074 = vst [vmem:[#allocation93_spill] sm:$0xff] %v9187_v8 }
 0x158   :  { %13073 = vst [vmem:[#allocation92_spill] sm:$0xff] %v9145_v61  ;;  %v1981_v20 = vpop.f32.mrf.mxu0  ;;  %v6657_v37 = vor.u32 %v7662_v6, %v6654_v12  ;;  %v208_v26 = vld [vmem:[%s12685_s0 + $0x5a0] sm:$0xff] }
 0x159   :  { %v1890_v36 = vpop.f32.mrf.mxu3  ;;  %v2070_v57 = vpop.f32.mrf.mxu1  ;;  %v9193_v3 = vpack.c.bf16 %v208_v26, %v201_v2  ;;  %v220_v2 = vld [vmem:[%s12685_s0 + $0x600] sm:$0xff]  ;;  %v215_v26 = vld [vmem:[%s12685_s0 + $0x5d8] sm:$0xff] }
 0x15a   :  { %v1891_v15 = vadd.f32 %v1890_v36, %v1802_v32  ;;  %v6785_v32 = vor.u32 %v7694_v34, %v6782_v59  ;;  %2313 = vmatpush.bf16.msra.mxu0 %v6657_v37  ;;  %v212_v59 = vld [vmem:[%s12685_s0 + $0x5c0] sm:$0xff] }
 0x15b   :  { %13077 = vst [vmem:[#allocation96_spill] sm:$0xff] %v9193_v3 }
 0x15c   :  { %v1980_v53 = vadd.f32 %v1979_v50, %v1891_v15  ;;  %v206_v50 = vld [vmem:[%s12685_s0 + $0x590] sm:$0xff]  ;;  %2402 = vmatpush.bf16.msra.mxu1 %v6785_v32 }
 0x15d   :  { %v9191_v11 = vpack.c.bf16 %v206_v50, %v199_v27  ;;  %v219_v50 = vld [vmem:[%s12685_s0 + $0x5f8] sm:$0xff]  ;;  %v222_v32 = vld [vmem:[%s12685_s0 + $0x610] sm:$0xff] }
 0x15e   :  { %v9184_v36 = vadd.f32 %v2068_v38, %v1980_v53  ;;  %v1803_v15 = vpop.f32.mrf.mxu2  ;;  %v6446_v38 = vld [vmem:[%s12683_s1 + $0x10] sm:$0xf0] }
 0x15f   :  { %v1804_v6 = vadd.f32 %v1803_v15, %v8740_v39  ;;  %13076 = vst [vmem:[#allocation95_spill] sm:$0xff] %v9191_v11  ;;  %v7610_v39 = vld [vmem:[%s12683_s1 + $0x4] sm:$0xf] }
 0x160   :  { %v1984_v55 = vpop.f32.mrf.mxu0  ;;  %v6449_v9 = vor.u32 %v7610_v39, %v6446_v38  ;;  %v7690_v39 = vld [vmem:[%s12683_s1 + $0x284] sm:$0xf] }
 0x161   :  { %v1892_v12 = vpop.f32.mrf.mxu3  ;;  %v2073_v61 = vpop.f32.mrf.mxu1 }
 0x162   :  { %v1893_v46 = vadd.f32 %v1892_v12, %v1804_v6  ;;  %2229 = vmatpush.bf16.msra.mxu3 %v6449_v9  ;;  %v7658_v12 = vld [vmem:[%s12683_s1 + $0x184] sm:$0xf] }
 0x163   :  { %1845 = vmatmul.bf16.gmra.mxu2 %v9187_v8  ;;  %2023 = vmatmul.bf16.gmra.mxu0 %v9189_v43  ;;  %v9253_v43 = vpack.c.bf16 %v222_v32, %v215_v26  ;;  %v6606_v26 = vld [vmem:[%s12683_s1 + $0x150] sm:$0xf0]  ;;  %v7682_v32 = vld [vmem:[%s12683_s1 + $0x244] sm:$0xf] }
 0x164   :  { %v1982_v34 = vadd.f32 %v1981_v20, %v1893_v46  ;;  %2112 = vmatmul.bf16.gmra.mxu1 %v9193_v3 }
 0x165   :  { %13082 = vst [vmem:[#allocation101_spill] sm:$0xff] %v9253_v43 }
 0x166   :  { %1934 = vmatmul.bf16.gmra.mxu3 %v9191_v11  ;;  %v9205_v33 = vadd.f32 %v2070_v57, %v1982_v34  ;;  %v1806_v46 = vpop.f32.mrf.mxu2  ;;  %v213_v57 = vld [vmem:[%s12685_s0 + $0x5c8] sm:$0xff]  ;;  %v6638_v34 = vld [vmem:[%s12683_s1 + $0x190] sm:$0xf0] }
 0x167   :  { %v1807_v20 = vadd.f32 %v1806_v46, %v8778_v19  ;;  %v214_v19 = vld [vmem:[%s12685_s0 + $0x5d0] sm:$0xff]  ;;  %v9244_v46 = vpack.c.bf16 %v219_v50, %v212_v59  ;;  %v7654_v59 = vld [vmem:[%s12683_s1 + $0x164] sm:$0xf] }
 0x168   :  { %v1986_v27 = vpop.f32.mrf.mxu0  ;;  %v6622_v50 = vld [vmem:[%s12683_s1 + $0x170] sm:$0xf0] }
 0x169   :  { %v1895_v53 = vpop.f32.mrf.mxu3  ;;  %v2075_v28 = vpop.f32.mrf.mxu1  ;;  %13079 = vst [vmem:[#allocation98_spill] sm:$0xff] %v9244_v46 }
 0x16a   :  { %v1896_v45 = vadd.f32 %v1895_v53, %v1807_v20  ;;  %v6641_v20 = vor.u32 %v7658_v12, %v6638_v34  ;;  %v6766_v53 = vld [vmem:[%s12683_s1 + $0x290] sm:$0xf0] }
 0x16b   :  { %v6769_v3 = vor.u32 %v7690_v39, %v6766_v53  ;;  %v6734_v34 = vld [vmem:[%s12683_s1 + $0x250] sm:$0xf0]  ;;  %v7646_v53 = vld [vmem:[%s12683_s1 + $0x124] sm:$0xf] }
 0x16c   :  { %v1985_v37 = vadd.f32 %v1984_v55, %v1896_v45  ;;  %v221_v55 = vld [vmem:[%s12685_s0 + $0x608] sm:$0xff]  ;;  %2314 = vmatpush.bf16.msra.mxu0 %v6641_v20 }
 0x16d   :  { %2403 = vmatpush.bf16.msra.mxu1 %v6769_v3  ;;  %v7686_v3 = vld [vmem:[%s12683_s1 + $0x264] sm:$0xf] }
 0x16e   :  { %v9232_v15 = vadd.f32 %v2073_v61, %v1985_v37  ;;  %v1808_v6 = vpop.f32.mrf.mxu2  ;;  %v9246_v61 = vpack.c.bf16 %v221_v55, %v214_v19  ;;  %v9251_v37 = vpack.c.bf16 %v220_v2, %v213_v57  ;;  %v7650_v2 = vld [vmem:[%s12683_s1 + $0x144] sm:$0xf] }
 0x16f   :  { %v1809_v38 = vadd.f32 %v1808_v6, %v8794_v29 }
 0x170   :  { %13078 = vst [vmem:[#allocation97_spill] sm:$0xff] %v9232_v15  ;;  %v1989_v45 = vpop.f32.mrf.mxu0 }
 0x171   :  { %v1897_v9 = vpop.f32.mrf.mxu3  ;;  %13080 = vst [vmem:[#allocation99_spill] sm:$0xff] %v9246_v61  ;;  %v2078_v15 = vpop.f32.mrf.mxu1 }
 0x172   :  { %13081 = vst [vmem:[#allocation100_spill] sm:$0xff] %v9251_v37  ;;  %v1898_v11 = vadd.f32 %v1897_v9, %v1809_v38  ;;  %v6737_v38 = vor.u32 %v7682_v32, %v6734_v34  ;;  %v229_v32 = vld [vmem:[%s12685_s0 + $0x648] sm:$0xff]  ;;  %v7642_v34 = vld [vmem:[%s12683_s1 + $0x104] sm:$0xf] }
 0x173   :  { %1850 = vmatmul.bf16.gmra.mxu2 %v9244_v46  ;;  %2028 = vmatmul.bf16.gmra.mxu0 %v9246_v61 }
 0x174   :  { %v1987_v29 = vadd.f32 %v1986_v27, %v1898_v11  ;;  %2117 = vmatmul.bf16.gmra.mxu1 %v9253_v43  ;;  %v6750_v11 = vld [vmem:[%s12683_s1 + $0x270] sm:$0xf0]  ;;  %v6625_v27 = vor.u32 %v7654_v59, %v6622_v50 }
 0x175   :  { %v6753_v57 = vor.u32 %v7686_v3, %v6750_v11  ;;  %v226_v50 = vld [vmem:[%s12685_s0 + $0x630] sm:$0xff]  ;;  %v233_v3 = vld [vmem:[%s12685_s0 + $0x668] sm:$0xff] }
 0x176   :  { %1939 = vmatmul.bf16.gmra.mxu3 %v9251_v37  ;;  %v9271_v19 = vadd.f32 %v2075_v28, %v1987_v29  ;;  %v1811_v55 = vpop.f32.mrf.mxu2  ;;  %2315 = vmatpush.bf16.msra.mxu0 %v6625_v27  ;;  %v6609_v28 = vor.u32 %v7650_v2, %v6606_v26  ;;  %v7678_v29 = vld [vmem:[%s12683_s1 + $0x224] sm:$0xf]  ;;  %v6718_v27 = vld [vmem:[%s12683_s1 + $0x230] sm:$0xf0] }
 0x177   :  { %v1812_v6 = vadd.f32 %v1811_v55, %v8832_v23  ;;  %2404 = vmatpush.bf16.msra.mxu1 %v6753_v57  ;;  %v6590_v23 = vld [vmem:[%s12683_s1 + $0x130] sm:$0xf0]  ;;  %v227_v57 = vld [vmem:[%s12685_s0 + $0x638] sm:$0xff]  ;;  %v6721_v2 = vor.u32 %v7678_v29, %v6718_v27  ;;  %v9334_v29 = vpack.c.bf16 %v233_v3, %v226_v50  ;;  %v7734_v50 = vld [vmem:[%s12683_s1 + $0x3e4] sm:$0xf] }
 0x178   :  { %v1991_v39 = vpop.f32.mrf.mxu0  ;;  %v6593_v11 = vor.u32 %v7646_v53, %v6590_v23  ;;  %v235_v55 = vld [vmem:[%s12685_s0 + $0x678] sm:$0xff]  ;;  %v234_v26 = vld [vmem:[%s12685_s0 + $0x670] sm:$0xff] }
 0x179   :  { %v1900_v12 = vpop.f32.mrf.mxu3  ;;  %v2080_v20 = vpop.f32.mrf.mxu1  ;;  %13084 = vst [vmem:[#allocation103_spill] sm:$0xff] %v9334_v29  ;;  %v9341_v61 = vpack.c.bf16 %v234_v26, %v227_v57  ;;  %v6942_v3 = vld [vmem:[%s12683_s1 + $0x3f0] sm:$0xf0] }
 0x17a   :  { %v1901_v9 = vadd.f32 %v1900_v12, %v1812_v6  ;;  %2316 = vmatpush.bf16.msra.mxu0 %v6609_v28  ;;  %v236_v6 = vld [vmem:[%s12685_s0 + $0x680] sm:$0xff] }
 0x17b   :  { %2405 = vmatpush.bf16.msra.mxu1 %v6737_v38  ;;  %v6574_v38 = vld [vmem:[%s12683_s1 + $0x110] sm:$0xf0]  ;;  %13086 = vst [vmem:[#allocation105_spill] sm:$0xff] %v9341_v61  ;;  %v9343_v43 = vpack.c.bf16 %v236_v6, %v229_v32 }
 0x17c   :  { %v1990_v59 = vadd.f32 %v1989_v45, %v1901_v9  ;;  %v228_v45 = vld [vmem:[%s12685_s0 + $0x640] sm:$0xff]  ;;  %v6577_v46 = vor.u32 %v7642_v34, %v6574_v38 }
 0x17d   :  { %v7674_v9 = vld [vmem:[%s12683_s1 + $0x204] sm:$0xf]  ;;  %13087 = vst [vmem:[#allocation106_spill] sm:$0xff] %v9343_v43 }
 0x17e   :  { %v9322_v12 = vadd.f32 %v2078_v15, %v1990_v59  ;;  %v1813_v28 = vpop.f32.mrf.mxu2  ;;  %v9336_v15 = vpack.c.bf16 %v235_v55, %v228_v45  ;;  %2317 = vmatpush.bf16.msra.mxu0 %v6593_v11  ;;  %v6702_v59 = vld [vmem:[%s12683_s1 + $0x210] sm:$0xf0] }
 0x17f   :  { %v1814_v53 = vadd.f32 %v1813_v28, %v8842_v41  ;;  %2406 = vmatpush.bf16.msra.mxu1 %v6721_v2  ;;  %v6705_v41 = vor.u32 %v7674_v9, %v6702_v59  ;;  %v7070_v11 = vld [vmem:[%s12683_s1 + $0x4f0] sm:$0xf0]  ;;  %v241_v9 = vld [vmem:[%s12685_s0 + $0x6a8] sm:$0xff]  ;;  %v243_v59 = vld [vmem:[%s12685_s0 + $0x6b8] sm:$0xff] }
 0x180   :  { %13083 = vst [vmem:[#allocation102_spill] sm:$0xff] %v9322_v12  ;;  %v1994_v27 = vpop.f32.mrf.mxu0 }
 0x181   :  { %v1902_v23 = vpop.f32.mrf.mxu3  ;;  %13085 = vst [vmem:[#allocation104_spill] sm:$0xff] %v9336_v15  ;;  %v2083_v12 = vpop.f32.mrf.mxu1 }
 0x182   :  { %v1903_v37 = vadd.f32 %v1902_v23, %v1814_v53  ;;  %2318 = vmatpush.bf16.msra.mxu0 %v6577_v46  ;;  %v240_v46 = vld [vmem:[%s12685_s0 + $0x6a0] sm:$0xff]  ;;  %v249_v53 = vld [vmem:[%s12685_s0 + $0x6e8] sm:$0xff] }
 0x183   :  { %1855 = vmatmul.bf16.gmra.mxu2 %v9334_v29  ;;  %2033 = vmatmul.bf16.gmra.mxu0 %v9336_v15  ;;  %v248_v23 = vld [vmem:[%s12685_s0 + $0x6e0] sm:$0xff] }
 0x184   :  { %v1992_v28 = vadd.f32 %v1991_v39, %v1903_v37  ;;  %2122 = vmatmul.bf16.gmra.mxu1 %v9343_v43  ;;  %v7766_v37 = vld [vmem:[%s12683_s1 + $0x4e4] sm:$0xf]  ;;  %v6945_v39 = vor.u32 %v7734_v50, %v6942_v3 }
 0x185   :  { %2407 = vmatpush.bf16.msra.mxu1 %v6705_v41  ;;  %v7073_v55 = vor.u32 %v7766_v37, %v7070_v11 }
 0x186   :  { %1944 = vmatmul.bf16.gmra.mxu3 %v9341_v61  ;;  %v9361_v57 = vadd.f32 %v2080_v20, %v1992_v28  ;;  %v1816_v45 = vpop.f32.mrf.mxu2  ;;  %2489 = vmatpush.bf16.msrb.mxu2 %v6945_v39  ;;  %v247_v20 = vld [vmem:[%s12685_s0 + $0x6d8] sm:$0xff]  ;;  %v13135_v61 = vld [vmem:[#allocation16_spill] sm:$0xff] }
 0x187   :  { %v1817_v2 = vadd.f32 %v1816_v45, %v8880_v44  ;;  %2578 = vmatpush.bf16.msrb.mxu3 %v7073_v55  ;;  %v242_v44 = vld [vmem:[%s12685_s0 + $0x6b0] sm:$0xff]  ;;  %v9391_v37 = vpack.c.bf16 %v247_v20, %v240_v46  ;;  %v9395_v45 = vpack.c.bf16 %v248_v23, %v241_v9  ;;  %v41_v23 = vld [vmem:[%s12685_s0 + $0x68] sm:$0xff] }
 0x188   :  { %v1996_v32 = vpop.f32.mrf.mxu0  ;;  %v9393_v39 = vpack.c.bf16 %v249_v53, %v242_v44 }
 0x189   :  { %v1905_v26 = vpop.f32.mrf.mxu3  ;;  %v2085_v34 = vpop.f32.mrf.mxu1  ;;  %13088 = vst [vmem:[#allocation107_spill] sm:$0xff] %v9391_v37 }
 0x18a   :  { %v1906_v6 = vadd.f32 %v1905_v26, %v1817_v2  ;;  %13089 = vst [vmem:[#allocation108_spill] sm:$0xff] %v9393_v39 }
 0x18b   :  { %13090 = vst [vmem:[#allocation109_spill] sm:$0xff] %v9395_v45 }
 0x18c   :  { %v1995_v38 = vadd.f32 %v1994_v27, %v1906_v6  ;;  %v250_v27 = vld [vmem:[%s12685_s0 + $0x6f0] sm:$0xff] }
 0x18d   :  { %v9397_v55 = vpack.c.bf16 %v250_v27, %v243_v59 }
 0x18e   :  { %v9388_v41 = vadd.f32 %v2083_v12, %v1995_v38  ;;  %v1818_v28 = vpop.f32.mrf.mxu2 }
 0x18f   :  { %v1819_v50 = vadd.f32 %v1818_v28, %v8896_v47  ;;  %13091 = vst [vmem:[#allocation110_spill] sm:$0xff] %v9397_v55 }
 0x190   :  { %v1999_v11 = vpop.f32.mrf.mxu0 }
 0x191   :  { %v1907_v3 = vpop.f32.mrf.mxu3  ;;  %v2088_v26 = vpop.f32.mrf.mxu1 }
 0x192   :  { %v1908_v2 = vadd.f32 %v1907_v3, %v1819_v50 }
 0x193   :  { %1860 = vmatmul.bf16.gmra.mxu2 %v9391_v37  ;;  %2038 = vmatmul.bf16.gmra.mxu0 %v9393_v39 }
 0x194   :  { %v1997_v6 = vadd.f32 %v1996_v32, %v1908_v2  ;;  %2127 = vmatmul.bf16.gmra.mxu1 %v9397_v55  ;;  %v34_v32 = vld [vmem:[%s12685_s0 + $0x30] sm:$0xff] }
 0x196   :  { %1949 = vmatmul.bf16.gmra.mxu3 %v9395_v45  ;;  %v9403_v47 = vadd.f32 %v2085_v34, %v1997_v6  ;;  %v1821_v12 = vpop.f32.mrf.mxu2  ;;  %v7762_v6 = vld [vmem:[%s12683_s1 + $0x4c4] sm:$0xf] }
 0x197   :  { %v1822_v38 = vadd.f32 %v1821_v12, %v8934_v0  ;;  %v9415_v0 = vpack.c.bf16 %v41_v23, %v34_v32 }
 0x198   :  { %v2001_v20 = vpop.f32.mrf.mxu0 }
 0x199   :  { %v1910_v46 = vpop.f32.mrf.mxu3  ;;  %v2090_v44 = vpop.f32.mrf.mxu1  ;;  %13092 = vst [vmem:[#allocation111_spill] sm:$0xff] %v9415_v0 }
 0x19a   :  { %v1911_v9 = vadd.f32 %v1910_v46, %v1822_v38  ;;  %v7054_v38 = vld [vmem:[%s12683_s1 + $0x4d0] sm:$0xf0] }
 0x19c   :  { %v2000_v53 = vadd.f32 %v1999_v11, %v1911_v9  ;;  %v7057_v9 = vor.u32 %v7762_v6, %v7054_v38 }
 0x19e   :  { %v9412_v59 = vadd.f32 %v2088_v26, %v2000_v53  ;;  %v1823_v34 = vpop.f32.mrf.mxu2  ;;  %v6926_v26 = vld [vmem:[%s12683_s1 + $0x3d0] sm:$0xf0]  ;;  %2579 = vmatpush.bf16.msrb.mxu3 %v7057_v9 }
 0x19f   :  { %v1824_v27 = vadd.f32 %v1823_v34, %v8950_v17  ;;  %v7730_v17 = vld [vmem:[%s12683_s1 + $0x3c4] sm:$0xf] }
 0x1a0   :  { %v2004_v50 = vpop.f32.mrf.mxu0  ;;  %v6929_v12 = vor.u32 %v7730_v17, %v6926_v26 }
 0x1a1   :  { %v1912_v28 = vpop.f32.mrf.mxu3  ;;  %v2093_v11 = vpop.f32.mrf.mxu1 }
 0x1a2   :  { %v1913_v3 = vadd.f32 %v1912_v28, %v1824_v27  ;;  %2490 = vmatpush.bf16.msrb.mxu2 %v6929_v12 }
 0x1a3   :  { %7226 = vmatmul.msk.bf16.vlgmr.msra.gmra.mxu2 %vm1550_vm0, %v9415_v0  ;;  %2319 = vmatmul.bf16.vlgmr.msra.gmra.mxu0 %v8096_v4 }
 0x1a4   :  { %v2002_v2 = vadd.f32 %v2001_v20, %v1913_v3  ;;  %2408 = vmatmul.bf16.vlgmr.msra.gmra.mxu1 %v8565_v56  ;;  %v48_v3 = vld [vmem:[%s12685_s0 + $0xa0] sm:$0xff] }
 0x1a6   :  { %2230 = vmatmul.bf16.vlgmr.msra.gmra.mxu3 %v8083_v63  ;;  %v9434_v46 = vadd.f32 %v2090_v44, %v2002_v2  ;;  %v1826_v20 = vpop.f32.mrf.mxu2  ;;  %v55_v44 = vld [vmem:[%s12685_s0 + $0xd8] sm:$0xff] }
 0x1a7   :  { %v1827_v53 = vadd.f32 %v1826_v20, %v8587_v31  ;;  %v9446_v6 = vpack.c.bf16 %v55_v44, %v48_v3  ;;  %v69_v44 = vld [vmem:[%s12685_s0 + $0x148] sm:$0xff]  ;;  %v13117_v63 = vld [vmem:[#allocation6_spill] sm:$0xff] }
 0x1a8   :  { %v2006_v23 = vpop.f32.mrf.mxu0 }
 0x1a9   :  { %v1915_v32 = vpop.f32.mrf.mxu3  ;;  %v2095_v27 = vpop.f32.mrf.mxu1  ;;  %13093 = vst [vmem:[#allocation112_spill] sm:$0xff] %v9446_v6 }
 0x1aa   :  { %v1916_v34 = vadd.f32 %v1915_v32, %v1827_v53 }
 0x1ac   :  { %v2005_v28 = vadd.f32 %v2004_v50, %v1916_v34 }
 0x1ae   :  { %v9443_v2 = vadd.f32 %v2093_v11, %v2005_v28  ;;  %v1828_v17 = vpop.f32.mrf.mxu2 }
 0x1af   :  { %v1829_v31 = vadd.f32 %v1828_v17, %v8625_v21 }
 0x1b0   :  { %v2009_v12 = vpop.f32.mrf.mxu0 }
 0x1b1   :  { %v1917_v26 = vpop.f32.mrf.mxu3  ;;  %v2098_v20 = vpop.f32.mrf.mxu1 }
 0x1b2   :  { %v1918_v38 = vadd.f32 %v1917_v26, %v1829_v31 }
 0x1b3   :  { %7227 = vmatmul.msk.bf16.gmra.mxu2 %vm1550_vm0, %v9446_v6  ;;  %2324 = vmatmul.bf16.gmra.mxu0 %v8144_v24  ;;  %v13113_v24 = vld [vmem:[#allocation67_spill] sm:$0xff] }
 0x1b4   :  { %v2007_v50 = vadd.f32 %v2006_v23, %v1918_v38  ;;  %2413 = vmatmul.bf16.gmra.mxu1 %v8617_v54  ;;  %v62_v23 = vld [vmem:[%s12685_s0 + $0x110] sm:$0xff] }
 0x1b6   :  { %2235 = vmatmul.bf16.gmra.mxu3 %v8140_v22  ;;  %v9453_v11 = vadd.f32 %v2095_v27, %v2007_v50  ;;  %v1831_v9 = vpop.f32.mrf.mxu2 }
 0x1b7   :  { %v1832_v21 = vadd.f32 %v1831_v9, %v8635_v35  ;;  %v9465_v35 = vpack.c.bf16 %v69_v44, %v62_v23 }
 0x1b8   :  { %v2011_v32 = vpop.f32.mrf.mxu0 }
 0x1b9   :  { %v1920_v53 = vpop.f32.mrf.mxu3  ;;  %v2100_v28 = vpop.f32.mrf.mxu1  ;;  %13094 = vst [vmem:[#allocation113_spill] sm:$0xff] %v9465_v35 }
 0x1ba   :  { %v1921_v34 = vadd.f32 %v1920_v53, %v1832_v21  ;;  %v7758_v21 = vld [vmem:[%s12683_s1 + $0x4a4] sm:$0xf] }
 0x1bc   :  { %v2010_v3 = vadd.f32 %v2009_v12, %v1921_v34 }
 0x1be   :  { %v9462_v17 = vadd.f32 %v2098_v20, %v2010_v3  ;;  %v1833_v27 = vpop.f32.mrf.mxu2  ;;  %v6910_v20 = vld [vmem:[%s12683_s1 + $0x3b0] sm:$0xf0] }
 0x1bf   :  { %v1834_v31 = vadd.f32 %v1833_v27, %v8673_v62  ;;  %v7726_v62 = vld [vmem:[%s12683_s1 + $0x3a4] sm:$0xf] }
 0x1c0   :  { %v2014_v38 = vpop.f32.mrf.mxu0  ;;  %v6913_v53 = vor.u32 %v7726_v62, %v6910_v20  ;;  %v76_v62 = vld [vmem:[%s12685_s0 + $0x180] sm:$0xff] }
 0x1c1   :  { %v1922_v26 = vpop.f32.mrf.mxu3  ;;  %v2103_v9 = vpop.f32.mrf.mxu1 }
 0x1c2   :  { %v1923_v50 = vadd.f32 %v1922_v26, %v1834_v31  ;;  %2491 = vmatpush.bf16.msrb.mxu2 %v6913_v53 }
 0x1c3   :  { %7228 = vmatmul.msk.bf16.gmra.mxu2 %vm1550_vm0, %v9465_v35  ;;  %2329 = vmatmul.bf16.gmra.mxu0 %v8192_v42 }
 0x1c4   :  { %v2012_v12 = vadd.f32 %v2011_v32, %v1923_v50  ;;  %2418 = vmatmul.bf16.gmra.mxu1 %v8665_v30  ;;  %v7038_v32 = vld [vmem:[%s12683_s1 + $0x4b0] sm:$0xf0] }
 0x1c5   :  { %v7041_v23 = vor.u32 %v7758_v21, %v7038_v32 }
 0x1c6   :  { %2240 = vmatmul.bf16.gmra.mxu3 %v8188_v40  ;;  %v9484_v34 = vadd.f32 %v2100_v28, %v2012_v12  ;;  %v1836_v3 = vpop.f32.mrf.mxu2  ;;  %v83_v28 = vld [vmem:[%s12685_s0 + $0x1b8] sm:$0xff] }
 0x1c7   :  { %v1837_v44 = vadd.f32 %v1836_v3, %v8689_v52  ;;  %2580 = vmatpush.bf16.msrb.mxu3 %v7041_v23  ;;  %v9496_v53 = vpack.c.bf16 %v83_v28, %v76_v62 }
 0x1c8   :  { %v2016_v31 = vpop.f32.mrf.mxu0 }
 0x1c9   :  { %v1925_v27 = vpop.f32.mrf.mxu3  ;;  %v2105_v50 = vpop.f32.mrf.mxu1  ;;  %13095 = vst [vmem:[#allocation114_spill] sm:$0xff] %v9496_v53 }
 0x1ca   :  { %v1926_v26 = vadd.f32 %v1925_v27, %v1837_v44 }
 0x1cc   :  { %v2015_v42 = vadd.f32 %v2014_v38, %v1926_v26 }
 0x1ce   :  { %v9493_v12 = vadd.f32 %v2103_v9, %v2015_v42  ;;  %v1838_v20 = vpop.f32.mrf.mxu2 }
 0x1cf   :  { %v1839_v52 = vadd.f32 %v1838_v20, %v8727_v1  ;;  %v97_v20 = vld [vmem:[%s12685_s0 + $0x228] sm:$0xff] }
 0x1d0   :  { %v2019_v32 = vpop.f32.mrf.mxu0 }
 0x1d1   :  { %v1927_v21 = vpop.f32.mrf.mxu3  ;;  %v2108_v23 = vpop.f32.mrf.mxu1 }
 0x1d2   :  { %v1928_v3 = vadd.f32 %v1927_v21, %v1839_v52 }
 0x1d3   :  { %7229 = vmatmul.msk.bf16.gmra.mxu2 %vm1550_vm0, %v9496_v53  ;;  %2334 = vmatmul.bf16.gmra.mxu0 %v8240_v60 }
 0x1d4   :  { %v2017_v38 = vadd.f32 %v2016_v31, %v1928_v3  ;;  %2423 = vmatmul.bf16.gmra.mxu1 %v8719_v7  ;;  %v90_v31 = vld [vmem:[%s12685_s0 + $0x1f0] sm:$0xff]  ;;  %v13106_v7 = vld [vmem:[#allocation27_spill] sm:$0xff] }
 0x1d6   :  { %2245 = vmatmul.bf16.gmra.mxu3 %v8236_v58  ;;  %v9503_v42 = vadd.f32 %v2105_v50, %v2017_v38  ;;  %v1841_v9 = vpop.f32.mrf.mxu2  ;;  %v13107_v58 = vld [vmem:[#allocation61_spill] sm:$0xff] }
 0x1d7   :  { %v1842_v1 = vadd.f32 %v1841_v9, %v8737_v48  ;;  %v9515_v48 = vpack.c.bf16 %v97_v20, %v90_v31 }
 0x1d8   :  { %v2021_v27 = vpop.f32.mrf.mxu0 }
 0x1d9   :  { %v1930_v44 = vpop.f32.mrf.mxu3  ;;  %v2110_v62 = vpop.f32.mrf.mxu1  ;;  %13096 = vst [vmem:[#allocation115_spill] sm:$0xff] %v9515_v48 }
 0x1da   :  { %v1931_v26 = vadd.f32 %v1930_v44, %v1842_v1  ;;  %v7754_v44 = vld [vmem:[%s12683_s1 + $0x484] sm:$0xf] }
 0x1dc   :  { %v2020_v28 = vadd.f32 %v2019_v32, %v1931_v26  ;;  %v7022_v26 = vld [vmem:[%s12683_s1 + $0x490] sm:$0xf0] }
 0x1dd   :  { %v7025_v20 = vor.u32 %v7754_v44, %v7022_v26  ;;  %v13097_v44 = vld [vmem:[#allocation59_spill] sm:$0xff] }
 0x1de   :  { %v9512_v52 = vadd.f32 %v2108_v23, %v2020_v28  ;;  %v1843_v50 = vpop.f32.mrf.mxu2  ;;  %v6894_v23 = vld [vmem:[%s12683_s1 + $0x390] sm:$0xf0] }
 0x1df   :  { %v1844_v21 = vadd.f32 %v1843_v50, %v8775_v10  ;;  %v7722_v10 = vld [vmem:[%s12683_s1 + $0x384] sm:$0xf]  ;;  %2581 = vmatpush.bf16.msrb.mxu3 %v7025_v20 }
 0x1e0   :  { %v2024_v38 = vpop.f32.mrf.mxu0 }
 0x1e1   :  { %v1932_v3 = vpop.f32.mrf.mxu3  ;;  %v2113_v1 = vpop.f32.mrf.mxu1 }
 0x1e2   :  { %v1933_v9 = vadd.f32 %v1932_v3, %v1844_v21 }
 0x1e3   :  { %7230 = vmatmul.msk.bf16.gmra.mxu2 %vm1550_vm0, %v9515_v48  ;;  %2339 = vmatmul.bf16.gmra.mxu0 %v8288_v18 }
 0x1e4   :  { %v2022_v32 = vadd.f32 %v2021_v27, %v1933_v9  ;;  %2428 = vmatmul.bf16.gmra.mxu1 %v8767_v49  ;;  %v6897_v27 = vor.u32 %v7722_v10, %v6894_v23  ;;  %v104_v10 = vld [vmem:[%s12685_s0 + $0x260] sm:$0xff] }
 0x1e6   :  { %2250 = vmatmul.bf16.gmra.mxu3 %v8284_v16  ;;  %v9534_v28 = vadd.f32 %v2110_v62, %v2022_v32  ;;  %v1846_v31 = vpop.f32.mrf.mxu2  ;;  %2492 = vmatpush.bf16.msrb.mxu2 %v6897_v27  ;;  %v111_v62 = vld [vmem:[%s12685_s0 + $0x298] sm:$0xff]  ;;  %v13101_v16 = vld [vmem:[#allocation55_spill] sm:$0xff] }
 0x1e7   :  { %v1847_v50 = vadd.f32 %v1846_v31, %v8791_v51  ;;  %v9546_v27 = vpack.c.bf16 %v111_v62, %v104_v10 }
 0x1e8   :  { %v2026_v3 = vpop.f32.mrf.mxu0 }
 0x1e9   :  { %v1935_v21 = vpop.f32.mrf.mxu3  ;;  %v2115_v18 = vpop.f32.mrf.mxu1  ;;  %13098 = vst [vmem:[#allocation59_spill] sm:$0xff] %v9546_v27 }
 0x1ea   :  { %v1936_v9 = vadd.f32 %v1935_v21, %v1847_v50  ;;  %v13099_v21 = vld [vmem:[#allocation25_spill] sm:$0xff] }
 0x1ec   :  { %v2025_v49 = vadd.f32 %v2024_v38, %v1936_v9  ;;  %v13100_v9 = vld [vmem:[#allocation23_spill] sm:$0xff] }
 0x1ee   :  { %v9543_v32 = vadd.f32 %v2113_v1, %v2025_v49  ;;  %v1848_v23 = vpop.f32.mrf.mxu2 }
 0x1ef   :  { %v1849_v51 = vadd.f32 %v1848_v23, %v13097_v44  ;;  %v13102_v23 = vld [vmem:[#allocation60_spill] sm:$0xff] }
 0x1f0   :  { %v2029_v31 = vpop.f32.mrf.mxu0 }
 0x1f1   :  { %v1937_v26 = vpop.f32.mrf.mxu3  ;;  %v2118_v50 = vpop.f32.mrf.mxu1 }
 0x1f2   :  { %v1938_v20 = vadd.f32 %v1937_v26, %v1849_v51 }
 0x1f3   :  { %7231 = vmatmul.msk.bf16.gmra.mxu2 %vm1550_vm0, %v9546_v27  ;;  %2344 = vmatmul.bf16.gmra.mxu0 %v13099_v21 }
 0x1f4   :  { %v2027_v38 = vadd.f32 %v2026_v3, %v1938_v20  ;;  %2433 = vmatmul.bf16.gmra.mxu1 %v13101_v16  ;;  %v118_v3 = vld [vmem:[%s12685_s0 + $0x2d0] sm:$0xff]  ;;  %v125_v20 = vld [vmem:[%s12685_s0 + $0x308] sm:$0xff] }
 0x1f6   :  { %2255 = vmatmul.bf16.gmra.mxu3 %v13100_v9  ;;  %v9553_v49 = vadd.f32 %v2115_v18, %v2027_v38  ;;  %v1851_v1 = vpop.f32.mrf.mxu2  ;;  %v13103_v38 = vld [vmem:[#allocation65_spill] sm:$0xff] }
 0x1f7   :  { %v1852_v44 = vadd.f32 %v1851_v1, %v13102_v23  ;;  %v9565_v1 = vpack.c.bf16 %v125_v20, %v118_v3 }
 0x1f8   :  { %v2031_v62 = vpop.f32.mrf.mxu0 }
 0x1f9   :  { %v1940_v10 = vpop.f32.mrf.mxu3  ;;  %v2120_v51 = vpop.f32.mrf.mxu1  ;;  %13104 = vst [vmem:[#allocation60_spill] sm:$0xff] %v9565_v1 }
 0x1fa   :  { %v1941_v60 = vadd.f32 %v1940_v10, %v1852_v44 }
 0x1fc   :  { %v2030_v26 = vadd.f32 %v2029_v31, %v1941_v60  ;;  %v13105_v31 = vld [vmem:[#allocation29_spill] sm:$0xff] }
 0x1fe   :  { %v9562_v21 = vadd.f32 %v2118_v50, %v2030_v26  ;;  %v1853_v18 = vpop.f32.mrf.mxu2  ;;  %v7718_v50 = vld [vmem:[%s12683_s1 + $0x364] sm:$0xf]  ;;  %v6878_v26 = vld [vmem:[%s12683_s1 + $0x370] sm:$0xf0] }
 0x1ff   :  { %v1854_v16 = vadd.f32 %v1853_v18, %v13103_v38  ;;  %v13108_v38 = vld [vmem:[#allocation66_spill] sm:$0xff] }
 0x200   :  { %v2034_v23 = vpop.f32.mrf.mxu0 }
 0x201   :  { %v1942_v9 = vpop.f32.mrf.mxu3  ;;  %v2123_v10 = vpop.f32.mrf.mxu1 }
 0x202   :  { %v1943_v44 = vadd.f32 %v1942_v9, %v1854_v16  ;;  %v7750_v16 = vld [vmem:[%s12683_s1 + $0x464] sm:$0xf]  ;;  %v6881_v9 = vor.u32 %v7718_v50, %v6878_v26 }
 0x203   :  { %7232 = vmatmul.msk.bf16.gmra.mxu2 %vm1550_vm0, %v9565_v1  ;;  %2349 = vmatmul.bf16.gmra.mxu0 %v13105_v31  ;;  %v132_v50 = vld [vmem:[%s12685_s0 + $0x340] sm:$0xff] }
 0x204   :  { %v2032_v60 = vadd.f32 %v2031_v62, %v1943_v44  ;;  %2438 = vmatmul.bf16.gmra.mxu1 %v13107_v58  ;;  %v7006_v62 = vld [vmem:[%s12683_s1 + $0x470] sm:$0xf0]  ;;  %2493 = vmatpush.bf16.msrb.mxu2 %v6881_v9 }
 0x205   :  { %v7009_v18 = vor.u32 %v7750_v16, %v7006_v62  ;;  %v13109_v16 = vld [vmem:[#allocation71_spill] sm:$0xff] }
 0x206   :  { %2260 = vmatmul.bf16.gmra.mxu3 %v13106_v7  ;;  %v9584_v3 = vadd.f32 %v2120_v51, %v2032_v60  ;;  %v1856_v20 = vpop.f32.mrf.mxu2  ;;  %v139_v51 = vld [vmem:[%s12685_s0 + $0x378] sm:$0xff] }
 0x207   :  { %v1857_v44 = vadd.f32 %v1856_v20, %v13108_v38  ;;  %2582 = vmatpush.bf16.msrb.mxu3 %v7009_v18  ;;  %v9596_v9 = vpack.c.bf16 %v139_v51, %v132_v50 }
 0x208   :  { %v2036_v58 = vpop.f32.mrf.mxu0 }
 0x209   :  { %v1945_v31 = vpop.f32.mrf.mxu3  ;;  %v2125_v30 = vpop.f32.mrf.mxu1  ;;  %13110 = vst [vmem:[#allocation65_spill] sm:$0xff] %v9596_v9 }
 0x20a   :  { %v1946_v7 = vadd.f32 %v1945_v31, %v1857_v44  ;;  %v13112_v44 = vld [vmem:[#allocation31_spill] sm:$0xff] }
 0x20c   :  { %v2035_v40 = vadd.f32 %v2034_v23, %v1946_v7  ;;  %v13111_v23 = vld [vmem:[#allocation33_spill] sm:$0xff] }
 0x20e   :  { %v9593_v60 = vadd.f32 %v2123_v10, %v2035_v40  ;;  %v1858_v26 = vpop.f32.mrf.mxu2 }
 0x20f   :  { %v1859_v62 = vadd.f32 %v1858_v26, %v13109_v16  ;;  %v13114_v26 = vld [vmem:[#allocation72_spill] sm:$0xff] }
 0x210   :  { %v2039_v18 = vpop.f32.mrf.mxu0 }
 0x211   :  { %v1947_v20 = vpop.f32.mrf.mxu3  ;;  %v2128_v38 = vpop.f32.mrf.mxu1 }
 0x212   :  { %v1948_v31 = vadd.f32 %v1947_v20, %v1859_v62  ;;  %v7198_v20 = vld [vmem:[%s12683_s1 + $0x5f0] sm:$0xf0] }
 0x213   :  { %7233 = vmatmul.msk.bf16.gmra.mxu2 %vm1550_vm0, %v9596_v9  ;;  %2354 = vmatmul.bf16.gmra.mxu0 %v13111_v23 }
 0x214   :  { %v2037_v7 = vadd.f32 %v2036_v58, %v1948_v31  ;;  %2443 = vmatmul.bf16.gmra.mxu1 %v13113_v24  ;;  %v7798_v58 = vld [vmem:[%s12683_s1 + $0x5e4] sm:$0xf] }
 0x216   :  { %2265 = vmatmul.bf16.gmra.mxu3 %v13112_v44  ;;  %v9603_v40 = vadd.f32 %v2125_v30, %v2037_v7  ;;  %v1861_v10 = vpop.f32.mrf.mxu2  ;;  %v7802_v30 = vld [vmem:[%s12683_s1 + $0x604] sm:$0xf]  ;;  %v7201_v7 = vor.u32 %v7798_v58, %v7198_v20 }
 0x217   :  { %v1862_v16 = vadd.f32 %v1861_v10, %v13114_v26  ;;  %v7214_v10 = vld [vmem:[%s12683_s1 + $0x610] sm:$0xf0] }
 0x218   :  { %v2041_v51 = vpop.f32.mrf.mxu0  ;;  %v146_v26 = vld [vmem:[%s12685_s0 + $0x3b0] sm:$0xff]  ;;  %2667 = vmatpush.bf16.msrb.mxu0 %v7201_v7  ;;  %v7714_v7 = vld [vmem:[%s12683_s1 + $0x344] sm:$0xf] }
 0x219   :  { %v1950_v50 = vpop.f32.mrf.mxu3  ;;  %v2130_v62 = vpop.f32.mrf.mxu1 }
 0x21a   :  { %v1951_v54 = vadd.f32 %v1950_v50, %v1862_v16  ;;  %v153_v16 = vld [vmem:[%s12685_s0 + $0x3e8] sm:$0xff]  ;;  %v7217_v50 = vor.u32 %v7802_v30, %v7214_v10 }
 0x21b   :  { %v9627_v20 = vpack.c.bf16 %v153_v16, %v146_v26  ;;  %v6990_v26 = vld [vmem:[%s12683_s1 + $0x450] sm:$0xf0] }
 0x21c   :  { %v2040_v31 = vadd.f32 %v2039_v18, %v1951_v54  ;;  %2763 = vmatpush.bf16.msrb.mxu1 %v7217_v50  ;;  %v13115_v54 = vld [vmem:[#allocation77_spill] sm:$0xff] }
 0x21d   :  { %13116 = vst [vmem:[#allocation66_spill] sm:$0xff] %v9627_v20 }
 0x21e   :  { %v9624_v23 = vadd.f32 %v2128_v38, %v2040_v31  ;;  %v1863_v24 = vpop.f32.mrf.mxu2  ;;  %v7904_v38 = vld [vmem:[%s12684_s5] sm:$0xf]  ;;  %v13118_v31 = vld [vmem:[#allocation4_spill] sm:$0xff] }
 0x21f   :  { %v1864_v18 = vadd.f32 %v1863_v24, %v13115_v54  ;;  %v9635_v30 = vperm.slane %v7904_v38, 1  ;;  %v13119_v24 = vld [vmem:[#allocation73_spill] sm:$0xff] }
 0x220   :  { %v2320_v44 = vpop.f32.mrf.mxu0 }
 0x221   :  { %v1952_v58 = vpop.f32.mrf.mxu3  ;;  %v2409_v4 = vpop.f32.mrf.mxu1 }
 0x222   :  { %v1953_v22 = vadd.f32 %v1952_v58, %v1864_v18  ;;  %v13120_v18 = vld [vmem:[#allocation78_spill] sm:$0xff] }
 0x223   :  { %7234 = vmatmul.msk.bf16.gmra.mxu2 %vm1550_vm0, %v9627_v20  ;;  %2359 = vmatmul.bf16.gmra.mxu0 %v13117_v63 }
 0x224   :  { %v2042_v56 = vadd.f32 %v2041_v51, %v1953_v22  ;;  %2448 = vmatmul.bf16.gmra.mxu1 %v13119_v24  ;;  %v6862_v22 = vld [vmem:[%s12683_s1 + $0x350] sm:$0xf0]  ;;  %v7746_v51 = vld [vmem:[%s12683_s1 + $0x444] sm:$0xf] }
 0x225   :  { %v6865_v10 = vor.u32 %v7714_v7, %v6862_v22  ;;  %v6993_v54 = vor.u32 %v7746_v51, %v6990_v26  ;;  %v160_v7 = vld [vmem:[%s12685_s0 + $0x420] sm:$0xff] }
 0x226   :  { %2270 = vmatmul.bf16.gmra.mxu3 %v13118_v31  ;;  %v9651_v16 = vadd.f32 %v2130_v62, %v2042_v56  ;;  %v2142_v50 = vpop.f32.mrf.mxu2  ;;  %v167_v56 = vld [vmem:[%s12685_s0 + $0x458] sm:$0xff]  ;;  %v13121_v26 = vld [vmem:[#allocation83_spill] sm:$0xff] }
 0x227   :  { %v2143_v58 = vadd.f32 %v2142_v50, %v13120_v18  ;;  %2494 = vmatpush.bf16.msrb.mxu2 %v6865_v10  ;;  %2583 = vmatpush.bf16.msrb.mxu3 %v6993_v54  ;;  %v9664_v18 = vpack.c.bf16 %v167_v56, %v160_v7  ;;  %v13126_v7 = vld [vmem:[#allocation79_spill] sm:$0xff] }
 0x228   :  { %v2322_v24 = vpop.f32.mrf.mxu0 }
 0x229   :  { %v2231_v38 = vpop.f32.mrf.mxu3  ;;  %v2411_v31 = vpop.f32.mrf.mxu1  ;;  %v4219_v51 = vmul.f32 0.1, %v2143_v58  ;;  %13122 = vst [vmem:[#allocation71_spill] sm:$0xff] %v9664_v18  ;;  %vm4091_vm1 = vcmp.gt.f32.partialorder %v2143_v58, 0.0 }
 0x22a   :  { %v2232_v63 = vadd.f32 %v2231_v38, %v9635_v30 }
 0x22b   :  { %v4347_v45 = vsel %vm4091_vm1, %v2143_v58, %v4219_v51 }
 0x22c   :  { %v2321_v39 = vadd.f32 %v2320_v44, %v2232_v63 }
 0x22e   :  { %v9661_v62 = vadd.f32 %v2409_v4, %v2321_v39  ;;  %v2144_v22 = vpop.f32.mrf.mxu2  ;;  %v13123_v4 = vld [vmem:[#allocation10_spill] sm:$0xff] }
 0x22f   :  { %v2145_v10 = vadd.f32 %v2144_v22, %v13121_v26  ;;  %v13125_v22 = vld [vmem:[#allocation8_spill] sm:$0xff] }
 0x230   :  { %v2325_v44 = vpop.f32.mrf.mxu0 }
 0x231   :  { %v2233_v50 = vpop.f32.mrf.mxu3  ;;  %vm4095_vm2 = vcmp.gt.f32.partialorder %v2145_v10, 0.0  ;;  %v4223_v54 = vmul.f32 0.1, %v2145_v10  ;;  %v2414_v38 = vpop.f32.mrf.mxu1 }
 0x232   :  { %v2234_v63 = vadd.f32 %v2233_v50, %v9635_v30 }
 0x233   :  { %v4351_v15 = vsel %vm4095_vm2, %v2145_v10, %v4223_v54  ;;  %7235 = vmatmul.msk.bf16.gmra.mxu2 %vm1550_vm0, %v9664_v18  ;;  %2364 = vmatmul.bf16.gmra.mxu0 %v13123_v4 }
 0x234   :  { %v2323_v55 = vadd.f32 %v2322_v24, %v2234_v63  ;;  %v9670_v39 = vpack.c.bf16 %v4351_v15, %v4347_v45  ;;  %2453 = vmatmul.bf16.gmra.mxu1 %v13126_v7  ;;  %v7794_v15 = vld [vmem:[%s12683_s1 + $0x5c4] sm:$0xf]  ;;  %v7182_v45 = vld [vmem:[%s12683_s1 + $0x5d0] sm:$0xf0] }
 0x235   :  { %v7185_v63 = vor.u32 %v7794_v15, %v7182_v45 }
 0x236   :  { %13124 = vst [vmem:[#allocation72_spill] sm:$0xff] %v9670_v39  ;;  %2275 = vmatmul.bf16.gmra.mxu3 %v13125_v22  ;;  %v9674_v56 = vadd.f32 %v2411_v31, %v2323_v55  ;;  %v2147_v26 = vpop.f32.mrf.mxu2  ;;  %v174_v55 = vld [vmem:[%s12685_s0 + $0x490] sm:$0xff]  ;;  %v13129_v22 = vld [vmem:[#allocation12_spill] sm:$0xff] }
 0x237   :  { %v2148_v50 = vadd.f32 %v2147_v26, %v9082_v14  ;;  %v181_v14 = vld [vmem:[%s12685_s0 + $0x4c8] sm:$0xff]  ;;  %2668 = vmatpush.bf16.msrb.mxu0 %v7185_v63 }
 0x238   :  { %v2327_v58 = vpop.f32.mrf.mxu0 }
 0x239   :  { %v2236_v43 = vpop.f32.mrf.mxu3  ;;  %v2416_v51 = vpop.f32.mrf.mxu1  ;;  %vm4099_vm3 = vcmp.gt.f32.partialorder %v2148_v50, 0.0 }
 0x23a   :  { %v2237_v24 = vadd.f32 %v2236_v43, %v9635_v30 }
 0x23c   :  { %v2326_v10 = vadd.f32 %v2325_v44, %v2237_v24  ;;  %v4227_v44 = vmul.f32 0.1, %v2148_v50  ;;  %v9693_v24 = vpack.c.bf16 %v181_v14, %v174_v55  ;;  %v6846_v55 = vld [vmem:[%s12683_s1 + $0x330] sm:$0xf0] }
 0x23e   :  { %v9690_v43 = vadd.f32 %v2414_v38, %v2326_v10  ;;  %v2149_v31 = vpop.f32.mrf.mxu2  ;;  %13127 = vst [vmem:[#allocation77_spill] sm:$0xff] %v9693_v24  ;;  %v13128_v38 = vld [vmem:[#allocation14_spill] sm:$0xff]  ;;  %v4355_v10 = vsel %vm4099_vm3, %v2148_v50, %v4227_v44 }
 0x23f   :  { %v2150_v54 = vadd.f32 %v2149_v31, %v9103_v5  ;;  %v7710_v5 = vld [vmem:[%s12683_s1 + $0x324] sm:$0xf]  ;;  %v6974_v31 = vld [vmem:[%s12683_s1 + $0x430] sm:$0xf0] }
 0x240   :  { %v2330_v45 = vpop.f32.mrf.mxu0 }
 0x241   :  { %v2238_v26 = vpop.f32.mrf.mxu3  ;;  %vm4103_vm4 = vcmp.gt.f32.partialorder %v2150_v54, 0.0  ;;  %v4231_v39 = vmul.f32 0.1, %v2150_v54  ;;  %v2419_v4 = vpop.f32.mrf.mxu1 }
 0x242   :  { %v2239_v15 = vadd.f32 %v2238_v26, %v9635_v30 }
 0x243   :  { %7236 = vmatmul.msk.bf16.gmra.mxu2 %vm1550_vm0, %v9693_v24  ;;  %2369 = vmatmul.bf16.gmra.mxu0 %v13128_v38  ;;  %v4359_v63 = vsel %vm4103_vm4, %v2150_v54, %v4231_v39  ;;  %v6849_v39 = vor.u32 %v7710_v5, %v6846_v55  ;;  %v13132_v55 = vld [vmem:[#allocation92_spill] sm:$0xff] }
 0x244   :  { %v2328_v7 = vadd.f32 %v2327_v58, %v2239_v15  ;;  %2458 = vmatmul.bf16.gmra.mxu1 %v9085_v13  ;;  %v7742_v58 = vld [vmem:[%s12683_s1 + $0x424] sm:$0xf]  ;;  %v9712_v50 = vpack.c.bf16 %v4359_v63, %v4355_v10  ;;  %v195_v10 = vld [vmem:[%s12685_s0 + $0x538] sm:$0xff] }
 0x245   :  { %v6977_v54 = vor.u32 %v7742_v58, %v6974_v31  ;;  %2495 = vmatpush.bf16.msrb.mxu2 %v6849_v39 }
 0x246   :  { %2280 = vmatmul.bf16.gmra.mxu3 %v13129_v22  ;;  %v9710_v14 = vadd.f32 %v2416_v51, %v2328_v7  ;;  %13130 = vst [vmem:[#allocation78_spill] sm:$0xff] %v9712_v50  ;;  %v2152_v44 = vpop.f32.mrf.mxu2  ;;  %v188_v51 = vld [vmem:[%s12685_s0 + $0x500] sm:$0xff] }
 0x247   :  { %v2153_v26 = vadd.f32 %v2152_v44, %v9130_v25  ;;  %2584 = vmatpush.bf16.msrb.mxu3 %v6977_v54  ;;  %v9728_v31 = vpack.c.bf16 %v195_v10, %v188_v51 }
 0x248   :  { %v2332_v13 = vpop.f32.mrf.mxu0 }
 0x249   :  { %v2241_v15 = vpop.f32.mrf.mxu3  ;;  %v2421_v22 = vpop.f32.mrf.mxu1  ;;  %v4235_v25 = vmul.f32 0.1, %v2153_v26  ;;  %13133 = vst [vmem:[#allocation92_spill] sm:$0xff] %v9728_v31  ;;  %vm4107_vm5 = vcmp.gt.f32.partialorder %v2153_v26, 0.0 }
 0x24a   :  { %v2242_v38 = vadd.f32 %v2241_v15, %v9635_v30 }
 0x24c   :  { %v2331_v7 = vadd.f32 %v2330_v45, %v2242_v38 }
 0x24e   :  { %v9725_v63 = vadd.f32 %v2419_v4, %v2331_v7  ;;  %v2154_v5 = vpop.f32.mrf.mxu2  ;;  %v13134_v4 = vld [vmem:[#allocation18_spill] sm:$0xff]  ;;  %v4363_v7 = vsel %vm4107_vm5, %v2153_v26, %v4235_v25  ;;  %v7790_v26 = vld [vmem:[%s12683_s1 + $0x5a4] sm:$0xf] }
 0x24f   :  { %v2155_v58 = vadd.f32 %v2154_v5, %v13132_v55  ;;  %v13136_v5 = vld [vmem:[#allocation88_spill] sm:$0xff] }
 0x250   :  { %13131 = vst [vmem:[#allocation83_spill] sm:$0xff] %v9725_v63  ;;  %v2335_v38 = vpop.f32.mrf.mxu0 }
 0x251   :  { %v2243_v39 = vpop.f32.mrf.mxu3  ;;  %vm4111_vm6 = vcmp.gt.f32.partialorder %v2155_v58, 0.0  ;;  %v4239_v44 = vmul.f32 0.1, %v2155_v58  ;;  %v2424_v54 = vpop.f32.mrf.mxu1 }
 0x252   :  { %v2244_v45 = vadd.f32 %v2243_v39, %v9635_v30 }
 0x253   :  { %7237 = vmatmul.msk.bf16.gmra.mxu2 %vm1550_vm0, %v9728_v31  ;;  %2374 = vmatmul.bf16.gmra.mxu0 %v13134_v4  ;;  %v4367_v50 = vsel %vm4111_vm6, %v2155_v58, %v4239_v44  ;;  %v13139_v4 = vld [vmem:[#allocation20_spill] sm:$0xff] }
 0x254   :  { %v2333_v15 = vadd.f32 %v2332_v13, %v2244_v45  ;;  %2463 = vmatmul.bf16.gmra.mxu1 %v13136_v5  ;;  %v9738_v10 = vpack.c.bf16 %v4367_v50, %v4363_v7  ;;  %v202_v50 = vld [vmem:[%s12685_s0 + $0x570] sm:$0xff] }
 0x256   :  { %2285 = vmatmul.bf16.gmra.mxu3 %v13135_v61  ;;  %v9736_v51 = vadd.f32 %v2421_v22, %v2333_v15  ;;  %13137 = vst [vmem:[#allocation116_spill] sm:$0xff] %v9738_v10  ;;  %v2157_v55 = vpop.f32.mrf.mxu2  ;;  %v7166_v22 = vld [vmem:[%s12683_s1 + $0x5b0] sm:$0xf0]  ;;  %v7778_v61 = vld [vmem:[%s12683_s1 + $0x544] sm:$0xf] }
 0x257   :  { %v2158_v39 = vadd.f32 %v2157_v55, %v9184_v36  ;;  %v7169_v25 = vor.u32 %v7790_v26, %v7166_v22  ;;  %v209_v36 = vld [vmem:[%s12685_s0 + $0x5a8] sm:$0xff] }
 0x258   :  { %v2337_v45 = vpop.f32.mrf.mxu0  ;;  %v9757_v7 = vpack.c.bf16 %v209_v36, %v202_v50  ;;  %v6830_v50 = vld [vmem:[%s12683_s1 + $0x310] sm:$0xf0] }
 0x259   :  { %v2246_v63 = vpop.f32.mrf.mxu3  ;;  %v2426_v31 = vpop.f32.mrf.mxu1  ;;  %2669 = vmatpush.bf16.msrb.mxu0 %v7169_v25  ;;  %vm4115_vm7 = vcmp.gt.f32.partialorder %v2158_v39, 0.0 }
 0x25a   :  { %v2247_v13 = vadd.f32 %v2246_v63, %v9635_v30 }
 0x25c   :  { %v2336_v24 = vadd.f32 %v2335_v38, %v2247_v13  ;;  %v4243_v38 = vmul.f32 0.1, %v2158_v39 }
 0x25e   :  { %v9754_v63 = vadd.f32 %v2424_v54, %v2336_v24  ;;  %v2159_v58 = vpop.f32.mrf.mxu2  ;;  %v13138_v24 = vld [vmem:[#allocation22_spill] sm:$0xff]  ;;  %v4371_v54 = vsel %vm4115_vm7, %v2158_v39, %v4243_v38  ;;  %v6958_v38 = vld [vmem:[%s12683_s1 + $0x410] sm:$0xf0] }
 0x25f   :  { %v2160_v44 = vadd.f32 %v2159_v58, %v9205_v33  ;;  %v7706_v33 = vld [vmem:[%s12683_s1 + $0x304] sm:$0xf] }
 0x260   :  { %v2340_v13 = vpop.f32.mrf.mxu0  ;;  %v6833_v58 = vor.u32 %v7706_v33, %v6830_v50  ;;  %v7786_v50 = vld [vmem:[%s12683_s1 + $0x584] sm:$0xf] }
 0x261   :  { %v2248_v15 = vpop.f32.mrf.mxu3  ;;  %vm4119_vm8 = vcmp.gt.f32.partialorder %v2160_v44, 0.0  ;;  %v4247_v26 = vmul.f32 0.1, %v2160_v44  ;;  %v2429_v22 = vpop.f32.mrf.mxu1 }
 0x262   :  { %v2249_v55 = vadd.f32 %v2248_v15, %v9635_v30  ;;  %2496 = vmatpush.bf16.msrb.mxu2 %v6833_v58 }
 0x263   :  { %7238 = vmatmul.msk.bf16.gmra.mxu2 %vm1550_vm0, %v9757_v7  ;;  %2379 = vmatmul.bf16.gmra.mxu0 %v13138_v24  ;;  %v4375_v25 = vsel %vm4119_vm8, %v2160_v44, %v4247_v26 }
 0x264   :  { %v2338_v10 = vadd.f32 %v2337_v45, %v2249_v55  ;;  %2468 = vmatmul.bf16.gmra.mxu1 %v9187_v8  ;;  %v7738_v45 = vld [vmem:[%s12683_s1 + $0x404] sm:$0xf]  ;;  %v9776_v39 = vpack.c.bf16 %v4375_v25, %v4371_v54  ;;  %v13141_v55 = vld [vmem:[#allocation97_spill] sm:$0xff]  ;;  %v223_v54 = vld [vmem:[%s12685_s0 + $0x618] sm:$0xff] }
 0x265   :  { %v6961_v15 = vor.u32 %v7738_v45, %v6958_v38 }
 0x266   :  { %2290 = vmatmul.bf16.gmra.mxu3 %v13139_v4  ;;  %v9774_v36 = vadd.f32 %v2426_v31, %v2338_v10  ;;  %13140 = vst [vmem:[#allocation117_spill] sm:$0xff] %v9776_v39  ;;  %v2162_v44 = vpop.f32.mrf.mxu2  ;;  %v216_v10 = vld [vmem:[%s12685_s0 + $0x5e0] sm:$0xff] }
 0x267   :  { %v2163_v26 = vadd.f32 %v2162_v44, %v13141_v55  ;;  %2585 = vmatpush.bf16.msrb.mxu3 %v6961_v15  ;;  %v9798_v58 = vpack.c.bf16 %v223_v54, %v216_v10  ;;  %v7782_v39 = vld [vmem:[%s12683_s1 + $0x564] sm:$0xf]  ;;  %v13143_v10 = vld [vmem:[#allocation26_spill] sm:$0xff] }
 0x268   :  { %v2342_v4 = vpop.f32.mrf.mxu0 }
 0x269   :  { %v2251_v24 = vpop.f32.mrf.mxu3  ;;  %v2431_v5 = vpop.f32.mrf.mxu1  ;;  %13142 = vst [vmem:[#allocation97_spill] sm:$0xff] %v9798_v58  ;;  %vm4123_vm9 = vcmp.gt.f32.partialorder %v2163_v26, 0.0 }
 0x26a   :  { %v2252_v8 = vadd.f32 %v2251_v24, %v9635_v30  ;;  %v7150_v24 = vld [vmem:[%s12683_s1 + $0x590] sm:$0xf0] }
 0x26b   :  { %v7153_v38 = vor.u32 %v7786_v50, %v7150_v24  ;;  %v13144_v24 = vld [vmem:[#allocation24_spill] sm:$0xff] }
 0x26c   :  { %v2341_v31 = vadd.f32 %v2340_v13, %v2252_v8  ;;  %v4251_v8 = vmul.f32 0.1, %v2163_v26 }
 0x26d   :  { %2670 = vmatpush.bf16.msrb.mxu0 %v7153_v38 }
 0x26e   :  { %v9789_v25 = vadd.f32 %v2429_v22, %v2341_v31  ;;  %v2164_v33 = vpop.f32.mrf.mxu2 }
 0x26f   :  { %v2165_v13 = vadd.f32 %v2164_v33, %v9271_v19  ;;  %v7134_v19 = vld [vmem:[%s12683_s1 + $0x570] sm:$0xf0]  ;;  %v4379_v33 = vsel %vm4123_vm9, %v2163_v26, %v4251_v8  ;;  %v13147_v26 = vld [vmem:[#allocation102_spill] sm:$0xff] }
 0x270   :  { %v2345_v44 = vpop.f32.mrf.mxu0  ;;  %v7137_v54 = vor.u32 %v7782_v39, %v7134_v19  ;;  %v7118_v39 = vld [vmem:[%s12683_s1 + $0x550] sm:$0xf0] }
 0x271   :  { %v2253_v45 = vpop.f32.mrf.mxu3  ;;  %vm4127_vm10 = vcmp.gt.f32.partialorder %v2165_v13, 0.0  ;;  %v4255_v15 = vmul.f32 0.1, %v2165_v13  ;;  %v2434_v55 = vpop.f32.mrf.mxu1 }
 0x272   :  { %v2254_v22 = vadd.f32 %v2253_v45, %v9635_v30  ;;  %v13145_v45 = vld [vmem:[#allocation98_spill] sm:$0xff]  ;;  %2671 = vmatpush.bf16.msrb.mxu0 %v7137_v54  ;;  %v7774_v54 = vld [vmem:[%s12683_s1 + $0x524] sm:$0xf] }
 0x273   :  { %7239 = vmatmul.msk.bf16.gmra.mxu2 %vm1550_vm0, %v9798_v58  ;;  %2384 = vmatmul.bf16.gmra.mxu0 %v13143_v10  ;;  %v4383_v50 = vsel %vm4127_vm10, %v2165_v13, %v4255_v15  ;;  %v7121_v15 = vor.u32 %v7778_v61, %v7118_v39  ;;  %v237_v61 = vld [vmem:[%s12685_s0 + $0x688] sm:$0xff] }
 0x274   :  { %v2343_v31 = vadd.f32 %v2342_v4, %v2254_v22  ;;  %2473 = vmatmul.bf16.gmra.mxu1 %v13145_v45  ;;  %v9814_v38 = vpack.c.bf16 %v4383_v50, %v4379_v33  ;;  %v7102_v50 = vld [vmem:[%s12683_s1 + $0x530] sm:$0xf0] }
 0x276   :  { %2295 = vmatmul.bf16.gmra.mxu3 %v13144_v24  ;;  %v9812_v4 = vadd.f32 %v2431_v5, %v2343_v31  ;;  %13146 = vst [vmem:[#allocation118_spill] sm:$0xff] %v9814_v38  ;;  %v2167_v22 = vpop.f32.mrf.mxu2  ;;  %2672 = vmatpush.bf16.msrb.mxu0 %v7121_v15  ;;  %v7105_v38 = vor.u32 %v7774_v54, %v7102_v50 }
 0x277   :  { %v2168_v8 = vadd.f32 %v2167_v22, %v13147_v26  ;;  %v230_v22 = vld [vmem:[%s12685_s0 + $0x650] sm:$0xff]  ;;  %v7770_v26 = vld [vmem:[%s12683_s1 + $0x504] sm:$0xf] }
 0x278   :  { %v2347_v5 = vpop.f32.mrf.mxu0  ;;  %v9845_v50 = vpack.c.bf16 %v237_v61, %v230_v22  ;;  %v6564_v22 = vld [vmem:[%s12683_s1 + $0xe8] sm:$0xf] }
 0x279   :  { %v2256_v13 = vpop.f32.mrf.mxu3  ;;  %v2436_v31 = vpop.f32.mrf.mxu1  ;;  %v4259_v15 = vmul.f32 0.1, %v2168_v8  ;;  %vm4131_vm11 = vcmp.gt.f32.partialorder %v2168_v8, 0.0 }
 0x27a   :  { %v2257_v19 = vadd.f32 %v2256_v13, %v9635_v30  ;;  %2673 = vmatpush.bf16.msrb.mxu0 %v7105_v38  ;;  %v7086_v13 = vld [vmem:[%s12683_s1 + $0x510] sm:$0xf0]  ;;  %13149 = vst [vmem:[#allocation119_spill] sm:$0xff] %v9845_v50 }
 0x27b   :  { %v7089_v10 = vor.u32 %v7770_v26, %v7086_v13  ;;  %v4387_v58 = vsel %vm4131_vm11, %v2168_v8, %v4259_v15  ;;  %v7673_v13 = vld [vmem:[%s12683_s1 + $0x1f4] sm:$0xf0] }
 0x27c   :  { %v2346_v33 = vadd.f32 %v2345_v44, %v2257_v19 }
 0x27e   :  { %v9836_v39 = vadd.f32 %v2434_v55, %v2346_v33  ;;  %v2169_v44 = vpop.f32.mrf.mxu2  ;;  %2674 = vmatpush.bf16.msrb.mxu0 %v7089_v10  ;;  %v7641_v10 = vld [vmem:[%s12683_s1 + $0xf4] sm:$0xf0] }
 0x27f   :  { %v2170_v19 = vadd.f32 %v2169_v44, %v9361_v57  ;;  %v13151_v44 = vld [vmem:[#allocation28_spill] sm:$0xff]  ;;  %v6565_v26 = vor.u32 %v7641_v10, %v6564_v22 }
 0x280   :  { %13148 = vst [vmem:[#allocation102_spill] sm:$0xff] %v9836_v39  ;;  %v2350_v38 = vpop.f32.mrf.mxu0  ;;  %v13150_v39 = vld [vmem:[#allocation30_spill] sm:$0xff] }
 0x281   :  { %v2258_v54 = vpop.f32.mrf.mxu3  ;;  %vm4135_vm12 = vcmp.gt.f32.partialorder %v2170_v19, 0.0  ;;  %v4263_v33 = vmul.f32 0.1, %v2170_v19  ;;  %v2439_v45 = vpop.f32.mrf.mxu1  ;;  %2845 = vmatpush.bf16.msra.mxu2 %v6565_v26 }
 0x282   :  { %v2259_v55 = vadd.f32 %v2258_v54, %v9635_v30 }
 0x283   :  { %7240 = vmatmul.msk.bf16.gmra.mxu2 %vm1550_vm0, %v9845_v50  ;;  %2389 = vmatmul.bf16.gmra.mxu0 %v13150_v39  ;;  %v4391_v57 = vsel %vm4135_vm12, %v2170_v19, %v4263_v33 }
 0x284   :  { %v2348_v24 = vadd.f32 %v2347_v5, %v2259_v55  ;;  %2478 = vmatmul.bf16.gmra.mxu1 %v9334_v29  ;;  %v6692_v5 = vld [vmem:[%s12683_s1 + $0x1e8] sm:$0xf]  ;;  %v9864_v8 = vpack.c.bf16 %v4391_v57, %v4387_v58  ;;  %v244_v58 = vld [vmem:[%s12685_s0 + $0x6c0] sm:$0xff] }
 0x285   :  { %v6693_v19 = vor.u32 %v7673_v13, %v6692_v5 }
 0x286   :  { %2300 = vmatmul.bf16.gmra.mxu3 %v13151_v44  ;;  %v9862_v61 = vadd.f32 %v2436_v31, %v2348_v24  ;;  %13152 = vst [vmem:[#allocation120_spill] sm:$0xff] %v9864_v8  ;;  %v2172_v15 = vpop.f32.mrf.mxu2  ;;  %v251_v31 = vld [vmem:[%s12685_s0 + $0x6f8] sm:$0xff]  ;;  %v13155_v8 = vld [vmem:[#allocation32_spill] sm:$0xff] }
 0x287   :  { %v2173_v54 = vadd.f32 %v2172_v15, %v9388_v41  ;;  %2934 = vmatpush.bf16.msra.mxu3 %v6693_v19  ;;  %v9880_v26 = vpack.c.bf16 %v251_v31, %v244_v58 }
 0x288   :  { %v2352_v39 = vpop.f32.mrf.mxu0 }
 0x289   :  { %v2261_v55 = vpop.f32.mrf.mxu3  ;;  %v2441_v29 = vpop.f32.mrf.mxu1  ;;  %v4267_v41 = vmul.f32 0.1, %v2173_v54  ;;  %13153 = vst [vmem:[#allocation121_spill] sm:$0xff] %v9880_v26  ;;  %vm4139_vm13 = vcmp.gt.f32.partialorder %v2173_v54, 0.0 }
 0x28a   :  { %v2262_v33 = vadd.f32 %v2261_v55, %v9635_v30 }
 0x28c   :  { %v2351_v24 = vadd.f32 %v2350_v38, %v2262_v33  ;;  %v4395_v33 = vsel %vm4139_vm13, %v2173_v54, %v4267_v41 }
 0x28e   :  { %v9877_v57 = vadd.f32 %v2439_v45, %v2351_v24  ;;  %v2174_v22 = vpop.f32.mrf.mxu2  ;;  %v13154_v45 = vld [vmem:[#allocation34_spill] sm:$0xff] }
 0x28f   :  { %v2175_v10 = vadd.f32 %v2174_v22, %v9403_v47 }
 0x290   :  { %v2355_v13 = vpop.f32.mrf.mxu0 }
 0x291   :  { %v2263_v5 = vpop.f32.mrf.mxu3  ;;  %vm4143_vm14 = vcmp.gt.f32.partialorder %v2175_v10, 0.0  ;;  %v4271_v15 = vmul.f32 0.1, %v2175_v10  ;;  %v2444_v19 = vpop.f32.mrf.mxu1 }
 0x292   :  { %v2264_v38 = vadd.f32 %v2263_v5, %v9635_v30 }
 0x293   :  { %7241 = vmatmul.msk.bf16.gmra.mxu2 %vm1550_vm0, %v9880_v26  ;;  %2394 = vmatmul.bf16.gmra.mxu0 %v13154_v45  ;;  %v4399_v24 = vsel %vm4143_vm14, %v2175_v10, %v4271_v15 }
 0x294   :  { %v2353_v55 = vadd.f32 %v2352_v39, %v2264_v38  ;;  %2483 = vmatmul.bf16.gmra.mxu1 %v9391_v37  ;;  %v9890_v58 = vpack.c.bf16 %v4399_v24, %v4395_v33 }
 0x296   :  { %2305 = vmatmul.bf16.gmra.mxu3 %v13155_v8  ;;  %v9888_v47 = vadd.f32 %v2441_v29, %v2353_v55  ;;  %13156 = vst [vmem:[#allocation122_spill] sm:$0xff] %v9890_v58  ;;  %v2177_v31 = vpop.f32.mrf.mxu2  ;;  %v13191_v8 = vld [vmem:[#allocation74_spill] sm:$0xff] }
 0x297   :  { %v2178_v22 = vadd.f32 %v2177_v31, %v9412_v59  ;;  %v13157_v31 = vld [vmem:[#allocation37_spill] sm:$0xff] }
 0x298   :  { %v2357_v38 = vpop.f32.mrf.mxu0 }
 0x299   :  { %v2266_v5 = vpop.f32.mrf.mxu3  ;;  %v2446_v44 = vpop.f32.mrf.mxu1  ;;  %v4275_v41 = vmul.f32 0.1, %v2178_v22  ;;  %vm4147_vm15 = vcmp.gt.f32.partialorder %v2178_v22, 0.0 }
 0x29a   :  { %v2267_v39 = vadd.f32 %v2266_v5, %v9635_v30  ;;  %v13158_v5 = vld [vmem:[#allocation38_spill] sm:$0xff] }
 0x29c   :  { %v2356_v26 = vadd.f32 %v2355_v13, %v2267_v39  ;;  %v4403_v13 = vsel %vm4147_vm15, %v2178_v22, %v4275_v41  ;;  %v7637_v39 = vld [vmem:[%s12683_s1 + $0xd4] sm:$0xf0] }
 0x29e   :  { %v9894_v45 = vadd.f32 %v2444_v19, %v2356_v26  ;;  %v2179_v54 = vpop.f32.mrf.mxu2  ;;  %v13159_v19 = vld [vmem:[#allocation36_spill] sm:$0xff] }
 0x29f   :  { %v2180_v10 = vadd.f32 %v2179_v54, %v9434_v46  ;;  %v6548_v46 = vld [vmem:[%s12683_s1 + $0xc8] sm:$0xf] }
 0x2a0   :  { %v2360_v55 = vpop.f32.mrf.mxu0  ;;  %v6549_v41 = vor.u32 %v7637_v39, %v6548_v46 }
 0x2a1   :  { %v2268_v15 = vpop.f32.mrf.mxu3  ;;  %vm4151_vm1 = vcmp.gt.f32.partialorder %v2180_v10, 0.0  ;;  %v4279_v33 = vmul.f32 0.1, %v2180_v10  ;;  %v2449_v59 = vpop.f32.mrf.mxu1 }
 0x2a2   :  { %v2269_v29 = vadd.f32 %v2268_v15, %v9635_v30  ;;  %2846 = vmatpush.bf16.msra.mxu2 %v6549_v41 }
 0x2a3   :  { %2497 = vmatmul.bf16.vlgmr.msrb.gmra.mxu2 %v13157_v31  ;;  %2675 = vmatmul.bf16.vlgmr.msrb.gmra.mxu0 %v13158_v5  ;;  %v4407_v26 = vsel %vm4151_vm1, %v2180_v10, %v4279_v33  ;;  %v7669_v10 = vld [vmem:[%s12683_s1 + $0x1d4] sm:$0xf0] }
 0x2a4   :  { %v2358_v24 = vadd.f32 %v2357_v38, %v2269_v29  ;;  %7242 = vmatmul.msk.bf16.vlgmr.msrb.gmra.mxu1 %vm1550_vm0, %v9415_v0  ;;  %v6676_v38 = vld [vmem:[%s12683_s1 + $0x1c8] sm:$0xf]  ;;  %v9914_v22 = vpack.c.bf16 %v4407_v26, %v4403_v13 }
 0x2a5   :  { %v6677_v29 = vor.u32 %v7669_v10, %v6676_v38 }
 0x2a6   :  { %2586 = vmatmul.bf16.vlgmr.msrb.gmra.mxu3 %v13159_v19  ;;  %v9912_v54 = vadd.f32 %v2446_v44, %v2358_v24  ;;  %13160 = vst [vmem:[#allocation123_spill] sm:$0xff] %v9914_v22  ;;  %v2182_v15 = vpop.f32.mrf.mxu2 }
 0x2a7   :  { %v2183_v33 = vadd.f32 %v2182_v15, %v9443_v2  ;;  %2935 = vmatpush.bf16.msra.mxu3 %v6677_v29  ;;  %v13162_v29 = vld [vmem:[#allocation42_spill] sm:$0xff] }
 0x2a8   :  { %v2362_v0 = vpop.f32.mrf.mxu0 }
 0x2a9   :  { %v2271_v58 = vpop.f32.mrf.mxu3  ;;  %v2451_v19 = vpop.f32.mrf.mxu1  ;;  %v4283_v26 = vmul.f32 0.1, %v2183_v33  ;;  %vm4155_vm2 = vcmp.gt.f32.partialorder %v2183_v33, 0.0 }
 0x2aa   :  { %v2272_v5 = vadd.f32 %v2271_v58, %v9635_v30  ;;  %v13161_v58 = vld [vmem:[#allocation41_spill] sm:$0xff] }
 0x2ac   :  { %v2361_v44 = vadd.f32 %v2360_v55, %v2272_v5  ;;  %v4411_v55 = vsel %vm4155_vm2, %v2183_v33, %v4283_v26  ;;  %v13163_v5 = vld [vmem:[#allocation40_spill] sm:$0xff] }
 0x2ae   :  { %v9921_v24 = vadd.f32 %v2449_v59, %v2361_v44  ;;  %v2184_v13 = vpop.f32.mrf.mxu2 }
 0x2af   :  { %v2185_v46 = vadd.f32 %v2184_v13, %v9453_v11 }
 0x2b0   :  { %v2365_v10 = vpop.f32.mrf.mxu0 }
 0x2b1   :  { %v2273_v39 = vpop.f32.mrf.mxu3  ;;  %vm4159_vm3 = vcmp.gt.f32.partialorder %v2185_v46, 0.0  ;;  %v4287_v2 = vmul.f32 0.1, %v2185_v46  ;;  %v2454_v41 = vpop.f32.mrf.mxu1 }
 0x2b2   :  { %v2274_v38 = vadd.f32 %v2273_v39, %v9635_v30 }
 0x2b3   :  { %2502 = vmatmul.bf16.gmra.mxu2 %v13161_v58  ;;  %2680 = vmatmul.bf16.gmra.mxu0 %v13162_v29  ;;  %v4415_v59 = vsel %vm4159_vm3, %v2185_v46, %v4287_v2 }
 0x2b4   :  { %v2363_v15 = vadd.f32 %v2362_v0, %v2274_v38  ;;  %7243 = vmatmul.msk.bf16.gmra.mxu1 %vm1550_vm0, %v9446_v6  ;;  %v9932_v44 = vpack.c.bf16 %v4415_v59, %v4411_v55 }
 0x2b6   :  { %2591 = vmatmul.bf16.gmra.mxu3 %v13163_v5  ;;  %v9930_v11 = vadd.f32 %v2451_v19, %v2363_v15  ;;  %13164 = vst [vmem:[#allocation41_spill] sm:$0xff] %v9932_v44  ;;  %v2187_v13 = vpop.f32.mrf.mxu2 }
 0x2b7   :  { %v2188_v39 = vadd.f32 %v2187_v13, %v9462_v17  ;;  %v13165_v13 = vld [vmem:[#allocation45_spill] sm:$0xff] }
 0x2b8   :  { %v2367_v38 = vpop.f32.mrf.mxu0 }
 0x2b9   :  { %v2276_v22 = vpop.f32.mrf.mxu3  ;;  %v2456_v37 = vpop.f32.mrf.mxu1  ;;  %v4291_v46 = vmul.f32 0.1, %v2188_v39  ;;  %vm4163_vm4 = vcmp.gt.f32.partialorder %v2188_v39, 0.0 }
 0x2ba   :  { %v2277_v0 = vadd.f32 %v2276_v22, %v9635_v30  ;;  %v13166_v22 = vld [vmem:[#allocation46_spill] sm:$0xff] }
 0x2bc   :  { %v2366_v29 = vadd.f32 %v2365_v10, %v2277_v0  ;;  %v4419_v10 = vsel %vm4163_vm4, %v2188_v39, %v4291_v46  ;;  %v6660_v0 = vld [vmem:[%s12683_s1 + $0x1a8] sm:$0xf]  ;;  %v7665_v46 = vld [vmem:[%s12683_s1 + $0x1b4] sm:$0xf0] }
 0x2be   :  { %v9936_v33 = vadd.f32 %v2454_v41, %v2366_v29  ;;  %v2189_v26 = vpop.f32.mrf.mxu2  ;;  %v13167_v29 = vld [vmem:[#allocation44_spill] sm:$0xff] }
 0x2bf   :  { %v2190_v2 = vadd.f32 %v2189_v26, %v9484_v34  ;;  %v7633_v34 = vld [vmem:[%s12683_s1 + $0xb4] sm:$0xf0] }
 0x2c0   :  { %v2370_v15 = vpop.f32.mrf.mxu0 }
 0x2c1   :  { %v2278_v6 = vpop.f32.mrf.mxu3  ;;  %vm4167_vm5 = vcmp.gt.f32.partialorder %v2190_v2, 0.0  ;;  %v4295_v55 = vmul.f32 0.1, %v2190_v2  ;;  %v2459_v17 = vpop.f32.mrf.mxu1 }
 0x2c2   :  { %v2279_v19 = vadd.f32 %v2278_v6, %v9635_v30  ;;  %v6532_v6 = vld [vmem:[%s12683_s1 + $0xa8] sm:$0xf] }
 0x2c3   :  { %2507 = vmatmul.bf16.gmra.mxu2 %v13165_v13  ;;  %2685 = vmatmul.bf16.gmra.mxu0 %v13166_v22  ;;  %v4423_v41 = vsel %vm4167_vm5, %v2190_v2, %v4295_v55  ;;  %v6533_v26 = vor.u32 %v7633_v34, %v6532_v6 }
 0x2c4   :  { %v2368_v59 = vadd.f32 %v2367_v38, %v2279_v19  ;;  %7244 = vmatmul.msk.bf16.gmra.mxu1 %vm1550_vm0, %v9465_v35  ;;  %v9956_v39 = vpack.c.bf16 %v4423_v41, %v4419_v10  ;;  %v6661_v19 = vor.u32 %v7665_v46, %v6660_v0 }
 0x2c5   :  { %2847 = vmatpush.bf16.msra.mxu2 %v6533_v26 }
 0x2c6   :  { %2596 = vmatmul.bf16.gmra.mxu3 %v13167_v29  ;;  %v9954_v38 = vadd.f32 %v2456_v37, %v2368_v59  ;;  %13168 = vst [vmem:[#allocation124_spill] sm:$0xff] %v9956_v39  ;;  %v2192_v2 = vpop.f32.mrf.mxu2 }
 0x2c7   :  { %v2193_v55 = vadd.f32 %v2192_v2, %v9493_v12  ;;  %2936 = vmatpush.bf16.msra.mxu3 %v6661_v19  ;;  %v13170_v19 = vld [vmem:[#allocation50_spill] sm:$0xff] }
 0x2c8   :  { %v2372_v35 = vpop.f32.mrf.mxu0 }
 0x2c9   :  { %v2281_v44 = vpop.f32.mrf.mxu3  ;;  %v2461_v29 = vpop.f32.mrf.mxu1  ;;  %v4299_v41 = vmul.f32 0.1, %v2193_v55  ;;  %vm4171_vm6 = vcmp.gt.f32.partialorder %v2193_v55, 0.0 }
 0x2ca   :  { %v2282_v22 = vadd.f32 %v2281_v44, %v9635_v30  ;;  %v13169_v44 = vld [vmem:[#allocation49_spill] sm:$0xff] }
 0x2cc   :  { %v2371_v37 = vadd.f32 %v2370_v15, %v2282_v22  ;;  %v4427_v15 = vsel %vm4171_vm6, %v2193_v55, %v4299_v41  ;;  %v13171_v22 = vld [vmem:[#allocation48_spill] sm:$0xff] }
 0x2ce   :  { %v9963_v59 = vadd.f32 %v2459_v17, %v2371_v37  ;;  %v2194_v10 = vpop.f32.mrf.mxu2 }
 0x2cf   :  { %v2195_v6 = vadd.f32 %v2194_v10, %v9503_v42 }
 0x2d0   :  { %v2375_v46 = vpop.f32.mrf.mxu0 }
 0x2d1   :  { %v2283_v34 = vpop.f32.mrf.mxu3  ;;  %vm4175_vm7 = vcmp.gt.f32.partialorder %v2195_v6, 0.0  ;;  %v4303_v12 = vmul.f32 0.1, %v2195_v6  ;;  %v2464_v26 = vpop.f32.mrf.mxu1 }
 0x2d2   :  { %v2284_v0 = vadd.f32 %v2283_v34, %v9635_v30 }
 0x2d3   :  { %2512 = vmatmul.bf16.gmra.mxu2 %v13169_v44  ;;  %2690 = vmatmul.bf16.gmra.mxu0 %v13170_v19  ;;  %v4431_v17 = vsel %vm4175_vm7, %v2195_v6, %v4303_v12 }
 0x2d4   :  { %v2373_v2 = vadd.f32 %v2372_v35, %v2284_v0  ;;  %7245 = vmatmul.msk.bf16.gmra.mxu1 %vm1550_vm0, %v9496_v53  ;;  %v9974_v37 = vpack.c.bf16 %v4431_v17, %v4427_v15 }
 0x2d6   :  { %2601 = vmatmul.bf16.gmra.mxu3 %v13171_v22  ;;  %v9972_v42 = vadd.f32 %v2461_v29, %v2373_v2  ;;  %13172 = vst [vmem:[#allocation125_spill] sm:$0xff] %v9974_v37  ;;  %v2197_v10 = vpop.f32.mrf.mxu2 }
 0x2d7   :  { %v2198_v34 = vadd.f32 %v2197_v10, %v9512_v52  ;;  %v13173_v10 = vld [vmem:[#allocation53_spill] sm:$0xff] }
 0x2d8   :  { %v2377_v0 = vpop.f32.mrf.mxu0 }
 0x2d9   :  { %v2286_v39 = vpop.f32.mrf.mxu3  ;;  %v2466_v5 = vpop.f32.mrf.mxu1  ;;  %v4307_v6 = vmul.f32 0.1, %v2198_v34  ;;  %vm4179_vm8 = vcmp.gt.f32.partialorder %v2198_v34, 0.0 }
 0x2da   :  { %v2287_v35 = vadd.f32 %v2286_v39, %v9635_v30  ;;  %v13174_v39 = vld [vmem:[#allocation54_spill] sm:$0xff] }
 0x2dc   :  { %v2376_v19 = vadd.f32 %v2375_v46, %v2287_v35  ;;  %v4435_v46 = vsel %vm4179_vm8, %v2198_v34, %v4307_v6  ;;  %v6644_v35 = vld [vmem:[%s12683_s1 + $0x188] sm:$0xf]  ;;  %v7661_v6 = vld [vmem:[%s12683_s1 + $0x194] sm:$0xf0] }
 0x2de   :  { %v9978_v55 = vadd.f32 %v2464_v26, %v2376_v19  ;;  %v2199_v41 = vpop.f32.mrf.mxu2  ;;  %v13175_v19 = vld [vmem:[#allocation52_spill] sm:$0xff] }
 0x2df   :  { %v2200_v12 = vadd.f32 %v2199_v41, %v9534_v28  ;;  %v7629_v28 = vld [vmem:[%s12683_s1 + $0x94] sm:$0xf0] }
 0x2e0   :  { %v2380_v2 = vpop.f32.mrf.mxu0 }
 0x2e1   :  { %v2288_v53 = vpop.f32.mrf.mxu3  ;;  %vm4183_vm9 = vcmp.gt.f32.partialorder %v2200_v12, 0.0  ;;  %v4311_v15 = vmul.f32 0.1, %v2200_v12  ;;  %v2469_v52 = vpop.f32.mrf.mxu1 }
 0x2e2   :  { %v2289_v29 = vadd.f32 %v2288_v53, %v9635_v30  ;;  %v6516_v53 = vld [vmem:[%s12683_s1 + $0x88] sm:$0xf] }
 0x2e3   :  { %2517 = vmatmul.bf16.gmra.mxu2 %v13173_v10  ;;  %2695 = vmatmul.bf16.gmra.mxu0 %v13174_v39  ;;  %v4439_v26 = vsel %vm4183_vm9, %v2200_v12, %v4311_v15  ;;  %v6517_v41 = vor.u32 %v7629_v28, %v6516_v53 }
 0x2e4   :  { %v2378_v17 = vadd.f32 %v2377_v0, %v2289_v29  ;;  %7246 = vmatmul.msk.bf16.gmra.mxu1 %vm1550_vm0, %v9515_v48  ;;  %v9998_v34 = vpack.c.bf16 %v4439_v26, %v4435_v46  ;;  %v6645_v29 = vor.u32 %v7661_v6, %v6644_v35 }
 0x2e5   :  { %2848 = vmatpush.bf16.msra.mxu2 %v6517_v41 }
 0x2e6   :  { %2606 = vmatmul.bf16.gmra.mxu3 %v13175_v19  ;;  %v9996_v0 = vadd.f32 %v2466_v5, %v2378_v17  ;;  %13176 = vst [vmem:[#allocation126_spill] sm:$0xff] %v9998_v34  ;;  %v2202_v12 = vpop.f32.mrf.mxu2 }
 0x2e7   :  { %v2203_v15 = vadd.f32 %v2202_v12, %v9543_v32  ;;  %2937 = vmatpush.bf16.msra.mxu3 %v6645_v29  ;;  %v13178_v29 = vld [vmem:[#allocation58_spill] sm:$0xff] }
 0x2e8   :  { %v2382_v48 = vpop.f32.mrf.mxu0 }
 0x2e9   :  { %v2291_v37 = vpop.f32.mrf.mxu3  ;;  %v2471_v19 = vpop.f32.mrf.mxu1  ;;  %v4315_v26 = vmul.f32 0.1, %v2203_v15  ;;  %vm4187_vm10 = vcmp.gt.f32.partialorder %v2203_v15, 0.0 }
 0x2ea   :  { %v2292_v39 = vadd.f32 %v2291_v37, %v9635_v30  ;;  %v13177_v37 = vld [vmem:[#allocation57_spill] sm:$0xff] }
 0x2ec   :  { %v2381_v5 = vadd.f32 %v2380_v2, %v2292_v39  ;;  %v4443_v2 = vsel %vm4187_vm10, %v2203_v15, %v4315_v26  ;;  %v13179_v39 = vld [vmem:[#allocation56_spill] sm:$0xff] }
 0x2ee   :  { %v10005_v17 = vadd.f32 %v2469_v52, %v2381_v5  ;;  %v2204_v46 = vpop.f32.mrf.mxu2 }
 0x2ef   :  { %v2205_v53 = vadd.f32 %v2204_v46, %v9553_v49 }
 0x2f0   :  { %v2385_v6 = vpop.f32.mrf.mxu0 }
 0x2f1   :  { %v2293_v28 = vpop.f32.mrf.mxu3  ;;  %vm4191_vm11 = vcmp.gt.f32.partialorder %v2205_v53, 0.0  ;;  %v4319_v32 = vmul.f32 0.1, %v2205_v53  ;;  %v2474_v41 = vpop.f32.mrf.mxu1 }
 0x2f2   :  { %v2294_v35 = vadd.f32 %v2293_v28, %v9635_v30 }
 0x2f3   :  { %2522 = vmatmul.bf16.gmra.mxu2 %v13177_v37  ;;  %2700 = vmatmul.bf16.gmra.mxu0 %v13178_v29  ;;  %v4447_v52 = vsel %vm4191_vm11, %v2205_v53, %v4319_v32 }
 0x2f4   :  { %v2383_v12 = vadd.f32 %v2382_v48, %v2294_v35  ;;  %7247 = vmatmul.msk.bf16.gmra.mxu1 %vm1550_vm0, %v9546_v27  ;;  %v10016_v5 = vpack.c.bf16 %v4447_v52, %v4443_v2 }
 0x2f6   :  { %2611 = vmatmul.bf16.gmra.mxu3 %v13179_v39  ;;  %v10014_v49 = vadd.f32 %v2471_v19, %v2383_v12  ;;  %13180 = vst [vmem:[#allocation127_spill] sm:$0xff] %v10016_v5  ;;  %v2207_v46 = vpop.f32.mrf.mxu2 }
 0x2f7   :  { %v2208_v28 = vadd.f32 %v2207_v46, %v9562_v21  ;;  %v13181_v46 = vld [vmem:[#allocation63_spill] sm:$0xff] }
 0x2f8   :  { %v2387_v35 = vpop.f32.mrf.mxu0 }
 0x2f9   :  { %v2296_v34 = vpop.f32.mrf.mxu3  ;;  %v2476_v22 = vpop.f32.mrf.mxu1  ;;  %v4323_v53 = vmul.f32 0.1, %v2208_v28  ;;  %vm4195_vm12 = vcmp.gt.f32.partialorder %v2208_v28, 0.0 }
 0x2fa   :  { %v2297_v48 = vadd.f32 %v2296_v34, %v9635_v30  ;;  %v13182_v34 = vld [vmem:[#allocation64_spill] sm:$0xff] }
 0x2fc   :  { %v2386_v29 = vadd.f32 %v2385_v6, %v2297_v48  ;;  %v4451_v6 = vsel %vm4195_vm12, %v2208_v28, %v4323_v53  ;;  %v6628_v48 = vld [vmem:[%s12683_s1 + $0x168] sm:$0xf]  ;;  %v7657_v53 = vld [vmem:[%s12683_s1 + $0x174] sm:$0xf0] }
 0x2fe   :  { %v10020_v15 = vadd.f32 %v2474_v41, %v2386_v29  ;;  %v2209_v26 = vpop.f32.mrf.mxu2  ;;  %v13183_v29 = vld [vmem:[#allocation62_spill] sm:$0xff] }
 0x2ff   :  { %v2210_v32 = vadd.f32 %v2209_v26, %v9584_v3  ;;  %v7625_v3 = vld [vmem:[%s12683_s1 + $0x74] sm:$0xf0] }
 0x300   :  { %v2390_v12 = vpop.f32.mrf.mxu0 }
 0x301   :  { %v2298_v27 = vpop.f32.mrf.mxu3  ;;  %vm4199_vm13 = vcmp.gt.f32.partialorder %v2210_v32, 0.0  ;;  %v4327_v2 = vmul.f32 0.1, %v2210_v32  ;;  %v2479_v21 = vpop.f32.mrf.mxu1 }
 0x302   :  { %v2299_v19 = vadd.f32 %v2298_v27, %v9635_v30  ;;  %v6500_v27 = vld [vmem:[%s12683_s1 + $0x68] sm:$0xf] }
 0x303   :  { %2527 = vmatmul.bf16.gmra.mxu2 %v13181_v46  ;;  %2705 = vmatmul.bf16.gmra.mxu0 %v13182_v34  ;;  %v4455_v41 = vsel %vm4199_vm13, %v2210_v32, %v4327_v2  ;;  %v6501_v26 = vor.u32 %v7625_v3, %v6500_v27 }
 0x304   :  { %v2388_v52 = vadd.f32 %v2387_v35, %v2299_v19  ;;  %7248 = vmatmul.msk.bf16.gmra.mxu1 %vm1550_vm0, %v9565_v1  ;;  %v10040_v28 = vpack.c.bf16 %v4455_v41, %v4451_v6  ;;  %v6629_v19 = vor.u32 %v7657_v53, %v6628_v48 }
 0x305   :  { %2849 = vmatpush.bf16.msra.mxu2 %v6501_v26 }
 0x306   :  { %2616 = vmatmul.bf16.gmra.mxu3 %v13183_v29  ;;  %v10038_v35 = vadd.f32 %v2476_v22, %v2388_v52  ;;  %13184 = vst [vmem:[#allocation128_spill] sm:$0xff] %v10040_v28  ;;  %v2212_v32 = vpop.f32.mrf.mxu2 }
 0x307   :  { %v2213_v2 = vadd.f32 %v2212_v32, %v9593_v60  ;;  %2938 = vmatpush.bf16.msra.mxu3 %v6629_v19  ;;  %v13186_v19 = vld [vmem:[#allocation70_spill] sm:$0xff] }
 0x308   :  { %v2392_v1 = vpop.f32.mrf.mxu0 }
 0x309   :  { %v2301_v5 = vpop.f32.mrf.mxu3  ;;  %v2481_v29 = vpop.f32.mrf.mxu1  ;;  %v4331_v41 = vmul.f32 0.1, %v2213_v2  ;;  %vm4203_vm14 = vcmp.gt.f32.partialorder %v2213_v2, 0.0 }
 0x30a   :  { %v2302_v34 = vadd.f32 %v2301_v5, %v9635_v30  ;;  %v13185_v5 = vld [vmem:[#allocation69_spill] sm:$0xff] }
 0x30c   :  { %v2391_v22 = vadd.f32 %v2390_v12, %v2302_v34  ;;  %v4459_v12 = vsel %vm4203_vm14, %v2213_v2, %v4331_v41  ;;  %v13187_v34 = vld [vmem:[#allocation68_spill] sm:$0xff] }
 0x30e   :  { %v10047_v52 = vadd.f32 %v2479_v21, %v2391_v22  ;;  %v2214_v6 = vpop.f32.mrf.mxu2 }
 0x30f   :  { %v2215_v27 = vadd.f32 %v2214_v6, %v9603_v40 }
 0x310   :  { %v2395_v53 = vpop.f32.mrf.mxu0 }
 0x311   :  { %v2303_v3 = vpop.f32.mrf.mxu3  ;;  %vm4207_vm15 = vcmp.gt.f32.partialorder %v2215_v27, 0.0  ;;  %v4335_v60 = vmul.f32 0.1, %v2215_v27  ;;  %v2484_v26 = vpop.f32.mrf.mxu1 }
 0x312   :  { %v2304_v48 = vadd.f32 %v2303_v3, %v9635_v30 }
 0x313   :  { %2532 = vmatmul.bf16.gmra.mxu2 %v13185_v5  ;;  %2710 = vmatmul.bf16.gmra.mxu0 %v13186_v19  ;;  %v4463_v21 = vsel %vm4207_vm15, %v2215_v27, %v4335_v60 }
 0x314   :  { %v2393_v32 = vadd.f32 %v2392_v1, %v2304_v48  ;;  %7249 = vmatmul.msk.bf16.gmra.mxu1 %vm1550_vm0, %v9596_v9  ;;  %v10058_v22 = vpack.c.bf16 %v4463_v21, %v4459_v12 }
 0x316   :  { %2621 = vmatmul.bf16.gmra.mxu3 %v13187_v34  ;;  %v10056_v40 = vadd.f32 %v2481_v29, %v2393_v32  ;;  %13188 = vst [vmem:[#allocation129_spill] sm:$0xff] %v10058_v22  ;;  %v2217_v6 = vpop.f32.mrf.mxu2  ;;  %v6820_v29 = vld [vmem:[%s12683_s1 + $0x2e8] sm:$0xf] }
 0x317   :  { %v2218_v3 = vadd.f32 %v2217_v6, %v9624_v23  ;;  %v7705_v23 = vld [vmem:[%s12683_s1 + $0x2f4] sm:$0xf0] }
 0x318   :  { %v2397_v48 = vpop.f32.mrf.mxu0  ;;  %v6821_v32 = vor.u32 %v7705_v23, %v6820_v29  ;;  %v7621_v29 = vld [vmem:[%s12683_s1 + $0x54] sm:$0xf0] }
 0x319   :  { %v2306_v28 = vpop.f32.mrf.mxu3  ;;  %v2486_v39 = vpop.f32.mrf.mxu1  ;;  %v4339_v41 = vmul.f32 0.1, %v2218_v3  ;;  %vm4211_vm1 = vcmp.gt.f32.partialorder %v2218_v3, 0.0 }
 0x31a   :  { %v2307_v1 = vadd.f32 %v2306_v28, %v9635_v30  ;;  %v6948_v28 = vld [vmem:[%s12683_s1 + $0x3e8] sm:$0xf]  ;;  %3023 = vmatpush.bf16.msra.mxu0 %v6821_v32 }
 0x31b   :  { %v4467_v22 = vsel %vm4211_vm1, %v2218_v3, %v4339_v41  ;;  %v6612_v3 = vld [vmem:[%s12683_s1 + $0x148] sm:$0xf] }
 0x31c   :  { %v2396_v19 = vadd.f32 %v2395_v53, %v2307_v1  ;;  %v13189_v1 = vld [vmem:[#allocation75_spill] sm:$0xff] }
 0x31e   :  { %v10062_v2 = vadd.f32 %v2484_v26, %v2396_v19  ;;  %v2219_v27 = vpop.f32.mrf.mxu2 }
 0x31f   :  { %v2220_v60 = vadd.f32 %v2219_v27, %v9651_v16  ;;  %v7737_v16 = vld [vmem:[%s12683_s1 + $0x3f4] sm:$0xf0]  ;;  %v13190_v27 = vld [vmem:[#allocation76_spill] sm:$0xff] }
 0x320   :  { %v2676_v26 = vpop.f32.mrf.mxu0  ;;  %v6949_v21 = vor.u32 %v7737_v16, %v6948_v28 }
 0x321   :  { %v2308_v9 = vpop.f32.mrf.mxu3  ;;  %vm4215_vm2 = vcmp.gt.f32.partialorder %v2220_v60, 0.0  ;;  %v4343_v19 = vmul.f32 0.1, %v2220_v60  ;;  %v2765_v12 = vpop.f32.mrf.mxu1 }
 0x322   :  { %v2309_v53 = vadd.f32 %v2308_v9, %v9635_v30  ;;  %3112 = vmatpush.bf16.msra.mxu1 %v6949_v21 }
 0x323   :  { %2537 = vmatmul.bf16.gmra.mxu2 %v13189_v1  ;;  %2715 = vmatmul.bf16.gmra.mxu0 %v13190_v27  ;;  %v4471_v34 = vsel %vm4215_vm2, %v2220_v60, %v4343_v19 }
 0x324   :  { %v2398_v6 = vadd.f32 %v2397_v48, %v2309_v53  ;;  %7250 = vmatmul.msk.bf16.gmra.mxu1 %vm1550_vm0, %v9627_v20  ;;  %v10085_v30 = vpack.c.bf16 %v4471_v34, %v4467_v22  ;;  %v6484_v48 = vld [vmem:[%s12683_s1 + $0x48] sm:$0xf] }
 0x325   :  { %v6485_v60 = vor.u32 %v7621_v29, %v6484_v48 }
 0x326   :  { %2626 = vmatmul.bf16.gmra.mxu3 %v13191_v8  ;;  %v10083_v9 = vadd.f32 %v2486_v39, %v2398_v6  ;;  %13192 = vst [vmem:[#allocation130_spill] sm:$0xff] %v10085_v30  ;;  %v2498_v41 = vpop.f32.mrf.mxu2  ;;  %v7653_v39 = vld [vmem:[%s12683_s1 + $0x154] sm:$0xf0]  ;;  %v13193_v8 = vld [vmem:[#allocation81_spill] sm:$0xff] }
 0x327   :  { %v2499_v34 = vadd.f32 %v2498_v41, %v9661_v62  ;;  %v6613_v23 = vor.u32 %v7653_v39, %v6612_v3  ;;  %2850 = vmatpush.bf16.msra.mxu2 %v6485_v60  ;;  %v13194_v62 = vld [vmem:[#allocation82_spill] sm:$0xff]  ;;  %v13195_v3 = vld [vmem:[#allocation80_spill] sm:$0xff] }
 0x328   :  { %v2678_v28 = vpop.f32.mrf.mxu0 }
 0x329   :  { %v2587_v22 = vpop.f32.mrf.mxu3  ;;  %v2767_v32 = vpop.f32.mrf.mxu1  ;;  %2939 = vmatpush.bf16.msra.mxu3 %v6613_v23 }
 0x32a   :  { %v2588_v53 = vadd.f32 %v2587_v22, %v2499_v34 }
 0x32c   :  { %v2677_v16 = vadd.f32 %v2676_v26, %v2588_v53 }
 0x32e   :  { %v2766_v19 = vadd.f32 %v2765_v12, %v2677_v16  ;;  %v2500_v21 = vpop.f32.mrf.mxu2 }
 0x32f   :  { %v2501_v6 = vadd.f32 %v2500_v21, %v9674_v56 }
 0x330   :  { %v2681_v48 = vpop.f32.mrf.mxu0  ;;  %v4220_v41 = vmul.f32 0.1, %v2766_v19  ;;  %vm4092_vm3 = vcmp.gt.f32.partialorder %v2766_v19, 0.0 }
 0x331   :  { %v2589_v30 = vpop.f32.mrf.mxu3  ;;  %v2770_v27 = vpop.f32.mrf.mxu1 }
 0x332   :  { %v2590_v29 = vadd.f32 %v2589_v30, %v2501_v6  ;;  %v4348_v34 = vsel %vm4092_vm3, %v2766_v19, %v4220_v41 }
 0x333   :  { %2542 = vmatmul.bf16.gmra.mxu2 %v13193_v8  ;;  %2720 = vmatmul.bf16.gmra.mxu0 %v13194_v62 }
 0x334   :  { %v2679_v20 = vadd.f32 %v2678_v28, %v2590_v29  ;;  %7251 = vmatmul.msk.bf16.gmra.mxu1 %vm1550_vm0, %v9664_v18 }
 0x336   :  { %2631 = vmatmul.bf16.gmra.mxu3 %v13195_v3  ;;  %v2768_v26 = vadd.f32 %v2767_v32, %v2679_v20  ;;  %v2503_v12 = vpop.f32.mrf.mxu2  ;;  %v6804_v32 = vld [vmem:[%s12683_s1 + $0x2c8] sm:$0xf] }
 0x337   :  { %v2504_v60 = vadd.f32 %v2503_v12, %v9690_v43  ;;  %v7701_v43 = vld [vmem:[%s12683_s1 + $0x2d4] sm:$0xf0] }
 0x338   :  { %vm4096_vm4 = vcmp.gt.f32.partialorder %v2768_v26, 0.0  ;;  %v4224_v56 = vmul.f32 0.1, %v2768_v26  ;;  %v2683_v39 = vpop.f32.mrf.mxu0  ;;  %v6805_v41 = vor.u32 %v7701_v43, %v6804_v32  ;;  %v7649_v43 = vld [vmem:[%s12683_s1 + $0x134] sm:$0xf0] }
 0x339   :  { %v2592_v30 = vpop.f32.mrf.mxu3  ;;  %v2772_v28 = vpop.f32.mrf.mxu1 }
 0x33a   :  { %v4352_v22 = vsel %vm4096_vm4, %v2768_v26, %v4224_v56  ;;  %v2593_v23 = vadd.f32 %v2592_v30, %v2504_v60  ;;  %v6932_v26 = vld [vmem:[%s12683_s1 + $0x3c8] sm:$0xf]  ;;  %3024 = vmatpush.bf16.msra.mxu0 %v6805_v41  ;;  %v13197_v60 = vld [vmem:[#allocation86_spill] sm:$0xff]  ;;  %v13198_v30 = vld [vmem:[#allocation87_spill] sm:$0xff] }
 0x33b   :  { %v10107_v53 = vpack.c.bf16 %v4352_v22, %v4348_v34  ;;  %v13199_v22 = vld [vmem:[#allocation85_spill] sm:$0xff] }
 0x33c   :  { %v2682_v16 = vadd.f32 %v2681_v48, %v2593_v23  ;;  %v13200_v23 = vld [vmem:[#allocation77_spill] sm:$0xff] }
 0x33d   :  { %13196 = vst [vmem:[#allocation131_spill] sm:$0xff] %v10107_v53 }
 0x33e   :  { %v2771_v21 = vadd.f32 %v2770_v27, %v2682_v16  ;;  %v2505_v6 = vpop.f32.mrf.mxu2  ;;  %v7733_v27 = vld [vmem:[%s12683_s1 + $0x3d4] sm:$0xf0] }
 0x33f   :  { %v2506_v29 = vadd.f32 %v2505_v6, %v9710_v14  ;;  %v6933_v12 = vor.u32 %v7733_v27, %v6932_v26  ;;  %v6468_v6 = vld [vmem:[%s12683_s1 + $0x28] sm:$0xf] }
 0x340   :  { %v2686_v19 = vpop.f32.mrf.mxu0  ;;  %v4228_v34 = vmul.f32 0.1, %v2771_v21  ;;  %vm4100_vm5 = vcmp.gt.f32.partialorder %v2771_v21, 0.0 }
 0x341   :  { %v2594_v20 = vpop.f32.mrf.mxu3  ;;  %v2775_v48 = vpop.f32.mrf.mxu1  ;;  %3113 = vmatpush.bf16.msra.mxu1 %v6933_v12 }
 0x342   :  { %v2595_v14 = vadd.f32 %v2594_v20, %v2506_v29  ;;  %v6596_v29 = vld [vmem:[%s12683_s1 + $0x128] sm:$0xf] }
 0x343   :  { %2547 = vmatmul.bf16.gmra.mxu2 %v13197_v60  ;;  %2725 = vmatmul.bf16.gmra.mxu0 %v13198_v30  ;;  %v6597_v27 = vor.u32 %v7649_v43, %v6596_v29  ;;  %v4356_v30 = vsel %vm4100_vm5, %v2771_v21, %v4228_v34  ;;  %v13203_v60 = vld [vmem:[#allocation90_spill] sm:$0xff]  ;;  %v13206_v21 = vld [vmem:[#allocation92_spill] sm:$0xff] }
 0x344   :  { %v2684_v56 = vadd.f32 %v2683_v39, %v2595_v14  ;;  %7252 = vmatmul.msk.bf16.gmra.mxu1 %vm1550_vm0, %v13200_v23  ;;  %v7617_v39 = vld [vmem:[%s12683_s1 + $0x34] sm:$0xf0] }
 0x345   :  { %v6469_v32 = vor.u32 %v7617_v39, %v6468_v6  ;;  %2940 = vmatpush.bf16.msra.mxu3 %v6597_v27 }
 0x346   :  { %2636 = vmatmul.bf16.gmra.mxu3 %v13199_v22  ;;  %v2773_v16 = vadd.f32 %v2772_v28, %v2684_v56  ;;  %v2508_v20 = vpop.f32.mrf.mxu2  ;;  %v13201_v28 = vld [vmem:[#allocation83_spill] sm:$0xff] }
 0x347   :  { %v2509_v41 = vadd.f32 %v2508_v20, %v13201_v28  ;;  %2851 = vmatpush.bf16.msra.mxu2 %v6469_v32  ;;  %v13204_v32 = vld [vmem:[#allocation91_spill] sm:$0xff] }
 0x348   :  { %vm4104_vm6 = vcmp.gt.f32.partialorder %v2773_v16, 0.0  ;;  %v4232_v14 = vmul.f32 0.1, %v2773_v16  ;;  %v2688_v12 = vpop.f32.mrf.mxu0 }
 0x349   :  { %v2597_v26 = vpop.f32.mrf.mxu3  ;;  %v2777_v53 = vpop.f32.mrf.mxu1 }
 0x34a   :  { %v2598_v56 = vadd.f32 %v2597_v26, %v2509_v41  ;;  %v4360_v23 = vsel %vm4104_vm6, %v2773_v16, %v4232_v14  ;;  %v13205_v41 = vld [vmem:[#allocation89_spill] sm:$0xff] }
 0x34b   :  { %v10140_v22 = vpack.c.bf16 %v4360_v23, %v4356_v30 }
 0x34c   :  { %v2687_v6 = vadd.f32 %v2686_v19, %v2598_v56 }
 0x34d   :  { %13202 = vst [vmem:[#allocation83_spill] sm:$0xff] %v10140_v22 }
 0x34e   :  { %v2776_v39 = vadd.f32 %v2775_v48, %v2687_v6  ;;  %v2510_v62 = vpop.f32.mrf.mxu2 }
 0x34f   :  { %v2511_v18 = vadd.f32 %v2510_v62, %v9736_v51 }
 0x350   :  { %v2691_v20 = vpop.f32.mrf.mxu0  ;;  %v4236_v30 = vmul.f32 0.1, %v2776_v39  ;;  %vm4108_vm7 = vcmp.gt.f32.partialorder %v2776_v39, 0.0 }
 0x351   :  { %v2599_v3 = vpop.f32.mrf.mxu3  ;;  %v2780_v29 = vpop.f32.mrf.mxu1 }
 0x352   :  { %v2600_v28 = vadd.f32 %v2599_v3, %v2511_v18  ;;  %v4364_v16 = vsel %vm4108_vm7, %v2776_v39, %v4236_v30  ;;  %v6916_v39 = vld [vmem:[%s12683_s1 + $0x3a8] sm:$0xf] }
 0x353   :  { %2552 = vmatmul.bf16.gmra.mxu2 %v13203_v60  ;;  %2730 = vmatmul.bf16.gmra.mxu0 %v13204_v32 }
 0x354   :  { %v2689_v43 = vadd.f32 %v2688_v12, %v2600_v28  ;;  %7253 = vmatmul.msk.bf16.gmra.mxu1 %vm1550_vm0, %v13206_v21  ;;  %v7697_v28 = vld [vmem:[%s12683_s1 + $0x2b4] sm:$0xf0] }
 0x356   :  { %2641 = vmatmul.bf16.gmra.mxu3 %v13205_v41  ;;  %v2778_v19 = vadd.f32 %v2777_v53, %v2689_v43  ;;  %v2513_v48 = vpop.f32.mrf.mxu2 }
 0x357   :  { %v2514_v51 = vadd.f32 %v2513_v48, %v9754_v63  ;;  %v6788_v63 = vld [vmem:[%s12683_s1 + $0x2a8] sm:$0xf] }
 0x358   :  { %vm4112_vm8 = vcmp.gt.f32.partialorder %v2778_v19, 0.0  ;;  %v4240_v18 = vmul.f32 0.1, %v2778_v19  ;;  %v2693_v3 = vpop.f32.mrf.mxu0  ;;  %v6789_v48 = vor.u32 %v7697_v28, %v6788_v63 }
 0x359   :  { %v2602_v62 = vpop.f32.mrf.mxu3  ;;  %v2782_v23 = vpop.f32.mrf.mxu1 }
 0x35a   :  { %v2603_v34 = vadd.f32 %v2602_v62, %v2514_v51  ;;  %v4368_v26 = vsel %vm4112_vm8, %v2778_v19, %v4240_v18  ;;  %3025 = vmatpush.bf16.msra.mxu0 %v6789_v48  ;;  %v13208_v51 = vld [vmem:[#allocation95_spill] sm:$0xff]  ;;  %v13209_v62 = vld [vmem:[#allocation96_spill] sm:$0xff] }
 0x35b   :  { %v10149_v27 = vpack.c.bf16 %v4368_v26, %v4364_v16  ;;  %v6452_v26 = vld [vmem:[%s12683_s1 + $0x8] sm:$0xf] }
 0x35c   :  { %v2692_v14 = vadd.f32 %v2691_v20, %v2603_v34  ;;  %v7729_v20 = vld [vmem:[%s12683_s1 + $0x3b4] sm:$0xf0] }
 0x35d   :  { %13207 = vst [vmem:[#allocation91_spill] sm:$0xff] %v10149_v27  ;;  %v6917_v30 = vor.u32 %v7729_v20, %v6916_v39  ;;  %v13210_v34 = vld [vmem:[#allocation94_spill] sm:$0xff] }
 0x35e   :  { %v2781_v12 = vadd.f32 %v2780_v29, %v2692_v14  ;;  %v2515_v56 = vpop.f32.mrf.mxu2  ;;  %v6580_v14 = vld [vmem:[%s12683_s1 + $0x108] sm:$0xf] }
 0x35f   :  { %v2516_v6 = vadd.f32 %v2515_v56, %v9774_v36  ;;  %3114 = vmatpush.bf16.msra.mxu1 %v6917_v30 }
 0x360   :  { %v2696_v43 = vpop.f32.mrf.mxu0  ;;  %v4244_v18 = vmul.f32 0.1, %v2781_v12  ;;  %vm4116_vm9 = vcmp.gt.f32.partialorder %v2781_v12, 0.0 }
 0x361   :  { %v2604_v53 = vpop.f32.mrf.mxu3  ;;  %v2785_v29 = vpop.f32.mrf.mxu1 }
 0x362   :  { %v2605_v36 = vadd.f32 %v2604_v53, %v2516_v6  ;;  %v7645_v53 = vld [vmem:[%s12683_s1 + $0x114] sm:$0xf0]  ;;  %v4372_v30 = vsel %vm4116_vm9, %v2781_v12, %v4244_v18 }
 0x363   :  { %2557 = vmatmul.bf16.gmra.mxu2 %v13208_v51  ;;  %2735 = vmatmul.bf16.gmra.mxu0 %v13209_v62  ;;  %v6581_v28 = vor.u32 %v7645_v53, %v6580_v14  ;;  %v7693_v14 = vld [vmem:[%s12683_s1 + $0x294] sm:$0xf0]  ;;  %v13222_v62 = vld [vmem:[#allocation109_spill] sm:$0xff] }
 0x364   :  { %v2694_v19 = vadd.f32 %v2693_v3, %v2605_v36  ;;  %7254 = vmatmul.msk.bf16.gmra.mxu1 %vm1550_vm0, %v9757_v7  ;;  %v7613_v3 = vld [vmem:[%s12683_s1 + $0x14] sm:$0xf0] }
 0x365   :  { %v6453_v6 = vor.u32 %v7613_v3, %v6452_v26  ;;  %2941 = vmatpush.bf16.msra.mxu3 %v6581_v28 }
 0x366   :  { %2646 = vmatmul.bf16.gmra.mxu3 %v13210_v34  ;;  %v2783_v16 = vadd.f32 %v2782_v23, %v2694_v19  ;;  %v2518_v56 = vpop.f32.mrf.mxu2 }
 0x367   :  { %v2519_v23 = vadd.f32 %v2518_v56, %v9789_v25  ;;  %2852 = vmatpush.bf16.msra.mxu2 %v6453_v6  ;;  %v6772_v25 = vld [vmem:[%s12683_s1 + $0x288] sm:$0xf] }
 0x368   :  { %vm4120_vm10 = vcmp.gt.f32.partialorder %v2783_v16, 0.0  ;;  %v4248_v48 = vmul.f32 0.1, %v2783_v16  ;;  %v2698_v39 = vpop.f32.mrf.mxu0  ;;  %v6900_v56 = vld [vmem:[%s12683_s1 + $0x388] sm:$0xf] }
 0x369   :  { %v2607_v63 = vpop.f32.mrf.mxu3  ;;  %v2787_v36 = vpop.f32.mrf.mxu1 }
 0x36a   :  { %v2608_v20 = vadd.f32 %v2607_v63, %v2519_v23  ;;  %v4376_v19 = vsel %vm4120_vm10, %v2783_v16, %v4248_v48  ;;  %v6773_v16 = vor.u32 %v7693_v14, %v6772_v25  ;;  %v6756_v63 = vld [vmem:[%s12683_s1 + $0x268] sm:$0xf]  ;;  %v13215_v25 = vld [vmem:[#allocation97_spill] sm:$0xff] }
 0x36b   :  { %v10182_v27 = vpack.c.bf16 %v4376_v19, %v4372_v30  ;;  %v13212_v48 = vld [vmem:[#allocation100_spill] sm:$0xff]  ;;  %v7721_v19 = vld [vmem:[%s12683_s1 + $0x374] sm:$0xf0] }
 0x36c   :  { %v2697_v26 = vadd.f32 %v2696_v43, %v2608_v20  ;;  %v7725_v43 = vld [vmem:[%s12683_s1 + $0x394] sm:$0xf0]  ;;  %3026 = vmatpush.bf16.msra.mxu0 %v6773_v16  ;;  %v13213_v20 = vld [vmem:[#allocation101_spill] sm:$0xff] }
 0x36d   :  { %13211 = vst [vmem:[#allocation89_spill] sm:$0xff] %v10182_v27  ;;  %v6901_v6 = vor.u32 %v7725_v43, %v6900_v56  ;;  %v7685_v16 = vld [vmem:[%s12683_s1 + $0x254] sm:$0xf0]  ;;  %v6868_v43 = vld [vmem:[%s12683_s1 + $0x348] sm:$0xf] }
 0x36e   :  { %v2786_v3 = vadd.f32 %v2785_v29, %v2697_v26  ;;  %v2520_v22 = vpop.f32.mrf.mxu2  ;;  %v13214_v26 = vld [vmem:[#allocation99_spill] sm:$0xff] }
 0x36f   :  { %v2521_v12 = vadd.f32 %v2520_v22, %v9812_v4  ;;  %3115 = vmatpush.bf16.msra.mxu1 %v6901_v6  ;;  %v7689_v4 = vld [vmem:[%s12683_s1 + $0x274] sm:$0xf0]  ;;  %v6884_v22 = vld [vmem:[%s12683_s1 + $0x368] sm:$0xf] }
 0x370   :  { %v2701_v29 = vpop.f32.mrf.mxu0  ;;  %v6757_v30 = vor.u32 %v7689_v4, %v6756_v63  ;;  %v6885_v14 = vor.u32 %v7721_v19, %v6884_v22  ;;  %v4252_v56 = vmul.f32 0.1, %v2786_v3  ;;  %vm4124_vm11 = vcmp.gt.f32.partialorder %v2786_v3, 0.0  ;;  %v13216_v6 = vld [vmem:[#allocation102_spill] sm:$0xff] }
 0x371   :  { %v2609_v18 = vpop.f32.mrf.mxu3  ;;  %v2790_v23 = vpop.f32.mrf.mxu1  ;;  %v7717_v4 = vld [vmem:[%s12683_s1 + $0x354] sm:$0xf0] }
 0x372   :  { %v2610_v53 = vadd.f32 %v2609_v18, %v2521_v12  ;;  %3027 = vmatpush.bf16.msra.mxu0 %v6757_v30  ;;  %v6740_v18 = vld [vmem:[%s12683_s1 + $0x248] sm:$0xf]  ;;  %v6869_v30 = vor.u32 %v7717_v4, %v6868_v43  ;;  %v4380_v27 = vsel %vm4124_vm11, %v2786_v3, %v4252_v56  ;;  %v7713_v3 = vld [vmem:[%s12683_s1 + $0x334] sm:$0xf0] }
 0x373   :  { %2562 = vmatmul.bf16.gmra.mxu2 %v13212_v48  ;;  %2740 = vmatmul.bf16.gmra.mxu0 %v13213_v20 }
 0x374   :  { %v2699_v28 = vadd.f32 %v2698_v39, %v2610_v53  ;;  %7255 = vmatmul.msk.bf16.gmra.mxu1 %vm1550_vm0, %v13215_v25 }
 0x375   :  { %3116 = vmatpush.bf16.msra.mxu1 %v6885_v14 }
 0x376   :  { %2651 = vmatmul.bf16.gmra.mxu3 %v13214_v26  ;;  %v2788_v12 = vadd.f32 %v2787_v36, %v2699_v28  ;;  %v2523_v39 = vpop.f32.mrf.mxu2  ;;  %v6741_v36 = vor.u32 %v7685_v16, %v6740_v18  ;;  %v7681_v18 = vld [vmem:[%s12683_s1 + $0x234] sm:$0xf0]  ;;  %v6852_v16 = vld [vmem:[%s12683_s1 + $0x328] sm:$0xf] }
 0x377   :  { %v2524_v53 = vadd.f32 %v2523_v39, %v13216_v6  ;;  %v6724_v39 = vld [vmem:[%s12683_s1 + $0x228] sm:$0xf]  ;;  %v6853_v56 = vor.u32 %v7713_v3, %v6852_v16 }
 0x378   :  { %vm4128_vm12 = vcmp.gt.f32.partialorder %v2788_v12, 0.0  ;;  %v4256_v22 = vmul.f32 0.1, %v2788_v12  ;;  %v2703_v28 = vpop.f32.mrf.mxu0  ;;  %3028 = vmatpush.bf16.msra.mxu0 %v6741_v36  ;;  %v6708_v36 = vld [vmem:[%s12683_s1 + $0x208] sm:$0xf] }
 0x379   :  { %v2612_v63 = vpop.f32.mrf.mxu3  ;;  %v2792_v14 = vpop.f32.mrf.mxu1  ;;  %3117 = vmatpush.bf16.msra.mxu1 %v6869_v30 }
 0x37a   :  { %v2613_v19 = vadd.f32 %v2612_v63, %v2524_v53  ;;  %v4384_v20 = vsel %vm4128_vm12, %v2788_v12, %v4256_v22  ;;  %v6725_v53 = vor.u32 %v7681_v18, %v6724_v39 }
 0x37b   :  { %v10237_v43 = vpack.c.bf16 %v4384_v20, %v4380_v27  ;;  %v7677_v27 = vld [vmem:[%s12683_s1 + $0x214] sm:$0xf0] }
 0x37c   :  { %v2702_v6 = vadd.f32 %v2701_v29, %v2613_v19  ;;  %3029 = vmatpush.bf16.msra.mxu0 %v6725_v53  ;;  %v6836_v29 = vld [vmem:[%s12683_s1 + $0x308] sm:$0xf]  ;;  %v6709_v22 = vor.u32 %v7677_v27, %v6708_v36  ;;  %v13219_v53 = vld [vmem:[#allocation106_spill] sm:$0xff] }
 0x37d   :  { %13217 = vst [vmem:[#allocation92_spill] sm:$0xff] %v10237_v43  ;;  %3118 = vmatpush.bf16.msra.mxu1 %v6853_v56  ;;  %v13220_v56 = vld [vmem:[#allocation104_spill] sm:$0xff]  ;;  %v7769_v36 = vld [vmem:[%s12683_s1 + $0x4f4] sm:$0xf0] }
 0x37e   :  { %v2791_v12 = vadd.f32 %v2790_v23, %v2702_v6  ;;  %v2525_v63 = vpop.f32.mrf.mxu2  ;;  %v7709_v23 = vld [vmem:[%s12683_s1 + $0x314] sm:$0xf0]  ;;  %v13218_v6 = vld [vmem:[#allocation105_spill] sm:$0xff] }
 0x37f   :  { %v2526_v20 = vadd.f32 %v2525_v63, %v9862_v61  ;;  %v6837_v19 = vor.u32 %v7709_v23, %v6836_v29  ;;  %v7076_v63 = vld [vmem:[%s12683_s1 + $0x4e8] sm:$0xf] }
 0x380   :  { %v2706_v30 = vpop.f32.mrf.mxu0  ;;  %3030 = vmatpush.bf16.msra.mxu0 %v6709_v22  ;;  %v4260_v3 = vmul.f32 0.1, %v2791_v12  ;;  %v7077_v29 = vor.u32 %v7769_v36, %v7076_v63  ;;  %vm4132_vm13 = vcmp.gt.f32.partialorder %v2791_v12, 0.0 }
 0x381   :  { %v2614_v4 = vpop.f32.mrf.mxu3  ;;  %v2795_v18 = vpop.f32.mrf.mxu1  ;;  %3119 = vmatpush.bf16.msra.mxu1 %v6837_v19 }
 0x382   :  { %v2615_v39 = vadd.f32 %v2614_v4, %v2526_v20  ;;  %v7801_v20 = vld [vmem:[%s12683_s1 + $0x5f4] sm:$0xf0]  ;;  %3201 = vmatpush.bf16.msrb.mxu2 %v7077_v29  ;;  %v4388_v43 = vsel %vm4132_vm13, %v2791_v12, %v4260_v3  ;;  %v13225_v12 = vld [vmem:[#allocation121_spill] sm:$0xff] }
 0x383   :  { %2567 = vmatmul.bf16.gmra.mxu2 %v13218_v6  ;;  %2745 = vmatmul.bf16.gmra.mxu0 %v13219_v53  ;;  %v13223_v29 = vld [vmem:[#allocation110_spill] sm:$0xff] }
 0x384   :  { %v2704_v16 = vadd.f32 %v2703_v28, %v2615_v39  ;;  %7256 = vmatmul.msk.bf16.gmra.mxu1 %vm1550_vm0, %v9845_v50  ;;  %v7204_v28 = vld [vmem:[%s12683_s1 + $0x5e8] sm:$0xf] }
 0x385   :  { %v7205_v22 = vor.u32 %v7801_v20, %v7204_v28 }
 0x386   :  { %2656 = vmatmul.bf16.gmra.mxu3 %v13220_v56  ;;  %v2793_v61 = vadd.f32 %v2792_v14, %v2704_v16  ;;  %v2528_v27 = vpop.f32.mrf.mxu2 }
 0x387   :  { %v2529_v14 = vadd.f32 %v2528_v27, %v9877_v57  ;;  %3290 = vmatpush.bf16.msrb.mxu3 %v7205_v22 }
 0x388   :  { %vm4136_vm14 = vcmp.gt.f32.partialorder %v2793_v61, 0.0  ;;  %v4264_v23 = vmul.f32 0.1, %v2793_v61  ;;  %v2708_v19 = vpop.f32.mrf.mxu0 }
 0x389   :  { %v2617_v4 = vpop.f32.mrf.mxu3  ;;  %v2797_v16 = vpop.f32.mrf.mxu1 }
 0x38a   :  { %v2618_v39 = vadd.f32 %v2617_v4, %v2529_v14  ;;  %v4392_v53 = vsel %vm4136_vm14, %v2793_v61, %v4264_v23  ;;  %v13224_v14 = vld [vmem:[#allocation108_spill] sm:$0xff] }
 0x38b   :  { %v10273_v50 = vpack.c.bf16 %v4392_v53, %v4388_v43 }
 0x38c   :  { %v2707_v63 = vadd.f32 %v2706_v30, %v2618_v39 }
 0x38d   :  { %13221 = vst [vmem:[#allocation94_spill] sm:$0xff] %v10273_v50 }
 0x38e   :  { %v2796_v36 = vadd.f32 %v2795_v18, %v2707_v63  ;;  %v2530_v56 = vpop.f32.mrf.mxu2 }
 0x38f   :  { %v2531_v25 = vadd.f32 %v2530_v56, %v9888_v47 }
 0x390   :  { %v2711_v57 = vpop.f32.mrf.mxu0  ;;  %v4268_v43 = vmul.f32 0.1, %v2796_v36  ;;  %vm4140_vm15 = vcmp.gt.f32.partialorder %v2796_v36, 0.0 }
 0x391   :  { %v2619_v26 = vpop.f32.mrf.mxu3  ;;  %v2800_v28 = vpop.f32.mrf.mxu1 }
 0x392   :  { %v2620_v27 = vadd.f32 %v2619_v26, %v2531_v25  ;;  %v4396_v61 = vsel %vm4140_vm15, %v2796_v36, %v4268_v43 }
 0x393   :  { %2572 = vmatmul.bf16.gmra.mxu2 %v13222_v62  ;;  %2750 = vmatmul.bf16.gmra.mxu0 %v13223_v29  ;;  %v13228_v29 = vld [vmem:[#allocation35_spill] sm:$0xff] }
 0x394   :  { %v2709_v20 = vadd.f32 %v2708_v19, %v2620_v27  ;;  %7257 = vmatmul.msk.bf16.gmra.mxu1 %vm1550_vm0, %v13225_v12 }
 0x396   :  { %2661 = vmatmul.bf16.gmra.mxu3 %v13224_v14  ;;  %v2798_v30 = vadd.f32 %v2797_v16, %v2709_v20  ;;  %v2533_v18 = vpop.f32.mrf.mxu2 }
 0x397   :  { %v2534_v47 = vadd.f32 %v2533_v18, %v9894_v45  ;;  %v13227_v18 = vld [vmem:[#allocation3_spill] sm:$0xff] }
 0x398   :  { %vm4144_vm1 = vcmp.gt.f32.partialorder %v2798_v30, 0.0  ;;  %v4272_v26 = vmul.f32 0.1, %v2798_v30  ;;  %v2713_v25 = vpop.f32.mrf.mxu0 }
 0x399   :  { %v2622_v53 = vpop.f32.mrf.mxu3  ;;  %v2802_v56 = vpop.f32.mrf.mxu1 }
 0x39a   :  { %v2623_v3 = vadd.f32 %v2622_v53, %v2534_v47  ;;  %v4400_v4 = vsel %vm4144_vm1, %v2798_v30, %v4272_v26  ;;  %v13229_v53 = vld [vmem:[#allocation5_spill] sm:$0xff]  ;;  %v7797_v26 = vld [vmem:[%s12683_s1 + $0x5d4] sm:$0xf0] }
 0x39b   :  { %v10282_v22 = vpack.c.bf16 %v4400_v4, %v4396_v61 }
 0x39c   :  { %v2712_v23 = vadd.f32 %v2711_v57, %v2623_v3  ;;  %v7060_v57 = vld [vmem:[%s12683_s1 + $0x4c8] sm:$0xf] }
 0x39d   :  { %13226 = vst [vmem:[#allocation102_spill] sm:$0xff] %v10282_v22 }
 0x39e   :  { %v2801_v19 = vadd.f32 %v2800_v28, %v2712_v23  ;;  %v2535_v39 = vpop.f32.mrf.mxu2  ;;  %v7188_v28 = vld [vmem:[%s12683_s1 + $0x5c8] sm:$0xf] }
 0x39f   :  { %v2536_v63 = vadd.f32 %v2535_v39, %v9912_v54  ;;  %v7765_v54 = vld [vmem:[%s12683_s1 + $0x4d4] sm:$0xf0] }
 0x3a0   :  { %v2716_v27 = vpop.f32.mrf.mxu0  ;;  %v4276_v47 = vmul.f32 0.1, %v2801_v19  ;;  %v7061_v30 = vor.u32 %v7765_v54, %v7060_v57  ;;  %vm4148_vm2 = vcmp.gt.f32.partialorder %v2801_v19, 0.0 }
 0x3a1   :  { %v2624_v16 = vpop.f32.mrf.mxu3  ;;  %v2805_v50 = vpop.f32.mrf.mxu1 }
 0x3a2   :  { %v2625_v20 = vadd.f32 %v2624_v16, %v2536_v63  ;;  %3202 = vmatpush.bf16.msrb.mxu2 %v7061_v30  ;;  %v4404_v63 = vsel %vm4148_vm2, %v2801_v19, %v4276_v47  ;;  %v13232_v30 = vld [vmem:[#allocation39_spill] sm:$0xff] }
 0x3a3   :  { %2853 = vmatmul.bf16.vlgmr.msra.gmra.mxu2 %v13227_v18  ;;  %3031 = vmatmul.bf16.vlgmr.msra.gmra.mxu0 %v13228_v29 }
 0x3a4   :  { %v2714_v45 = vadd.f32 %v2713_v25, %v2625_v20  ;;  %3120 = vmatmul.bf16.vlgmr.msra.gmra.mxu1 %v13157_v31  ;;  %v13231_v31 = vld [vmem:[#allocation7_spill] sm:$0xff] }
 0x3a6   :  { %2942 = vmatmul.bf16.vlgmr.msra.gmra.mxu3 %v13229_v53  ;;  %v2803_v36 = vadd.f32 %v2802_v56, %v2714_v45  ;;  %v2538_v43 = vpop.f32.mrf.mxu2  ;;  %v7189_v56 = vor.u32 %v7797_v26, %v7188_v28 }
 0x3a7   :  { %v2539_v25 = vadd.f32 %v2538_v43, %v9921_v24 }
 0x3a8   :  { %vm4152_vm3 = vcmp.gt.f32.partialorder %v2803_v36, 0.0  ;;  %v4280_v61 = vmul.f32 0.1, %v2803_v36  ;;  %v2718_v4 = vpop.f32.mrf.mxu0  ;;  %3291 = vmatpush.bf16.msrb.mxu3 %v7189_v56 }
 0x3a9   :  { %v2627_v3 = vpop.f32.mrf.mxu3  ;;  %v2807_v39 = vpop.f32.mrf.mxu1 }
 0x3aa   :  { %v2628_v23 = vadd.f32 %v2627_v3, %v2539_v25  ;;  %v4408_v16 = vsel %vm4152_vm3, %v2803_v36, %v4280_v61  ;;  %v13233_v25 = vld [vmem:[#allocation9_spill] sm:$0xff] }
 0x3ab   :  { %v10302_v20 = vpack.c.bf16 %v4408_v16, %v4404_v63 }
 0x3ac   :  { %v2717_v45 = vadd.f32 %v2716_v27, %v2628_v23 }
 0x3ad   :  { %13230 = vst [vmem:[#allocation108_spill] sm:$0xff] %v10302_v20  ;;  %v13236_v20 = vld [vmem:[#allocation43_spill] sm:$0xff] }
 0x3ae   :  { %v2806_v57 = vadd.f32 %v2805_v50, %v2717_v45  ;;  %v2540_v54 = vpop.f32.mrf.mxu2 }
 0x3af   :  { %v2541_v22 = vadd.f32 %v2540_v54, %v9930_v11 }
 0x3b0   :  { %v2721_v24 = vpop.f32.mrf.mxu0  ;;  %v4284_v19 = vmul.f32 0.1, %v2806_v57  ;;  %vm4156_vm4 = vcmp.gt.f32.partialorder %v2806_v57, 0.0 }
 0x3b1   :  { %v2629_v29 = vpop.f32.mrf.mxu3  ;;  %v2810_v28 = vpop.f32.mrf.mxu1 }
 0x3b2   :  { %v2630_v43 = vadd.f32 %v2629_v29, %v2541_v22  ;;  %v4412_v56 = vsel %vm4156_vm4, %v2806_v57, %v4284_v19 }
 0x3b3   :  { %2858 = vmatmul.bf16.gmra.mxu2 %v13231_v31  ;;  %3036 = vmatmul.bf16.gmra.mxu0 %v13232_v30 }
 0x3b4   :  { %v2719_v26 = vadd.f32 %v2718_v4, %v2630_v43  ;;  %3125 = vmatmul.bf16.gmra.mxu1 %v13161_v58 }
 0x3b6   :  { %2947 = vmatmul.bf16.gmra.mxu3 %v13233_v25  ;;  %v2808_v47 = vadd.f32 %v2807_v39, %v2719_v26  ;;  %v2543_v27 = vpop.f32.mrf.mxu2 }
 0x3b7   :  { %v2544_v50 = vadd.f32 %v2543_v27, %v9936_v33  ;;  %v13235_v27 = vld [vmem:[#allocation11_spill] sm:$0xff] }
 0x3b8   :  { %vm4160_vm5 = vcmp.gt.f32.partialorder %v2808_v47, 0.0  ;;  %v4288_v36 = vmul.f32 0.1, %v2808_v47  ;;  %v2723_v29 = vpop.f32.mrf.mxu0 }
 0x3b9   :  { %v2632_v11 = vpop.f32.mrf.mxu3  ;;  %v2812_v3 = vpop.f32.mrf.mxu1 }
 0x3ba   :  { %v2633_v22 = vadd.f32 %v2632_v11, %v2544_v50  ;;  %v4416_v61 = vsel %vm4160_vm5, %v2808_v47, %v4288_v36  ;;  %v13237_v11 = vld [vmem:[#allocation13_spill] sm:$0xff]  ;;  %v7793_v36 = vld [vmem:[%s12683_s1 + $0x5b4] sm:$0xf0] }
 0x3bb   :  { %v10310_v4 = vpack.c.bf16 %v4416_v61, %v4412_v56 }
 0x3bc   :  { %v2722_v23 = vadd.f32 %v2721_v24, %v2633_v22  ;;  %v7044_v24 = vld [vmem:[%s12683_s1 + $0x4a8] sm:$0xf] }
 0x3bd   :  { %13234 = vst [vmem:[#allocation3_spill] sm:$0xff] %v10310_v4 }
 0x3be   :  { %v2811_v63 = vadd.f32 %v2810_v28, %v2722_v23  ;;  %v2545_v16 = vpop.f32.mrf.mxu2  ;;  %v7172_v28 = vld [vmem:[%s12683_s1 + $0x5a8] sm:$0xf] }
 0x3bf   :  { %v2546_v45 = vadd.f32 %v2545_v16, %v9954_v38  ;;  %v7761_v38 = vld [vmem:[%s12683_s1 + $0x4b4] sm:$0xf0] }
 0x3c0   :  { %v2726_v54 = vpop.f32.mrf.mxu0  ;;  %v4292_v50 = vmul.f32 0.1, %v2811_v63  ;;  %v7045_v47 = vor.u32 %v7761_v38, %v7044_v24  ;;  %vm4164_vm6 = vcmp.gt.f32.partialorder %v2811_v63, 0.0 }
 0x3c1   :  { %v2634_v39 = vpop.f32.mrf.mxu3  ;;  %v2815_v26 = vpop.f32.mrf.mxu1 }
 0x3c2   :  { %v2635_v43 = vadd.f32 %v2634_v39, %v2546_v45  ;;  %3203 = vmatpush.bf16.msrb.mxu2 %v7045_v47  ;;  %v4420_v45 = vsel %vm4164_vm6, %v2811_v63, %v4292_v50  ;;  %v13240_v47 = vld [vmem:[#allocation47_spill] sm:$0xff] }
 0x3c3   :  { %2863 = vmatmul.bf16.gmra.mxu2 %v13235_v27  ;;  %3041 = vmatmul.bf16.gmra.mxu0 %v13236_v20 }
 0x3c4   :  { %v2724_v33 = vadd.f32 %v2723_v29, %v2635_v43  ;;  %3130 = vmatmul.bf16.gmra.mxu1 %v13165_v13  ;;  %v13239_v13 = vld [vmem:[#allocation15_spill] sm:$0xff] }
 0x3c6   :  { %2952 = vmatmul.bf16.gmra.mxu3 %v13237_v11  ;;  %v2813_v57 = vadd.f32 %v2812_v3, %v2724_v33  ;;  %v2548_v19 = vpop.f32.mrf.mxu2  ;;  %v7173_v3 = vor.u32 %v7793_v36, %v7172_v28 }
 0x3c7   :  { %v2549_v29 = vadd.f32 %v2548_v19, %v9963_v59 }
 0x3c8   :  { %vm4168_vm7 = vcmp.gt.f32.partialorder %v2813_v57, 0.0  ;;  %v4296_v56 = vmul.f32 0.1, %v2813_v57  ;;  %v2728_v61 = vpop.f32.mrf.mxu0  ;;  %3292 = vmatpush.bf16.msrb.mxu3 %v7173_v3 }
 0x3c9   :  { %v2637_v22 = vpop.f32.mrf.mxu3  ;;  %v2817_v16 = vpop.f32.mrf.mxu1 }
 0x3ca   :  { %v2638_v23 = vadd.f32 %v2637_v22, %v2549_v29  ;;  %v4424_v39 = vsel %vm4168_vm7, %v2813_v57, %v4296_v56  ;;  %v13241_v29 = vld [vmem:[#allocation17_spill] sm:$0xff] }
 0x3cb   :  { %v10330_v43 = vpack.c.bf16 %v4424_v39, %v4420_v45 }
 0x3cc   :  { %v2727_v33 = vadd.f32 %v2726_v54, %v2638_v23 }
 0x3cd   :  { %13238 = vst [vmem:[#allocation5_spill] sm:$0xff] %v10330_v43  ;;  %v13244_v43 = vld [vmem:[#allocation51_spill] sm:$0xff] }
 0x3ce   :  { %v2816_v24 = vadd.f32 %v2815_v26, %v2727_v33  ;;  %v2550_v38 = vpop.f32.mrf.mxu2 }
 0x3cf   :  { %v2551_v4 = vadd.f32 %v2550_v38, %v9972_v42 }
 0x3d0   :  { %v2731_v59 = vpop.f32.mrf.mxu0  ;;  %v4300_v63 = vmul.f32 0.1, %v2816_v24  ;;  %vm4172_vm8 = vcmp.gt.f32.partialorder %v2816_v24, 0.0 }
 0x3d1   :  { %v2639_v20 = vpop.f32.mrf.mxu3  ;;  %v2820_v28 = vpop.f32.mrf.mxu1 }
 0x3d2   :  { %v2640_v19 = vadd.f32 %v2639_v20, %v2551_v4  ;;  %v4428_v3 = vsel %vm4172_vm8, %v2816_v24, %v4300_v63 }
 0x3d3   :  { %2868 = vmatmul.bf16.gmra.mxu2 %v13239_v13  ;;  %3046 = vmatmul.bf16.gmra.mxu0 %v13240_v47 }
 0x3d4   :  { %v2729_v36 = vadd.f32 %v2728_v61, %v2640_v19  ;;  %3135 = vmatmul.bf16.gmra.mxu1 %v13169_v44 }
 0x3d6   :  { %2957 = vmatmul.bf16.gmra.mxu3 %v13241_v29  ;;  %v2818_v50 = vadd.f32 %v2817_v16, %v2729_v36  ;;  %v2553_v54 = vpop.f32.mrf.mxu2 }
 0x3d7   :  { %v2554_v26 = vadd.f32 %v2553_v54, %v9978_v55  ;;  %v13243_v54 = vld [vmem:[#allocation19_spill] sm:$0xff] }
 0x3d8   :  { %vm4176_vm9 = vcmp.gt.f32.partialorder %v2818_v50, 0.0  ;;  %v4304_v57 = vmul.f32 0.1, %v2818_v50  ;;  %v2733_v20 = vpop.f32.mrf.mxu0 }
 0x3d9   :  { %v2642_v42 = vpop.f32.mrf.mxu3  ;;  %v2822_v22 = vpop.f32.mrf.mxu1 }
 0x3da   :  { %v2643_v4 = vadd.f32 %v2642_v42, %v2554_v26  ;;  %v4432_v56 = vsel %vm4176_vm9, %v2818_v50, %v4304_v57  ;;  %v13245_v42 = vld [vmem:[#allocation21_spill] sm:$0xff]  ;;  %v7789_v57 = vld [vmem:[%s12683_s1 + $0x594] sm:$0xf0] }
 0x3db   :  { %v10338_v61 = vpack.c.bf16 %v4432_v56, %v4428_v3 }
 0x3dc   :  { %v2732_v23 = vadd.f32 %v2731_v59, %v2643_v4  ;;  %v7028_v59 = vld [vmem:[%s12683_s1 + $0x488] sm:$0xf] }
 0x3dd   :  { %13242 = vst [vmem:[#allocation7_spill] sm:$0xff] %v10338_v61 }
 0x3de   :  { %v2821_v45 = vadd.f32 %v2820_v28, %v2732_v23  ;;  %v2555_v39 = vpop.f32.mrf.mxu2  ;;  %v7156_v28 = vld [vmem:[%s12683_s1 + $0x588] sm:$0xf] }
 0x3df   :  { %v2556_v33 = vadd.f32 %v2555_v39, %v9996_v0  ;;  %v7757_v0 = vld [vmem:[%s12683_s1 + $0x494] sm:$0xf0] }
 0x3e0   :  { %v2736_v38 = vpop.f32.mrf.mxu0  ;;  %v4308_v26 = vmul.f32 0.1, %v2821_v45  ;;  %v7029_v50 = vor.u32 %v7757_v0, %v7028_v59  ;;  %vm4180_vm10 = vcmp.gt.f32.partialorder %v2821_v45, 0.0 }
 0x3e1   :  { %v2644_v16 = vpop.f32.mrf.mxu3  ;;  %v2825_v36 = vpop.f32.mrf.mxu1 }
 0x3e2   :  { %v2645_v19 = vadd.f32 %v2644_v16, %v2556_v33  ;;  %3204 = vmatpush.bf16.msrb.mxu2 %v7029_v50  ;;  %v4436_v33 = vsel %vm4180_vm10, %v2821_v45, %v4308_v26  ;;  %v13248_v50 = vld [vmem:[#allocation55_spill] sm:$0xff] }
 0x3e3   :  { %2873 = vmatmul.bf16.gmra.mxu2 %v13243_v54  ;;  %3051 = vmatmul.bf16.gmra.mxu0 %v13244_v43 }
 0x3e4   :  { %v2734_v55 = vadd.f32 %v2733_v20, %v2645_v19  ;;  %3140 = vmatmul.bf16.gmra.mxu1 %v13173_v10  ;;  %v13247_v10 = vld [vmem:[#allocation23_spill] sm:$0xff] }
 0x3e6   :  { %2962 = vmatmul.bf16.gmra.mxu3 %v13245_v42  ;;  %v2823_v24 = vadd.f32 %v2822_v22, %v2734_v55  ;;  %v2558_v63 = vpop.f32.mrf.mxu2  ;;  %v7157_v22 = vor.u32 %v7789_v57, %v7156_v28 }
 0x3e7   :  { %v2559_v20 = vadd.f32 %v2558_v63, %v10005_v17 }
 0x3e8   :  { %vm4184_vm11 = vcmp.gt.f32.partialorder %v2823_v24, 0.0  ;;  %v4312_v3 = vmul.f32 0.1, %v2823_v24  ;;  %v2738_v56 = vpop.f32.mrf.mxu0  ;;  %3293 = vmatpush.bf16.msrb.mxu3 %v7157_v22 }
 0x3e9   :  { %v2647_v4 = vpop.f32.mrf.mxu3  ;;  %v2827_v39 = vpop.f32.mrf.mxu1 }
 0x3ea   :  { %v2648_v23 = vadd.f32 %v2647_v4, %v2559_v20  ;;  %v4440_v16 = vsel %vm4184_vm11, %v2823_v24, %v4312_v3  ;;  %v13249_v20 = vld [vmem:[#allocation25_spill] sm:$0xff] }
 0x3eb   :  { %v10358_v19 = vpack.c.bf16 %v4440_v16, %v4436_v33 }
 0x3ec   :  { %v2737_v55 = vadd.f32 %v2736_v38, %v2648_v23 }
 0x3ed   :  { %13246 = vst [vmem:[#allocation9_spill] sm:$0xff] %v10358_v19  ;;  %v13252_v19 = vld [vmem:[#allocation61_spill] sm:$0xff] }
 0x3ee   :  { %v2826_v59 = vadd.f32 %v2825_v36, %v2737_v55  ;;  %v2560_v0 = vpop.f32.mrf.mxu2 }
 0x3ef   :  { %v2561_v61 = vadd.f32 %v2560_v0, %v10014_v49 }
 0x3f0   :  { %v2741_v17 = vpop.f32.mrf.mxu0  ;;  %v4316_v45 = vmul.f32 0.1, %v2826_v59  ;;  %vm4188_vm12 = vcmp.gt.f32.partialorder %v2826_v59, 0.0 }
 0x3f1   :  { %v2649_v43 = vpop.f32.mrf.mxu3  ;;  %v2830_v28 = vpop.f32.mrf.mxu1 }
 0x3f2   :  { %v2650_v63 = vadd.f32 %v2649_v43, %v2561_v61  ;;  %v4444_v22 = vsel %vm4188_vm12, %v2826_v59, %v4316_v45 }
 0x3f3   :  { %2878 = vmatmul.bf16.gmra.mxu2 %v13247_v10  ;;  %3056 = vmatmul.bf16.gmra.mxu0 %v13248_v50 }
 0x3f4   :  { %v2739_v57 = vadd.f32 %v2738_v56, %v2650_v63  ;;  %3145 = vmatmul.bf16.gmra.mxu1 %v13177_v37 }
 0x3f6   :  { %2967 = vmatmul.bf16.gmra.mxu3 %v13249_v20  ;;  %v2828_v26 = vadd.f32 %v2827_v39, %v2739_v57  ;;  %v2563_v38 = vpop.f32.mrf.mxu2 }
 0x3f7   :  { %v2564_v36 = vadd.f32 %v2563_v38, %v10020_v15  ;;  %v13251_v38 = vld [vmem:[#allocation27_spill] sm:$0xff] }
 0x3f8   :  { %vm4192_vm13 = vcmp.gt.f32.partialorder %v2828_v26, 0.0  ;;  %v4320_v24 = vmul.f32 0.1, %v2828_v26  ;;  %v2743_v43 = vpop.f32.mrf.mxu0 }
 0x3f9   :  { %v2652_v49 = vpop.f32.mrf.mxu3  ;;  %v2832_v4 = vpop.f32.mrf.mxu1 }
 0x3fa   :  { %v2653_v61 = vadd.f32 %v2652_v49, %v2564_v36  ;;  %v4448_v3 = vsel %vm4192_vm13, %v2828_v26, %v4320_v24  ;;  %v13253_v49 = vld [vmem:[#allocation29_spill] sm:$0xff]  ;;  %v7785_v24 = vld [vmem:[%s12683_s1 + $0x574] sm:$0xf0] }
 0x3fb   :  { %v10366_v56 = vpack.c.bf16 %v4448_v3, %v4444_v22 }
 0x3fc   :  { %v2742_v23 = vadd.f32 %v2741_v17, %v2653_v61  ;;  %v7012_v17 = vld [vmem:[%s12683_s1 + $0x468] sm:$0xf] }
 0x3fd   :  { %13250 = vst [vmem:[#allocation11_spill] sm:$0xff] %v10366_v56 }
 0x3fe   :  { %v2831_v33 = vadd.f32 %v2830_v28, %v2742_v23  ;;  %v2565_v16 = vpop.f32.mrf.mxu2  ;;  %v7140_v28 = vld [vmem:[%s12683_s1 + $0x568] sm:$0xf] }
 0x3ff   :  { %v2566_v55 = vadd.f32 %v2565_v16, %v10038_v35  ;;  %v7753_v35 = vld [vmem:[%s12683_s1 + $0x474] sm:$0xf0] }
 0x400   :  { %v2746_v0 = vpop.f32.mrf.mxu0  ;;  %v4324_v36 = vmul.f32 0.1, %v2831_v33  ;;  %v7013_v26 = vor.u32 %v7753_v35, %v7012_v17  ;;  %vm4196_vm14 = vcmp.gt.f32.partialorder %v2831_v33, 0.0 }
 0x401   :  { %v2654_v39 = vpop.f32.mrf.mxu3  ;;  %v2835_v57 = vpop.f32.mrf.mxu1 }
 0x402   :  { %v2655_v63 = vadd.f32 %v2654_v39, %v2566_v55  ;;  %3205 = vmatpush.bf16.msrb.mxu2 %v7013_v26  ;;  %v4452_v55 = vsel %vm4196_vm14, %v2831_v33, %v4324_v36  ;;  %v13256_v26 = vld [vmem:[#allocation67_spill] sm:$0xff] }
 0x403   :  { %2883 = vmatmul.bf16.gmra.mxu2 %v13251_v38  ;;  %3061 = vmatmul.bf16.gmra.mxu0 %v13252_v19 }
 0x404   :  { %v2744_v15 = vadd.f32 %v2743_v43, %v2655_v63  ;;  %3150 = vmatmul.bf16.gmra.mxu1 %v13181_v46  ;;  %v13255_v46 = vld [vmem:[#allocation31_spill] sm:$0xff] }
 0x406   :  { %2972 = vmatmul.bf16.gmra.mxu3 %v13253_v49  ;;  %v2833_v59 = vadd.f32 %v2832_v4, %v2744_v15  ;;  %v2568_v45 = vpop.f32.mrf.mxu2  ;;  %v7141_v4 = vor.u32 %v7785_v24, %v7140_v28 }
 0x407   :  { %v2569_v43 = vadd.f32 %v2568_v45, %v10047_v52 }
 0x408   :  { %vm4200_vm15 = vcmp.gt.f32.partialorder %v2833_v59, 0.0  ;;  %v4328_v22 = vmul.f32 0.1, %v2833_v59  ;;  %v2748_v3 = vpop.f32.mrf.mxu0  ;;  %3294 = vmatpush.bf16.msrb.mxu3 %v7141_v4 }
 0x409   :  { %v2657_v61 = vpop.f32.mrf.mxu3  ;;  %v2837_v16 = vpop.f32.mrf.mxu1 }
 0x40a   :  { %v2658_v23 = vadd.f32 %v2657_v61, %v2569_v43  ;;  %v4456_v39 = vsel %vm4200_vm15, %v2833_v59, %v4328_v22  ;;  %v13257_v43 = vld [vmem:[#allocation33_spill] sm:$0xff] }
 0x40b   :  { %v10386_v63 = vpack.c.bf16 %v4456_v39, %v4452_v55  ;;  %v7220_v55 = vld [vmem:[%s12683_s1 + $0x608] sm:$0xf] }
 0x40c   :  { %v2747_v15 = vadd.f32 %v2746_v0, %v2658_v23 }
 0x40d   :  { %13254 = vst [vmem:[#allocation15_spill] sm:$0xff] %v10386_v63 }
 0x40e   :  { %v2836_v17 = vadd.f32 %v2835_v57, %v2747_v15  ;;  %v2570_v35 = vpop.f32.mrf.mxu2  ;;  %v6566_v15 = vld [vmem:[%s12683_s1 + $0xf8] sm:$0xf0] }
 0x40f   :  { %v2571_v56 = vadd.f32 %v2570_v35, %v10056_v40 }
 0x410   :  { %v2751_v52 = vpop.f32.mrf.mxu0  ;;  %v4332_v33 = vmul.f32 0.1, %v2836_v17  ;;  %vm4204_vm1 = vcmp.gt.f32.partialorder %v2836_v17, 0.0 }
 0x411   :  { %v2659_v19 = vpop.f32.mrf.mxu3  ;;  %v2840_v28 = vpop.f32.mrf.mxu1 }
 0x412   :  { %v2660_v45 = vadd.f32 %v2659_v19, %v2571_v56  ;;  %v4460_v4 = vsel %vm4204_vm1, %v2836_v17, %v4332_v33 }
 0x413   :  { %2888 = vmatmul.bf16.gmra.mxu2 %v13255_v46  ;;  %3066 = vmatmul.bf16.gmra.mxu0 %v13256_v26 }
 0x414   :  { %v2749_v24 = vadd.f32 %v2748_v3, %v2660_v45  ;;  %3155 = vmatmul.bf16.gmra.mxu1 %v13185_v5 }
 0x416   :  { %2977 = vmatmul.bf16.gmra.mxu3 %v13257_v43  ;;  %v2838_v36 = vadd.f32 %v2837_v16, %v2749_v24  ;;  %v2573_v0 = vpop.f32.mrf.mxu2  ;;  %v7805_v16 = vld [vmem:[%s12683_s1 + $0x614] sm:$0xf0] }
 0x417   :  { %v2574_v57 = vadd.f32 %v2573_v0, %v10062_v2  ;;  %v7639_v2 = vld [vmem:[%s12683_s1 + $0xec] sm:$0xf]  ;;  %v7221_v39 = vor.u32 %v7805_v16, %v7220_v55 }
 0x418   :  { %vm4208_vm2 = vcmp.gt.f32.partialorder %v2838_v36, 0.0  ;;  %v4336_v59 = vmul.f32 0.1, %v2838_v36  ;;  %v2753_v19 = vpop.f32.mrf.mxu0  ;;  %v6569_v35 = vor.u32 %v7639_v2, %v6566_v15  ;;  %v7781_v2 = vld [vmem:[%s12683_s1 + $0x554] sm:$0xf0] }
 0x419   :  { %v2662_v40 = vpop.f32.mrf.mxu3  ;;  %v2842_v61 = vpop.f32.mrf.mxu1  ;;  %3386 = vmatpush.bf16.msrb.mxu0 %v7221_v39 }
 0x41a   :  { %v2663_v56 = vadd.f32 %v2662_v40, %v2574_v57  ;;  %v4464_v22 = vsel %vm4208_vm2, %v2838_v36, %v4336_v59  ;;  %3468 = vmatpush.bf16.msrb.mxu1 %v6569_v35  ;;  %v13259_v40 = vld [vmem:[#allocation4_spill] sm:$0xff]  ;;  %v13260_v59 = vld [vmem:[#allocation73_spill] sm:$0xff] }
 0x41b   :  { %v10394_v3 = vpack.c.bf16 %v4464_v22, %v4460_v4  ;;  %v13261_v4 = vld [vmem:[#allocation6_spill] sm:$0xff]  ;;  %v7124_v22 = vld [vmem:[%s12683_s1 + $0x548] sm:$0xf] }
 0x41c   :  { %v2752_v23 = vadd.f32 %v2751_v52, %v2663_v56  ;;  %v7905_v56 = vld [vmem:[%s12684_s5] sm:$0xf]  ;;  %v7125_v15 = vor.u32 %v7781_v2, %v7124_v22 }
 0x41d   :  { %13258 = vst [vmem:[#allocation19_spill] sm:$0xff] %v10394_v3 }
 0x41e   :  { %v2841_v17 = vadd.f32 %v2840_v28, %v2752_v23  ;;  %v2575_v52 = vpop.f32.mrf.mxu2  ;;  %v10414_v28 = vperm.slane %v7905_v56, 2  ;;  %3295 = vmatpush.bf16.msrb.mxu3 %v7125_v15  ;;  %v13264_v15 = vld [vmem:[#allocation79_spill] sm:$0xff] }
 0x41f   :  { %v2576_v45 = vadd.f32 %v2575_v52, %v10083_v9  ;;  %v6996_v9 = vld [vmem:[%s12683_s1 + $0x448] sm:$0xf] }
 0x420   :  { %v3032_v33 = vpop.f32.mrf.mxu0  ;;  %v4340_v23 = vmul.f32 0.1, %v2841_v17  ;;  %vm4212_vm3 = vcmp.gt.f32.partialorder %v2841_v17, 0.0 }
 0x421   :  { %v2664_v24 = vpop.f32.mrf.mxu3  ;;  %v3121_v0 = vpop.f32.mrf.mxu1 }
 0x422   :  { %v2665_v36 = vadd.f32 %v2664_v24, %v2576_v45  ;;  %v4468_v3 = vsel %vm4212_vm3, %v2841_v17, %v4340_v23 }
 0x423   :  { %2893 = vmatmul.bf16.gmra.mxu2 %v13259_v40  ;;  %3071 = vmatmul.bf16.gmra.mxu0 %v13260_v59 }
 0x424   :  { %v2754_v57 = vadd.f32 %v2753_v19, %v2665_v36  ;;  %3160 = vmatmul.bf16.gmra.mxu1 %v13189_v1  ;;  %v7749_v19 = vld [vmem:[%s12683_s1 + $0x454] sm:$0xf0] }
 0x425   :  { %v6997_v16 = vor.u32 %v7749_v19, %v6996_v9 }
 0x426   :  { %2982 = vmatmul.bf16.gmra.mxu3 %v13261_v4  ;;  %v2843_v55 = vadd.f32 %v2842_v61, %v2754_v57  ;;  %v2854_v39 = vpop.f32.mrf.mxu2  ;;  %v13263_v4 = vld [vmem:[#allocation8_spill] sm:$0xff] }
 0x427   :  { %v2855_v35 = vadd.f32 %v2854_v39, %v10414_v28  ;;  %3206 = vmatpush.bf16.msrb.mxu2 %v6997_v16 }
 0x428   :  { %vm4216_vm4 = vcmp.gt.f32.partialorder %v2843_v55, 0.0  ;;  %v4344_v45 = vmul.f32 0.1, %v2843_v55  ;;  %v3034_v24 = vpop.f32.mrf.mxu0 }
 0x429   :  { %v2943_v52 = vpop.f32.mrf.mxu3  ;;  %v3123_v56 = vpop.f32.mrf.mxu1 }
 0x42a   :  { %v2944_v36 = vadd.f32 %v2943_v52, %v2855_v35  ;;  %v4472_v61 = vsel %vm4216_vm4, %v2843_v55, %v4344_v45  ;;  %v13265_v35 = vld [vmem:[#allocation10_spill] sm:$0xff] }
 0x42b   :  { %v10431_v57 = vpack.c.bf16 %v4472_v61, %v4468_v3  ;;  %v6550_v45 = vld [vmem:[%s12683_s1 + $0xd8] sm:$0xf0] }
 0x42c   :  { %v3033_v9 = vadd.f32 %v3032_v33, %v2944_v36 }
 0x42d   :  { %13262 = vst [vmem:[#allocation23_spill] sm:$0xff] %v10431_v57 }
 0x42e   :  { %v10433_v19 = vadd.f32 %v3121_v0, %v3033_v9  ;;  %v2856_v63 = vpop.f32.mrf.mxu2 }
 0x42f   :  { %v2857_v22 = vadd.f32 %v2856_v63, %v10414_v28 }
 0x430   :  { %v3037_v39 = vpop.f32.mrf.mxu0 }
 0x431   :  { %v2945_v2 = vpop.f32.mrf.mxu3  ;;  %v3126_v16 = vpop.f32.mrf.mxu1 }
 0x432   :  { %v2946_v59 = vadd.f32 %v2945_v2, %v2857_v22 }
 0x433   :  { %2898 = vmatmul.bf16.gmra.mxu2 %v13263_v4  ;;  %3076 = vmatmul.bf16.gmra.mxu0 %v13264_v15 }
 0x434   :  { %v3035_v1 = vadd.f32 %v3034_v24, %v2946_v59  ;;  %3165 = vmatmul.bf16.gmra.mxu1 %v13193_v8  ;;  %v7635_v59 = vld [vmem:[%s12683_s1 + $0xcc] sm:$0xf] }
 0x435   :  { %v6553_v24 = vor.u32 %v7635_v59, %v6550_v45  ;;  %v7777_v45 = vld [vmem:[%s12683_s1 + $0x534] sm:$0xf0] }
 0x436   :  { %2987 = vmatmul.bf16.gmra.mxu3 %v13265_v35  ;;  %v10440_v3 = vadd.f32 %v3123_v56, %v3035_v1  ;;  %v2859_v17 = vpop.f32.mrf.mxu2 }
 0x437   :  { %v2860_v33 = vadd.f32 %v2859_v17, %v10414_v28  ;;  %3469 = vmatpush.bf16.msrb.mxu1 %v6553_v24  ;;  %v13266_v17 = vld [vmem:[#allocation12_spill] sm:$0xff] }
 0x438   :  { %v3039_v63 = vpop.f32.mrf.mxu0 }
 0x439   :  { %v2948_v0 = vpop.f32.mrf.mxu3  ;;  %v3128_v55 = vpop.f32.mrf.mxu1 }
 0x43a   :  { %v2949_v23 = vadd.f32 %v2948_v0, %v2860_v33  ;;  %v13267_v33 = vld [vmem:[#allocation84_spill] sm:$0xff]  ;;  %v13268_v0 = vld [vmem:[#allocation14_spill] sm:$0xff] }
 0x43c   :  { %v3038_v52 = vadd.f32 %v3037_v39, %v2949_v23  ;;  %v13269_v23 = vld [vmem:[#allocation86_spill] sm:$0xff] }
 0x43e   :  { %v10449_v36 = vadd.f32 %v3126_v16, %v3038_v52  ;;  %v2861_v1 = vpop.f32.mrf.mxu2  ;;  %v6980_v16 = vld [vmem:[%s12683_s1 + $0x428] sm:$0xf]  ;;  %v7745_v52 = vld [vmem:[%s12683_s1 + $0x434] sm:$0xf0] }
 0x43f   :  { %v2862_v56 = vadd.f32 %v2861_v1, %v10414_v28  ;;  %v6981_v59 = vor.u32 %v7745_v52, %v6980_v16 }
 0x440   :  { %v3042_v9 = vpop.f32.mrf.mxu0 }
 0x441   :  { %v2950_v61 = vpop.f32.mrf.mxu3  ;;  %v3131_v2 = vpop.f32.mrf.mxu1  ;;  %3207 = vmatpush.bf16.msrb.mxu2 %v6981_v59  ;;  %v13272_v59 = vld [vmem:[#allocation18_spill] sm:$0xff] }
 0x442   :  { %v2951_v22 = vadd.f32 %v2950_v61, %v2862_v56 }
 0x443   :  { %2903 = vmatmul.bf16.gmra.mxu2 %v13266_v17  ;;  %3081 = vmatmul.bf16.gmra.mxu0 %v13267_v33 }
 0x444   :  { %v3040_v39 = vadd.f32 %v3039_v63, %v2951_v22  ;;  %3170 = vmatmul.bf16.gmra.mxu1 %v13269_v23  ;;  %v7108_v63 = vld [vmem:[%s12683_s1 + $0x528] sm:$0xf] }
 0x445   :  { %v7109_v56 = vor.u32 %v7777_v45, %v7108_v63  ;;  %v13270_v63 = vld [vmem:[#allocation16_spill] sm:$0xff] }
 0x446   :  { %2992 = vmatmul.bf16.gmra.mxu3 %v13268_v0  ;;  %v10468_v24 = vadd.f32 %v3128_v55, %v3040_v39  ;;  %v2864_v1 = vpop.f32.mrf.mxu2  ;;  %v13271_v45 = vld [vmem:[#allocation88_spill] sm:$0xff] }
 0x447   :  { %v2865_v61 = vadd.f32 %v2864_v1, %v10414_v28  ;;  %3296 = vmatpush.bf16.msrb.mxu3 %v7109_v56 }
 0x448   :  { %v3044_v57 = vpop.f32.mrf.mxu0 }
 0x449   :  { %v2953_v22 = vpop.f32.mrf.mxu3  ;;  %v3133_v23 = vpop.f32.mrf.mxu1 }
 0x44a   :  { %v2954_v33 = vadd.f32 %v2953_v22, %v2865_v61  ;;  %v6534_v22 = vld [vmem:[%s12683_s1 + $0xb8] sm:$0xf0] }
 0x44c   :  { %v3043_v0 = vadd.f32 %v3042_v9, %v2954_v33 }
 0x44e   :  { %v10471_v15 = vadd.f32 %v3131_v2, %v3043_v0  ;;  %v2866_v16 = vpop.f32.mrf.mxu2 }
 0x44f   :  { %v2867_v52 = vadd.f32 %v2866_v16, %v10414_v28 }
 0x450   :  { %v3047_v35 = vpop.f32.mrf.mxu0 }
 0x451   :  { %v2955_v8 = vpop.f32.mrf.mxu3  ;;  %v3136_v39 = vpop.f32.mrf.mxu1 }
 0x452   :  { %v2956_v55 = vadd.f32 %v2955_v8, %v2867_v52 }
 0x453   :  { %2908 = vmatmul.bf16.gmra.mxu2 %v13270_v63  ;;  %3086 = vmatmul.bf16.gmra.mxu0 %v13271_v45  ;;  %v13274_v45 = vld [vmem:[#allocation93_spill] sm:$0xff] }
 0x454   :  { %v3045_v26 = vadd.f32 %v3044_v57, %v2956_v55  ;;  %3175 = vmatmul.bf16.gmra.mxu1 %v13203_v60  ;;  %v7631_v57 = vld [vmem:[%s12683_s1 + $0xac] sm:$0xf]  ;;  %v13275_v60 = vld [vmem:[#allocation22_spill] sm:$0xff] }
 0x455   :  { %v6537_v16 = vor.u32 %v7631_v57, %v6534_v22  ;;  %v7773_v22 = vld [vmem:[%s12683_s1 + $0x514] sm:$0xf0] }
 0x456   :  { %2997 = vmatmul.bf16.gmra.mxu3 %v13272_v59  ;;  %v10478_v1 = vadd.f32 %v3133_v23, %v3045_v26  ;;  %v2869_v9 = vpop.f32.mrf.mxu2 }
 0x457   :  { %v2870_v2 = vadd.f32 %v2869_v9, %v10414_v28  ;;  %3470 = vmatpush.bf16.msrb.mxu1 %v6537_v16 }
 0x458   :  { %v3049_v0 = vpop.f32.mrf.mxu0 }
 0x459   :  { %v2958_v33 = vpop.f32.mrf.mxu3  ;;  %v3138_v61 = vpop.f32.mrf.mxu1 }
 0x45a   :  { %v2959_v56 = vadd.f32 %v2958_v33, %v2870_v2 }
 0x45c   :  { %v3048_v8 = vadd.f32 %v3047_v35, %v2959_v56  ;;  %v13273_v56 = vld [vmem:[#allocation20_spill] sm:$0xff] }
 0x45e   :  { %v10487_v52 = vadd.f32 %v3136_v39, %v3048_v8  ;;  %v2871_v26 = vpop.f32.mrf.mxu2  ;;  %v6964_v39 = vld [vmem:[%s12683_s1 + $0x408] sm:$0xf]  ;;  %v7741_v8 = vld [vmem:[%s12683_s1 + $0x414] sm:$0xf0] }
 0x45f   :  { %v2872_v23 = vadd.f32 %v2871_v26, %v10414_v28  ;;  %v6965_v57 = vor.u32 %v7741_v8, %v6964_v39  ;;  %v7627_v8 = vld [vmem:[%s12683_s1 + $0x8c] sm:$0xf] }
 0x460   :  { %v3052_v9 = vpop.f32.mrf.mxu0 }
 0x461   :  { %v2960_v55 = vpop.f32.mrf.mxu3  ;;  %v3141_v33 = vpop.f32.mrf.mxu1  ;;  %3208 = vmatpush.bf16.msrb.mxu2 %v6965_v57 }
 0x462   :  { %v2961_v2 = vadd.f32 %v2960_v55, %v2872_v23 }
 0x463   :  { %2913 = vmatmul.bf16.gmra.mxu2 %v13273_v56  ;;  %3091 = vmatmul.bf16.gmra.mxu0 %v13274_v45 }
 0x464   :  { %v3050_v35 = vadd.f32 %v3049_v0, %v2961_v2  ;;  %3180 = vmatmul.bf16.gmra.mxu1 %v13208_v51  ;;  %v7092_v0 = vld [vmem:[%s12683_s1 + $0x508] sm:$0xf] }
 0x465   :  { %v7093_v23 = vor.u32 %v7773_v22, %v7092_v0 }
 0x466   :  { %3002 = vmatmul.bf16.gmra.mxu3 %v13275_v60  ;;  %v10506_v16 = vadd.f32 %v3138_v61, %v3050_v35  ;;  %v2874_v26 = vpop.f32.mrf.mxu2  ;;  %v6518_v61 = vld [vmem:[%s12683_s1 + $0x98] sm:$0xf0] }
 0x467   :  { %v2875_v55 = vadd.f32 %v2874_v26, %v10414_v28  ;;  %3297 = vmatpush.bf16.msrb.mxu3 %v7093_v23  ;;  %v6521_v57 = vor.u32 %v7627_v8, %v6518_v61 }
 0x468   :  { %v3054_v45 = vpop.f32.mrf.mxu0 }
 0x469   :  { %v2963_v2 = vpop.f32.mrf.mxu3  ;;  %v3143_v60 = vpop.f32.mrf.mxu1  ;;  %3471 = vmatpush.bf16.msrb.mxu1 %v6521_v57 }
 0x46a   :  { %v2964_v51 = vadd.f32 %v2963_v2, %v2875_v55  ;;  %v13277_v55 = vld [vmem:[#allocation98_spill] sm:$0xff] }
 0x46c   :  { %v3053_v59 = vadd.f32 %v3052_v9, %v2964_v51  ;;  %v7623_v51 = vld [vmem:[%s12683_s1 + $0x6c] sm:$0xf] }
 0x46e   :  { %v10509_v5 = vadd.f32 %v3141_v33, %v3053_v59  ;;  %v2876_v39 = vpop.f32.mrf.mxu2  ;;  %v6502_v59 = vld [vmem:[%s12683_s1 + $0x78] sm:$0xf0]  ;;  %v13276_v33 = vld [vmem:[#allocation24_spill] sm:$0xff] }
 0x46f   :  { %v2877_v35 = vadd.f32 %v2876_v39, %v10414_v28  ;;  %v6505_v2 = vor.u32 %v7623_v51, %v6502_v59  ;;  %v13278_v39 = vld [vmem:[#allocation26_spill] sm:$0xff] }
 0x470   :  { %v3057_v22 = vpop.f32.mrf.mxu0 }
 0x471   :  { %v2965_v0 = vpop.f32.mrf.mxu3  ;;  %v3146_v23 = vpop.f32.mrf.mxu1  ;;  %3472 = vmatpush.bf16.msrb.mxu1 %v6505_v2 }
 0x472   :  { %v2966_v26 = vadd.f32 %v2965_v0, %v2877_v35  ;;  %v7619_v35 = vld [vmem:[%s12683_s1 + $0x4c] sm:$0xf] }
 0x473   :  { %2918 = vmatmul.bf16.gmra.mxu2 %v13276_v33  ;;  %3096 = vmatmul.bf16.gmra.mxu0 %v13277_v55 }
 0x474   :  { %v3055_v9 = vadd.f32 %v3054_v45, %v2966_v26  ;;  %3185 = vmatmul.bf16.gmra.mxu1 %v13212_v48  ;;  %v6486_v45 = vld [vmem:[%s12683_s1 + $0x58] sm:$0xf0] }
 0x475   :  { %v6489_v26 = vor.u32 %v7619_v35, %v6486_v45  ;;  %v7611_v35 = vld [vmem:[%s12683_s1 + $0xc] sm:$0xf]  ;;  %v6454_v45 = vld [vmem:[%s12683_s1 + $0x18] sm:$0xf0] }
 0x476   :  { %3007 = vmatmul.bf16.gmra.mxu3 %v13278_v39  ;;  %v10528_v8 = vadd.f32 %v3143_v60, %v3055_v9  ;;  %v2879_v61 = vpop.f32.mrf.mxu2  ;;  %v7615_v60 = vld [vmem:[%s12683_s1 + $0x2c] sm:$0xf]  ;;  %v6470_v9 = vld [vmem:[%s12683_s1 + $0x38] sm:$0xf0] }
 0x477   :  { %v2880_v0 = vadd.f32 %v2879_v61, %v10414_v28  ;;  %3473 = vmatpush.bf16.msrb.mxu1 %v6489_v26  ;;  %v6473_v48 = vor.u32 %v7615_v60, %v6470_v9  ;;  %v6457_v26 = vor.u32 %v7611_v35, %v6454_v45  ;;  %v13281_v60 = vld [vmem:[#allocation30_spill] sm:$0xff]  ;;  %v7671_v9 = vld [vmem:[%s12683_s1 + $0x1ec] sm:$0xf] }
 0x478   :  { %v3059_v51 = vpop.f32.mrf.mxu0 }
 0x479   :  { %v2968_v57 = vpop.f32.mrf.mxu3  ;;  %v3148_v55 = vpop.f32.mrf.mxu1 }
 0x47a   :  { %v2969_v59 = vadd.f32 %v2968_v57, %v2880_v0 }
 0x47b   :  { %3474 = vmatpush.bf16.msrb.mxu1 %v6473_v48 }
 0x47c   :  { %v3058_v2 = vadd.f32 %v3057_v22, %v2969_v59  ;;  %v13280_v59 = vld [vmem:[#allocation103_spill] sm:$0xff] }
 0x47e   :  { %v10543_v39 = vadd.f32 %v3146_v23, %v3058_v2  ;;  %v2881_v61 = vpop.f32.mrf.mxu2  ;;  %v13279_v23 = vld [vmem:[#allocation28_spill] sm:$0xff]  ;;  %v6694_v2 = vld [vmem:[%s12683_s1 + $0x1f8] sm:$0xf0] }
 0x47f   :  { %v2882_v0 = vadd.f32 %v2881_v61, %v10414_v28  ;;  %3475 = vmatpush.bf16.msrb.mxu1 %v6457_v26  ;;  %v6822_v61 = vld [vmem:[%s12683_s1 + $0x2f8] sm:$0xf0] }
 0x480   :  { %v3062_v43 = vpop.f32.mrf.mxu0 }
 0x481   :  { %v2970_v57 = vpop.f32.mrf.mxu3  ;;  %v3151_v22 = vpop.f32.mrf.mxu1 }
 0x482   :  { %v2971_v49 = vadd.f32 %v2970_v57, %v2882_v0 }
 0x483   :  { %2923 = vmatmul.bf16.gmra.mxu2 %v13279_v23  ;;  %3101 = vmatmul.bf16.gmra.mxu0 %v13280_v59 }
 0x484   :  { %v3060_v48 = vadd.f32 %v3059_v51, %v2971_v49  ;;  %3190 = vmatmul.bf16.gmra.mxu1 %v13218_v6  ;;  %v7703_v49 = vld [vmem:[%s12683_s1 + $0x2ec] sm:$0xf]  ;;  %v6697_v51 = vor.u32 %v7671_v9, %v6694_v2 }
 0x485   :  { %v6825_v0 = vor.u32 %v7703_v49, %v6822_v61  ;;  %v13282_v49 = vld [vmem:[#allocation32_spill] sm:$0xff]  ;;  %v13283_v61 = vld [vmem:[#allocation107_spill] sm:$0xff] }
 0x486   :  { %3012 = vmatmul.bf16.gmra.mxu3 %v13281_v60  ;;  %v10568_v35 = vadd.f32 %v3148_v55, %v3060_v48  ;;  %v2884_v45 = vpop.f32.mrf.mxu2  ;;  %3557 = vmatpush.bf16.msra.mxu2 %v6697_v51  ;;  %v13284_v51 = vld [vmem:[#allocation34_spill] sm:$0xff] }
 0x487   :  { %v2885_v57 = vadd.f32 %v2884_v45, %v10414_v28  ;;  %3646 = vmatpush.bf16.msra.mxu3 %v6825_v0 }
 0x488   :  { %v3064_v59 = vpop.f32.mrf.mxu0 }
 0x489   :  { %v2973_v26 = vpop.f32.mrf.mxu3  ;;  %v3153_v60 = vpop.f32.mrf.mxu1 }
 0x48a   :  { %v2974_v6 = vadd.f32 %v2973_v26, %v2885_v57 }
 0x48c   :  { %v3063_v50 = vadd.f32 %v3062_v43, %v2974_v6 }
 0x48e   :  { %v10571_v37 = vadd.f32 %v3151_v22, %v3063_v50  ;;  %v2886_v9 = vpop.f32.mrf.mxu2 }
 0x48f   :  { %v2887_v2 = vadd.f32 %v2886_v9, %v10414_v28 }
 0x490   :  { %v3067_v42 = vpop.f32.mrf.mxu0 }
 0x491   :  { %v2975_v20 = vpop.f32.mrf.mxu3  ;;  %v3156_v48 = vpop.f32.mrf.mxu1 }
 0x492   :  { %v2976_v55 = vadd.f32 %v2975_v20, %v2887_v2 }
 0x493   :  { %2928 = vmatmul.bf16.gmra.mxu2 %v13282_v49  ;;  %3106 = vmatmul.bf16.gmra.mxu0 %v13283_v61 }
 0x494   :  { %v3065_v47 = vadd.f32 %v3064_v59, %v2976_v55  ;;  %3195 = vmatmul.bf16.gmra.mxu1 %v13222_v62 }
 0x496   :  { %3017 = vmatmul.bf16.gmra.mxu3 %v13284_v51  ;;  %v10578_v45 = vadd.f32 %v3153_v60, %v3065_v47  ;;  %v2889_v6 = vpop.f32.mrf.mxu2  ;;  %v13285_v47 = vld [vmem:[#allocation36_spill] sm:$0xff]  ;;  %v13286_v60 = vld [vmem:[#allocation111_spill] sm:$0xff] }
 0x497   :  { %v2890_v50 = vadd.f32 %v2889_v6, %v10414_v28  ;;  %v13287_v6 = vld [vmem:[#allocation38_spill] sm:$0xff] }
 0x498   :  { %v3069_v22 = vpop.f32.mrf.mxu0 }
 0x499   :  { %v2978_v43 = vpop.f32.mrf.mxu3  ;;  %v3158_v57 = vpop.f32.mrf.mxu1 }
 0x49a   :  { %v2979_v0 = vadd.f32 %v2978_v43, %v2890_v50  ;;  %v6806_v43 = vld [vmem:[%s12683_s1 + $0x2d8] sm:$0xf0] }
 0x49c   :  { %v3068_v20 = vadd.f32 %v3067_v42, %v2979_v0  ;;  %v7667_v42 = vld [vmem:[%s12683_s1 + $0x1cc] sm:$0xf] }
 0x49e   :  { %v10581_v26 = vadd.f32 %v3156_v48, %v3068_v20  ;;  %v2891_v59 = vpop.f32.mrf.mxu2  ;;  %v6678_v48 = vld [vmem:[%s12683_s1 + $0x1d8] sm:$0xf0] }
 0x49f   :  { %v2892_v9 = vadd.f32 %v2891_v59, %v10414_v28  ;;  %v6681_v50 = vor.u32 %v7667_v42, %v6678_v48 }
 0x4a0   :  { %v3072_v55 = vpop.f32.mrf.mxu0 }
 0x4a1   :  { %v2980_v2 = vpop.f32.mrf.mxu3  ;;  %v3161_v51 = vpop.f32.mrf.mxu1  ;;  %3558 = vmatpush.bf16.msra.mxu2 %v6681_v50  ;;  %v13290_v50 = vld [vmem:[#allocation42_spill] sm:$0xff] }
 0x4a2   :  { %v2981_v61 = vadd.f32 %v2980_v2, %v2892_v9 }
 0x4a3   :  { %3209 = vmatmul.bf16.vlgmr.msrb.gmra.mxu2 %v13285_v47  ;;  %7258 = vmatmul.msk.bf16.vlgmr.msrb.gmra.mxu0 %vm1550_vm0, %v13286_v60 }
 0x4a4   :  { %v3070_v62 = vadd.f32 %v3069_v22, %v2981_v61  ;;  %3476 = vmatmul.bf16.vlgmr.msrb.gmra.mxu1 %v13227_v18  ;;  %v7699_v61 = vld [vmem:[%s12683_s1 + $0x2cc] sm:$0xf] }
 0x4a5   :  { %v6809_v0 = vor.u32 %v7699_v61, %v6806_v43  ;;  %v13288_v61 = vld [vmem:[#allocation40_spill] sm:$0xff] }
 0x4a6   :  { %3298 = vmatmul.bf16.vlgmr.msrb.gmra.mxu3 %v13287_v6  ;;  %v10601_v22 = vadd.f32 %v3158_v57, %v3070_v62  ;;  %v2894_v18 = vpop.f32.mrf.mxu2  ;;  %v13289_v43 = vld [vmem:[#allocation112_spill] sm:$0xff] }
 0x4a7   :  { %v2895_v20 = vadd.f32 %v2894_v18, %v10414_v28  ;;  %3647 = vmatpush.bf16.msra.mxu3 %v6809_v0 }
 0x4a8   :  { %v3074_v9 = vpop.f32.mrf.mxu0 }
 0x4a9   :  { %v2983_v59 = vpop.f32.mrf.mxu3  ;;  %v3163_v60 = vpop.f32.mrf.mxu1 }
 0x4aa   :  { %v2984_v2 = vadd.f32 %v2983_v59, %v2895_v20 }
 0x4ac   :  { %v3073_v6 = vadd.f32 %v3072_v55, %v2984_v2 }
 0x4ae   :  { %v10604_v44 = vadd.f32 %v3161_v51, %v3073_v6  ;;  %v2896_v42 = vpop.f32.mrf.mxu2 }
 0x4af   :  { %v2897_v48 = vadd.f32 %v2896_v42, %v10414_v28 }
 0x4b0   :  { %v3077_v11 = vpop.f32.mrf.mxu0 }
 0x4b1   :  { %v2985_v29 = vpop.f32.mrf.mxu3  ;;  %v3166_v57 = vpop.f32.mrf.mxu1 }
 0x4b2   :  { %v2986_v62 = vadd.f32 %v2985_v29, %v2897_v48 }
 0x4b3   :  { %3214 = vmatmul.bf16.gmra.mxu2 %v13288_v61  ;;  %7259 = vmatmul.msk.bf16.gmra.mxu0 %vm1550_vm0, %v13289_v43 }
 0x4b4   :  { %v3075_v30 = vadd.f32 %v3074_v9, %v2986_v62  ;;  %3481 = vmatmul.bf16.gmra.mxu1 %v13231_v31 }
 0x4b6   :  { %3303 = vmatmul.bf16.gmra.mxu3 %v13290_v50  ;;  %v10612_v55 = vadd.f32 %v3163_v60, %v3075_v30  ;;  %v2899_v51 = vpop.f32.mrf.mxu2  ;;  %v13292_v30 = vld [vmem:[#allocation44_spill] sm:$0xff]  ;;  %v13293_v60 = vld [vmem:[#allocation113_spill] sm:$0xff] }
 0x4b7   :  { %v2900_v6 = vadd.f32 %v2899_v51, %v10414_v28  ;;  %v13294_v51 = vld [vmem:[#allocation46_spill] sm:$0xff] }
 0x4b8   :  { %v3079_v0 = vpop.f32.mrf.mxu0 }
 0x4b9   :  { %v2988_v18 = vpop.f32.mrf.mxu3  ;;  %v3168_v29 = vpop.f32.mrf.mxu1 }
 0x4ba   :  { %v2989_v20 = vadd.f32 %v2988_v18, %v2900_v6  ;;  %v6790_v18 = vld [vmem:[%s12683_s1 + $0x2b8] sm:$0xf0] }
 0x4bc   :  { %v3078_v59 = vadd.f32 %v3077_v11, %v2989_v20  ;;  %v7663_v11 = vld [vmem:[%s12683_s1 + $0x1ac] sm:$0xf] }
 0x4be   :  { %v10615_v9 = vadd.f32 %v3166_v57, %v3078_v59  ;;  %v2901_v2 = vpop.f32.mrf.mxu2  ;;  %v6662_v57 = vld [vmem:[%s12683_s1 + $0x1b8] sm:$0xf0] }
 0x4bf   :  { %v2902_v42 = vadd.f32 %v2901_v2, %v10414_v28  ;;  %v6665_v6 = vor.u32 %v7663_v11, %v6662_v57 }
 0x4c0   :  { %13291 = vst [vmem:[#allocation27_spill] sm:$0xff] %v10615_v9  ;;  %v3082_v62 = vpop.f32.mrf.mxu0 }
 0x4c1   :  { %v2990_v48 = vpop.f32.mrf.mxu3  ;;  %v3171_v50 = vpop.f32.mrf.mxu1  ;;  %3559 = vmatpush.bf16.msra.mxu2 %v6665_v6  ;;  %v13298_v6 = vld [vmem:[#allocation50_spill] sm:$0xff] }
 0x4c2   :  { %v2991_v43 = vadd.f32 %v2990_v48, %v2902_v42 }
 0x4c3   :  { %3219 = vmatmul.bf16.gmra.mxu2 %v13292_v30  ;;  %7260 = vmatmul.msk.bf16.gmra.mxu0 %vm1550_vm0, %v13293_v60 }
 0x4c4   :  { %v3080_v31 = vadd.f32 %v3079_v0, %v2991_v43  ;;  %3486 = vmatmul.bf16.gmra.mxu1 %v13235_v27  ;;  %v7695_v43 = vld [vmem:[%s12683_s1 + $0x2ac] sm:$0xf] }
 0x4c5   :  { %v6793_v20 = vor.u32 %v7695_v43, %v6790_v18  ;;  %v13296_v43 = vld [vmem:[#allocation48_spill] sm:$0xff]  ;;  %v13297_v18 = vld [vmem:[#allocation114_spill] sm:$0xff] }
 0x4c6   :  { %3308 = vmatmul.bf16.gmra.mxu3 %v13294_v51  ;;  %v10635_v0 = vadd.f32 %v3168_v29, %v3080_v31  ;;  %v2904_v27 = vpop.f32.mrf.mxu2 }
 0x4c7   :  { %v2905_v59 = vadd.f32 %v2904_v27, %v10414_v28  ;;  %3648 = vmatpush.bf16.msra.mxu3 %v6793_v20 }
 0x4c8   :  { %13295 = vst [vmem:[#allocation31_spill] sm:$0xff] %v10635_v0  ;;  %v3084_v42 = vpop.f32.mrf.mxu0 }
 0x4c9   :  { %v2993_v2 = vpop.f32.mrf.mxu3  ;;  %v3173_v60 = vpop.f32.mrf.mxu1 }
 0x4ca   :  { %v2994_v48 = vadd.f32 %v2993_v2, %v2905_v59 }
 0x4cc   :  { %v3083_v51 = vadd.f32 %v3082_v62, %v2994_v48 }
 0x4ce   :  { %v10638_v30 = vadd.f32 %v3171_v50, %v3083_v51  ;;  %v2906_v11 = vpop.f32.mrf.mxu2 }
 0x4cf   :  { %v2907_v57 = vadd.f32 %v2906_v11, %v10414_v28 }
 0x4d0   :  { %v3087_v61 = vpop.f32.mrf.mxu0 }
 0x4d1   :  { %v2995_v9 = vpop.f32.mrf.mxu3  ;;  %v3176_v31 = vpop.f32.mrf.mxu1 }
 0x4d2   :  { %v2996_v29 = vadd.f32 %v2995_v9, %v2907_v57 }
 0x4d3   :  { %3224 = vmatmul.bf16.gmra.mxu2 %v13296_v43  ;;  %7261 = vmatmul.msk.bf16.gmra.mxu0 %vm1550_vm0, %v13297_v18 }
 0x4d4   :  { %v3085_v0 = vadd.f32 %v3084_v42, %v2996_v29  ;;  %3491 = vmatmul.bf16.gmra.mxu1 %v13239_v13 }
 0x4d6   :  { %3313 = vmatmul.bf16.gmra.mxu3 %v13298_v6  ;;  %v10646_v62 = vadd.f32 %v3173_v60, %v3085_v0  ;;  %v2909_v50 = vpop.f32.mrf.mxu2  ;;  %v13300_v60 = vld [vmem:[#allocation52_spill] sm:$0xff]  ;;  %v13301_v0 = vld [vmem:[#allocation115_spill] sm:$0xff] }
 0x4d7   :  { %v2910_v51 = vadd.f32 %v2909_v50, %v10414_v28  ;;  %v13302_v50 = vld [vmem:[#allocation54_spill] sm:$0xff] }
 0x4d8   :  { %v3089_v20 = vpop.f32.mrf.mxu0 }
 0x4d9   :  { %v2998_v27 = vpop.f32.mrf.mxu3  ;;  %v3178_v9 = vpop.f32.mrf.mxu1 }
 0x4da   :  { %v2999_v59 = vadd.f32 %v2998_v27, %v2910_v51  ;;  %v6774_v27 = vld [vmem:[%s12683_s1 + $0x298] sm:$0xf0] }
 0x4dc   :  { %v3088_v2 = vadd.f32 %v3087_v61, %v2999_v59  ;;  %v7659_v61 = vld [vmem:[%s12683_s1 + $0x18c] sm:$0xf] }
 0x4de   :  { %v10649_v42 = vadd.f32 %v3176_v31, %v3088_v2  ;;  %v2911_v48 = vpop.f32.mrf.mxu2  ;;  %v6646_v31 = vld [vmem:[%s12683_s1 + $0x198] sm:$0xf0] }
 0x4df   :  { %v2912_v11 = vadd.f32 %v2911_v48, %v10414_v28  ;;  %v6649_v51 = vor.u32 %v7659_v61, %v6646_v31 }
 0x4e0   :  { %13299 = vst [vmem:[#allocation4_spill] sm:$0xff] %v10649_v42  ;;  %v3092_v29 = vpop.f32.mrf.mxu0 }
 0x4e1   :  { %v3000_v57 = vpop.f32.mrf.mxu3  ;;  %v3181_v6 = vpop.f32.mrf.mxu1  ;;  %3560 = vmatpush.bf16.msra.mxu2 %v6649_v51  ;;  %v13306_v51 = vld [vmem:[#allocation58_spill] sm:$0xff] }
 0x4e2   :  { %v3001_v18 = vadd.f32 %v3000_v57, %v2912_v11 }
 0x4e3   :  { %3229 = vmatmul.bf16.gmra.mxu2 %v13300_v60  ;;  %7262 = vmatmul.msk.bf16.gmra.mxu0 %vm1550_vm0, %v13301_v0 }
 0x4e4   :  { %v3090_v13 = vadd.f32 %v3089_v20, %v3001_v18  ;;  %3496 = vmatmul.bf16.gmra.mxu1 %v13243_v54  ;;  %v7691_v18 = vld [vmem:[%s12683_s1 + $0x28c] sm:$0xf] }
 0x4e5   :  { %v6777_v59 = vor.u32 %v7691_v18, %v6774_v27  ;;  %v13304_v18 = vld [vmem:[#allocation56_spill] sm:$0xff]  ;;  %v13305_v27 = vld [vmem:[#allocation59_spill] sm:$0xff] }
 0x4e6   :  { %3318 = vmatmul.bf16.gmra.mxu3 %v13302_v50  ;;  %v10669_v20 = vadd.f32 %v3178_v9, %v3090_v13  ;;  %v2914_v54 = vpop.f32.mrf.mxu2 }
 0x4e7   :  { %v2915_v2 = vadd.f32 %v2914_v54, %v10414_v28  ;;  %3649 = vmatpush.bf16.msra.mxu3 %v6777_v59 }
 0x4e8   :  { %13303 = vst [vmem:[#allocation8_spill] sm:$0xff] %v10669_v20  ;;  %v3094_v11 = vpop.f32.mrf.mxu0 }
 0x4e9   :  { %v3003_v48 = vpop.f32.mrf.mxu3  ;;  %v3183_v0 = vpop.f32.mrf.mxu1 }
 0x4ea   :  { %v3004_v57 = vadd.f32 %v3003_v48, %v2915_v2 }
 0x4ec   :  { %v3093_v50 = vadd.f32 %v3092_v29, %v3004_v57 }
 0x4ee   :  { %v10672_v60 = vadd.f32 %v3181_v6, %v3093_v50  ;;  %v2916_v61 = vpop.f32.mrf.mxu2 }
 0x4ef   :  { %v2917_v31 = vadd.f32 %v2916_v61, %v10414_v28 }
 0x4f0   :  { %v3097_v43 = vpop.f32.mrf.mxu0 }
 0x4f1   :  { %v3005_v42 = vpop.f32.mrf.mxu3  ;;  %v3186_v13 = vpop.f32.mrf.mxu1 }
 0x4f2   :  { %v3006_v9 = vadd.f32 %v3005_v42, %v2917_v31 }
 0x4f3   :  { %3234 = vmatmul.bf16.gmra.mxu2 %v13304_v18  ;;  %7263 = vmatmul.msk.bf16.gmra.mxu0 %vm1550_vm0, %v13305_v27 }
 0x4f4   :  { %v3095_v20 = vadd.f32 %v3094_v11, %v3006_v9  ;;  %3501 = vmatmul.bf16.gmra.mxu1 %v13247_v10 }
 0x4f6   :  { %3323 = vmatmul.bf16.gmra.mxu3 %v13306_v51  ;;  %v10680_v29 = vadd.f32 %v3183_v0, %v3095_v20  ;;  %v2919_v6 = vpop.f32.mrf.mxu2  ;;  %v13308_v0 = vld [vmem:[#allocation62_spill] sm:$0xff]  ;;  %v13309_v20 = vld [vmem:[#allocation60_spill] sm:$0xff] }
 0x4f7   :  { %v2920_v50 = vadd.f32 %v2919_v6, %v10414_v28  ;;  %v13310_v6 = vld [vmem:[#allocation64_spill] sm:$0xff] }
 0x4f8   :  { %v3099_v59 = vpop.f32.mrf.mxu0 }
 0x4f9   :  { %v3008_v54 = vpop.f32.mrf.mxu3  ;;  %v3188_v42 = vpop.f32.mrf.mxu1 }
 0x4fa   :  { %v3009_v2 = vadd.f32 %v3008_v54, %v2920_v50  ;;  %v6758_v54 = vld [vmem:[%s12683_s1 + $0x278] sm:$0xf0] }
 0x4fc   :  { %v3098_v48 = vadd.f32 %v3097_v43, %v3009_v2  ;;  %v7655_v43 = vld [vmem:[%s12683_s1 + $0x16c] sm:$0xf] }
 0x4fe   :  { %v10683_v11 = vadd.f32 %v3186_v13, %v3098_v48  ;;  %v2921_v57 = vpop.f32.mrf.mxu2  ;;  %v6630_v13 = vld [vmem:[%s12683_s1 + $0x178] sm:$0xf0] }
 0x4ff   :  { %v2922_v61 = vadd.f32 %v2921_v57, %v10414_v28  ;;  %v6633_v50 = vor.u32 %v7655_v43, %v6630_v13 }
 0x500   :  { %13307 = vst [vmem:[#allocation12_spill] sm:$0xff] %v10683_v11  ;;  %v3102_v9 = vpop.f32.mrf.mxu0 }
 0x501   :  { %v3010_v31 = vpop.f32.mrf.mxu3  ;;  %v3191_v51 = vpop.f32.mrf.mxu1  ;;  %3561 = vmatpush.bf16.msra.mxu2 %v6633_v50  ;;  %v13314_v50 = vld [vmem:[#allocation70_spill] sm:$0xff] }
 0x502   :  { %v3011_v27 = vadd.f32 %v3010_v31, %v2922_v61 }
 0x503   :  { %3239 = vmatmul.bf16.gmra.mxu2 %v13308_v0  ;;  %7264 = vmatmul.msk.bf16.gmra.mxu0 %vm1550_vm0, %v13309_v20 }
 0x504   :  { %v3100_v10 = vadd.f32 %v3099_v59, %v3011_v27  ;;  %3506 = vmatmul.bf16.gmra.mxu1 %v13251_v38  ;;  %v7687_v27 = vld [vmem:[%s12683_s1 + $0x26c] sm:$0xf] }
 0x505   :  { %v6761_v2 = vor.u32 %v7687_v27, %v6758_v54  ;;  %v13312_v27 = vld [vmem:[#allocation68_spill] sm:$0xff]  ;;  %v13313_v54 = vld [vmem:[#allocation65_spill] sm:$0xff] }
 0x506   :  { %3328 = vmatmul.bf16.gmra.mxu3 %v13310_v6  ;;  %v10703_v59 = vadd.f32 %v3188_v42, %v3100_v10  ;;  %v2924_v38 = vpop.f32.mrf.mxu2 }
 0x507   :  { %v2925_v48 = vadd.f32 %v2924_v38, %v10414_v28  ;;  %3650 = vmatpush.bf16.msra.mxu3 %v6761_v2 }
 0x508   :  { %13311 = vst [vmem:[#allocation16_spill] sm:$0xff] %v10703_v59  ;;  %v3104_v61 = vpop.f32.mrf.mxu0 }
 0x509   :  { %v3013_v57 = vpop.f32.mrf.mxu3  ;;  %v3193_v20 = vpop.f32.mrf.mxu1 }
 0x50a   :  { %v3014_v31 = vadd.f32 %v3013_v57, %v2925_v48 }
 0x50c   :  { %v3103_v6 = vadd.f32 %v3102_v9, %v3014_v31  ;;  %v6950_v31 = vld [vmem:[%s12683_s1 + $0x3f8] sm:$0xf0] }
 0x50e   :  { %v10706_v0 = vadd.f32 %v3191_v51, %v3103_v6  ;;  %v2926_v43 = vpop.f32.mrf.mxu2 }
 0x50f   :  { %v2927_v13 = vadd.f32 %v2926_v43, %v10414_v28 }
 0x510   :  { %v3107_v18 = vpop.f32.mrf.mxu0 }
 0x511   :  { %v3015_v11 = vpop.f32.mrf.mxu3  ;;  %v3196_v10 = vpop.f32.mrf.mxu1 }
 0x512   :  { %v3016_v42 = vadd.f32 %v3015_v11, %v2927_v13 }
 0x513   :  { %3244 = vmatmul.bf16.gmra.mxu2 %v13312_v27  ;;  %7265 = vmatmul.msk.bf16.gmra.mxu0 %vm1550_vm0, %v13313_v54 }
 0x514   :  { %v3105_v59 = vadd.f32 %v3104_v61, %v3016_v42  ;;  %3511 = vmatmul.bf16.gmra.mxu1 %v13255_v46  ;;  %v7735_v61 = vld [vmem:[%s12683_s1 + $0x3ec] sm:$0xf] }
 0x515   :  { %v7767_v46 = vld [vmem:[%s12683_s1 + $0x4ec] sm:$0xf]  ;;  %v6953_v43 = vor.u32 %v7735_v61, %v6950_v31  ;;  %v6614_v61 = vld [vmem:[%s12683_s1 + $0x158] sm:$0xf0] }
 0x516   :  { %3333 = vmatmul.bf16.gmra.mxu3 %v13314_v50  ;;  %v10714_v9 = vadd.f32 %v3193_v20, %v3105_v59  ;;  %v2929_v51 = vpop.f32.mrf.mxu2  ;;  %v13316_v50 = vld [vmem:[#allocation74_spill] sm:$0xff] }
 0x517   :  { %v2930_v6 = vadd.f32 %v2929_v51, %v10414_v28  ;;  %3735 = vmatpush.bf16.msra.mxu0 %v6953_v43 }
 0x518   :  { %v3109_v2 = vpop.f32.mrf.mxu0 }
 0x519   :  { %v3018_v38 = vpop.f32.mrf.mxu3  ;;  %v3198_v11 = vpop.f32.mrf.mxu1 }
 0x51a   :  { %v3019_v48 = vadd.f32 %v3018_v38, %v2930_v6 }
 0x51c   :  { %v3108_v57 = vadd.f32 %v3107_v18, %v3019_v48  ;;  %v7078_v18 = vld [vmem:[%s12683_s1 + $0x4f8] sm:$0xf0] }
 0x51d   :  { %v7081_v51 = vor.u32 %v7767_v46, %v7078_v18 }
 0x51e   :  { %v10726_v20 = vadd.f32 %v3196_v10, %v3108_v57  ;;  %v2931_v59 = vpop.f32.mrf.mxu2  ;;  %v13317_v10 = vld [vmem:[#allocation66_spill] sm:$0xff]  ;;  %v13318_v57 = vld [vmem:[#allocation76_spill] sm:$0xff] }
 0x51f   :  { %v2932_v13 = vadd.f32 %v2931_v59, %v10414_v28  ;;  %3824 = vmatpush.bf16.msra.mxu1 %v7081_v51  ;;  %v7651_v28 = vld [vmem:[%s12683_s1 + $0x14c] sm:$0xf] }
 0x520   :  { %v3388_v6 = vpop.f32.mrf.mxu0  ;;  %v6617_v59 = vor.u32 %v7651_v28, %v6614_v61 }
 0x521   :  { %v3020_v42 = vpop.f32.mrf.mxu3  ;;  %v10732_v48 = vpop.f32.mrf.mxu1 }
 0x522   :  { %v3021_v38 = vadd.f32 %v3020_v42, %v2932_v13  ;;  %13315 = vst [vmem:[#allocation20_spill] sm:$0xff] %v10732_v48  ;;  %3562 = vmatpush.bf16.msra.mxu2 %v6617_v59 }
 0x523   :  { %3249 = vmatmul.bf16.gmra.mxu2 %v13316_v50  ;;  %7266 = vmatmul.msk.bf16.gmra.mxu0 %vm1550_vm0, %v13317_v10 }
 0x524   :  { %v3110_v54 = vadd.f32 %v3109_v2, %v3021_v38  ;;  %3516 = vmatmul.bf16.gmra.mxu1 %v13259_v40  ;;  %v7683_v2 = vld [vmem:[%s12683_s1 + $0x24c] sm:$0xf]  ;;  %v6742_v40 = vld [vmem:[%s12683_s1 + $0x258] sm:$0xf0] }
 0x525   :  { %v6745_v13 = vor.u32 %v7683_v2, %v6742_v40  ;;  %v13322_v2 = vld [vmem:[#allocation71_spill] sm:$0xff] }
 0x526   :  { %3338 = vmatmul.bf16.gmra.mxu3 %v13318_v57  ;;  %v10748_v31 = vadd.f32 %v3198_v11, %v3110_v54  ;;  %v3210_v46 = vpop.f32.mrf.mxu2 }
 0x527   :  { %v3211_v43 = vadd.f32 %v3210_v46, %v10433_v19  ;;  %3651 = vmatpush.bf16.msra.mxu3 %v6745_v13  ;;  %v13321_v19 = vld [vmem:[#allocation80_spill] sm:$0xff]  ;;  %v13323_v46 = vld [vmem:[#allocation82_spill] sm:$0xff] }
 0x528   :  { %13319 = vst [vmem:[#allocation24_spill] sm:$0xff] %v10748_v31  ;;  %v3390_v42 = vpop.f32.mrf.mxu0 }
 0x529   :  { %v3299_v18 = vpop.f32.mrf.mxu3  ;;  %v10754_v38 = vpop.f32.mrf.mxu1 }
 0x52a   :  { %v3300_v51 = vadd.f32 %v3299_v18, %v3211_v43 }
 0x52c   :  { %v3389_v10 = vadd.f32 %v3388_v6, %v3300_v51 }
 0x52e   :  { %v3212_v57 = vpop.f32.mrf.mxu2  ;;  %v4221_v50 = vmul.f32 0.1, %v3389_v10  ;;  %vm4093_vm5 = vcmp.gt.f32.partialorder %v3389_v10, 0.0 }
 0x52f   :  { %v3213_v54 = vadd.f32 %v3212_v57, %v10440_v3 }
 0x530   :  { %v3393_v28 = vpop.f32.mrf.mxu0  ;;  %v4349_v57 = vsel %vm4093_vm5, %v3389_v10, %v4221_v50  ;;  %v6934_v50 = vld [vmem:[%s12683_s1 + $0x3d8] sm:$0xf0] }
 0x531   :  { %v3301_v11 = vpop.f32.mrf.mxu3  ;;  %v10757_v48 = vpop.f32.mrf.mxu1  ;;  %v7062_v10 = vld [vmem:[%s12683_s1 + $0x4d8] sm:$0xf0] }
 0x532   :  { %v3302_v61 = vadd.f32 %v3301_v11, %v3213_v54  ;;  %13320 = vst [vmem:[#allocation28_spill] sm:$0xff] %v10757_v48  ;;  %v7731_v11 = vld [vmem:[%s12683_s1 + $0x3cc] sm:$0xf] }
 0x533   :  { %3254 = vmatmul.bf16.gmra.mxu2 %v13321_v19  ;;  %7267 = vmatmul.msk.bf16.gmra.mxu0 %vm1550_vm0, %v13322_v2  ;;  %v13329_v2 = vld [vmem:[#allocation87_spill] sm:$0xff] }
 0x534   :  { %v3391_v31 = vadd.f32 %v3390_v42, %v3302_v61  ;;  %3521 = vmatmul.bf16.gmra.mxu1 %v13263_v4  ;;  %v6937_v61 = vor.u32 %v7731_v11, %v6934_v50  ;;  %v7647_v11 = vld [vmem:[%s12683_s1 + $0x12c] sm:$0xf] }
 0x536   :  { %3343 = vmatmul.bf16.gmra.mxu3 %v13323_v46  ;;  %vm4097_vm6 = vcmp.gt.f32.partialorder %v3391_v31, 0.0  ;;  %v4225_v6 = vmul.f32 0.1, %v3391_v31  ;;  %v3215_v3 = vpop.f32.mrf.mxu2  ;;  %3736 = vmatpush.bf16.msra.mxu0 %v6937_v61 }
 0x537   :  { %v3216_v40 = vadd.f32 %v3215_v3, %v10449_v36  ;;  %v7763_v36 = vld [vmem:[%s12683_s1 + $0x4cc] sm:$0xf] }
 0x538   :  { %v4353_v59 = vsel %vm4097_vm6, %v3391_v31, %v4225_v6  ;;  %v3395_v13 = vpop.f32.mrf.mxu0  ;;  %v7065_v6 = vor.u32 %v7763_v36, %v7062_v10  ;;  %v7679_v36 = vld [vmem:[%s12683_s1 + $0x22c] sm:$0xf]  ;;  %v6726_v10 = vld [vmem:[%s12683_s1 + $0x238] sm:$0xf0] }
 0x539   :  { %v3304_v43 = vpop.f32.mrf.mxu3  ;;  %v10765_v18 = vpack.c.bf16 %v4353_v59, %v4349_v57  ;;  %v10767_v51 = vpop.f32.mrf.mxu1 }
 0x53a   :  { %v3305_v42 = vadd.f32 %v3304_v43, %v3216_v40  ;;  %13325 = vst [vmem:[#allocation36_spill] sm:$0xff] %v10767_v51  ;;  %3825 = vmatpush.bf16.msra.mxu1 %v7065_v6 }
 0x53b   :  { %13324 = vst [vmem:[#allocation32_spill] sm:$0xff] %v10765_v18  ;;  %v13328_v18 = vld [vmem:[#allocation77_spill] sm:$0xff] }
 0x53c   :  { %v3394_v54 = vadd.f32 %v3393_v28, %v3305_v42  ;;  %v13327_v42 = vld [vmem:[#allocation85_spill] sm:$0xff] }
 0x53e   :  { %v3217_v4 = vpop.f32.mrf.mxu2  ;;  %v4229_v40 = vmul.f32 0.1, %v3394_v54  ;;  %vm4101_vm7 = vcmp.gt.f32.partialorder %v3394_v54, 0.0 }
 0x53f   :  { %v3218_v31 = vadd.f32 %v3217_v4, %v10468_v24  ;;  %v6598_v4 = vld [vmem:[%s12683_s1 + $0x138] sm:$0xf0] }
 0x540   :  { %v3398_v3 = vpop.f32.mrf.mxu0  ;;  %v6601_v50 = vor.u32 %v7647_v11, %v6598_v4  ;;  %v4357_v61 = vsel %vm4101_vm7, %v3394_v54, %v4229_v40 }
 0x541   :  { %v3306_v28 = vpop.f32.mrf.mxu3  ;;  %v10782_v59 = vpop.f32.mrf.mxu1 }
 0x542   :  { %v3307_v57 = vadd.f32 %v3306_v28, %v3218_v31  ;;  %13326 = vst [vmem:[#allocation68_spill] sm:$0xff] %v10782_v59  ;;  %v6729_v28 = vor.u32 %v7679_v36, %v6726_v10  ;;  %3563 = vmatpush.bf16.msra.mxu2 %v6601_v50  ;;  %v7727_v10 = vld [vmem:[%s12683_s1 + $0x3ac] sm:$0xf] }
 0x543   :  { %3259 = vmatmul.bf16.gmra.mxu2 %v13327_v42  ;;  %7268 = vmatmul.msk.bf16.gmra.mxu0 %vm1550_vm0, %v13328_v18 }
 0x544   :  { %v3396_v43 = vadd.f32 %v3395_v13, %v3307_v57  ;;  %3526 = vmatmul.bf16.gmra.mxu1 %v13266_v17  ;;  %3652 = vmatpush.bf16.msra.mxu3 %v6729_v28 }
 0x546   :  { %3348 = vmatmul.bf16.gmra.mxu3 %v13329_v2  ;;  %v4233_v24 = vmul.f32 0.1, %v3396_v43  ;;  %v3220_v13 = vpop.f32.mrf.mxu2  ;;  %vm4105_vm8 = vcmp.gt.f32.partialorder %v3396_v43, 0.0 }
 0x547   :  { %v3221_v17 = vadd.f32 %v3220_v13, %v10471_v15 }
 0x548   :  { %v4361_v6 = vsel %vm4105_vm8, %v3396_v43, %v4233_v24  ;;  %v3400_v57 = vpop.f32.mrf.mxu0 }
 0x549   :  { %v3309_v31 = vpop.f32.mrf.mxu3  ;;  %v10802_v18 = vpack.c.bf16 %v4361_v6, %v4357_v61  ;;  %v10804_v4 = vpop.f32.mrf.mxu1 }
 0x54a   :  { %v3310_v11 = vadd.f32 %v3309_v31, %v3221_v17  ;;  %v6918_v17 = vld [vmem:[%s12683_s1 + $0x3b8] sm:$0xf0] }
 0x54b   :  { %13330 = vst [vmem:[#allocation80_spill] sm:$0xff] %v10802_v18  ;;  %v6921_v28 = vor.u32 %v7727_v10, %v6918_v17 }
 0x54c   :  { %v3399_v2 = vadd.f32 %v3398_v3, %v3310_v11 }
 0x54d   :  { %3737 = vmatpush.bf16.msra.mxu0 %v6921_v28 }
 0x54e   :  { %v3222_v46 = vpop.f32.mrf.mxu2  ;;  %v4237_v13 = vmul.f32 0.1, %v3399_v2  ;;  %vm4109_vm9 = vcmp.gt.f32.partialorder %v3399_v2, 0.0 }
 0x54f   :  { %v3223_v59 = vadd.f32 %v3222_v46, %v10478_v1 }
 0x550   :  { %v3403_v51 = vpop.f32.mrf.mxu0  ;;  %v4365_v40 = vsel %vm4109_vm9, %v3399_v2, %v4237_v13  ;;  %v7046_v2 = vld [vmem:[%s12683_s1 + $0x4b8] sm:$0xf0] }
 0x551   :  { %v3311_v42 = vpop.f32.mrf.mxu3  ;;  %v10807_v15 = vpop.f32.mrf.mxu1 }
 0x552   :  { %v3312_v48 = vadd.f32 %v3311_v42, %v3223_v59 }
 0x553   :  { %3264 = vmatmul.bf16.gmra.mxu2 %v13205_v41  ;;  %7269 = vmatmul.msk.bf16.gmra.mxu0 %vm1550_vm0, %v13206_v21 }
 0x554   :  { %v3401_v54 = vadd.f32 %v3400_v57, %v3312_v48  ;;  %3531 = vmatmul.bf16.gmra.mxu1 %v13270_v63 }
 0x556   :  { %3353 = vmatmul.bf16.gmra.mxu3 %v13204_v32  ;;  %v4241_v3 = vmul.f32 0.1, %v3401_v54  ;;  %vm4113_vm10 = vcmp.gt.f32.partialorder %v3401_v54, 0.0  ;;  %v3225_v1 = vpop.f32.mrf.mxu2 }
 0x557   :  { %v3226_v46 = vadd.f32 %v3225_v1, %v10487_v52  ;;  %v7759_v52 = vld [vmem:[%s12683_s1 + $0x4ac] sm:$0xf] }
 0x558   :  { %v4369_v43 = vsel %vm4113_vm10, %v3401_v54, %v4241_v3  ;;  %v3405_v42 = vpop.f32.mrf.mxu0  ;;  %v7049_v61 = vor.u32 %v7759_v52, %v7046_v2  ;;  %v13332_v3 = vld [vmem:[#allocation96_spill] sm:$0xff] }
 0x559   :  { %v3314_v59 = vpop.f32.mrf.mxu3  ;;  %v10815_v48 = vpack.c.bf16 %v4369_v43, %v4365_v40  ;;  %v10817_v50 = vpop.f32.mrf.mxu1  ;;  %v7643_v1 = vld [vmem:[%s12683_s1 + $0x10c] sm:$0xf] }
 0x55a   :  { %v3315_v24 = vadd.f32 %v3314_v59, %v3226_v46  ;;  %3826 = vmatpush.bf16.msra.mxu1 %v7049_v61  ;;  %v6582_v46 = vld [vmem:[%s12683_s1 + $0x118] sm:$0xf0]  ;;  %v7675_v43 = vld [vmem:[%s12683_s1 + $0x20c] sm:$0xf] }
 0x55b   :  { %13331 = vst [vmem:[#allocation132_spill] sm:$0xff] %v10815_v48  ;;  %v6585_v40 = vor.u32 %v7643_v1, %v6582_v46 }
 0x55c   :  { %v3404_v36 = vadd.f32 %v3403_v51, %v3315_v24 }
 0x55d   :  { %3564 = vmatpush.bf16.msra.mxu2 %v6585_v40 }
 0x55e   :  { %v3227_v63 = vpop.f32.mrf.mxu2  ;;  %v4245_v13 = vmul.f32 0.1, %v3404_v36  ;;  %vm4117_vm11 = vcmp.gt.f32.partialorder %v3404_v36, 0.0 }
 0x55f   :  { %v3228_v31 = vadd.f32 %v3227_v63, %v10506_v16 }
 0x560   :  { %v3408_v6 = vpop.f32.mrf.mxu0  ;;  %v4373_v63 = vsel %vm4117_vm11, %v3404_v36, %v4245_v13  ;;  %v7755_v36 = vld [vmem:[%s12683_s1 + $0x48c] sm:$0xf] }
 0x561   :  { %v3316_v51 = vpop.f32.mrf.mxu3  ;;  %v10832_v11 = vpop.f32.mrf.mxu1 }
 0x562   :  { %v3317_v57 = vadd.f32 %v3316_v51, %v3228_v31 }
 0x563   :  { %3269 = vmatmul.bf16.gmra.mxu2 %v13210_v34  ;;  %7270 = vmatmul.msk.bf16.gmra.mxu0 %vm1550_vm0, %v9757_v7 }
 0x564   :  { %v3406_v54 = vadd.f32 %v3405_v42, %v3317_v57  ;;  %3536 = vmatmul.bf16.gmra.mxu1 %v13273_v56  ;;  %v6710_v42 = vld [vmem:[%s12683_s1 + $0x218] sm:$0xf0]  ;;  %v7723_v57 = vld [vmem:[%s12683_s1 + $0x38c] sm:$0xf] }
 0x565   :  { %v6713_v10 = vor.u32 %v7675_v43, %v6710_v42  ;;  %v7719_v43 = vld [vmem:[%s12683_s1 + $0x36c] sm:$0xf] }
 0x566   :  { %3358 = vmatmul.bf16.gmra.mxu3 %v13332_v3  ;;  %v4249_v16 = vmul.f32 0.1, %v3406_v54  ;;  %v3230_v59 = vpop.f32.mrf.mxu2  ;;  %vm4121_vm12 = vcmp.gt.f32.partialorder %v3406_v54, 0.0  ;;  %v7751_v42 = vld [vmem:[%s12683_s1 + $0x46c] sm:$0xf] }
 0x567   :  { %v3231_v56 = vadd.f32 %v3230_v59, %v10509_v5  ;;  %3653 = vmatpush.bf16.msra.mxu3 %v6713_v10  ;;  %v6902_v5 = vld [vmem:[%s12683_s1 + $0x398] sm:$0xf0]  ;;  %v13334_v10 = vld [vmem:[#allocation99_spill] sm:$0xff] }
 0x568   :  { %v4377_v17 = vsel %vm4121_vm12, %v3406_v54, %v4249_v16  ;;  %v3410_v52 = vpop.f32.mrf.mxu0  ;;  %v6905_v16 = vor.u32 %v7723_v57, %v6902_v5 }
 0x569   :  { %v3319_v24 = vpop.f32.mrf.mxu3  ;;  %v10852_v2 = vpack.c.bf16 %v4377_v17, %v4373_v63  ;;  %v10854_v51 = vpop.f32.mrf.mxu1  ;;  %v13335_v63 = vld [vmem:[#allocation97_spill] sm:$0xff] }
 0x56a   :  { %v3320_v31 = vadd.f32 %v3319_v24, %v3231_v56  ;;  %3738 = vmatpush.bf16.msra.mxu0 %v6905_v16 }
 0x56b   :  { %13333 = vst [vmem:[#allocation96_spill] sm:$0xff] %v10852_v2 }
 0x56c   :  { %v3409_v28 = vadd.f32 %v3408_v6, %v3320_v31  ;;  %v7030_v6 = vld [vmem:[%s12683_s1 + $0x498] sm:$0xf0] }
 0x56d   :  { %v7033_v46 = vor.u32 %v7755_v36, %v7030_v6  ;;  %v7014_v31 = vld [vmem:[%s12683_s1 + $0x478] sm:$0xf0]  ;;  %v7715_v36 = vld [vmem:[%s12683_s1 + $0x34c] sm:$0xf] }
 0x56e   :  { %v3232_v61 = vpop.f32.mrf.mxu2  ;;  %v4253_v56 = vmul.f32 0.1, %v3409_v28  ;;  %vm4125_vm13 = vcmp.gt.f32.partialorder %v3409_v28, 0.0  ;;  %v7017_v57 = vor.u32 %v7751_v42, %v7014_v31 }
 0x56f   :  { %v3233_v13 = vadd.f32 %v3232_v61, %v10528_v8  ;;  %3827 = vmatpush.bf16.msra.mxu1 %v7033_v46  ;;  %v6886_v8 = vld [vmem:[%s12683_s1 + $0x378] sm:$0xf0]  ;;  %v13336_v61 = vld [vmem:[#allocation101_spill] sm:$0xff] }
 0x570   :  { %v3413_v1 = vpop.f32.mrf.mxu0  ;;  %v6889_v17 = vor.u32 %v7719_v43, %v6886_v8  ;;  %v6998_v46 = vld [vmem:[%s12683_s1 + $0x458] sm:$0xf0] }
 0x571   :  { %v3321_v54 = vpop.f32.mrf.mxu3  ;;  %v10869_v40 = vpop.f32.mrf.mxu1 }
 0x572   :  { %v3322_v59 = vadd.f32 %v3321_v54, %v3233_v13  ;;  %3739 = vmatpush.bf16.msra.mxu0 %v6889_v17  ;;  %v6870_v13 = vld [vmem:[%s12683_s1 + $0x358] sm:$0xf0]  ;;  %v7747_v54 = vld [vmem:[%s12683_s1 + $0x44c] sm:$0xf] }
 0x573   :  { %3274 = vmatmul.bf16.gmra.mxu2 %v13334_v10  ;;  %7271 = vmatmul.msk.bf16.gmra.mxu0 %vm1550_vm0, %v13335_v63  ;;  %v6873_v6 = vor.u32 %v7715_v36, %v6870_v13  ;;  %v7001_v42 = vor.u32 %v7747_v54, %v6998_v46  ;;  %v7707_v54 = vld [vmem:[%s12683_s1 + $0x30c] sm:$0xf] }
 0x574   :  { %v3411_v24 = vadd.f32 %v3410_v52, %v3322_v59  ;;  %3541 = vmatmul.bf16.gmra.mxu1 %v13276_v33  ;;  %v4381_v59 = vsel %vm4125_vm13, %v3409_v28, %v4253_v56  ;;  %v7743_v28 = vld [vmem:[%s12683_s1 + $0x42c] sm:$0xf] }
 0x575   :  { %3828 = vmatpush.bf16.msra.mxu1 %v7017_v57 }
 0x576   :  { %3363 = vmatmul.bf16.gmra.mxu3 %v13336_v61  ;;  %v4257_v5 = vmul.f32 0.1, %v3411_v24  ;;  %vm4129_vm14 = vcmp.gt.f32.partialorder %v3411_v24, 0.0  ;;  %v3235_v52 = vpop.f32.mrf.mxu2  ;;  %3740 = vmatpush.bf16.msra.mxu0 %v6873_v6 }
 0x577   :  { %v3236_v33 = vadd.f32 %v3235_v52, %v10543_v39  ;;  %v7711_v39 = vld [vmem:[%s12683_s1 + $0x32c] sm:$0xf]  ;;  %v6854_v52 = vld [vmem:[%s12683_s1 + $0x338] sm:$0xf0] }
 0x578   :  { %v4385_v43 = vsel %vm4129_vm14, %v3411_v24, %v4257_v5  ;;  %v3415_v8 = vpop.f32.mrf.mxu0  ;;  %v6857_v24 = vor.u32 %v7711_v39, %v6854_v52  ;;  %v6982_v5 = vld [vmem:[%s12683_s1 + $0x438] sm:$0xf0] }
 0x579   :  { %v3324_v16 = vpop.f32.mrf.mxu3  ;;  %v10902_v17 = vpack.c.bf16 %v4385_v43, %v4381_v59  ;;  %v10904_v57 = vpop.f32.mrf.mxu1  ;;  %3829 = vmatpush.bf16.msra.mxu1 %v7001_v42  ;;  %v6985_v36 = vor.u32 %v7743_v28, %v6982_v5  ;;  %v6966_v59 = vld [vmem:[%s12683_s1 + $0x418] sm:$0xf0]  ;;  %v13339_v5 = vld [vmem:[#allocation119_spill] sm:$0xff] }
 0x57a   :  { %v3325_v31 = vadd.f32 %v3324_v16, %v3236_v33  ;;  %3741 = vmatpush.bf16.msra.mxu0 %v6857_v24  ;;  %v6838_v33 = vld [vmem:[%s12683_s1 + $0x318] sm:$0xf0]  ;;  %v13338_v24 = vld [vmem:[#allocation104_spill] sm:$0xff] }
 0x57b   :  { %13337 = vst [vmem:[#allocation99_spill] sm:$0xff] %v10902_v17  ;;  %v6841_v46 = vor.u32 %v7707_v54, %v6838_v33  ;;  %v7206_v54 = vld [vmem:[%s12683_s1 + $0x5f8] sm:$0xf0] }
 0x57c   :  { %v3414_v56 = vadd.f32 %v3413_v1, %v3325_v31  ;;  %v7739_v1 = vld [vmem:[%s12683_s1 + $0x40c] sm:$0xf] }
 0x57d   :  { %3830 = vmatpush.bf16.msra.mxu1 %v6985_v36  ;;  %v6969_v42 = vor.u32 %v7739_v1, %v6966_v59  ;;  %v7803_v1 = vld [vmem:[%s12683_s1 + $0x60c] sm:$0xf] }
 0x57e   :  { %v3237_v13 = vpop.f32.mrf.mxu2  ;;  %3742 = vmatpush.bf16.msra.mxu0 %v6841_v46  ;;  %v4261_v52 = vmul.f32 0.1, %v3414_v56  ;;  %vm4133_vm15 = vcmp.gt.f32.partialorder %v3414_v56, 0.0 }
 0x57f   :  { %v3238_v16 = vadd.f32 %v3237_v13, %v10568_v35  ;;  %v13340_v35 = vld [vmem:[#allocation106_spill] sm:$0xff]  ;;  %v7799_v13 = vld [vmem:[%s12683_s1 + $0x5ec] sm:$0xf] }
 0x580   :  { %v3418_v43 = vpop.f32.mrf.mxu0  ;;  %v7209_v33 = vor.u32 %v7799_v13, %v7206_v54  ;;  %v4389_v59 = vsel %vm4133_vm15, %v3414_v56, %v4261_v52  ;;  %v13342_v52 = vld [vmem:[#allocation110_spill] sm:$0xff] }
 0x581   :  { %v3326_v6 = vpop.f32.mrf.mxu3  ;;  %v10931_v39 = vpop.f32.mrf.mxu1  ;;  %3831 = vmatpush.bf16.msra.mxu1 %v6969_v42 }
 0x582   :  { %v3327_v31 = vadd.f32 %v3326_v6, %v3238_v16  ;;  %v7222_v16 = vld [vmem:[%s12683_s1 + $0x618] sm:$0xf0]  ;;  %3913 = vmatpush.bf16.msrb.mxu2 %v7209_v33 }
 0x583   :  { %3279 = vmatmul.bf16.gmra.mxu2 %v13338_v24  ;;  %7272 = vmatmul.msk.bf16.gmra.mxu0 %vm1550_vm0, %v13339_v5  ;;  %v7225_v46 = vor.u32 %v7803_v1, %v7222_v16 }
 0x584   :  { %v3416_v28 = vadd.f32 %v3415_v8, %v3327_v31  ;;  %3546 = vmatmul.bf16.gmra.mxu1 %v13279_v23 }
 0x585   :  { %4009 = vmatpush.bf16.msrb.mxu3 %v7225_v46 }
 0x586   :  { %3368 = vmatmul.bf16.gmra.mxu3 %v13340_v35  ;;  %v4265_v36 = vmul.f32 0.1, %v3416_v28  ;;  %v3240_v8 = vpop.f32.mrf.mxu2  ;;  %vm4137_vm1 = vcmp.gt.f32.partialorder %v3416_v28, 0.0 }
 0x587   :  { %v3241_v23 = vadd.f32 %v3240_v8, %v10571_v37 }
 0x588   :  { %v4393_v42 = vsel %vm4137_vm1, %v3416_v28, %v4265_v36  ;;  %v3420_v31 = vpop.f32.mrf.mxu0 }
 0x589   :  { %v3329_v6 = vpop.f32.mrf.mxu3  ;;  %v10951_v17 = vpack.c.bf16 %v4393_v42, %v4389_v59  ;;  %v10953_v54 = vpop.f32.mrf.mxu1 }
 0x58a   :  { %v3330_v13 = vadd.f32 %v3329_v6, %v3241_v23 }
 0x58b   :  { %13341 = vst [vmem:[#allocation101_spill] sm:$0xff] %v10951_v17 }
 0x58c   :  { %v3419_v2 = vadd.f32 %v3418_v43, %v3330_v13  ;;  %v13345_v13 = vld [vmem:[#allocation35_spill] sm:$0xff] }
 0x58e   :  { %v3242_v48 = vpop.f32.mrf.mxu2  ;;  %v4269_v8 = vmul.f32 0.1, %v3419_v2  ;;  %vm4141_vm2 = vcmp.gt.f32.partialorder %v3419_v2, 0.0 }
 0x58f   :  { %v3243_v18 = vadd.f32 %v3242_v48, %v10578_v45 }
 0x590   :  { %v3423_v35 = vpop.f32.mrf.mxu0  ;;  %v4397_v28 = vsel %vm4141_vm2, %v3419_v2, %v4269_v8  ;;  %v13344_v2 = vld [vmem:[#allocation37_spill] sm:$0xff]  ;;  %v7190_v8 = vld [vmem:[%s12683_s1 + $0x5d8] sm:$0xf0] }
 0x591   :  { %v3331_v5 = vpop.f32.mrf.mxu3  ;;  %v10956_v37 = vpop.f32.mrf.mxu1 }
 0x592   :  { %v3332_v63 = vadd.f32 %v3331_v5, %v3243_v18 }
 0x593   :  { %3284 = vmatmul.bf16.gmra.mxu2 %v13224_v14  ;;  %7273 = vmatmul.msk.bf16.gmra.mxu0 %vm1550_vm0, %v13225_v12 }
 0x594   :  { %v3421_v56 = vadd.f32 %v3420_v31, %v3332_v63  ;;  %3551 = vmatmul.bf16.gmra.mxu1 %v13282_v49 }
 0x596   :  { %3373 = vmatmul.bf16.gmra.mxu3 %v13342_v52  ;;  %v4273_v43 = vmul.f32 0.1, %v3421_v56  ;;  %vm4145_vm3 = vcmp.gt.f32.partialorder %v3421_v56, 0.0  ;;  %v3245_v45 = vpop.f32.mrf.mxu2 }
 0x597   :  { %v3246_v48 = vadd.f32 %v3245_v45, %v10581_v26 }
 0x598   :  { %v4401_v5 = vsel %vm4145_vm3, %v3421_v56, %v4273_v43  ;;  %v3425_v36 = vpop.f32.mrf.mxu0 }
 0x599   :  { %v3334_v18 = vpop.f32.mrf.mxu3  ;;  %v10964_v63 = vpack.c.bf16 %v4401_v5, %v4397_v28  ;;  %v10966_v1 = vpop.f32.mrf.mxu1 }
 0x59a   :  { %v3335_v33 = vadd.f32 %v3334_v18, %v3246_v48 }
 0x59b   :  { %13343 = vst [vmem:[#allocation104_spill] sm:$0xff] %v10964_v63 }
 0x59c   :  { %v3424_v16 = vadd.f32 %v3423_v35, %v3335_v33 }
 0x59e   :  { %v3247_v23 = vpop.f32.mrf.mxu2  ;;  %v4277_v31 = vmul.f32 0.1, %v3424_v16  ;;  %vm4149_vm4 = vcmp.gt.f32.partialorder %v3424_v16, 0.0 }
 0x59f   :  { %v3248_v6 = vadd.f32 %v3247_v23, %v10601_v22  ;;  %v7795_v22 = vld [vmem:[%s12683_s1 + $0x5cc] sm:$0xf] }
 0x5a0   :  { %v3428_v49 = vpop.f32.mrf.mxu0  ;;  %v7193_v43 = vor.u32 %v7795_v22, %v7190_v8  ;;  %v4405_v48 = vsel %vm4149_vm4, %v3424_v16, %v4277_v31  ;;  %v13347_v16 = vld [vmem:[#allocation39_spill] sm:$0xff]  ;;  %v13348_v31 = vld [vmem:[#allocation40_spill] sm:$0xff] }
 0x5a1   :  { %v3336_v46 = vpop.f32.mrf.mxu3  ;;  %v10969_v42 = vpop.f32.mrf.mxu1 }
 0x5a2   :  { %v3337_v59 = vadd.f32 %v3336_v46, %v3248_v6  ;;  %3914 = vmatpush.bf16.msrb.mxu2 %v7193_v43 }
 0x5a3   :  { %3565 = vmatmul.bf16.vlgmr.msra.gmra.mxu2 %v13229_v53  ;;  %3743 = vmatmul.bf16.vlgmr.msra.gmra.mxu0 %v13344_v2 }
 0x5a4   :  { %v3426_v26 = vadd.f32 %v3425_v36, %v3337_v59  ;;  %3832 = vmatmul.bf16.vlgmr.msra.gmra.mxu1 %v13285_v47 }
 0x5a6   :  { %3654 = vmatmul.bf16.vlgmr.msra.gmra.mxu3 %v13345_v13  ;;  %v4281_v35 = vmul.f32 0.1, %v3426_v26  ;;  %v3250_v56 = vpop.f32.mrf.mxu2  ;;  %vm4153_vm5 = vcmp.gt.f32.partialorder %v3426_v26, 0.0 }
 0x5a7   :  { %v3251_v53 = vadd.f32 %v3250_v56, %v10604_v44 }
 0x5a8   :  { %v4409_v18 = vsel %vm4153_vm5, %v3426_v26, %v4281_v35  ;;  %v3430_v28 = vpop.f32.mrf.mxu0 }
 0x5a9   :  { %v3339_v45 = vpop.f32.mrf.mxu3  ;;  %v10982_v47 = vpack.c.bf16 %v4409_v18, %v4405_v48  ;;  %v10984_v36 = vpop.f32.mrf.mxu1 }
 0x5aa   :  { %v3340_v5 = vadd.f32 %v3339_v45, %v3251_v53 }
 0x5ab   :  { %13346 = vst [vmem:[#allocation37_spill] sm:$0xff] %v10982_v47 }
 0x5ac   :  { %v3429_v33 = vadd.f32 %v3428_v49, %v3340_v5 }
 0x5ae   :  { %v3252_v23 = vpop.f32.mrf.mxu2  ;;  %v4285_v44 = vmul.f32 0.1, %v3429_v33  ;;  %vm4157_vm6 = vcmp.gt.f32.partialorder %v3429_v33, 0.0 }
 0x5af   :  { %v3253_v6 = vadd.f32 %v3252_v23, %v10612_v55  ;;  %v13349_v55 = vld [vmem:[#allocation27_spill] sm:$0xff] }
 0x5b0   :  { %v3433_v59 = vpop.f32.mrf.mxu0  ;;  %v4413_v56 = vsel %vm4157_vm6, %v3429_v33, %v4285_v44  ;;  %v13353_v33 = vld [vmem:[#allocation45_spill] sm:$0xff]  ;;  %v13354_v44 = vld [vmem:[#allocation43_spill] sm:$0xff] }
 0x5b1   :  { %v3341_v46 = vpop.f32.mrf.mxu3  ;;  %v10987_v13 = vpop.f32.mrf.mxu1 }
 0x5b2   :  { %v3342_v2 = vadd.f32 %v3341_v46, %v3253_v6 }
 0x5b3   :  { %3570 = vmatmul.bf16.gmra.mxu2 %v13233_v25  ;;  %3748 = vmatmul.bf16.gmra.mxu0 %v13161_v58 }
 0x5b4   :  { %v3431_v22 = vadd.f32 %v3430_v28, %v3342_v2  ;;  %3837 = vmatmul.bf16.gmra.mxu1 %v13348_v31  ;;  %v13351_v28 = vld [vmem:[#allocation31_spill] sm:$0xff] }
 0x5b6   :  { %3659 = vmatmul.bf16.gmra.mxu3 %v13347_v16  ;;  %v4289_v49 = vmul.f32 0.1, %v3431_v22  ;;  %vm4161_vm7 = vcmp.gt.f32.partialorder %v3431_v22, 0.0  ;;  %v3255_v26 = vpop.f32.mrf.mxu2 }
 0x5b7   :  { %v3256_v35 = vadd.f32 %v3255_v26, %v13349_v55  ;;  %v13352_v26 = vld [vmem:[#allocation13_spill] sm:$0xff]  ;;  %v7174_v55 = vld [vmem:[%s12683_s1 + $0x5b8] sm:$0xf0] }
 0x5b8   :  { %v4417_v43 = vsel %vm4161_vm7, %v3431_v22, %v4289_v49  ;;  %v3435_v53 = vpop.f32.mrf.mxu0  ;;  %v13355_v22 = vld [vmem:[#allocation44_spill] sm:$0xff] }
 0x5b9   :  { %v3344_v8 = vpop.f32.mrf.mxu3  ;;  %v10994_v45 = vpack.c.bf16 %v4417_v43, %v4413_v56  ;;  %v10996_v25 = vpop.f32.mrf.mxu1  ;;  %v7791_v49 = vld [vmem:[%s12683_s1 + $0x5ac] sm:$0xf] }
 0x5ba   :  { %v3345_v48 = vadd.f32 %v3344_v8, %v3256_v35  ;;  %v7177_v8 = vor.u32 %v7791_v49, %v7174_v55 }
 0x5bb   :  { %13350 = vst [vmem:[#allocation35_spill] sm:$0xff] %v10994_v45 }
 0x5bc   :  { %v3434_v58 = vadd.f32 %v3433_v59, %v3345_v48  ;;  %3915 = vmatpush.bf16.msrb.mxu2 %v7177_v8 }
 0x5be   :  { %v3257_v18 = vpop.f32.mrf.mxu2  ;;  %v4293_v16 = vmul.f32 0.1, %v3434_v58  ;;  %vm4165_vm8 = vcmp.gt.f32.partialorder %v3434_v58, 0.0 }
 0x5bf   :  { %v3258_v5 = vadd.f32 %v3257_v18, %v13351_v28 }
 0x5c0   :  { %v3438_v6 = vpop.f32.mrf.mxu0 }
 0x5c1   :  { %v3346_v23 = vpop.f32.mrf.mxu3  ;;  %v10999_v2 = vpop.f32.mrf.mxu1 }
 0x5c2   :  { %v3347_v46 = vadd.f32 %v3346_v23, %v3258_v5 }
 0x5c3   :  { %3575 = vmatmul.bf16.gmra.mxu2 %v13352_v26  ;;  %3753 = vmatmul.bf16.gmra.mxu0 %v13353_v33 }
 0x5c4   :  { %v3436_v31 = vadd.f32 %v3435_v53, %v3347_v46  ;;  %3842 = vmatmul.bf16.gmra.mxu1 %v13355_v22  ;;  %v4421_v53 = vsel %vm4165_vm8, %v3434_v58, %v4293_v16  ;;  %v13357_v58 = vld [vmem:[#allocation17_spill] sm:$0xff] }
 0x5c5   :  { %v13358_v16 = vld [vmem:[#allocation49_spill] sm:$0xff] }
 0x5c6   :  { %3664 = vmatmul.bf16.gmra.mxu3 %v13354_v44  ;;  %v4297_v59 = vmul.f32 0.1, %v3436_v31  ;;  %v3260_v35 = vpop.f32.mrf.mxu2  ;;  %vm4169_vm9 = vcmp.gt.f32.partialorder %v3436_v31, 0.0 }
 0x5c7   :  { %v3261_v56 = vadd.f32 %v3260_v35, %v10638_v30 }
 0x5c8   :  { %v4425_v48 = vsel %vm4169_vm9, %v3436_v31, %v4297_v59  ;;  %v3440_v18 = vpop.f32.mrf.mxu0  ;;  %v13359_v31 = vld [vmem:[#allocation47_spill] sm:$0xff]  ;;  %v13360_v59 = vld [vmem:[#allocation48_spill] sm:$0xff] }
 0x5c9   :  { %v3349_v43 = vpop.f32.mrf.mxu3  ;;  %v11012_v28 = vpack.c.bf16 %v4425_v48, %v4421_v53  ;;  %v11014_v23 = vpop.f32.mrf.mxu1 }
 0x5ca   :  { %v3350_v5 = vadd.f32 %v3349_v43, %v3261_v56 }
 0x5cb   :  { %13356 = vst [vmem:[#allocation39_spill] sm:$0xff] %v11012_v28 }
 0x5cc   :  { %v3439_v46 = vadd.f32 %v3438_v6, %v3350_v5 }
 0x5ce   :  { %v3262_v26 = vpop.f32.mrf.mxu2  ;;  %v4301_v30 = vmul.f32 0.1, %v3439_v46  ;;  %vm4173_vm10 = vcmp.gt.f32.partialorder %v3439_v46, 0.0 }
 0x5cf   :  { %v3263_v33 = vadd.f32 %v3262_v26, %v10646_v62  ;;  %v13361_v62 = vld [vmem:[#allocation4_spill] sm:$0xff] }
 0x5d0   :  { %v3443_v22 = vpop.f32.mrf.mxu0  ;;  %v4429_v53 = vsel %vm4173_vm10, %v3439_v46, %v4301_v30  ;;  %v13365_v46 = vld [vmem:[#allocation53_spill] sm:$0xff]  ;;  %v13366_v30 = vld [vmem:[#allocation51_spill] sm:$0xff] }
 0x5d1   :  { %v3351_v44 = vpop.f32.mrf.mxu3  ;;  %v11017_v55 = vpop.f32.mrf.mxu1 }
 0x5d2   :  { %v3352_v49 = vadd.f32 %v3351_v44, %v3263_v33 }
 0x5d3   :  { %3580 = vmatmul.bf16.gmra.mxu2 %v13357_v58  ;;  %3758 = vmatmul.bf16.gmra.mxu0 %v13358_v16  ;;  %v13363_v58 = vld [vmem:[#allocation8_spill] sm:$0xff] }
 0x5d4   :  { %v3441_v35 = vadd.f32 %v3440_v18, %v3352_v49  ;;  %3847 = vmatmul.bf16.gmra.mxu1 %v13360_v59 }
 0x5d6   :  { %3669 = vmatmul.bf16.gmra.mxu3 %v13359_v31  ;;  %v4305_v6 = vmul.f32 0.1, %v3441_v35  ;;  %vm4177_vm11 = vcmp.gt.f32.partialorder %v3441_v35, 0.0  ;;  %v3265_v8 = vpop.f32.mrf.mxu2 }
 0x5d7   :  { %v3266_v56 = vadd.f32 %v3265_v8, %v13361_v62  ;;  %v13364_v62 = vld [vmem:[#allocation21_spill] sm:$0xff] }
 0x5d8   :  { %v4433_v48 = vsel %vm4177_vm11, %v3441_v35, %v4305_v6  ;;  %v3445_v5 = vpop.f32.mrf.mxu0  ;;  %v13367_v35 = vld [vmem:[#allocation52_spill] sm:$0xff] }
 0x5d9   :  { %v3354_v43 = vpop.f32.mrf.mxu3  ;;  %v11024_v26 = vpack.c.bf16 %v4433_v48, %v4429_v53  ;;  %v11026_v33 = vpop.f32.mrf.mxu1  ;;  %v7787_v6 = vld [vmem:[%s12683_s1 + $0x58c] sm:$0xf] }
 0x5da   :  { %v3355_v18 = vadd.f32 %v3354_v43, %v3266_v56  ;;  %v7158_v56 = vld [vmem:[%s12683_s1 + $0x598] sm:$0xf0] }
 0x5db   :  { %13362 = vst [vmem:[#allocation40_spill] sm:$0xff] %v11024_v26 }
 0x5dc   :  { %v3444_v44 = vadd.f32 %v3443_v22, %v3355_v18 }
 0x5de   :  { %v3267_v49 = vpop.f32.mrf.mxu2  ;;  %v4309_v47 = vmul.f32 0.1, %v3444_v44  ;;  %vm4181_vm12 = vcmp.gt.f32.partialorder %v3444_v44, 0.0 }
 0x5df   :  { %v3268_v16 = vadd.f32 %v3267_v49, %v13363_v58 }
 0x5e0   :  { %v3448_v59 = vpop.f32.mrf.mxu0 }
 0x5e1   :  { %v3356_v31 = vpop.f32.mrf.mxu3  ;;  %v11029_v45 = vpop.f32.mrf.mxu1 }
 0x5e2   :  { %v3357_v28 = vadd.f32 %v3356_v31, %v3268_v16 }
 0x5e3   :  { %3585 = vmatmul.bf16.gmra.mxu2 %v13364_v62  ;;  %3763 = vmatmul.bf16.gmra.mxu0 %v13365_v46 }
 0x5e4   :  { %v3446_v8 = vadd.f32 %v3445_v5, %v3357_v28  ;;  %3852 = vmatmul.bf16.gmra.mxu1 %v13367_v35  ;;  %v7161_v28 = vor.u32 %v7787_v6, %v7158_v56  ;;  %v4437_v5 = vsel %vm4181_vm12, %v3444_v44, %v4309_v47  ;;  %v13369_v47 = vld [vmem:[#allocation25_spill] sm:$0xff] }
 0x5e5   :  { %v13370_v44 = vld [vmem:[#allocation57_spill] sm:$0xff] }
 0x5e6   :  { %3674 = vmatmul.bf16.gmra.mxu3 %v13366_v30  ;;  %v4313_v22 = vmul.f32 0.1, %v3446_v8  ;;  %v3270_v43 = vpop.f32.mrf.mxu2  ;;  %vm4185_vm13 = vcmp.gt.f32.partialorder %v3446_v8, 0.0  ;;  %3916 = vmatpush.bf16.msrb.mxu2 %v7161_v28 }
 0x5e7   :  { %v3271_v53 = vadd.f32 %v3270_v43, %v10672_v60 }
 0x5e8   :  { %v4441_v18 = vsel %vm4185_vm13, %v3446_v8, %v4313_v22  ;;  %v3450_v49 = vpop.f32.mrf.mxu0  ;;  %v13371_v8 = vld [vmem:[#allocation55_spill] sm:$0xff]  ;;  %v13372_v22 = vld [vmem:[#allocation56_spill] sm:$0xff] }
 0x5e9   :  { %v3359_v48 = vpop.f32.mrf.mxu3  ;;  %v11042_v58 = vpack.c.bf16 %v4441_v18, %v4437_v5  ;;  %v11044_v31 = vpop.f32.mrf.mxu1 }
 0x5ea   :  { %v3360_v16 = vadd.f32 %v3359_v48, %v3271_v53 }
 0x5eb   :  { %13368 = vst [vmem:[#allocation27_spill] sm:$0xff] %v11042_v58 }
 0x5ec   :  { %v3449_v62 = vadd.f32 %v3448_v59, %v3360_v16 }
 0x5ee   :  { %v3272_v46 = vpop.f32.mrf.mxu2  ;;  %v4317_v60 = vmul.f32 0.1, %v3449_v62  ;;  %vm4189_vm14 = vcmp.gt.f32.partialorder %v3449_v62, 0.0 }
 0x5ef   :  { %v3273_v30 = vadd.f32 %v3272_v46, %v10680_v29  ;;  %v13373_v29 = vld [vmem:[#allocation12_spill] sm:$0xff] }
 0x5f0   :  { %v3453_v26 = vpop.f32.mrf.mxu0  ;;  %v4445_v5 = vsel %vm4189_vm14, %v3449_v62, %v4317_v60  ;;  %v13377_v62 = vld [vmem:[#allocation63_spill] sm:$0xff]  ;;  %v13378_v60 = vld [vmem:[#allocation61_spill] sm:$0xff] }
 0x5f1   :  { %v3361_v35 = vpop.f32.mrf.mxu3  ;;  %v11047_v56 = vpop.f32.mrf.mxu1 }
 0x5f2   :  { %v3362_v6 = vadd.f32 %v3361_v35, %v3273_v30 }
 0x5f3   :  { %3590 = vmatmul.bf16.gmra.mxu2 %v13369_v47  ;;  %3768 = vmatmul.bf16.gmra.mxu0 %v13370_v44  ;;  %v13375_v47 = vld [vmem:[#allocation16_spill] sm:$0xff] }
 0x5f4   :  { %v3451_v43 = vadd.f32 %v3450_v49, %v3362_v6  ;;  %3857 = vmatmul.bf16.gmra.mxu1 %v13372_v22 }
 0x5f6   :  { %3679 = vmatmul.bf16.gmra.mxu3 %v13371_v8  ;;  %v4321_v59 = vmul.f32 0.1, %v3451_v43  ;;  %vm4193_vm15 = vcmp.gt.f32.partialorder %v3451_v43, 0.0  ;;  %v3275_v28 = vpop.f32.mrf.mxu2 }
 0x5f7   :  { %v3276_v53 = vadd.f32 %v3275_v28, %v13373_v29  ;;  %v13376_v29 = vld [vmem:[#allocation29_spill] sm:$0xff] }
 0x5f8   :  { %v4449_v18 = vsel %vm4193_vm15, %v3451_v43, %v4321_v59  ;;  %v3455_v16 = vpop.f32.mrf.mxu0  ;;  %v13379_v43 = vld [vmem:[#allocation62_spill] sm:$0xff]  ;;  %v7783_v59 = vld [vmem:[%s12683_s1 + $0x56c] sm:$0xf] }
 0x5f9   :  { %v3364_v48 = vpop.f32.mrf.mxu3  ;;  %v11054_v46 = vpack.c.bf16 %v4449_v18, %v4445_v5  ;;  %v11056_v30 = vpop.f32.mrf.mxu1 }
 0x5fa   :  { %v3365_v49 = vadd.f32 %v3364_v48, %v3276_v53  ;;  %v7142_v53 = vld [vmem:[%s12683_s1 + $0x578] sm:$0xf0] }
 0x5fb   :  { %13374 = vst [vmem:[#allocation31_spill] sm:$0xff] %v11054_v46 }
 0x5fc   :  { %v3454_v35 = vadd.f32 %v3453_v26, %v3365_v49 }
 0x5fe   :  { %v3277_v6 = vpop.f32.mrf.mxu2  ;;  %v4325_v17 = vmul.f32 0.1, %v3454_v35  ;;  %vm4197_vm1 = vcmp.gt.f32.partialorder %v3454_v35, 0.0 }
 0x5ff   :  { %v3278_v44 = vadd.f32 %v3277_v6, %v13375_v47 }
 0x600   :  { %v3458_v22 = vpop.f32.mrf.mxu0 }
 0x601   :  { %v3366_v8 = vpop.f32.mrf.mxu3  ;;  %v11059_v63 = vpop.f32.mrf.mxu1 }
 0x602   :  { %v3367_v58 = vadd.f32 %v3366_v8, %v3278_v44 }
 0x603   :  { %3595 = vmatmul.bf16.gmra.mxu2 %v13376_v29  ;;  %3773 = vmatmul.bf16.gmra.mxu0 %v13377_v62 }
 0x604   :  { %v3456_v28 = vadd.f32 %v3455_v16, %v3367_v58  ;;  %3862 = vmatmul.bf16.gmra.mxu1 %v13379_v43  ;;  %v7145_v58 = vor.u32 %v7783_v59, %v7142_v53  ;;  %v4453_v16 = vsel %vm4197_vm1, %v3454_v35, %v4325_v17  ;;  %v13381_v17 = vld [vmem:[#allocation33_spill] sm:$0xff] }
 0x605   :  { %v13382_v35 = vld [vmem:[#allocation69_spill] sm:$0xff] }
 0x606   :  { %3684 = vmatmul.bf16.gmra.mxu3 %v13378_v60  ;;  %v4329_v26 = vmul.f32 0.1, %v3456_v28  ;;  %v3280_v48 = vpop.f32.mrf.mxu2  ;;  %vm4201_vm2 = vcmp.gt.f32.partialorder %v3456_v28, 0.0  ;;  %3917 = vmatpush.bf16.msrb.mxu2 %v7145_v58 }
 0x607   :  { %v3281_v5 = vadd.f32 %v3280_v48, %v10706_v0 }
 0x608   :  { %v4457_v49 = vsel %vm4201_vm2, %v3456_v28, %v4329_v26  ;;  %v3460_v6 = vpop.f32.mrf.mxu0  ;;  %v13383_v28 = vld [vmem:[#allocation67_spill] sm:$0xff] }
 0x609   :  { %v3369_v18 = vpop.f32.mrf.mxu3  ;;  %v11072_v47 = vpack.c.bf16 %v4457_v49, %v4453_v16  ;;  %v11074_v8 = vpop.f32.mrf.mxu1 }
 0x60a   :  { %v3370_v44 = vadd.f32 %v3369_v18, %v3281_v5 }
 0x60b   :  { %13380 = vst [vmem:[#allocation13_spill] sm:$0xff] %v11072_v47 }
 0x60c   :  { %v3459_v29 = vadd.f32 %v3458_v22, %v3370_v44 }
 0x60e   :  { %v3282_v62 = vpop.f32.mrf.mxu2  ;;  %v4333_v0 = vmul.f32 0.1, %v3459_v29  ;;  %vm4205_vm3 = vcmp.gt.f32.partialorder %v3459_v29, 0.0 }
 0x60f   :  { %v3283_v60 = vadd.f32 %v3282_v62, %v10714_v9 }
 0x610   :  { %v3463_v46 = vpop.f32.mrf.mxu0  ;;  %v4461_v5 = vsel %vm4205_vm3, %v3459_v29, %v4333_v0 }
 0x611   :  { %v3371_v43 = vpop.f32.mrf.mxu3  ;;  %v11077_v53 = vpop.f32.mrf.mxu1 }
 0x612   :  { %v3372_v59 = vadd.f32 %v3371_v43, %v3283_v60  ;;  %v7348_v60 = vld [vmem:[%s12686_s2 + $0x70] sm:$0xf]  ;;  %v7837_v43 = vld [vmem:[%s12686_s2 + $0xf4] sm:$0xf0] }
 0x613   :  { %3600 = vmatmul.bf16.gmra.mxu2 %v13381_v17  ;;  %3778 = vmatmul.bf16.gmra.mxu0 %v13382_v35 }
 0x614   :  { %v3461_v48 = vadd.f32 %v3460_v6, %v3372_v59  ;;  %3867 = vmatmul.bf16.gmra.mxu1 %v13312_v27  ;;  %v7821_v27 = vld [vmem:[%s12686_s2 + $0x74] sm:$0xf0] }
 0x615   :  { %v7349_v29 = vor.u32 %v7821_v27, %v7348_v60  ;;  %v13388_v60 = vld [vmem:[#allocation73_spill] sm:$0xff]  ;;  %v13389_v27 = vld [vmem:[#allocation74_spill] sm:$0xff] }
 0x616   :  { %3689 = vmatmul.bf16.gmra.mxu3 %v13383_v28  ;;  %v4337_v22 = vmul.f32 0.1, %v3461_v48  ;;  %vm4209_vm4 = vcmp.gt.f32.partialorder %v3461_v48, 0.0  ;;  %v3285_v26 = vpop.f32.mrf.mxu2  ;;  %v7906_v28 = vld [vmem:[%s12684_s5] sm:$0xf] }
 0x617   :  { %v3286_v9 = vadd.f32 %v3285_v26, %v10726_v20  ;;  %v7412_v20 = vld [vmem:[%s12686_s2 + $0xf0] sm:$0xf]  ;;  %4929 = vmatpush.bf16.msrb.mxu0 %v7349_v29  ;;  %v7126_v29 = vld [vmem:[%s12683_s1 + $0x558] sm:$0xf0] }
 0x618   :  { %v4465_v18 = vsel %vm4209_vm4, %v3461_v48, %v4337_v22  ;;  %v3465_v16 = vpop.f32.mrf.mxu0  ;;  %v7413_v59 = vor.u32 %v7837_v43, %v7412_v20  ;;  %v11104_v22 = vperm.slane %v7906_v28, 3  ;;  %v7779_v20 = vld [vmem:[%s12683_s1 + $0x54c] sm:$0xf] }
 0x619   :  { %v3374_v58 = vpop.f32.mrf.mxu3  ;;  %v11084_v49 = vpack.c.bf16 %v4465_v18, %v4461_v5  ;;  %v11086_v44 = vpop.f32.mrf.mxu1  ;;  %v13386_v18 = vld [vmem:[#allocation6_spill] sm:$0xff]  ;;  %v13390_v43 = vld [vmem:[#allocation20_spill] sm:$0xff] }
 0x61a   :  { %v3375_v6 = vadd.f32 %v3374_v58, %v3286_v9  ;;  %5018 = vmatpush.bf16.msrb.mxu1 %v7413_v59  ;;  %v3480_v47 = vadd.f32 %v10754_v38, %v11104_v22 }
 0x61b   :  { %13384 = vst [vmem:[#allocation45_spill] sm:$0xff] %v11084_v49 }
 0x61c   :  { %v3464_v62 = vadd.f32 %v3463_v46, %v3375_v6  ;;  %v13385_v46 = vld [vmem:[#allocation24_spill] sm:$0xff]  ;;  %v13387_v6 = vld [vmem:[#allocation75_spill] sm:$0xff] }
 0x61e   :  { %v3287_v0 = vpop.f32.mrf.mxu2  ;;  %v4341_v58 = vmul.f32 0.1, %v3464_v62  ;;  %vm4213_vm5 = vcmp.gt.f32.partialorder %v3464_v62, 0.0 }
 0x61f   :  { %v3288_v48 = vadd.f32 %v3287_v0, %v13385_v46  ;;  %v7129_v0 = vor.u32 %v7779_v20, %v7126_v29 }
 0x620   :  { %v3744_v35 = vpop.f32.mrf.mxu0  ;;  %v4469_v28 = vsel %vm4213_vm5, %v3464_v62, %v4341_v58  ;;  %v13392_v62 = vld [vmem:[#allocation10_spill] sm:$0xff]  ;;  %v13393_v58 = vld [vmem:[#allocation81_spill] sm:$0xff] }
 0x621   :  { %v3376_v17 = vpop.f32.mrf.mxu3  ;;  %v3833_v9 = vpop.f32.mrf.mxu1  ;;  %3918 = vmatpush.bf16.msrb.mxu2 %v7129_v0 }
 0x622   :  { %v3377_v26 = vadd.f32 %v3376_v17, %v3288_v48 }
 0x623   :  { %3605 = vmatmul.bf16.gmra.mxu2 %v13386_v18  ;;  %3783 = vmatmul.bf16.gmra.mxu0 %v13387_v6 }
 0x624   :  { %v3466_v5 = vadd.f32 %v3465_v16, %v3377_v26  ;;  %3872 = vmatmul.bf16.gmra.mxu1 %v13389_v27  ;;  %v3478_v16 = vadd.f32 %v13390_v43, %v11104_v22 }
 0x626   :  { %3694 = vmatmul.bf16.gmra.mxu3 %v13388_v60  ;;  %v4345_v59 = vmul.f32 0.1, %v3466_v5  ;;  %vm4217_vm6 = vcmp.gt.f32.partialorder %v3466_v5, 0.0  ;;  %v3566_v46 = vpop.f32.mrf.mxu2 }
 0x627   :  { %v3567_v48 = vadd.f32 %v3566_v46, %v3478_v16 }
 0x628   :  { %v4473_v26 = vsel %vm4217_vm6, %v3466_v5, %v4345_v59  ;;  %v3746_v18 = vpop.f32.mrf.mxu0  ;;  %v13394_v5 = vld [vmem:[#allocation79_spill] sm:$0xff] }
 0x629   :  { %v3655_v17 = vpop.f32.mrf.mxu3  ;;  %v11118_v6 = vpack.c.bf16 %v4473_v26, %v4469_v28  ;;  %v3835_v27 = vpop.f32.mrf.mxu1 }
 0x62a   :  { %v3656_v60 = vadd.f32 %v3655_v17, %v3567_v48 }
 0x62b   :  { %13391 = vst [vmem:[#allocation43_spill] sm:$0xff] %v11118_v6 }
 0x62c   :  { %v3745_v49 = vadd.f32 %v3744_v35, %v3656_v60  ;;  %v13395_v35 = vld [vmem:[#allocation28_spill] sm:$0xff]  ;;  %v7404_v60 = vld [vmem:[%s12686_s2 + $0xe0] sm:$0xf] }
 0x62d   :  { %v3483_v38 = vadd.f32 %v13395_v35, %v11104_v22 }
 0x62e   :  { %v11122_v12 = vadd.f32 %v3833_v9, %v3745_v49  ;;  %v3568_v43 = vpop.f32.mrf.mxu2 }
 0x62f   :  { %v3569_v20 = vadd.f32 %v3568_v43, %v3480_v47  ;;  %v7835_v43 = vld [vmem:[%s12686_s2 + $0xe4] sm:$0xf0] }
 0x630   :  { %v3749_v52 = vpop.f32.mrf.mxu0 }
 0x631   :  { %v3657_v29 = vpop.f32.mrf.mxu3  ;;  %v3838_v46 = vpop.f32.mrf.mxu1 }
 0x632   :  { %v3658_v16 = vadd.f32 %v3657_v29, %v3569_v20  ;;  %v13396_v20 = vld [vmem:[#allocation36_spill] sm:$0xff]  ;;  %v7405_v29 = vor.u32 %v7835_v43, %v7404_v60 }
 0x633   :  { %3610 = vmatmul.bf16.gmra.mxu2 %v13392_v62  ;;  %3788 = vmatmul.bf16.gmra.mxu0 %v13393_v58 }
 0x634   :  { %v3747_v0 = vadd.f32 %v3746_v18, %v3658_v16  ;;  %3877 = vmatmul.bf16.gmra.mxu1 %v13321_v19  ;;  %v7340_v18 = vld [vmem:[%s12686_s2 + $0x60] sm:$0xf]  ;;  %v7819_v19 = vld [vmem:[%s12686_s2 + $0x64] sm:$0xf0] }
 0x635   :  { %5019 = vmatpush.bf16.msrb.mxu1 %v7405_v29 }
 0x636   :  { %3699 = vmatmul.bf16.gmra.mxu3 %v13394_v5  ;;  %v11130_v49 = vadd.f32 %v3835_v27, %v3747_v0  ;;  %v3571_v9 = vpop.f32.mrf.mxu2  ;;  %v7341_v27 = vor.u32 %v7819_v19, %v7340_v18  ;;  %v13400_v18 = vld [vmem:[#allocation85_spill] sm:$0xff]  ;;  %v13401_v19 = vld [vmem:[#allocation68_spill] sm:$0xff] }
 0x637   :  { %v3572_v47 = vadd.f32 %v3571_v9, %v3483_v38  ;;  %v3488_v60 = vadd.f32 %v13401_v19, %v11104_v22 }
 0x638   :  { %v3751_v48 = vpop.f32.mrf.mxu0  ;;  %4930 = vmatpush.bf16.msrb.mxu0 %v7341_v27 }
 0x639   :  { %v3660_v59 = vpop.f32.mrf.mxu3  ;;  %v3840_v28 = vpop.f32.mrf.mxu1 }
 0x63a   :  { %v3661_v17 = vadd.f32 %v3660_v59, %v3572_v47  ;;  %v13397_v47 = vld [vmem:[#allocation14_spill] sm:$0xff] }
 0x63b   :  { %v13398_v59 = vld [vmem:[#allocation86_spill] sm:$0xff] }
 0x63c   :  { %v3750_v26 = vadd.f32 %v3749_v52, %v3661_v17  ;;  %v3485_v52 = vadd.f32 %v13396_v20, %v11104_v22  ;;  %v13399_v17 = vld [vmem:[#allocation84_spill] sm:$0xff] }
 0x63e   :  { %v11146_v16 = vadd.f32 %v3838_v46, %v3750_v26  ;;  %v3573_v0 = vpop.f32.mrf.mxu2  ;;  %v7775_v46 = vld [vmem:[%s12683_s1 + $0x52c] sm:$0xf]  ;;  %v7110_v26 = vld [vmem:[%s12683_s1 + $0x538] sm:$0xf0] }
 0x63f   :  { %v3574_v62 = vadd.f32 %v3573_v0, %v3485_v52 }
 0x640   :  { %v3754_v5 = vpop.f32.mrf.mxu0 }
 0x641   :  { %v3662_v58 = vpop.f32.mrf.mxu3  ;;  %v3843_v38 = vpop.f32.mrf.mxu1 }
 0x642   :  { %v3663_v35 = vadd.f32 %v3662_v58, %v3574_v62 }
 0x643   :  { %3615 = vmatmul.bf16.gmra.mxu2 %v13397_v47  ;;  %3793 = vmatmul.bf16.gmra.mxu0 %v13398_v59 }
 0x644   :  { %v3752_v9 = vadd.f32 %v3751_v48, %v3663_v35  ;;  %3882 = vmatmul.bf16.gmra.mxu1 %v13400_v18  ;;  %v7113_v48 = vor.u32 %v7775_v46, %v7110_v26  ;;  %v3490_v35 = vadd.f32 %v10804_v4, %v11104_v22  ;;  %v13402_v26 = vld [vmem:[#allocation18_spill] sm:$0xff]  ;;  %v3493_v4 = vadd.f32 %v10807_v15, %v11104_v22  ;;  %v7396_v15 = vld [vmem:[%s12686_s2 + $0xd0] sm:$0xf] }
 0x646   :  { %3704 = vmatmul.bf16.gmra.mxu3 %v13399_v17  ;;  %v11160_v27 = vadd.f32 %v3840_v28, %v3752_v9  ;;  %v3576_v43 = vpop.f32.mrf.mxu2  ;;  %3919 = vmatpush.bf16.msrb.mxu2 %v7113_v48  ;;  %v13404_v48 = vld [vmem:[#allocation88_spill] sm:$0xff] }
 0x647   :  { %v3577_v20 = vadd.f32 %v3576_v43, %v3488_v60  ;;  %v13403_v60 = vld [vmem:[#allocation90_spill] sm:$0xff] }
 0x648   :  { %v3756_v29 = vpop.f32.mrf.mxu0 }
 0x649   :  { %v3665_v52 = vpop.f32.mrf.mxu3  ;;  %v3845_v62 = vpop.f32.mrf.mxu1 }
 0x64a   :  { %v3666_v0 = vadd.f32 %v3665_v52, %v3577_v20 }
 0x64c   :  { %v3755_v58 = vadd.f32 %v3754_v5, %v3666_v0 }
 0x64e   :  { %v11164_v47 = vadd.f32 %v3843_v38, %v3755_v58  ;;  %v3578_v59 = vpop.f32.mrf.mxu2 }
 0x64f   :  { %v3579_v17 = vadd.f32 %v3578_v59, %v3490_v35  ;;  %v7332_v35 = vld [vmem:[%s12686_s2 + $0x50] sm:$0xf]  ;;  %v7833_v59 = vld [vmem:[%s12686_s2 + $0xd4] sm:$0xf0] }
 0x650   :  { %v3759_v19 = vpop.f32.mrf.mxu0 }
 0x651   :  { %v3667_v18 = vpop.f32.mrf.mxu3  ;;  %v3848_v28 = vpop.f32.mrf.mxu1 }
 0x652   :  { %v3668_v46 = vadd.f32 %v3667_v18, %v3579_v17  ;;  %v3495_v17 = vadd.f32 %v10817_v50, %v11104_v22  ;;  %v7397_v18 = vor.u32 %v7833_v59, %v7396_v15  ;;  %v7771_v50 = vld [vmem:[%s12683_s1 + $0x50c] sm:$0xf] }
 0x653   :  { %3620 = vmatmul.bf16.gmra.mxu2 %v13402_v26  ;;  %3798 = vmatmul.bf16.gmra.mxu0 %v13403_v60 }
 0x654   :  { %v3757_v9 = vadd.f32 %v3756_v29, %v3668_v46  ;;  %3887 = vmatmul.bf16.gmra.mxu1 %v13205_v41  ;;  %v7817_v41 = vld [vmem:[%s12686_s2 + $0x54] sm:$0xf0] }
 0x655   :  { %5020 = vmatpush.bf16.msrb.mxu1 %v7397_v18 }
 0x656   :  { %3709 = vmatmul.bf16.gmra.mxu3 %v13404_v48  ;;  %v11172_v5 = vadd.f32 %v3845_v62, %v3757_v9  ;;  %v3581_v38 = vpop.f32.mrf.mxu2  ;;  %v7333_v62 = vor.u32 %v7817_v41, %v7332_v35 }
 0x657   :  { %v3582_v43 = vadd.f32 %v3581_v38, %v3493_v4 }
 0x658   :  { %v3761_v52 = vpop.f32.mrf.mxu0  ;;  %4931 = vmatpush.bf16.msrb.mxu0 %v7333_v62 }
 0x659   :  { %v3670_v20 = vpop.f32.mrf.mxu3  ;;  %v3850_v58 = vpop.f32.mrf.mxu1 }
 0x65a   :  { %v3671_v0 = vadd.f32 %v3670_v20, %v3582_v43  ;;  %v13405_v43 = vld [vmem:[#allocation22_spill] sm:$0xff]  ;;  %v13406_v20 = vld [vmem:[#allocation95_spill] sm:$0xff] }
 0x65c   :  { %v3760_v29 = vadd.f32 %v3759_v19, %v3671_v0  ;;  %v13407_v0 = vld [vmem:[#allocation93_spill] sm:$0xff] }
 0x65e   :  { %v11188_v19 = vadd.f32 %v3848_v28, %v3760_v29  ;;  %v3583_v46 = vpop.f32.mrf.mxu2  ;;  %v7094_v28 = vld [vmem:[%s12683_s1 + $0x518] sm:$0xf0]  ;;  %v3498_v29 = vadd.f32 %v10832_v11, %v11104_v22  ;;  %v7324_v11 = vld [vmem:[%s12686_s2 + $0x40] sm:$0xf] }
 0x65f   :  { %v3584_v9 = vadd.f32 %v3583_v46, %v3495_v17  ;;  %v3500_v46 = vadd.f32 %v10854_v51, %v11104_v22  ;;  %v7831_v51 = vld [vmem:[%s12686_s2 + $0xc4] sm:$0xf0] }
 0x660   :  { %v3764_v60 = vpop.f32.mrf.mxu0 }
 0x661   :  { %v3672_v26 = vpop.f32.mrf.mxu3  ;;  %v3853_v4 = vpop.f32.mrf.mxu1 }
 0x662   :  { %v3673_v48 = vadd.f32 %v3672_v26, %v3584_v9 }
 0x663   :  { %3625 = vmatmul.bf16.gmra.mxu2 %v13405_v43  ;;  %3803 = vmatmul.bf16.gmra.mxu0 %v13406_v20 }
 0x664   :  { %v3762_v38 = vadd.f32 %v3761_v52, %v3673_v48  ;;  %3892 = vmatmul.bf16.gmra.mxu1 %v13210_v34  ;;  %v7097_v52 = vor.u32 %v7771_v50, %v7094_v28  ;;  %v7388_v48 = vld [vmem:[%s12686_s2 + $0xc0] sm:$0xf]  ;;  %v7316_v28 = vld [vmem:[%s12686_s2 + $0x30] sm:$0xf] }
 0x665   :  { %v7389_v20 = vor.u32 %v7831_v51, %v7388_v48  ;;  %v7308_v48 = vld [vmem:[%s12686_s2 + $0x20] sm:$0xf] }
 0x666   :  { %3714 = vmatmul.bf16.gmra.mxu3 %v13407_v0  ;;  %v11202_v35 = vadd.f32 %v3850_v58, %v3762_v38  ;;  %v3586_v41 = vpop.f32.mrf.mxu2  ;;  %3920 = vmatpush.bf16.msrb.mxu2 %v7097_v52  ;;  %v7815_v58 = vld [vmem:[%s12686_s2 + $0x44] sm:$0xf0]  ;;  %v7380_v52 = vld [vmem:[%s12686_s2 + $0xb0] sm:$0xf] }
 0x667   :  { %v3587_v15 = vadd.f32 %v3586_v41, %v3498_v29  ;;  %v7325_v43 = vor.u32 %v7815_v58, %v7324_v11  ;;  %5021 = vmatpush.bf16.msrb.mxu1 %v7389_v20  ;;  %v7813_v29 = vld [vmem:[%s12686_s2 + $0x34] sm:$0xf0]  ;;  %v3503_v11 = vadd.f32 %v10869_v40, %v11104_v22 }
 0x668   :  { %v3766_v59 = vpop.f32.mrf.mxu0 }
 0x669   :  { %v3675_v62 = vpop.f32.mrf.mxu3  ;;  %v3855_v17 = vpop.f32.mrf.mxu1  ;;  %4932 = vmatpush.bf16.msrb.mxu0 %v7325_v43 }
 0x66a   :  { %v3676_v34 = vadd.f32 %v3675_v62, %v3587_v15  ;;  %v13408_v15 = vld [vmem:[#allocation26_spill] sm:$0xff]  ;;  %v13409_v62 = vld [vmem:[#allocation100_spill] sm:$0xff] }
 0x66c   :  { %v3765_v18 = vadd.f32 %v3764_v60, %v3676_v34  ;;  %v7317_v34 = vor.u32 %v7813_v29, %v7316_v28  ;;  %v7300_v29 = vld [vmem:[%s12686_s2 + $0x10] sm:$0xf] }
 0x66e   :  { %v11206_v9 = vadd.f32 %v3853_v4, %v3765_v18  ;;  %v3588_v26 = vpop.f32.mrf.mxu2  ;;  %v7829_v18 = vld [vmem:[%s12686_s2 + $0xb4] sm:$0xf0]  ;;  %4933 = vmatpush.bf16.msrb.mxu0 %v7317_v34 }
 0x66f   :  { %v3589_v38 = vadd.f32 %v3588_v26, %v3500_v46  ;;  %v13410_v46 = vld [vmem:[#allocation98_spill] sm:$0xff]  ;;  %v7381_v26 = vor.u32 %v7829_v18, %v7380_v52 }
 0x670   :  { %v3769_v4 = vpop.f32.mrf.mxu0  ;;  %v7809_v52 = vld [vmem:[%s12686_s2 + $0x14] sm:$0xf0] }
 0x671   :  { %v3677_v60 = vpop.f32.mrf.mxu3  ;;  %v3858_v50 = vpop.f32.mrf.mxu1  ;;  %5022 = vmatpush.bf16.msrb.mxu1 %v7381_v26  ;;  %v7825_v34 = vld [vmem:[%s12686_s2 + $0x94] sm:$0xf0] }
 0x672   :  { %v3678_v0 = vadd.f32 %v3677_v60, %v3589_v38  ;;  %v7811_v38 = vld [vmem:[%s12686_s2 + $0x24] sm:$0xf0] }
 0x673   :  { %3630 = vmatmul.bf16.gmra.mxu2 %v13408_v15  ;;  %3808 = vmatmul.bf16.gmra.mxu0 %v13409_v62  ;;  %v7309_v40 = vor.u32 %v7811_v38, %v7308_v48  ;;  %v7301_v62 = vor.u32 %v7809_v52, %v7300_v29  ;;  %v7356_v48 = vld [vmem:[%s12686_s2 + $0x80] sm:$0xf]  ;;  %v13412_v29 = vld [vmem:[#allocation105_spill] sm:$0xff] }
 0x674   :  { %v3767_v41 = vadd.f32 %v3766_v59, %v3678_v0  ;;  %3897 = vmatmul.bf16.gmra.mxu1 %v13334_v10  ;;  %v7372_v10 = vld [vmem:[%s12686_s2 + $0xa0] sm:$0xf] }
 0x675   :  { %4934 = vmatpush.bf16.msrb.mxu0 %v7309_v40  ;;  %v13413_v52 = vld [vmem:[#allocation103_spill] sm:$0xff] }
 0x676   :  { %3719 = vmatmul.bf16.gmra.mxu3 %v13410_v46  ;;  %v11238_v58 = vadd.f32 %v3855_v17, %v3767_v41  ;;  %v3591_v59 = vpop.f32.mrf.mxu2  ;;  %v7827_v17 = vld [vmem:[%s12686_s2 + $0xa4] sm:$0xf0]  ;;  %v7364_v41 = vld [vmem:[%s12686_s2 + $0x90] sm:$0xf]  ;;  %v3505_v46 = vadd.f32 %v10904_v57, %v11104_v22 }
 0x677   :  { %v3592_v60 = vadd.f32 %v3591_v59, %v3503_v11  ;;  %v7373_v20 = vor.u32 %v7827_v17, %v7372_v10  ;;  %v7365_v18 = vor.u32 %v7825_v34, %v7364_v41  ;;  %v7292_v59 = vld [vmem:[%s12686_s2] sm:$0xf]  ;;  %v7476_v41 = vld [vmem:[%s12686_s2 + $0x170] sm:$0xf] }
 0x678   :  { %v3771_v51 = vpop.f32.mrf.mxu0 }
 0x679   :  { %v3680_v43 = vpop.f32.mrf.mxu3  ;;  %v3860_v28 = vpop.f32.mrf.mxu1  ;;  %5023 = vmatpush.bf16.msrb.mxu1 %v7373_v20  ;;  %4935 = vmatpush.bf16.msrb.mxu0 %v7301_v62  ;;  %v3508_v62 = vadd.f32 %v10931_v39, %v11104_v22  ;;  %v3510_v39 = vadd.f32 %v10953_v54, %v11104_v22  ;;  %v3513_v54 = vadd.f32 %v10956_v37, %v11104_v22 }
 0x67a   :  { %v3681_v0 = vadd.f32 %v3680_v43, %v3592_v60 }
 0x67c   :  { %v3770_v15 = vadd.f32 %v3769_v4, %v3681_v0  ;;  %v7807_v4 = vld [vmem:[%s12686_s2 + $0x4] sm:$0xf0]  ;;  %v13411_v0 = vld [vmem:[#allocation30_spill] sm:$0xff] }
 0x67d   :  { %5024 = vmatpush.bf16.msrb.mxu1 %v7365_v18  ;;  %v7293_v57 = vor.u32 %v7807_v4, %v7292_v59 }
 0x67e   :  { %v11266_v26 = vadd.f32 %v3858_v50, %v3770_v15  ;;  %v3593_v11 = vpop.f32.mrf.mxu2  ;;  %v7823_v50 = vld [vmem:[%s12686_s2 + $0x84] sm:$0xf0]  ;;  %v7853_v15 = vld [vmem:[%s12686_s2 + $0x174] sm:$0xf0] }
 0x67f   :  { %v3594_v38 = vadd.f32 %v3593_v11, %v3505_v46  ;;  %v7357_v43 = vor.u32 %v7823_v50, %v7356_v48  ;;  %4936 = vmatpush.bf16.msrb.mxu0 %v7293_v57  ;;  %v7477_v34 = vor.u32 %v7853_v15, %v7476_v41  ;;  %v13414_v41 = vld [vmem:[#allocation34_spill] sm:$0xff]  ;;  %v13415_v15 = vld [vmem:[#allocation109_spill] sm:$0xff] }
 0x680   :  { %v3774_v60 = vpop.f32.mrf.mxu0 }
 0x681   :  { %v3682_v10 = vpop.f32.mrf.mxu3  ;;  %v3863_v17 = vpop.f32.mrf.mxu1  ;;  %5025 = vmatpush.bf16.msrb.mxu1 %v7357_v43  ;;  %5107 = vmatpush.bf16.msra.mxu2 %v7477_v34 }
 0x682   :  { %v3683_v40 = vadd.f32 %v3682_v10, %v3594_v38 }
 0x683   :  { %3635 = vmatmul.bf16.gmra.mxu2 %v13411_v0  ;;  %3813 = vmatmul.bf16.gmra.mxu0 %v13412_v29 }
 0x684   :  { %v3772_v20 = vadd.f32 %v3771_v51, %v3683_v40  ;;  %3902 = vmatmul.bf16.gmra.mxu1 %v13338_v24  ;;  %v7540_v51 = vld [vmem:[%s12686_s2 + $0x1f0] sm:$0xf]  ;;  %v7869_v24 = vld [vmem:[%s12686_s2 + $0x1f4] sm:$0xf0] }
 0x685   :  { %v7541_v11 = vor.u32 %v7869_v24, %v7540_v51  ;;  %v13416_v51 = vld [vmem:[#allocation107_spill] sm:$0xff] }
 0x686   :  { %3724 = vmatmul.bf16.gmra.mxu3 %v13413_v52  ;;  %v11298_v18 = vadd.f32 %v3860_v28, %v3772_v20  ;;  %v3596_v46 = vpop.f32.mrf.mxu2 }
 0x687   :  { %v3597_v59 = vadd.f32 %v3596_v46, %v3508_v62  ;;  %5196 = vmatpush.bf16.msra.mxu3 %v7541_v11 }
 0x688   :  { %v3776_v48 = vpop.f32.mrf.mxu0 }
 0x689   :  { %v3685_v4 = vpop.f32.mrf.mxu3  ;;  %v3865_v10 = vpop.f32.mrf.mxu1 }
 0x68a   :  { %v3686_v38 = vadd.f32 %v3685_v4, %v3597_v59  ;;  %v3515_v4 = vadd.f32 %v10966_v1, %v11104_v22  ;;  %v7468_v1 = vld [vmem:[%s12686_s2 + $0x160] sm:$0xf] }
 0x68c   :  { %v3775_v57 = vadd.f32 %v3774_v60, %v3686_v38 }
 0x68e   :  { %v11302_v50 = vadd.f32 %v3863_v17, %v3775_v57  ;;  %v3598_v43 = vpop.f32.mrf.mxu2 }
 0x68f   :  { %v3599_v40 = vadd.f32 %v3598_v43, %v3510_v39 }
 0x690   :  { %v3779_v28 = vpop.f32.mrf.mxu0 }
 0x691   :  { %v3687_v0 = vpop.f32.mrf.mxu3  ;;  %v3868_v29 = vpop.f32.mrf.mxu1 }
 0x692   :  { %v3688_v20 = vadd.f32 %v3687_v0, %v3599_v40  ;;  %v13417_v40 = vld [vmem:[#allocation38_spill] sm:$0xff]  ;;  %v13418_v0 = vld [vmem:[#allocation72_spill] sm:$0xff] }
 0x693   :  { %3640 = vmatmul.bf16.gmra.mxu2 %v13414_v41  ;;  %3818 = vmatmul.bf16.gmra.mxu0 %v13415_v15  ;;  %v3518_v41 = vadd.f32 %v10969_v42, %v11104_v22  ;;  %v3520_v42 = vadd.f32 %v10984_v36, %v11104_v22  ;;  %v3523_v36 = vadd.f32 %v10987_v13, %v11104_v22 }
 0x694   :  { %v3777_v52 = vadd.f32 %v3776_v48, %v3688_v20  ;;  %3907 = vmatmul.bf16.gmra.mxu1 %v13224_v14  ;;  %v13419_v20 = vld [vmem:[#allocation111_spill] sm:$0xff] }
 0x696   :  { %3729 = vmatmul.bf16.gmra.mxu3 %v13416_v51  ;;  %v11310_v60 = vadd.f32 %v3865_v10, %v3777_v52  ;;  %v3601_v17 = vpop.f32.mrf.mxu2  ;;  %v7532_v52 = vld [vmem:[%s12686_s2 + $0x1e0] sm:$0xf]  ;;  %v7867_v51 = vld [vmem:[%s12686_s2 + $0x1e4] sm:$0xf0] }
 0x697   :  { %v3602_v62 = vadd.f32 %v3601_v17, %v3513_v54 }
 0x698   :  { %v3781_v24 = vpop.f32.mrf.mxu0 }
 0x699   :  { %v3690_v34 = vpop.f32.mrf.mxu3  ;;  %v3870_v11 = vpop.f32.mrf.mxu1 }
 0x69a   :  { %v3691_v46 = vadd.f32 %v3690_v34, %v3602_v62  ;;  %v7533_v62 = vor.u32 %v7867_v51, %v7532_v52  ;;  %v13422_v52 = vld [vmem:[#allocation78_spill] sm:$0xff] }
 0x69c   :  { %v3780_v59 = vadd.f32 %v3779_v28, %v3691_v46  ;;  %v13420_v28 = vld [vmem:[#allocation131_spill] sm:$0xff]  ;;  %5197 = vmatpush.bf16.msra.mxu3 %v7533_v62 }
 0x69e   :  { %v11314_v48 = vadd.f32 %v3868_v29, %v3780_v59  ;;  %v3603_v38 = vpop.f32.mrf.mxu2  ;;  %v7851_v29 = vld [vmem:[%s12686_s2 + $0x164] sm:$0xf0] }
 0x69f   :  { %v3604_v57 = vadd.f32 %v3603_v38, %v3515_v4  ;;  %v7469_v15 = vor.u32 %v7851_v29, %v7468_v1  ;;  %v13421_v29 = vld [vmem:[#allocation42_spill] sm:$0xff] }
 0x6a0   :  { %v3784_v39 = vpop.f32.mrf.mxu0 }
 0x6a1   :  { %v3692_v14 = vpop.f32.mrf.mxu3  ;;  %v3873_v37 = vpop.f32.mrf.mxu1  ;;  %5108 = vmatpush.bf16.msra.mxu2 %v7469_v15 }
 0x6a2   :  { %v3693_v43 = vadd.f32 %v3692_v14, %v3604_v57 }
 0x6a3   :  { %3921 = vmatmul.bf16.vlgmr.msrb.gmra.mxu2 %v13417_v40  ;;  %4937 = vmatmul.bf16.vlgmr.msrb.gmra.mxu0 %v13418_v0 }
 0x6a4   :  { %v3782_v10 = vadd.f32 %v3781_v24, %v3693_v43  ;;  %5026 = vmatmul.bf16.vlgmr.msrb.gmra.mxu1 %v13420_v28 }
 0x6a6   :  { %7274 = vmatmul.msk.bf16.vlgmr.msrb.gmra.mxu3 %vm1550_vm0, %v13419_v20  ;;  %v11335_v54 = vadd.f32 %v3870_v11, %v3782_v10  ;;  %v3606_v17 = vpop.f32.mrf.mxu2 }
 0x6a7   :  { %v3607_v34 = vadd.f32 %v3606_v17, %v3518_v41  ;;  %v13423_v41 = vld [vmem:[#allocation112_spill] sm:$0xff] }
 0x6a8   :  { %v3786_v46 = vpop.f32.mrf.mxu0 }
 0x6a9   :  { %v3695_v24 = vpop.f32.mrf.mxu3  ;;  %v3875_v4 = vpop.f32.mrf.mxu1 }
 0x6aa   :  { %v3696_v59 = vadd.f32 %v3695_v24, %v3607_v34 }
 0x6ac   :  { %v3785_v38 = vadd.f32 %v3784_v39, %v3696_v59  ;;  %v13424_v39 = vld [vmem:[#allocation83_spill] sm:$0xff]  ;;  %v3525_v59 = vadd.f32 %v10996_v25, %v11104_v22  ;;  %v7460_v25 = vld [vmem:[%s12686_s2 + $0x150] sm:$0xf] }
 0x6ae   :  { %v11339_v57 = vadd.f32 %v3873_v37, %v3785_v38  ;;  %v3608_v14 = vpop.f32.mrf.mxu2 }
 0x6af   :  { %v3609_v43 = vadd.f32 %v3608_v14, %v3520_v42 }
 0x6b0   :  { %v3789_v11 = vpop.f32.mrf.mxu0 }
 0x6b1   :  { %v3697_v40 = vpop.f32.mrf.mxu3  ;;  %v3878_v20 = vpop.f32.mrf.mxu1 }
 0x6b2   :  { %v3698_v10 = vadd.f32 %v3697_v40, %v3609_v43 }
 0x6b3   :  { %3926 = vmatmul.bf16.gmra.mxu2 %v13421_v29  ;;  %4942 = vmatmul.bf16.gmra.mxu0 %v13422_v52  ;;  %v13426_v29 = vld [vmem:[#allocation116_spill] sm:$0xff] }
 0x6b4   :  { %v3787_v1 = vadd.f32 %v3786_v46, %v3698_v10  ;;  %5031 = vmatmul.bf16.gmra.mxu1 %v13424_v39 }
 0x6b6   :  { %7275 = vmatmul.msk.bf16.gmra.mxu3 %vm1550_vm0, %v13423_v41  ;;  %v11348_v37 = vadd.f32 %v3875_v4, %v3787_v1  ;;  %v3611_v15 = vpop.f32.mrf.mxu2  ;;  %v13425_v1 = vld [vmem:[#allocation46_spill] sm:$0xff]  ;;  %v13427_v41 = vld [vmem:[#allocation113_spill] sm:$0xff] }
 0x6b7   :  { %v3612_v51 = vadd.f32 %v3611_v15, %v3523_v36  ;;  %v7524_v36 = vld [vmem:[%s12686_s2 + $0x1d0] sm:$0xf]  ;;  %v3528_v15 = vadd.f32 %v10999_v2, %v11104_v22  ;;  %v3530_v2 = vadd.f32 %v11014_v23, %v11104_v22  ;;  %v3533_v23 = vadd.f32 %v11017_v55, %v11104_v22 }
 0x6b8   :  { %v3791_v62 = vpop.f32.mrf.mxu0 }
 0x6b9   :  { %v3700_v17 = vpop.f32.mrf.mxu3  ;;  %v3880_v24 = vpop.f32.mrf.mxu1 }
 0x6ba   :  { %v3701_v34 = vadd.f32 %v3700_v17, %v3612_v51  ;;  %v7865_v17 = vld [vmem:[%s12686_s2 + $0x1d4] sm:$0xf0] }
 0x6bc   :  { %v3790_v46 = vadd.f32 %v3789_v11, %v3701_v34  ;;  %v13428_v11 = vld [vmem:[#allocation91_spill] sm:$0xff] }
 0x6be   :  { %v11352_v38 = vadd.f32 %v3878_v20, %v3790_v46  ;;  %v3613_v42 = vpop.f32.mrf.mxu2  ;;  %v7849_v20 = vld [vmem:[%s12686_s2 + $0x154] sm:$0xf0]  ;;  %v7525_v46 = vor.u32 %v7865_v17, %v7524_v36 }
 0x6bf   :  { %v3614_v14 = vadd.f32 %v3613_v42, %v3525_v59  ;;  %v7461_v51 = vor.u32 %v7849_v20, %v7460_v25  ;;  %v13431_v17 = vld [vmem:[#allocation114_spill] sm:$0xff] }
 0x6c0   :  { %v3794_v40 = vpop.f32.mrf.mxu0  ;;  %5198 = vmatpush.bf16.msra.mxu3 %v7525_v46 }
 0x6c1   :  { %v3702_v43 = vpop.f32.mrf.mxu3  ;;  %v3883_v13 = vpop.f32.mrf.mxu1  ;;  %5109 = vmatpush.bf16.msra.mxu2 %v7461_v51  ;;  %v13430_v51 = vld [vmem:[#allocation117_spill] sm:$0xff] }
 0x6c2   :  { %v3703_v10 = vadd.f32 %v3702_v43, %v3614_v14 }
 0x6c3   :  { %3931 = vmatmul.bf16.gmra.mxu2 %v13425_v1  ;;  %4947 = vmatmul.bf16.gmra.mxu0 %v13426_v29 }
 0x6c4   :  { %v3792_v4 = vadd.f32 %v3791_v62, %v3703_v10  ;;  %5036 = vmatmul.bf16.gmra.mxu1 %v13428_v11 }
 0x6c6   :  { %7276 = vmatmul.msk.bf16.gmra.mxu3 %vm1550_vm0, %v13427_v41  ;;  %v11373_v62 = vadd.f32 %v3880_v24, %v3792_v4  ;;  %v3616_v34 = vpop.f32.mrf.mxu2 }
 0x6c7   :  { %v3617_v59 = vadd.f32 %v3616_v34, %v3528_v15  ;;  %v13429_v15 = vld [vmem:[#allocation50_spill] sm:$0xff] }
 0x6c8   :  { %v3796_v14 = vpop.f32.mrf.mxu0 }
 0x6c9   :  { %v3705_v42 = vpop.f32.mrf.mxu3  ;;  %v3885_v10 = vpop.f32.mrf.mxu1 }
 0x6ca   :  { %v3706_v43 = vadd.f32 %v3705_v42, %v3617_v59 }
 0x6cc   :  { %v3795_v1 = vadd.f32 %v3794_v40, %v3706_v43  ;;  %v13432_v40 = vld [vmem:[#allocation89_spill] sm:$0xff] }
 0x6ce   :  { %v11377_v41 = vadd.f32 %v3883_v13, %v3795_v1  ;;  %v3618_v25 = vpop.f32.mrf.mxu2  ;;  %v3535_v1 = vadd.f32 %v11026_v33, %v11104_v22  ;;  %v7452_v33 = vld [vmem:[%s12686_s2 + $0x140] sm:$0xf] }
 0x6cf   :  { %v3619_v20 = vadd.f32 %v3618_v25, %v3530_v2 }
 0x6d0   :  { %v3799_v24 = vpop.f32.mrf.mxu0 }
 0x6d1   :  { %v3707_v6 = vpop.f32.mrf.mxu3  ;;  %v3888_v11 = vpop.f32.mrf.mxu1 }
 0x6d2   :  { %v3708_v4 = vadd.f32 %v3707_v6, %v3619_v20 }
 0x6d3   :  { %3936 = vmatmul.bf16.gmra.mxu2 %v13429_v15  ;;  %4952 = vmatmul.bf16.gmra.mxu0 %v13430_v51 }
 0x6d4   :  { %v3797_v36 = vadd.f32 %v3796_v14, %v3708_v4  ;;  %5041 = vmatmul.bf16.gmra.mxu1 %v13432_v40 }
 0x6d6   :  { %7277 = vmatmul.msk.bf16.gmra.mxu3 %vm1550_vm0, %v13431_v17  ;;  %v11386_v13 = vadd.f32 %v3885_v10, %v3797_v36  ;;  %v3621_v34 = vpop.f32.mrf.mxu2  ;;  %v13434_v36 = vld [vmem:[#allocation54_spill] sm:$0xff] }
 0x6d7   :  { %v3622_v46 = vadd.f32 %v3621_v34, %v3533_v23  ;;  %v13435_v23 = vld [vmem:[#allocation118_spill] sm:$0xff]  ;;  %v13436_v34 = vld [vmem:[#allocation115_spill] sm:$0xff] }
 0x6d8   :  { %v3801_v6 = vpop.f32.mrf.mxu0 }
 0x6d9   :  { %v3710_v59 = vpop.f32.mrf.mxu3  ;;  %v3890_v14 = vpop.f32.mrf.mxu1 }
 0x6da   :  { %v3711_v42 = vadd.f32 %v3710_v59, %v3622_v46  ;;  %v7516_v46 = vld [vmem:[%s12686_s2 + $0x1c0] sm:$0xf]  ;;  %v3538_v59 = vadd.f32 %v11029_v45, %v11104_v22  ;;  %v3540_v45 = vadd.f32 %v11044_v31, %v11104_v22  ;;  %v3543_v31 = vadd.f32 %v11047_v56, %v11104_v22 }
 0x6dc   :  { %v3800_v43 = vadd.f32 %v3799_v24, %v3711_v42  ;;  %v13437_v24 = vld [vmem:[#allocation92_spill] sm:$0xff] }
 0x6dd   :  { %v7863_v42 = vld [vmem:[%s12686_s2 + $0x1c4] sm:$0xf0] }
 0x6de   :  { %v11390_v2 = vadd.f32 %v3888_v11, %v3800_v43  ;;  %v3623_v25 = vpop.f32.mrf.mxu2  ;;  %v7847_v11 = vld [vmem:[%s12686_s2 + $0x144] sm:$0xf0] }
 0x6df   :  { %v3624_v20 = vadd.f32 %v3623_v25, %v3535_v1  ;;  %v7517_v25 = vor.u32 %v7863_v42, %v7516_v46  ;;  %v13441_v42 = vld [vmem:[#allocation59_spill] sm:$0xff] }
 0x6e0   :  { %13433 = vst [vmem:[#allocation44_spill] sm:$0xff] %v11390_v2  ;;  %v3804_v15 = vpop.f32.mrf.mxu0 }
 0x6e1   :  { %v3712_v4 = vpop.f32.mrf.mxu3  ;;  %v3893_v55 = vpop.f32.mrf.mxu1  ;;  %5199 = vmatpush.bf16.msra.mxu3 %v7517_v25 }
 0x6e2   :  { %v3713_v17 = vadd.f32 %v3712_v4, %v3624_v20 }
 0x6e3   :  { %3941 = vmatmul.bf16.gmra.mxu2 %v13434_v36  ;;  %4957 = vmatmul.bf16.gmra.mxu0 %v13435_v23 }
 0x6e4   :  { %v3802_v10 = vadd.f32 %v3801_v6, %v3713_v17  ;;  %5046 = vmatmul.bf16.gmra.mxu1 %v13437_v24  ;;  %v7453_v6 = vor.u32 %v7847_v11, %v7452_v33 }
 0x6e6   :  { %7278 = vmatmul.msk.bf16.gmra.mxu3 %vm1550_vm0, %v13436_v34  ;;  %v11411_v43 = vadd.f32 %v3890_v14, %v3802_v10  ;;  %v3626_v1 = vpop.f32.mrf.mxu2  ;;  %5110 = vmatpush.bf16.msra.mxu2 %v7453_v6  ;;  %v13440_v6 = vld [vmem:[#allocation120_spill] sm:$0xff] }
 0x6e7   :  { %v3627_v20 = vadd.f32 %v3626_v1, %v3538_v59  ;;  %v13439_v59 = vld [vmem:[#allocation58_spill] sm:$0xff] }
 0x6e8   :  { %13438 = vst [vmem:[#allocation17_spill] sm:$0xff] %v11411_v43  ;;  %v3806_v17 = vpop.f32.mrf.mxu0 }
 0x6e9   :  { %v3715_v4 = vpop.f32.mrf.mxu3  ;;  %v3895_v34 = vpop.f32.mrf.mxu1 }
 0x6ea   :  { %v3716_v36 = vadd.f32 %v3715_v4, %v3627_v20 }
 0x6ec   :  { %v3805_v24 = vadd.f32 %v3804_v15, %v3716_v36  ;;  %v13442_v15 = vld [vmem:[#allocation94_spill] sm:$0xff] }
 0x6ee   :  { %v11415_v33 = vadd.f32 %v3893_v55, %v3805_v24  ;;  %v3628_v11 = vpop.f32.mrf.mxu2 }
 0x6ef   :  { %v3629_v23 = vadd.f32 %v3628_v11, %v3540_v45 }
 0x6f0   :  { %v3809_v14 = vpop.f32.mrf.mxu0 }
 0x6f1   :  { %v3717_v2 = vpop.f32.mrf.mxu3  ;;  %v3898_v43 = vpop.f32.mrf.mxu1 }
 0x6f2   :  { %v3718_v10 = vadd.f32 %v3717_v2, %v3629_v23 }
 0x6f3   :  { %3946 = vmatmul.bf16.gmra.mxu2 %v13439_v59  ;;  %4962 = vmatmul.bf16.gmra.mxu0 %v13440_v6 }
 0x6f4   :  { %v3807_v46 = vadd.f32 %v3806_v17, %v3718_v10  ;;  %5051 = vmatmul.bf16.gmra.mxu1 %v13442_v15  ;;  %v3545_v17 = vadd.f32 %v11056_v30, %v11104_v22  ;;  %v7444_v30 = vld [vmem:[%s12686_s2 + $0x130] sm:$0xf] }
 0x6f6   :  { %7279 = vmatmul.msk.bf16.gmra.mxu3 %vm1550_vm0, %v13441_v42  ;;  %v11424_v55 = vadd.f32 %v3895_v34, %v3807_v46  ;;  %v3631_v24 = vpop.f32.mrf.mxu2  ;;  %v13444_v46 = vld [vmem:[#allocation64_spill] sm:$0xff] }
 0x6f7   :  { %v3632_v1 = vadd.f32 %v3631_v24, %v3543_v31  ;;  %v13445_v31 = vld [vmem:[#allocation122_spill] sm:$0xff]  ;;  %v13446_v24 = vld [vmem:[#allocation60_spill] sm:$0xff] }
 0x6f8   :  { %v3811_v2 = vpop.f32.mrf.mxu0 }
 0x6f9   :  { %v3720_v25 = vpop.f32.mrf.mxu3  ;;  %v3900_v20 = vpop.f32.mrf.mxu1 }
 0x6fa   :  { %v3721_v23 = vadd.f32 %v3720_v25, %v3632_v1  ;;  %v7508_v1 = vld [vmem:[%s12686_s2 + $0x1b0] sm:$0xf]  ;;  %v3548_v25 = vadd.f32 %v11059_v63, %v11104_v22  ;;  %v3550_v63 = vadd.f32 %v11074_v8, %v11104_v22  ;;  %v3553_v8 = vadd.f32 %v11077_v53, %v11104_v22  ;;  %v7350_v53 = vld [vmem:[%s12686_s2 + $0x78] sm:$0xf0] }
 0x6fc   :  { %v3810_v4 = vadd.f32 %v3809_v14, %v3721_v23  ;;  %v13447_v14 = vld [vmem:[#allocation102_spill] sm:$0xff] }
 0x6fd   :  { %v7861_v23 = vld [vmem:[%s12686_s2 + $0x1b4] sm:$0xf0] }
 0x6fe   :  { %v11428_v36 = vadd.f32 %v3898_v43, %v3810_v4  ;;  %v3633_v45 = vpop.f32.mrf.mxu2  ;;  %v7845_v43 = vld [vmem:[%s12686_s2 + $0x134] sm:$0xf0] }
 0x6ff   :  { %v3634_v11 = vadd.f32 %v3633_v45, %v3545_v17  ;;  %v7509_v45 = vor.u32 %v7861_v23, %v7508_v1  ;;  %v13451_v23 = vld [vmem:[#allocation65_spill] sm:$0xff] }
 0x700   :  { %13443 = vst [vmem:[#allocation49_spill] sm:$0xff] %v11428_v36  ;;  %v3814_v59 = vpop.f32.mrf.mxu0 }
 0x701   :  { %v3722_v10 = vpop.f32.mrf.mxu3  ;;  %v3903_v56 = vpop.f32.mrf.mxu1  ;;  %5200 = vmatpush.bf16.msra.mxu3 %v7509_v45 }
 0x702   :  { %v3723_v42 = vadd.f32 %v3722_v10, %v3634_v11 }
 0x703   :  { %3951 = vmatmul.bf16.gmra.mxu2 %v13444_v46  ;;  %4967 = vmatmul.bf16.gmra.mxu0 %v13445_v31 }
 0x704   :  { %v3812_v34 = vadd.f32 %v3811_v2, %v3723_v42  ;;  %5056 = vmatmul.bf16.gmra.mxu1 %v13447_v14  ;;  %v7445_v2 = vor.u32 %v7845_v43, %v7444_v30 }
 0x706   :  { %7280 = vmatmul.msk.bf16.gmra.mxu3 %vm1550_vm0, %v13446_v24  ;;  %v11449_v4 = vadd.f32 %v3900_v20, %v3812_v34  ;;  %v3636_v17 = vpop.f32.mrf.mxu2  ;;  %5111 = vmatpush.bf16.msra.mxu2 %v7445_v2  ;;  %v13450_v2 = vld [vmem:[#allocation123_spill] sm:$0xff] }
 0x707   :  { %v3637_v11 = vadd.f32 %v3636_v17, %v3548_v25  ;;  %v13449_v25 = vld [vmem:[#allocation70_spill] sm:$0xff] }
 0x708   :  { %13448 = vst [vmem:[#allocation47_spill] sm:$0xff] %v11449_v4  ;;  %v3816_v42 = vpop.f32.mrf.mxu0 }
 0x709   :  { %v3725_v10 = vpop.f32.mrf.mxu3  ;;  %v3905_v24 = vpop.f32.mrf.mxu1 }
 0x70a   :  { %v3726_v46 = vadd.f32 %v3725_v10, %v3637_v11  ;;  %v4603_v10 = vld [vmem:[%s12684_s5 + $0x4] sm:$0x3] }
 0x70c   :  { %v3815_v14 = vadd.f32 %v3814_v59, %v3726_v46  ;;  %v13452_v59 = vld [vmem:[#allocation108_spill] sm:$0xff]  ;;  %v7820_v46 = vld [vmem:[%s12686_s2 + $0x74] sm:$0xf] }
 0x70e   :  { %v11453_v30 = vadd.f32 %v3903_v56, %v3815_v14  ;;  %v3638_v43 = vpop.f32.mrf.mxu2 }
 0x70f   :  { %v3639_v31 = vadd.f32 %v3638_v43, %v3550_v63  ;;  %v7353_v63 = vor.u32 %v7820_v46, %v7350_v53  ;;  %v7414_v43 = vld [vmem:[%s12686_s2 + $0xf8] sm:$0xf0] }
 0x710   :  { %v3819_v20 = vpop.f32.mrf.mxu0 }
 0x711   :  { %v3727_v36 = vpop.f32.mrf.mxu3  ;;  %v3908_v4 = vpop.f32.mrf.mxu1  ;;  %5285 = vmatpush.bf16.msra.mxu0 %v7353_v63 }
 0x712   :  { %v3728_v34 = vadd.f32 %v3727_v36, %v3639_v31 }
 0x713   :  { %3956 = vmatmul.bf16.gmra.mxu2 %v13449_v25  ;;  %4972 = vmatmul.bf16.gmra.mxu0 %v13450_v2  ;;  %v13453_v2 = vld [vmem:[#allocation76_spill] sm:$0xff] }
 0x714   :  { %v3817_v1 = vadd.f32 %v3816_v42, %v3728_v34  ;;  %5061 = vmatmul.bf16.gmra.mxu1 %v13452_v59  ;;  %v11481_v34 = vperm.slane %v4603_v10, 0  ;;  %v7436_v10 = vld [vmem:[%s12686_s2 + $0x120] sm:$0xf] }
 0x716   :  { %7281 = vmatmul.msk.bf16.gmra.mxu3 %vm1550_vm0, %v13451_v23  ;;  %v11462_v56 = vadd.f32 %v3905_v24, %v3817_v1  ;;  %v3641_v14 = vpop.f32.mrf.mxu2  ;;  %v7836_v24 = vld [vmem:[%s12686_s2 + $0xf4] sm:$0xf] }
 0x717   :  { %v3642_v17 = vadd.f32 %v3641_v14, %v3553_v8  ;;  %v7417_v1 = vor.u32 %v7836_v24, %v7414_v43  ;;  %v7859_v24 = vld [vmem:[%s12686_s2 + $0x1a4] sm:$0xf0] }
 0x718   :  { %v3821_v36 = vpop.f32.mrf.mxu0 }
 0x719   :  { %v3730_v45 = vpop.f32.mrf.mxu3  ;;  %v3910_v11 = vpop.f32.mrf.mxu1  ;;  %5374 = vmatpush.bf16.msra.mxu1 %v7417_v1 }
 0x71a   :  { %v3731_v31 = vadd.f32 %v3730_v45, %v3642_v17 }
 0x71c   :  { %v3820_v42 = vadd.f32 %v3819_v20, %v3731_v31  ;;  %v3555_v20 = vadd.f32 %v11086_v44, %v11104_v22  ;;  %v13454_v44 = vld [vmem:[#allocation41_spill] sm:$0xff]  ;;  %v13455_v22 = vld [vmem:[#allocation66_spill] sm:$0xff] }
 0x71e   :  { %v11483_v25 = vadd.f32 %v3908_v4, %v3820_v42  ;;  %v3643_v23 = vpop.f32.mrf.mxu2  ;;  %v13456_v4 = vld [vmem:[#allocation3_spill] sm:$0xff]  ;;  %v7843_v42 = vld [vmem:[%s12686_s2 + $0x124] sm:$0xf0] }
 0x71f   :  { %v3644_v8 = vadd.f32 %v3643_v23, %v3555_v20 }
 0x720   :  { %v4938_v17 = vpop.f32.mrf.mxu0 }
 0x721   :  { %v3732_v14 = vpop.f32.mrf.mxu3  ;;  %v4939_v31 = vadd.f32 %v4938_v17, %v11481_v34  ;;  %v5027_v46 = vpop.f32.mrf.mxu1 }
 0x722   :  { %v3733_v45 = vadd.f32 %v3732_v14, %v3644_v8 }
 0x723   :  { %v11486_v59 = vadd.f32 %v5027_v46, %v4939_v31  ;;  %3961 = vmatmul.bf16.gmra.mxu2 %v13453_v2  ;;  %4977 = vmatmul.bf16.gmra.mxu0 %v13454_v44  ;;  %v7437_v2 = vor.u32 %v7843_v42, %v7436_v10 }
 0x724   :  { %v3822_v53 = vadd.f32 %v3821_v36, %v3733_v45  ;;  %5066 = vmatmul.bf16.gmra.mxu1 %v13456_v4  ;;  %v7500_v36 = vld [vmem:[%s12686_s2 + $0x1a0] sm:$0xf] }
 0x725   :  { %v7501_v20 = vor.u32 %v7859_v24, %v7500_v36  ;;  %5112 = vmatpush.bf16.msra.mxu2 %v7437_v2 }
 0x726   :  { %7282 = vmatmul.msk.bf16.gmra.mxu3 %vm1550_vm0, %v13455_v22  ;;  %v11505_v63 = vadd.f32 %v3910_v11, %v3822_v53  ;;  %v3922_v43 = vpop.f32.mrf.mxu2 }
 0x727   :  { %v3923_v1 = vadd.f32 %v3922_v43, %v11122_v12  ;;  %5201 = vmatpush.bf16.msra.mxu3 %v7501_v20  ;;  %v13458_v43 = vld [vmem:[#allocation82_spill] sm:$0xff]  ;;  %v13459_v20 = vld [vmem:[#allocation124_spill] sm:$0xff] }
 0x728   :  { %v4940_v8 = vpop.f32.mrf.mxu0 }
 0x729   :  { %v4011_v23 = vpop.f32.mrf.mxu3  ;;  %v4941_v17 = vadd.f32 %v4940_v8, %v11481_v34  ;;  %v5029_v45 = vpop.f32.mrf.mxu1 }
 0x72a   :  { %v4012_v14 = vadd.f32 %v4011_v23, %v3923_v1  ;;  %v13460_v1 = vld [vmem:[#allocation71_spill] sm:$0xff] }
 0x72b   :  { %v11509_v31 = vadd.f32 %v5029_v45, %v4941_v17 }
 0x72c   :  { %v4222_v53 = vmul.f32 0.1, %v4012_v14  ;;  %vm4094_vm7 = vcmp.gt.f32.partialorder %v4012_v14, 0.0 }
 0x72e   :  { %v3924_v46 = vpop.f32.mrf.mxu2  ;;  %v4350_v23 = vsel %vm4094_vm7, %v4012_v14, %v4222_v53  ;;  %v7342_v14 = vld [vmem:[%s12686_s2 + $0x68] sm:$0xf0] }
 0x72f   :  { %v3925_v22 = vadd.f32 %v3924_v46, %v11130_v49  ;;  %v13461_v49 = vld [vmem:[#allocation5_spill] sm:$0xff]  ;;  %v7406_v53 = vld [vmem:[%s12686_s2 + $0xe8] sm:$0xf0] }
 0x730   :  { %v4943_v11 = vpop.f32.mrf.mxu0 }
 0x731   :  { %v4013_v10 = vpop.f32.mrf.mxu3  ;;  %v4944_v36 = vadd.f32 %v4943_v11, %v11481_v34  ;;  %v5032_v12 = vpop.f32.mrf.mxu1 }
 0x732   :  { %v4014_v42 = vadd.f32 %v4013_v10, %v3925_v22 }
 0x733   :  { %v11513_v24 = vadd.f32 %v5032_v12, %v4944_v36  ;;  %3966 = vmatmul.bf16.gmra.mxu2 %v13458_v43  ;;  %4982 = vmatmul.bf16.gmra.mxu0 %v13459_v20 }
 0x734   :  { %vm4098_vm8 = vcmp.gt.f32.partialorder %v4014_v42, 0.0  ;;  %v4226_v2 = vmul.f32 0.1, %v4014_v42  ;;  %5071 = vmatmul.bf16.gmra.mxu1 %v13461_v49  ;;  %v13464_v49 = vld [vmem:[#allocation87_spill] sm:$0xff] }
 0x735   :  { %13457 = vst [vmem:[#allocation48_spill] sm:$0xff] %v11513_v24 }
 0x736   :  { %7283 = vmatmul.msk.bf16.gmra.mxu3 %vm1550_vm0, %v13460_v1  ;;  %v4354_v8 = vsel %vm4098_vm8, %v4014_v42, %v4226_v2  ;;  %v3927_v45 = vpop.f32.mrf.mxu2  ;;  %v7818_v1 = vld [vmem:[%s12686_s2 + $0x64] sm:$0xf] }
 0x737   :  { %v11520_v17 = vpack.c.bf16 %v4354_v8, %v4350_v23  ;;  %v3928_v46 = vadd.f32 %v3927_v45, %v11146_v16  ;;  %v7834_v16 = vld [vmem:[%s12686_s2 + $0xe4] sm:$0xf]  ;;  %v7345_v42 = vor.u32 %v7818_v1, %v7342_v14  ;;  %v13465_v1 = vld [vmem:[#allocation125_spill] sm:$0xff] }
 0x738   :  { %v4945_v10 = vpop.f32.mrf.mxu0  ;;  %v7409_v2 = vor.u32 %v7834_v16, %v7406_v53  ;;  %v13466_v14 = vld [vmem:[#allocation77_spill] sm:$0xff]  ;;  %v7841_v53 = vld [vmem:[%s12686_s2 + $0x114] sm:$0xf0] }
 0x739   :  { %v4016_v22 = vpop.f32.mrf.mxu3  ;;  %v4946_v36 = vadd.f32 %v4945_v10, %v11481_v34  ;;  %v5034_v12 = vpop.f32.mrf.mxu1  ;;  %5286 = vmatpush.bf16.msra.mxu0 %v7345_v42  ;;  %v7428_v16 = vld [vmem:[%s12686_s2 + $0x110] sm:$0xf] }
 0x73a   :  { %v4017_v11 = vadd.f32 %v4016_v22, %v3928_v46  ;;  %5375 = vmatpush.bf16.msra.mxu1 %v7409_v2  ;;  %v7492_v42 = vld [vmem:[%s12686_s2 + $0x190] sm:$0xf]  ;;  %v7857_v2 = vld [vmem:[%s12686_s2 + $0x194] sm:$0xf0] }
 0x73b   :  { %v11524_v43 = vadd.f32 %v5034_v12, %v4946_v36 }
 0x73c   :  { %v4230_v22 = vmul.f32 0.1, %v4017_v11  ;;  %vm4102_vm9 = vcmp.gt.f32.partialorder %v4017_v11, 0.0 }
 0x73d   :  { %13462 = vst [vmem:[#allocation4_spill] sm:$0xff] %v11524_v43 }
 0x73e   :  { %v3929_v23 = vpop.f32.mrf.mxu2 }
 0x73f   :  { %v3930_v8 = vadd.f32 %v3929_v23, %v11160_v27  ;;  %v13467_v27 = vld [vmem:[#allocation7_spill] sm:$0xff]  ;;  %v4358_v23 = vsel %vm4102_vm9, %v4017_v11, %v4230_v22 }
 0x740   :  { %v4948_v46 = vpop.f32.mrf.mxu0 }
 0x741   :  { %v4018_v45 = vpop.f32.mrf.mxu3  ;;  %v4949_v36 = vadd.f32 %v4948_v46, %v11481_v34  ;;  %v5037_v12 = vpop.f32.mrf.mxu1  ;;  %v7493_v46 = vor.u32 %v7857_v2, %v7492_v42 }
 0x742   :  { %v4019_v10 = vadd.f32 %v4018_v45, %v3930_v8 }
 0x743   :  { %v11540_v24 = vadd.f32 %v5037_v12, %v4949_v36  ;;  %3971 = vmatmul.bf16.gmra.mxu2 %v13464_v49  ;;  %4987 = vmatmul.bf16.gmra.mxu0 %v13465_v1  ;;  %v7429_v49 = vor.u32 %v7841_v53, %v7428_v16 }
 0x744   :  { %vm4106_vm10 = vcmp.gt.f32.partialorder %v4019_v10, 0.0  ;;  %v4234_v43 = vmul.f32 0.1, %v4019_v10  ;;  %5076 = vmatmul.bf16.gmra.mxu1 %v13467_v27  ;;  %5202 = vmatpush.bf16.msra.mxu3 %v7493_v46 }
 0x745   :  { %13463 = vst [vmem:[#allocation8_spill] sm:$0xff] %v11540_v24  ;;  %5113 = vmatpush.bf16.msra.mxu2 %v7429_v49 }
 0x746   :  { %7284 = vmatmul.msk.bf16.gmra.mxu3 %vm1550_vm0, %v13466_v14  ;;  %v4362_v8 = vsel %vm4106_vm10, %v4019_v10, %v4234_v43  ;;  %v3932_v45 = vpop.f32.mrf.mxu2 }
 0x747   :  { %v11559_v36 = vpack.c.bf16 %v4362_v8, %v4358_v23  ;;  %v3933_v12 = vadd.f32 %v3932_v45, %v11164_v47 }
 0x748   :  { %v4950_v24 = vpop.f32.mrf.mxu0 }
 0x749   :  { %v4021_v14 = vpop.f32.mrf.mxu3  ;;  %v4951_v1 = vadd.f32 %v4950_v24, %v11481_v34  ;;  %v5039_v16 = vpop.f32.mrf.mxu1  ;;  %v13468_v24 = vld [vmem:[#allocation126_spill] sm:$0xff] }
 0x74a   :  { %v4022_v27 = vadd.f32 %v4021_v14, %v3933_v12 }
 0x74b   :  { %v11563_v53 = vadd.f32 %v5039_v16, %v4951_v1 }
 0x74c   :  { %v4238_v10 = vmul.f32 0.1, %v4022_v27  ;;  %vm4110_vm11 = vcmp.gt.f32.partialorder %v4022_v27, 0.0 }
 0x74e   :  { %v3934_v20 = vpop.f32.mrf.mxu2 }
 0x74f   :  { %v3935_v11 = vadd.f32 %v3934_v20, %v11172_v5  ;;  %v13469_v5 = vld [vmem:[#allocation9_spill] sm:$0xff]  ;;  %v4366_v20 = vsel %vm4110_vm11, %v4022_v27, %v4238_v10  ;;  %v7334_v27 = vld [vmem:[%s12686_s2 + $0x58] sm:$0xf0] }
 0x750   :  { %v4953_v22 = vpop.f32.mrf.mxu0 }
 0x751   :  { %v4023_v43 = vpop.f32.mrf.mxu3  ;;  %v4954_v2 = vadd.f32 %v4953_v22, %v11481_v34  ;;  %v5042_v47 = vpop.f32.mrf.mxu1  ;;  %v7398_v22 = vld [vmem:[%s12686_s2 + $0xd8] sm:$0xf0] }
 0x752   :  { %v4024_v42 = vadd.f32 %v4023_v43, %v3935_v11 }
 0x753   :  { %v11567_v23 = vadd.f32 %v5042_v47, %v4954_v2  ;;  %3976 = vmatmul.bf16.gmra.mxu2 %v13204_v32  ;;  %4992 = vmatmul.bf16.gmra.mxu0 %v13468_v24 }
 0x754   :  { %vm4114_vm12 = vcmp.gt.f32.partialorder %v4024_v42, 0.0  ;;  %v4242_v49 = vmul.f32 0.1, %v4024_v42  ;;  %5081 = vmatmul.bf16.gmra.mxu1 %v13469_v5 }
 0x756   :  { %7285 = vmatmul.msk.bf16.gmra.mxu3 %vm1550_vm0, %v13206_v21  ;;  %v4370_v1 = vsel %vm4114_vm12, %v4024_v42, %v4242_v49  ;;  %v3937_v8 = vpop.f32.mrf.mxu2  ;;  %v7816_v21 = vld [vmem:[%s12686_s2 + $0x54] sm:$0xf] }
 0x757   :  { %v11574_v45 = vpack.c.bf16 %v4370_v1, %v4366_v20  ;;  %v3938_v46 = vadd.f32 %v3937_v8, %v11188_v19  ;;  %v7832_v19 = vld [vmem:[%s12686_s2 + $0xd4] sm:$0xf]  ;;  %v7337_v10 = vor.u32 %v7816_v21, %v7334_v27  ;;  %v7420_v21 = vld [vmem:[%s12686_s2 + $0x100] sm:$0xf]  ;;  %v7839_v27 = vld [vmem:[%s12686_s2 + $0x104] sm:$0xf0] }
 0x758   :  { %v4955_v14 = vpop.f32.mrf.mxu0  ;;  %v7401_v42 = vor.u32 %v7832_v19, %v7398_v22  ;;  %v7484_v19 = vld [vmem:[%s12686_s2 + $0x180] sm:$0xf]  ;;  %v7855_v22 = vld [vmem:[%s12686_s2 + $0x184] sm:$0xf0] }
 0x759   :  { %v4026_v12 = vpop.f32.mrf.mxu3  ;;  %v4956_v11 = vadd.f32 %v4955_v14, %v11481_v34  ;;  %v5044_v32 = vpop.f32.mrf.mxu1  ;;  %5287 = vmatpush.bf16.msra.mxu0 %v7337_v10 }
 0x75a   :  { %v4027_v16 = vadd.f32 %v4026_v12, %v3938_v46  ;;  %5376 = vmatpush.bf16.msra.mxu1 %v7401_v42 }
 0x75b   :  { %v11578_v43 = vadd.f32 %v5044_v32, %v4956_v11  ;;  %v13471_v32 = vld [vmem:[#allocation127_spill] sm:$0xff] }
 0x75c   :  { %v4246_v1 = vmul.f32 0.1, %v4027_v16  ;;  %vm4118_vm13 = vcmp.gt.f32.partialorder %v4027_v16, 0.0 }
 0x75e   :  { %v3939_v2 = vpop.f32.mrf.mxu2 }
 0x75f   :  { %v3940_v47 = vadd.f32 %v3939_v2, %v11202_v35  ;;  %v13472_v35 = vld [vmem:[#allocation11_spill] sm:$0xff]  ;;  %v7485_v2 = vor.u32 %v7855_v22, %v7484_v19 }
 0x760   :  { %v4958_v20 = vpop.f32.mrf.mxu0 }
 0x761   :  { %v4028_v49 = vpop.f32.mrf.mxu3  ;;  %v4959_v46 = vadd.f32 %v4958_v20, %v11481_v34  ;;  %v5047_v12 = vpop.f32.mrf.mxu1  ;;  %5203 = vmatpush.bf16.msra.mxu3 %v7485_v2 }
 0x762   :  { %v4029_v8 = vadd.f32 %v4028_v49, %v3940_v47 }
 0x763   :  { %v11594_v11 = vadd.f32 %v5047_v12, %v4959_v46  ;;  %3981 = vmatmul.bf16.gmra.mxu2 %v13332_v3  ;;  %4997 = vmatmul.bf16.gmra.mxu0 %v13471_v32  ;;  %v7421_v3 = vor.u32 %v7839_v27, %v7420_v21 }
 0x764   :  { %vm4122_vm14 = vcmp.gt.f32.partialorder %v4029_v8, 0.0  ;;  %v4250_v14 = vmul.f32 0.1, %v4029_v8  ;;  %5086 = vmatmul.bf16.gmra.mxu1 %v13472_v35 }
 0x765   :  { %13470 = vst [vmem:[#allocation21_spill] sm:$0xff] %v11594_v11  ;;  %5114 = vmatpush.bf16.msra.mxu2 %v7421_v3 }
 0x766   :  { %7286 = vmatmul.msk.bf16.gmra.mxu3 %vm1550_vm0, %v9757_v7  ;;  %v4374_v7 = vsel %vm4118_vm13, %v4027_v16, %v4246_v1  ;;  %v4378_v10 = vsel %vm4122_vm14, %v4029_v8, %v4250_v14  ;;  %v3942_v42 = vpop.f32.mrf.mxu2  ;;  %v7814_v16 = vld [vmem:[%s12686_s2 + $0x44] sm:$0xf]  ;;  %v7326_v1 = vld [vmem:[%s12686_s2 + $0x48] sm:$0xf0] }
 0x767   :  { %v11613_v47 = vpack.c.bf16 %v4378_v10, %v4374_v7  ;;  %v3943_v49 = vadd.f32 %v3942_v42, %v11206_v9  ;;  %v7830_v9 = vld [vmem:[%s12686_s2 + $0xc4] sm:$0xf]  ;;  %v7329_v19 = vor.u32 %v7814_v16, %v7326_v1  ;;  %v7382_v1 = vld [vmem:[%s12686_s2 + $0xb8] sm:$0xf0] }
 0x768   :  { %v4960_v46 = vpop.f32.mrf.mxu0 }
 0x769   :  { %v4031_v20 = vpop.f32.mrf.mxu3  ;;  %v4961_v11 = vadd.f32 %v4960_v46, %v11481_v34  ;;  %v5049_v21 = vpop.f32.mrf.mxu1  ;;  %5288 = vmatpush.bf16.msra.mxu0 %v7329_v19 }
 0x76a   :  { %v4032_v12 = vadd.f32 %v4031_v20, %v3943_v49  ;;  %v7828_v49 = vld [vmem:[%s12686_s2 + $0xb4] sm:$0xf] }
 0x76b   :  { %v11617_v27 = vadd.f32 %v5049_v21, %v4961_v11  ;;  %v7390_v11 = vld [vmem:[%s12686_s2 + $0xc8] sm:$0xf0] }
 0x76c   :  { %v7393_v22 = vor.u32 %v7830_v9, %v7390_v11  ;;  %vm4126_vm15 = vcmp.gt.f32.partialorder %v4032_v12, 0.0  ;;  %v4254_v7 = vmul.f32 0.1, %v4032_v12  ;;  %v13474_v21 = vld [vmem:[#allocation128_spill] sm:$0xff]  ;;  %v13475_v9 = vld [vmem:[#allocation97_spill] sm:$0xff] }
 0x76e   :  { %v3944_v35 = vpop.f32.mrf.mxu2  ;;  %5377 = vmatpush.bf16.msra.mxu1 %v7393_v22  ;;  %v4382_v19 = vsel %vm4126_vm15, %v4032_v12, %v4254_v7  ;;  %v7310_v22 = vld [vmem:[%s12686_s2 + $0x28] sm:$0xf0] }
 0x76f   :  { %v3945_v8 = vadd.f32 %v3944_v35, %v11238_v58  ;;  %v7812_v58 = vld [vmem:[%s12686_s2 + $0x34] sm:$0xf]  ;;  %v7318_v35 = vld [vmem:[%s12686_s2 + $0x38] sm:$0xf0] }
 0x770   :  { %v4963_v3 = vpop.f32.mrf.mxu0  ;;  %v7321_v16 = vor.u32 %v7812_v58, %v7318_v35 }
 0x771   :  { %v4033_v14 = vpop.f32.mrf.mxu3  ;;  %v4964_v42 = vadd.f32 %v4963_v3, %v11481_v34  ;;  %v5052_v2 = vpop.f32.mrf.mxu1 }
 0x772   :  { %v4034_v10 = vadd.f32 %v4033_v14, %v3945_v8  ;;  %v13476_v8 = vld [vmem:[#allocation15_spill] sm:$0xff]  ;;  %v7385_v14 = vor.u32 %v7828_v49, %v7382_v1  ;;  %5289 = vmatpush.bf16.msra.mxu0 %v7321_v16 }
 0x773   :  { %v11642_v46 = vadd.f32 %v5052_v2, %v4964_v42  ;;  %3986 = vmatmul.bf16.gmra.mxu2 %v13336_v61  ;;  %5002 = vmatmul.bf16.gmra.mxu0 %v13474_v21  ;;  %v7810_v61 = vld [vmem:[%s12686_s2 + $0x24] sm:$0xf] }
 0x774   :  { %vm4130_vm1 = vcmp.gt.f32.partialorder %v4034_v10, 0.0  ;;  %v4258_v20 = vmul.f32 0.1, %v4034_v10  ;;  %5091 = vmatmul.bf16.gmra.mxu1 %v13476_v8  ;;  %v7826_v42 = vld [vmem:[%s12686_s2 + $0xa4] sm:$0xf]  ;;  %v7313_v7 = vor.u32 %v7810_v61, %v7310_v22 }
 0x775   :  { %13473 = vst [vmem:[#allocation53_spill] sm:$0xff] %v11642_v46  ;;  %5378 = vmatpush.bf16.msra.mxu1 %v7385_v14  ;;  %v7824_v14 = vld [vmem:[%s12686_s2 + $0x94] sm:$0xf] }
 0x776   :  { %7287 = vmatmul.msk.bf16.gmra.mxu3 %vm1550_vm0, %v13475_v9  ;;  %v4386_v11 = vsel %vm4130_vm1, %v4034_v10, %v4258_v20  ;;  %v3947_v3 = vpop.f32.mrf.mxu2  ;;  %v7374_v10 = vld [vmem:[%s12686_s2 + $0xa8] sm:$0xf0]  ;;  %5290 = vmatpush.bf16.msra.mxu0 %v7313_v7  ;;  %v7808_v9 = vld [vmem:[%s12686_s2 + $0x14] sm:$0xf] }
 0x777   :  { %v11662_v2 = vpack.c.bf16 %v4386_v11, %v4382_v19  ;;  %v3948_v58 = vadd.f32 %v3947_v3, %v11266_v26  ;;  %v7377_v49 = vor.u32 %v7826_v42, %v7374_v10  ;;  %v7302_v26 = vld [vmem:[%s12686_s2 + $0x18] sm:$0xf0]  ;;  %v7806_v42 = vld [vmem:[%s12686_s2 + $0x4] sm:$0xf] }
 0x778   :  { %v4965_v35 = vpop.f32.mrf.mxu0  ;;  %v7305_v11 = vor.u32 %v7808_v9, %v7302_v26  ;;  %v7366_v3 = vld [vmem:[%s12686_s2 + $0x98] sm:$0xf0] }
 0x779   :  { %13477 = vst [vmem:[#allocation51_spill] sm:$0xff] %v11662_v2  ;;  %v4036_v12 = vpop.f32.mrf.mxu3  ;;  %v4966_v16 = vadd.f32 %v4965_v35, %v11481_v34  ;;  %v5054_v1 = vpop.f32.mrf.mxu1  ;;  %5379 = vmatpush.bf16.msra.mxu1 %v7377_v49  ;;  %v7369_v61 = vor.u32 %v7824_v14, %v7366_v3  ;;  %v7358_v49 = vld [vmem:[%s12686_s2 + $0x88] sm:$0xf0] }
 0x77a   :  { %v4037_v20 = vadd.f32 %v4036_v12, %v3948_v58  ;;  %5291 = vmatpush.bf16.msra.mxu0 %v7305_v11  ;;  %v7294_v58 = vld [vmem:[%s12686_s2 + $0x8] sm:$0xf0]  ;;  %v7822_v12 = vld [vmem:[%s12686_s2 + $0x84] sm:$0xf] }
 0x77b   :  { %v11678_v19 = vadd.f32 %v5054_v1, %v4966_v16  ;;  %v7297_v35 = vor.u32 %v7806_v42, %v7294_v58  ;;  %v7361_v1 = vor.u32 %v7822_v12, %v7358_v49  ;;  %v13482_v42 = vld [vmem:[#allocation119_spill] sm:$0xff]  ;;  %v7852_v12 = vld [vmem:[%s12686_s2 + $0x174] sm:$0xf]  ;;  %v7542_v49 = vld [vmem:[%s12686_s2 + $0x1f8] sm:$0xf0] }
 0x77c   :  { %v4262_v9 = vmul.f32 0.1, %v4037_v20  ;;  %vm4134_vm2 = vcmp.gt.f32.partialorder %v4037_v20, 0.0  ;;  %v13483_v58 = vld [vmem:[#allocation19_spill] sm:$0xff] }
 0x77d   :  { %13478 = vst [vmem:[#allocation52_spill] sm:$0xff] %v11678_v19  ;;  %5380 = vmatpush.bf16.msra.mxu1 %v7369_v61 }
 0x77e   :  { %v3949_v22 = vpop.f32.mrf.mxu2  ;;  %5292 = vmatpush.bf16.msra.mxu0 %v7297_v35 }
 0x77f   :  { %v3950_v7 = vadd.f32 %v3949_v22, %v11298_v18  ;;  %v13480_v18 = vld [vmem:[#allocation106_spill] sm:$0xff]  ;;  %v13481_v22 = vld [vmem:[#allocation129_spill] sm:$0xff] }
 0x780   :  { %v4968_v16 = vpop.f32.mrf.mxu0 }
 0x781   :  { %v4038_v10 = vpop.f32.mrf.mxu3  ;;  %v4969_v14 = vadd.f32 %v4968_v16, %v11481_v34  ;;  %v5057_v11 = vpop.f32.mrf.mxu1  ;;  %5381 = vmatpush.bf16.msra.mxu1 %v7361_v1  ;;  %v4390_v16 = vsel %vm4134_vm2, %v4037_v20, %v4262_v9 }
 0x782   :  { %v4039_v26 = vadd.f32 %v4038_v10, %v3950_v7  ;;  %v7478_v7 = vld [vmem:[%s12686_s2 + $0x178] sm:$0xf0]  ;;  %v7868_v10 = vld [vmem:[%s12686_s2 + $0x1f4] sm:$0xf] }
 0x783   :  { %v11697_v61 = vadd.f32 %v5057_v11, %v4969_v14  ;;  %3991 = vmatmul.bf16.gmra.mxu2 %v13480_v18  ;;  %5007 = vmatmul.bf16.gmra.mxu0 %v13481_v22  ;;  %v7481_v35 = vor.u32 %v7852_v12, %v7478_v7  ;;  %v7545_v11 = vor.u32 %v7868_v10, %v7542_v49 }
 0x784   :  { %vm4138_vm3 = vcmp.gt.f32.partialorder %v4039_v26, 0.0  ;;  %v4266_v3 = vmul.f32 0.1, %v4039_v26  ;;  %5096 = vmatmul.bf16.gmra.mxu1 %v13483_v58 }
 0x785   :  { %13479 = vst [vmem:[#allocation25_spill] sm:$0xff] %v11697_v61  ;;  %5463 = vmatpush.bf16.msrb.mxu2 %v7481_v35  ;;  %5552 = vmatpush.bf16.msrb.mxu3 %v7545_v11 }
 0x786   :  { %7288 = vmatmul.msk.bf16.gmra.mxu3 %vm1550_vm0, %v13482_v42  ;;  %v4394_v1 = vsel %vm4138_vm3, %v4039_v26, %v4266_v3  ;;  %v3952_v14 = vpop.f32.mrf.mxu2 }
 0x787   :  { %v11716_v18 = vpack.c.bf16 %v4394_v1, %v4390_v16  ;;  %v3953_v42 = vadd.f32 %v3952_v14, %v11302_v50 }
 0x788   :  { %v4970_v58 = vpop.f32.mrf.mxu0 }
 0x789   :  { %v4041_v61 = vpop.f32.mrf.mxu3  ;;  %v4971_v19 = vadd.f32 %v4970_v58, %v11481_v34  ;;  %v5059_v12 = vpop.f32.mrf.mxu1  ;;  %v13486_v58 = vld [vmem:[#allocation130_spill] sm:$0xff] }
 0x78a   :  { %v4042_v22 = vadd.f32 %v4041_v61, %v3953_v42  ;;  %v13485_v61 = vld [vmem:[#allocation110_spill] sm:$0xff] }
 0x78b   :  { %v11720_v7 = vadd.f32 %v5059_v12, %v4971_v19  ;;  %v13487_v19 = vld [vmem:[#allocation121_spill] sm:$0xff] }
 0x78c   :  { %v4270_v3 = vmul.f32 0.1, %v4042_v22  ;;  %vm4142_vm4 = vcmp.gt.f32.partialorder %v4042_v22, 0.0 }
 0x78e   :  { %v3954_v46 = vpop.f32.mrf.mxu2 }
 0x78f   :  { %v3955_v20 = vadd.f32 %v3954_v46, %v11310_v60  ;;  %v13488_v60 = vld [vmem:[#allocation23_spill] sm:$0xff]  ;;  %v4398_v46 = vsel %vm4142_vm4, %v4042_v22, %v4270_v3 }
 0x790   :  { %v4973_v26 = vpop.f32.mrf.mxu0 }
 0x791   :  { %v4043_v9 = vpop.f32.mrf.mxu3  ;;  %v4974_v49 = vadd.f32 %v4973_v26, %v11481_v34  ;;  %v5062_v50 = vpop.f32.mrf.mxu1 }
 0x792   :  { %v4044_v10 = vadd.f32 %v4043_v9, %v3955_v20 }
 0x793   :  { %v11724_v16 = vadd.f32 %v5062_v50, %v4974_v49  ;;  %3996 = vmatmul.bf16.gmra.mxu2 %v13485_v61  ;;  %5012 = vmatmul.bf16.gmra.mxu0 %v13486_v58 }
 0x794   :  { %vm4146_vm5 = vcmp.gt.f32.partialorder %v4044_v10, 0.0  ;;  %v4274_v35 = vmul.f32 0.1, %v4044_v10  ;;  %5101 = vmatmul.bf16.gmra.mxu1 %v13488_v60 }
 0x795   :  { %13484 = vst [vmem:[#allocation57_spill] sm:$0xff] %v11724_v16 }
 0x796   :  { %7289 = vmatmul.msk.bf16.gmra.mxu3 %vm1550_vm0, %v13487_v19  ;;  %v4402_v1 = vsel %vm4146_vm5, %v4044_v10, %v4274_v35  ;;  %v3957_v14 = vpop.f32.mrf.mxu2 }
 0x797   :  { %v11731_v11 = vpack.c.bf16 %v4402_v1, %v4398_v46  ;;  %v3958_v42 = vadd.f32 %v3957_v14, %v11314_v48  ;;  %v13491_v1 = vld [vmem:[#allocation32_spill] sm:$0xff] }
 0x798   :  { %v4975_v20 = vpop.f32.mrf.mxu0 }
 0x799   :  { %13489 = vst [vmem:[#allocation55_spill] sm:$0xff] %v11731_v11  ;;  %v4046_v12 = vpop.f32.mrf.mxu3  ;;  %v4976_v26 = vadd.f32 %v4975_v20, %v11481_v34  ;;  %v5064_v49 = vpop.f32.mrf.mxu1 }
 0x79a   :  { %v4047_v9 = vadd.f32 %v4046_v12, %v3958_v42 }
 0x79b   :  { %v11735_v50 = vadd.f32 %v5064_v49, %v4976_v26 }
 0x79c   :  { %v4278_v22 = vmul.f32 0.1, %v4047_v9  ;;  %vm4150_vm0 = vcmp.gt.f32.partialorder %v4047_v9, 0.0 }
 0x79e   :  { %v3959_v61 = vpop.f32.mrf.mxu2  ;;  %v4406_v42 = vsel %vm4150_vm0, %v4047_v9, %v4278_v22 }
 0x79f   :  { %v3960_v19 = vadd.f32 %v3959_v61, %v11335_v54  ;;  %v7850_v54 = vld [vmem:[%s12686_s2 + $0x164] sm:$0xf] }
 0x7a0   :  { %v4978_v60 = vpop.f32.mrf.mxu0 }
 0x7a1   :  { %v4048_v16 = vpop.f32.mrf.mxu3  ;;  %v4979_v10 = vadd.f32 %v4978_v60, %v11481_v34  ;;  %v5067_v35 = vpop.f32.mrf.mxu1  ;;  %v7866_v60 = vld [vmem:[%s12686_s2 + $0x1e4] sm:$0xf] }
 0x7a2   :  { %v4049_v3 = vadd.f32 %v4048_v16, %v3960_v19  ;;  %v7470_v16 = vld [vmem:[%s12686_s2 + $0x168] sm:$0xf0] }
 0x7a3   :  { %v11739_v46 = vadd.f32 %v5067_v35, %v4979_v10  ;;  %5115 = vmatmul.bf16.vlgmr.msra.gmra.mxu2 %v13491_v1  ;;  %5293 = vmatmul.bf16.vlgmr.msra.gmra.mxu0 %v13418_v0  ;;  %v7473_v14 = vor.u32 %v7850_v54, %v7470_v16  ;;  %v7534_v0 = vld [vmem:[%s12686_s2 + $0x1e8] sm:$0xf0] }
 0x7a4   :  { %vm4154_vm6 = vcmp.gt.f32.partialorder %v4049_v3, 0.0  ;;  %v4282_v48 = vmul.f32 0.1, %v4049_v3  ;;  %5382 = vmatmul.bf16.vlgmr.msra.gmra.mxu1 %v13420_v28  ;;  %v7537_v20 = vor.u32 %v7866_v60, %v7534_v0 }
 0x7a5   :  { %13490 = vst [vmem:[#allocation56_spill] sm:$0xff] %v11739_v46  ;;  %5464 = vmatpush.bf16.msrb.mxu2 %v7473_v14 }
 0x7a6   :  { %5204 = vmatmul.bf16.vlgmr.msra.gmra.mxu3 %v11520_v17  ;;  %v4410_v12 = vsel %vm4154_vm6, %v4049_v3, %v4282_v48  ;;  %v3962_v28 = vpop.f32.mrf.mxu2 }
 0x7a7   :  { %v11757_v26 = vpack.c.bf16 %v4410_v12, %v4406_v42  ;;  %v3963_v49 = vadd.f32 %v3962_v28, %v11339_v57  ;;  %5553 = vmatpush.bf16.msrb.mxu3 %v7537_v20  ;;  %v13492_v12 = vld [vmem:[#allocation80_spill] sm:$0xff] }
 0x7a8   :  { %v4980_v19 = vpop.f32.mrf.mxu0 }
 0x7a9   :  { %v4051_v61 = vpop.f32.mrf.mxu3  ;;  %v4981_v35 = vadd.f32 %v4980_v19, %v11481_v34  ;;  %v5069_v54 = vpop.f32.mrf.mxu1 }
 0x7aa   :  { %v4052_v10 = vadd.f32 %v4051_v61, %v3963_v49 }
 0x7ab   :  { %v11761_v16 = vadd.f32 %v5069_v54, %v4981_v35 }
 0x7ac   :  { %v4286_v48 = vmul.f32 0.1, %v4052_v10  ;;  %vm4158_vm7 = vcmp.gt.f32.partialorder %v4052_v10, 0.0 }
 0x7ae   :  { %v3964_v46 = vpop.f32.mrf.mxu2 }
 0x7af   :  { %v3965_v9 = vadd.f32 %v3964_v46, %v11348_v37  ;;  %v4414_v37 = vsel %vm4158_vm7, %v4052_v10, %v4286_v48 }
 0x7b0   :  { %v4983_v3 = vpop.f32.mrf.mxu0 }
 0x7b1   :  { %v4053_v22 = vpop.f32.mrf.mxu3  ;;  %v4984_v0 = vadd.f32 %v4983_v3, %v11481_v34  ;;  %v5072_v57 = vpop.f32.mrf.mxu1 }
 0x7b2   :  { %v4054_v60 = vadd.f32 %v4053_v22, %v3965_v9 }
 0x7b3   :  { %v11765_v42 = vadd.f32 %v5072_v57, %v4984_v0  ;;  %5120 = vmatmul.bf16.gmra.mxu2 %v13492_v12  ;;  %5298 = vmatmul.bf16.gmra.mxu0 %v13422_v52 }
 0x7b4   :  { %vm4162_vm8 = vcmp.gt.f32.partialorder %v4054_v60, 0.0  ;;  %v4290_v14 = vmul.f32 0.1, %v4054_v60  ;;  %5387 = vmatmul.bf16.gmra.mxu1 %v13424_v39 }
 0x7b6   :  { %5209 = vmatmul.bf16.gmra.mxu3 %v11559_v36  ;;  %v4418_v46 = vsel %vm4162_vm8, %v4054_v60, %v4290_v14  ;;  %v3967_v28 = vpop.f32.mrf.mxu2 }
 0x7b7   :  { %v11771_v20 = vpack.c.bf16 %v4418_v46, %v4414_v37  ;;  %v3968_v49 = vadd.f32 %v3967_v28, %v11352_v38  ;;  %v13495_v37 = vld [vmem:[#allocation132_spill] sm:$0xff]  ;;  %v13496_v46 = vld [vmem:[#allocation91_spill] sm:$0xff]  ;;  %v7462_v28 = vld [vmem:[%s12686_s2 + $0x158] sm:$0xf0] }
 0x7b8   :  { %v4985_v19 = vpop.f32.mrf.mxu0 }
 0x7b9   :  { %13493 = vst [vmem:[#allocation12_spill] sm:$0xff] %v11771_v20  ;;  %v4056_v61 = vpop.f32.mrf.mxu3  ;;  %v4986_v54 = vadd.f32 %v4985_v19, %v11481_v34  ;;  %v5074_v9 = vpop.f32.mrf.mxu1 }
 0x7ba   :  { %v4057_v35 = vadd.f32 %v4056_v61, %v3968_v49  ;;  %v7864_v49 = vld [vmem:[%s12686_s2 + $0x1d4] sm:$0xf] }
 0x7bb   :  { %v11775_v22 = vadd.f32 %v5074_v9, %v4986_v54 }
 0x7bc   :  { %v4294_v10 = vmul.f32 0.1, %v4057_v35  ;;  %vm4166_vm9 = vcmp.gt.f32.partialorder %v4057_v35, 0.0 }
 0x7be   :  { %v3969_v52 = vpop.f32.mrf.mxu2  ;;  %v4422_v19 = vsel %vm4166_vm9, %v4057_v35, %v4294_v10 }
 0x7bf   :  { %v3970_v3 = vadd.f32 %v3969_v52, %v11373_v62  ;;  %v7848_v62 = vld [vmem:[%s12686_s2 + $0x154] sm:$0xf] }
 0x7c0   :  { %v4988_v39 = vpop.f32.mrf.mxu0  ;;  %v7465_v61 = vor.u32 %v7848_v62, %v7462_v28 }
 0x7c1   :  { %v4058_v0 = vpop.f32.mrf.mxu3  ;;  %v4989_v60 = vadd.f32 %v4988_v39, %v11481_v34  ;;  %v5077_v57 = vpop.f32.mrf.mxu1 }
 0x7c2   :  { %v4059_v48 = vadd.f32 %v4058_v0, %v3970_v3  ;;  %5465 = vmatpush.bf16.msrb.mxu2 %v7465_v61 }
 0x7c3   :  { %v11779_v14 = vadd.f32 %v5077_v57, %v4989_v60  ;;  %5125 = vmatmul.bf16.gmra.mxu2 %v13495_v37  ;;  %5303 = vmatmul.bf16.gmra.mxu0 %v13426_v29  ;;  %v7526_v29 = vld [vmem:[%s12686_s2 + $0x1d8] sm:$0xf0] }
 0x7c4   :  { %vm4170_vm10 = vcmp.gt.f32.partialorder %v4059_v48, 0.0  ;;  %v4298_v38 = vmul.f32 0.1, %v4059_v48  ;;  %5392 = vmatmul.bf16.gmra.mxu1 %v13496_v46  ;;  %v7529_v52 = vor.u32 %v7864_v49, %v7526_v29 }
 0x7c5   :  { %13494 = vst [vmem:[#allocation16_spill] sm:$0xff] %v11779_v14 }
 0x7c6   :  { %5214 = vmatmul.bf16.gmra.mxu3 %v11574_v45  ;;  %v4426_v54 = vsel %vm4170_vm10, %v4059_v48, %v4298_v38  ;;  %v3972_v9 = vpop.f32.mrf.mxu2 }
 0x7c7   :  { %v11797_v3 = vpack.c.bf16 %v4426_v54, %v4422_v19  ;;  %v3973_v0 = vadd.f32 %v3972_v9, %v11377_v41  ;;  %5554 = vmatpush.bf16.msrb.mxu3 %v7529_v52  ;;  %v13499_v54 = vld [vmem:[#allocation96_spill] sm:$0xff] }
 0x7c8   :  { %v4990_v60 = vpop.f32.mrf.mxu0 }
 0x7c9   :  { %13497 = vst [vmem:[#allocation29_spill] sm:$0xff] %v11797_v3  ;;  %v4061_v39 = vpop.f32.mrf.mxu3  ;;  %v4991_v46 = vadd.f32 %v4990_v60, %v11481_v34  ;;  %v5079_v62 = vpop.f32.mrf.mxu1 }
 0x7ca   :  { %v4062_v57 = vadd.f32 %v4061_v39, %v3973_v0  ;;  %v13501_v0 = vld [vmem:[#allocation44_spill] sm:$0xff] }
 0x7cb   :  { %v11801_v28 = vadd.f32 %v5079_v62, %v4991_v46 }
 0x7cc   :  { %v4302_v38 = vmul.f32 0.1, %v4062_v57  ;;  %vm4174_vm11 = vcmp.gt.f32.partialorder %v4062_v57, 0.0 }
 0x7ce   :  { %v3974_v14 = vpop.f32.mrf.mxu2 }
 0x7cf   :  { %v3975_v35 = vadd.f32 %v3974_v14, %v11386_v13  ;;  %v4430_v13 = vsel %vm4174_vm11, %v4062_v57, %v4302_v38 }
 0x7d0   :  { %v4993_v48 = vpop.f32.mrf.mxu0 }
 0x7d1   :  { %v4063_v10 = vpop.f32.mrf.mxu3  ;;  %v4994_v29 = vadd.f32 %v4993_v48, %v11481_v34  ;;  %v5082_v41 = vpop.f32.mrf.mxu1 }
 0x7d2   :  { %v4064_v49 = vadd.f32 %v4063_v10, %v3975_v35 }
 0x7d3   :  { %v11805_v19 = vadd.f32 %v5082_v41, %v4994_v29  ;;  %5130 = vmatmul.bf16.gmra.mxu2 %v13499_v54  ;;  %5308 = vmatmul.bf16.gmra.mxu0 %v13430_v51  ;;  %v13502_v29 = vld [vmem:[#allocation17_spill] sm:$0xff] }
 0x7d4   :  { %vm4178_vm12 = vcmp.gt.f32.partialorder %v4064_v49, 0.0  ;;  %v4306_v61 = vmul.f32 0.1, %v4064_v49  ;;  %5397 = vmatmul.bf16.gmra.mxu1 %v13432_v40 }
 0x7d5   :  { %13498 = vst [vmem:[#allocation63_spill] sm:$0xff] %v11805_v19 }
 0x7d6   :  { %5219 = vmatmul.bf16.gmra.mxu3 %v11613_v47  ;;  %v4434_v14 = vsel %vm4178_vm12, %v4064_v49, %v4306_v61  ;;  %v3977_v9 = vpop.f32.mrf.mxu2 }
 0x7d7   :  { %v11811_v52 = vpack.c.bf16 %v4434_v14, %v4430_v13  ;;  %v3978_v39 = vadd.f32 %v3977_v9, %v13501_v0  ;;  %v13504_v9 = vld [vmem:[#allocation99_spill] sm:$0xff]  ;;  %v13505_v0 = vld [vmem:[#allocation118_spill] sm:$0xff] }
 0x7d8   :  { %v4995_v46 = vpop.f32.mrf.mxu0 }
 0x7d9   :  { %13500 = vst [vmem:[#allocation61_spill] sm:$0xff] %v11811_v52  ;;  %v4066_v60 = vpop.f32.mrf.mxu3  ;;  %v4996_v35 = vadd.f32 %v4995_v46, %v11481_v34  ;;  %v5084_v10 = vpop.f32.mrf.mxu1  ;;  %v7862_v46 = vld [vmem:[%s12686_s2 + $0x1c4] sm:$0xf] }
 0x7da   :  { %v4067_v62 = vadd.f32 %v4066_v60, %v3978_v39  ;;  %v13506_v39 = vld [vmem:[#allocation92_spill] sm:$0xff] }
 0x7db   :  { %v11815_v48 = vadd.f32 %v5084_v10, %v4996_v35  ;;  %v7454_v60 = vld [vmem:[%s12686_s2 + $0x148] sm:$0xf0] }
 0x7dc   :  { %v4310_v57 = vmul.f32 0.1, %v4067_v62  ;;  %vm4182_vm13 = vcmp.gt.f32.partialorder %v4067_v62, 0.0  ;;  %v7518_v10 = vld [vmem:[%s12686_s2 + $0x1c8] sm:$0xf0] }
 0x7de   :  { %v3979_v51 = vpop.f32.mrf.mxu2 }
 0x7df   :  { %v3980_v41 = vadd.f32 %v3979_v51, %v13502_v29  ;;  %v4438_v51 = vsel %vm4182_vm13, %v4067_v62, %v4310_v57 }
 0x7e0   :  { %v4998_v40 = vpop.f32.mrf.mxu0 }
 0x7e1   :  { %v4068_v19 = vpop.f32.mrf.mxu3  ;;  %v4999_v49 = vadd.f32 %v4998_v40, %v11481_v34  ;;  %v5087_v61 = vpop.f32.mrf.mxu1  ;;  %v7521_v40 = vor.u32 %v7862_v46, %v7518_v10 }
 0x7e2   :  { %v4069_v38 = vadd.f32 %v4068_v19, %v3980_v41  ;;  %v7846_v19 = vld [vmem:[%s12686_s2 + $0x144] sm:$0xf] }
 0x7e3   :  { %v11819_v14 = vadd.f32 %v5087_v61, %v4999_v49  ;;  %5135 = vmatmul.bf16.gmra.mxu2 %v13504_v9  ;;  %5313 = vmatmul.bf16.gmra.mxu0 %v13505_v0  ;;  %v7457_v35 = vor.u32 %v7846_v19, %v7454_v60 }
 0x7e4   :  { %vm4186_vm14 = vcmp.gt.f32.partialorder %v4069_v38, 0.0  ;;  %v4314_v13 = vmul.f32 0.1, %v4069_v38  ;;  %5402 = vmatmul.bf16.gmra.mxu1 %v13506_v39  ;;  %5555 = vmatpush.bf16.msrb.mxu3 %v7521_v40  ;;  %v13510_v40 = vld [vmem:[#allocation49_spill] sm:$0xff] }
 0x7e5   :  { %13503 = vst [vmem:[#allocation62_spill] sm:$0xff] %v11819_v14  ;;  %5466 = vmatpush.bf16.msrb.mxu2 %v7457_v35 }
 0x7e6   :  { %5224 = vmatmul.bf16.gmra.mxu3 %v11662_v2  ;;  %v4442_v29 = vsel %vm4186_vm14, %v4069_v38, %v4314_v13  ;;  %v3982_v41 = vpop.f32.mrf.mxu2 }
 0x7e7   :  { %v11837_v49 = vpack.c.bf16 %v4442_v29, %v4438_v51  ;;  %v3983_v61 = vadd.f32 %v3982_v41, %v11415_v33  ;;  %v13508_v29 = vld [vmem:[#allocation101_spill] sm:$0xff] }
 0x7e8   :  { %v5000_v39 = vpop.f32.mrf.mxu0 }
 0x7e9   :  { %v4071_v0 = vpop.f32.mrf.mxu3  ;;  %v5001_v2 = vadd.f32 %v5000_v39, %v11481_v34  ;;  %v5089_v19 = vpop.f32.mrf.mxu1 }
 0x7ea   :  { %v4072_v14 = vadd.f32 %v4071_v0, %v3983_v61 }
 0x7eb   :  { %v11841_v60 = vadd.f32 %v5089_v19, %v5001_v2 }
 0x7ec   :  { %v4318_v13 = vmul.f32 0.1, %v4072_v14  ;;  %vm4190_vm15 = vcmp.gt.f32.partialorder %v4072_v14, 0.0 }
 0x7ee   :  { %v3984_v9 = vpop.f32.mrf.mxu2 }
 0x7ef   :  { %v3985_v62 = vadd.f32 %v3984_v9, %v11424_v55  ;;  %v4446_v55 = vsel %vm4190_vm15, %v4072_v14, %v4318_v13 }
 0x7f0   :  { %v5003_v38 = vpop.f32.mrf.mxu0 }
 0x7f1   :  { %v4073_v57 = vpop.f32.mrf.mxu3  ;;  %v5004_v10 = vadd.f32 %v5003_v38, %v11481_v34  ;;  %v5092_v33 = vpop.f32.mrf.mxu1 }
 0x7f2   :  { %v4074_v46 = vadd.f32 %v4073_v57, %v3985_v62 }
 0x7f3   :  { %v11845_v51 = vadd.f32 %v5092_v33, %v5004_v10  ;;  %5140 = vmatmul.bf16.gmra.mxu2 %v13508_v29  ;;  %5318 = vmatmul.bf16.gmra.mxu0 %v13440_v6  ;;  %v13511_v10 = vld [vmem:[#allocation47_spill] sm:$0xff] }
 0x7f4   :  { %vm4194_vm1 = vcmp.gt.f32.partialorder %v4074_v46, 0.0  ;;  %v4322_v35 = vmul.f32 0.1, %v4074_v46  ;;  %5407 = vmatmul.bf16.gmra.mxu1 %v13442_v15 }
 0x7f5   :  { %13507 = vst [vmem:[#allocation33_spill] sm:$0xff] %v11845_v51 }
 0x7f6   :  { %5229 = vmatmul.bf16.gmra.mxu3 %v11716_v18  ;;  %v4450_v2 = vsel %vm4194_vm1, %v4074_v46, %v4322_v35  ;;  %v3987_v9 = vpop.f32.mrf.mxu2 }
 0x7f7   :  { %v11851_v41 = vpack.c.bf16 %v4450_v2, %v4446_v55  ;;  %v3988_v61 = vadd.f32 %v3987_v9, %v13510_v40  ;;  %v13513_v9 = vld [vmem:[#allocation104_spill] sm:$0xff]  ;;  %v13514_v40 = vld [vmem:[#allocation122_spill] sm:$0xff] }
 0x7f8   :  { %v5005_v39 = vpop.f32.mrf.mxu0 }
 0x7f9   :  { %13509 = vst [vmem:[#allocation69_spill] sm:$0xff] %v11851_v41  ;;  %v4076_v0 = vpop.f32.mrf.mxu3  ;;  %v5006_v62 = vadd.f32 %v5005_v39, %v11481_v34  ;;  %v5094_v57 = vpop.f32.mrf.mxu1  ;;  %v7860_v39 = vld [vmem:[%s12686_s2 + $0x1b4] sm:$0xf] }
 0x7fa   :  { %v4077_v19 = vadd.f32 %v4076_v0, %v3988_v61  ;;  %v13515_v61 = vld [vmem:[#allocation102_spill] sm:$0xff] }
 0x7fb   :  { %v11855_v38 = vadd.f32 %v5094_v57, %v5006_v62  ;;  %v7446_v0 = vld [vmem:[%s12686_s2 + $0x138] sm:$0xf0] }
 0x7fc   :  { %v4326_v14 = vmul.f32 0.1, %v4077_v19  ;;  %vm4198_vm2 = vcmp.gt.f32.partialorder %v4077_v19, 0.0  ;;  %v7510_v57 = vld [vmem:[%s12686_s2 + $0x1b8] sm:$0xf0] }
 0x7fe   :  { %v3989_v6 = vpop.f32.mrf.mxu2 }
 0x7ff   :  { %v3990_v33 = vadd.f32 %v3989_v6, %v13511_v10  ;;  %v4454_v6 = vsel %vm4198_vm2, %v4077_v19, %v4326_v14 }
 0x800   :  { %v5008_v15 = vpop.f32.mrf.mxu0 }
 0x801   :  { %v4078_v51 = vpop.f32.mrf.mxu3  ;;  %v5009_v46 = vadd.f32 %v5008_v15, %v11481_v34  ;;  %v5097_v35 = vpop.f32.mrf.mxu1  ;;  %v7513_v15 = vor.u32 %v7860_v39, %v7510_v57 }
 0x802   :  { %v4079_v13 = vadd.f32 %v4078_v51, %v3990_v33  ;;  %v7844_v51 = vld [vmem:[%s12686_s2 + $0x134] sm:$0xf] }
 0x803   :  { %v11859_v2 = vadd.f32 %v5097_v35, %v5009_v46  ;;  %5145 = vmatmul.bf16.gmra.mxu2 %v13513_v9  ;;  %5323 = vmatmul.bf16.gmra.mxu0 %v13514_v40  ;;  %v7449_v62 = vor.u32 %v7844_v51, %v7446_v0 }
 0x804   :  { %vm4202_vm3 = vcmp.gt.f32.partialorder %v4079_v13, 0.0  ;;  %v4330_v55 = vmul.f32 0.1, %v4079_v13  ;;  %5412 = vmatmul.bf16.gmra.mxu1 %v13515_v61  ;;  %5556 = vmatpush.bf16.msrb.mxu3 %v7513_v15 }
 0x805   :  { %13512 = vst [vmem:[#allocation67_spill] sm:$0xff] %v11859_v2  ;;  %5467 = vmatpush.bf16.msrb.mxu2 %v7449_v62 }
 0x806   :  { %5234 = vmatmul.bf16.gmra.mxu3 %v11731_v11  ;;  %v4458_v10 = vsel %vm4202_vm3, %v4079_v13, %v4330_v55  ;;  %v3992_v33 = vpop.f32.mrf.mxu2 }
 0x807   :  { %v11877_v46 = vpack.c.bf16 %v4458_v10, %v4454_v6  ;;  %v3993_v35 = vadd.f32 %v3992_v33, %v11453_v30  ;;  %v13517_v10 = vld [vmem:[#allocation37_spill] sm:$0xff]  ;;  %v13518_v33 = vld [vmem:[#allocation123_spill] sm:$0xff] }
 0x808   :  { %v5010_v61 = vpop.f32.mrf.mxu0 }
 0x809   :  { %13516 = vst [vmem:[#allocation24_spill] sm:$0xff] %v11877_v46  ;;  %v4081_v40 = vpop.f32.mrf.mxu3  ;;  %v5011_v11 = vadd.f32 %v5010_v61, %v11481_v34  ;;  %v5099_v51 = vpop.f32.mrf.mxu1 }
 0x80a   :  { %v4082_v2 = vadd.f32 %v4081_v40, %v3993_v35 }
 0x80b   :  { %v11881_v0 = vadd.f32 %v5099_v51, %v5011_v11  ;;  %v13519_v11 = vld [vmem:[#allocation108_spill] sm:$0xff] }
 0x80c   :  { %v4334_v55 = vmul.f32 0.1, %v4082_v2  ;;  %vm4206_vm4 = vcmp.gt.f32.partialorder %v4082_v2, 0.0 }
 0x80e   :  { %v3994_v9 = vpop.f32.mrf.mxu2 }
 0x80f   :  { %v3995_v19 = vadd.f32 %v3994_v9, %v11462_v56  ;;  %v4462_v56 = vsel %vm4206_vm4, %v4082_v2, %v4334_v55  ;;  %v7885_v2 = vld [vmem:[%s12687_s3 + $0x78] sm:$0xff] }
 0x810   :  { %v5013_v13 = vpop.f32.mrf.mxu0  ;;  %6086 = vmatpush.bf16.msrb.mxu1 %v7885_v2 }
 0x811   :  { %v4083_v14 = vpop.f32.mrf.mxu3  ;;  %v5014_v57 = vadd.f32 %v5013_v13, %v11481_v34  ;;  %v5102_v30 = vpop.f32.mrf.mxu1 }
 0x812   :  { %v4084_v39 = vadd.f32 %v4083_v14, %v3995_v19 }
 0x813   :  { %v11885_v6 = vadd.f32 %v5102_v30, %v5014_v57  ;;  %5150 = vmatmul.bf16.gmra.mxu2 %v13517_v10  ;;  %5328 = vmatmul.bf16.gmra.mxu0 %v13518_v33  ;;  %v7877_v30 = vld [vmem:[%s12687_s3 + $0x38] sm:$0xff] }
 0x814   :  { %vm4210_vm5 = vcmp.gt.f32.partialorder %v4084_v39, 0.0  ;;  %v4338_v62 = vmul.f32 0.1, %v4084_v39  ;;  %5417 = vmatmul.bf16.gmra.mxu1 %v13519_v11  ;;  %5997 = vmatpush.bf16.msrb.mxu0 %v7877_v30 }
 0x816   :  { %5239 = vmatmul.bf16.gmra.mxu3 %v11757_v26  ;;  %v4466_v9 = vsel %vm4210_vm5, %v4084_v39, %v4338_v62  ;;  %v3997_v15 = vpop.f32.mrf.mxu2 }
 0x817   :  { %v11891_v35 = vpack.c.bf16 %v4466_v9, %v4462_v56  ;;  %v3998_v40 = vadd.f32 %v3997_v15, %v11483_v25  ;;  %v7907_v25 = vld [vmem:[%s12684_s5 + $0x4] sm:$0x3] }
 0x818   :  { %v5015_v51 = vpop.f32.mrf.mxu0  ;;  %v11906_v55 = vperm.slane %v7907_v25, 1 }
 0x819   :  { %13520 = vst [vmem:[#allocation6_spill] sm:$0xff] %v11891_v35  ;;  %v4086_v61 = vpop.f32.mrf.mxu3  ;;  %v5016_v14 = vadd.f32 %v5015_v51, %v11481_v34  ;;  %v5104_v13 = vpop.f32.mrf.mxu1  ;;  %v13522_v51 = vld [vmem:[#allocation35_spill] sm:$0xff] }
 0x81a   :  { %v4087_v19 = vadd.f32 %v4086_v61, %v3998_v40 }
 0x81b   :  { %v11895_v57 = vadd.f32 %v5104_v13, %v5016_v14  ;;  %v7438_v14 = vld [vmem:[%s12686_s2 + $0x128] sm:$0xf0]  ;;  %v7858_v13 = vld [vmem:[%s12686_s2 + $0x1a4] sm:$0xf] }
 0x81c   :  { %v4342_v11 = vmul.f32 0.1, %v4087_v19  ;;  %vm4214_vm0 = vcmp.gt.f32.partialorder %v4087_v19, 0.0 }
 0x81e   :  { %v3999_v34 = vpop.f32.mrf.mxu2  ;;  %v4470_v2 = vsel %vm4214_vm0, %v4087_v19, %v4342_v11 }
 0x81f   :  { %v4000_v39 = vadd.f32 %v3999_v34, %v11505_v63  ;;  %v7842_v63 = vld [vmem:[%s12686_s2 + $0x124] sm:$0xf] }
 0x820   :  { %v5294_v33 = vpop.f32.mrf.mxu0  ;;  %v7441_v30 = vor.u32 %v7842_v63, %v7438_v14 }
 0x821   :  { %v4088_v62 = vpop.f32.mrf.mxu3  ;;  %v5295_v9 = vadd.f32 %v5294_v33, %v11906_v55  ;;  %v5383_v15 = vpop.f32.mrf.mxu1 }
 0x822   :  { %v4089_v56 = vadd.f32 %v4088_v62, %v4000_v39  ;;  %5468 = vmatpush.bf16.msrb.mxu2 %v7441_v30 }
 0x823   :  { %v11910_v61 = vadd.f32 %v5383_v15, %v5295_v9  ;;  %5155 = vmatmul.bf16.gmra.mxu2 %v13522_v51  ;;  %5333 = vmatmul.bf16.gmra.mxu0 %v13454_v44  ;;  %v7502_v44 = vld [vmem:[%s12686_s2 + $0x1a8] sm:$0xf0] }
 0x824   :  { %vm4218_vm6 = vcmp.gt.f32.partialorder %v4089_v56, 0.0  ;;  %v4346_v40 = vmul.f32 0.1, %v4089_v56  ;;  %5422 = vmatmul.bf16.gmra.mxu1 %v13456_v4  ;;  %v7505_v34 = vor.u32 %v7858_v13, %v7502_v44 }
 0x825   :  { %13521 = vst [vmem:[#allocation75_spill] sm:$0xff] %v11910_v61 }
 0x826   :  { %5244 = vmatmul.bf16.gmra.mxu3 %v11771_v20  ;;  %v4474_v25 = vsel %vm4218_vm6, %v4089_v56, %v4346_v40  ;;  %v5116_v4 = vpop.f32.mrf.mxu2 }
 0x827   :  { %v11928_v39 = vpack.c.bf16 %v4474_v25, %v4470_v2  ;;  %v5117_v62 = vadd.f32 %v5116_v4, %v11486_v59  ;;  %5557 = vmatpush.bf16.msrb.mxu3 %v7505_v34  ;;  %v13524_v25 = vld [vmem:[#allocation39_spill] sm:$0xff]  ;;  %v13525_v4 = vld [vmem:[#allocation124_spill] sm:$0xff] }
 0x828   :  { %v5296_v9 = vpop.f32.mrf.mxu0  ;;  %v13531_v34 = vld [vmem:[#allocation40_spill] sm:$0xff] }
 0x829   :  { %v5205_v33 = vpop.f32.mrf.mxu3  ;;  %v5297_v61 = vadd.f32 %v5296_v9, %v11906_v55  ;;  %v5385_v63 = vpop.f32.mrf.mxu1 }
 0x82a   :  { %v5206_v15 = vadd.f32 %v5205_v33, %v5117_v62  ;;  %v13527_v33 = vld [vmem:[#allocation48_spill] sm:$0xff] }
 0x82b   :  { %v11932_v14 = vadd.f32 %v5385_v63, %v5297_v61  ;;  %v13526_v61 = vld [vmem:[#allocation5_spill] sm:$0xff] }
 0x82c   :  { %v5705_v40 = vmul.f32 0.1, %v5206_v15  ;;  %vm5641_vm7 = vcmp.gt.f32.partialorder %v5206_v15, 0.0 }
 0x82e   :  { %v5118_v20 = vpop.f32.mrf.mxu2 }
 0x82f   :  { %v5119_v19 = vadd.f32 %v5118_v20, %v11509_v31  ;;  %v11942_v31 = vsel %vm5641_vm7, %v5206_v15, %v5705_v40  ;;  %v7876_v15 = vld [vmem:[%s12687_s3 + $0x30] sm:$0xff] }
 0x830   :  { %v5299_v56 = vpop.f32.mrf.mxu0  ;;  %v7884_v40 = vld [vmem:[%s12687_s3 + $0x70] sm:$0xff]  ;;  %5998 = vmatpush.bf16.msrb.mxu0 %v7876_v15  ;;  %v13533_v15 = vld [vmem:[#allocation7_spill] sm:$0xff] }
 0x831   :  { %v5207_v11 = vpop.f32.mrf.mxu3  ;;  %v5300_v44 = vadd.f32 %v5299_v56, %v11906_v55  ;;  %v5388_v59 = vpop.f32.mrf.mxu1  ;;  %6087 = vmatpush.bf16.msrb.mxu1 %v7884_v40  ;;  %v7840_v40 = vld [vmem:[%s12686_s2 + $0x114] sm:$0xf] }
 0x832   :  { %v5208_v13 = vadd.f32 %v5207_v11, %v5119_v19 }
 0x833   :  { %v11936_v2 = vadd.f32 %v5388_v59, %v5300_v44  ;;  %5160 = vmatmul.bf16.gmra.mxu2 %v13524_v25  ;;  %5338 = vmatmul.bf16.gmra.mxu0 %v13525_v4 }
 0x834   :  { %vm5643_vm8 = vcmp.gt.f32.partialorder %v5208_v13, 0.0  ;;  %v5707_v30 = vmul.f32 0.1, %v5208_v13  ;;  %5427 = vmatmul.bf16.gmra.mxu1 %v13526_v61 }
 0x835   :  { %13523 = vst [vmem:[#allocation73_spill] sm:$0xff] %v11936_v2 }
 0x836   :  { %5249 = vmatmul.bf16.gmra.mxu3 %v11797_v3  ;;  %v11944_v20 = vsel %vm5643_vm8, %v5208_v13, %v5707_v30  ;;  %v5121_v62 = vpop.f32.mrf.mxu2  ;;  %v13529_v30 = vld [vmem:[#allocation4_spill] sm:$0xff] }
 0x837   :  { %v5122_v9 = vadd.f32 %v5121_v62, %v13527_v33 }
 0x838   :  { %v5301_v19 = vpop.f32.mrf.mxu0 }
 0x839   :  { %v5210_v63 = vpop.f32.mrf.mxu3  ;;  %v5302_v56 = vadd.f32 %v5301_v19, %v11906_v55  ;;  %v5390_v44 = vpop.f32.mrf.mxu1 }
 0x83a   :  { %v5211_v11 = vadd.f32 %v5210_v63, %v5122_v9 }
 0x83b   :  { %v11950_v59 = vadd.f32 %v5390_v44, %v5302_v56 }
 0x83c   :  { %v5709_v33 = vmul.f32 0.1, %v5211_v11  ;;  %vm5645_vm9 = vcmp.gt.f32.partialorder %v5211_v11, 0.0 }
 0x83d   :  { %13528 = vst [vmem:[#allocation74_spill] sm:$0xff] %v11950_v59  ;;  %v13532_v59 = vld [vmem:[#allocation125_spill] sm:$0xff] }
 0x83e   :  { %v5123_v13 = vpop.f32.mrf.mxu2 }
 0x83f   :  { %v5124_v4 = vadd.f32 %v5123_v13, %v13529_v30  ;;  %v7430_v13 = vld [vmem:[%s12686_s2 + $0x118] sm:$0xf0]  ;;  %v7856_v30 = vld [vmem:[%s12686_s2 + $0x194] sm:$0xf] }
 0x840   :  { %v5304_v62 = vpop.f32.mrf.mxu0 }
 0x841   :  { %v5212_v61 = vpop.f32.mrf.mxu3  ;;  %v5305_v63 = vadd.f32 %v5304_v62, %v11906_v55  ;;  %v5393_v19 = vpop.f32.mrf.mxu1 }
 0x842   :  { %v5213_v9 = vadd.f32 %v5212_v61, %v5124_v4  ;;  %v7433_v4 = vor.u32 %v7840_v40, %v7430_v13  ;;  %v11978_v61 = vsel %vm5645_vm9, %v5211_v11, %v5709_v33 }
 0x843   :  { %v11960_v44 = vadd.f32 %v5393_v19, %v5305_v63  ;;  %5165 = vmatmul.bf16.gmra.mxu2 %v13531_v34  ;;  %5343 = vmatmul.bf16.gmra.mxu0 %v13532_v59  ;;  %v7494_v59 = vld [vmem:[%s12686_s2 + $0x198] sm:$0xf0] }
 0x844   :  { %vm5647_vm10 = vcmp.gt.f32.partialorder %v5213_v9, 0.0  ;;  %v5711_v56 = vmul.f32 0.1, %v5213_v9  ;;  %5432 = vmatmul.bf16.gmra.mxu1 %v13533_v15  ;;  %v7497_v19 = vor.u32 %v7856_v30, %v7494_v59  ;;  %5469 = vmatpush.bf16.msrb.mxu2 %v7433_v4 }
 0x845   :  { %13530 = vst [vmem:[#allocation20_spill] sm:$0xff] %v11960_v44  ;;  %v13534_v44 = vld [vmem:[#allocation8_spill] sm:$0xff] }
 0x846   :  { %5254 = vmatmul.bf16.gmra.mxu3 %v11811_v52  ;;  %v11980_v62 = vsel %vm5647_vm10, %v5213_v9, %v5711_v56  ;;  %v5126_v63 = vpop.f32.mrf.mxu2 }
 0x847   :  { %v5127_v52 = vadd.f32 %v5126_v63, %v13534_v44  ;;  %5558 = vmatpush.bf16.msrb.mxu3 %v7497_v19 }
 0x848   :  { %v5306_v2 = vpop.f32.mrf.mxu0 }
 0x849   :  { %v5215_v34 = vpop.f32.mrf.mxu3  ;;  %v5307_v13 = vadd.f32 %v5306_v2, %v11906_v55  ;;  %v5395_v3 = vpop.f32.mrf.mxu1 }
 0x84a   :  { %v5216_v40 = vadd.f32 %v5215_v34, %v5127_v52  ;;  %v13535_v52 = vld [vmem:[#allocation27_spill] sm:$0xff] }
 0x84b   :  { %v11986_v25 = vadd.f32 %v5395_v3, %v5307_v13 }
 0x84c   :  { %v5713_v30 = vmul.f32 0.1, %v5216_v40  ;;  %vm5649_vm11 = vcmp.gt.f32.partialorder %v5216_v40, 0.0 }
 0x84e   :  { %v5128_v11 = vpop.f32.mrf.mxu2 }
 0x84f   :  { %v5129_v33 = vadd.f32 %v5128_v11, %v11563_v53  ;;  %v11996_v53 = vsel %vm5649_vm11, %v5216_v40, %v5713_v30  ;;  %v7883_v40 = vld [vmem:[%s12687_s3 + $0x68] sm:$0xff] }
 0x850   :  { %v5309_v56 = vpop.f32.mrf.mxu0  ;;  %6088 = vmatpush.bf16.msrb.mxu1 %v7883_v40  ;;  %v7854_v40 = vld [vmem:[%s12686_s2 + $0x184] sm:$0xf] }
 0x851   :  { %v5217_v9 = vpop.f32.mrf.mxu3  ;;  %v5310_v15 = vadd.f32 %v5309_v56, %v11906_v55  ;;  %v5398_v44 = vpop.f32.mrf.mxu1 }
 0x852   :  { %v5218_v59 = vadd.f32 %v5217_v9, %v5129_v33 }
 0x853   :  { %v11990_v63 = vadd.f32 %v5398_v44, %v5310_v15  ;;  %5170 = vmatmul.bf16.gmra.mxu2 %v13535_v52  ;;  %5348 = vmatmul.bf16.gmra.mxu0 %v13468_v24 }
 0x854   :  { %vm5651_vm12 = vcmp.gt.f32.partialorder %v5218_v59, 0.0  ;;  %v5715_v4 = vmul.f32 0.1, %v5218_v59  ;;  %5437 = vmatmul.bf16.gmra.mxu1 %v13469_v5  ;;  %v7875_v5 = vld [vmem:[%s12687_s3 + $0x28] sm:$0xff] }
 0x855   :  { %5999 = vmatpush.bf16.msrb.mxu0 %v7875_v5  ;;  %v7422_v5 = vld [vmem:[%s12686_s2 + $0x108] sm:$0xf0] }
 0x856   :  { %5259 = vmatmul.bf16.gmra.mxu3 %v11837_v49  ;;  %v11998_v3 = vsel %vm5651_vm12, %v5218_v59, %v5715_v4  ;;  %v5131_v2 = vpop.f32.mrf.mxu2 }
 0x857   :  { %v5132_v19 = vadd.f32 %v5131_v2, %v11567_v23 }
 0x858   :  { %v5311_v13 = vpop.f32.mrf.mxu0 }
 0x859   :  { %v5220_v15 = vpop.f32.mrf.mxu3  ;;  %v5312_v33 = vadd.f32 %v5311_v13, %v11906_v55  ;;  %v5400_v24 = vpop.f32.mrf.mxu1 }
 0x85a   :  { %v5221_v11 = vadd.f32 %v5220_v15, %v5132_v19 }
 0x85b   :  { %v12004_v9 = vadd.f32 %v5400_v24, %v5312_v33  ;;  %v13537_v33 = vld [vmem:[#allocation31_spill] sm:$0xff] }
 0x85c   :  { %v5717_v44 = vmul.f32 0.1, %v5221_v11  ;;  %vm5653_vm13 = vcmp.gt.f32.partialorder %v5221_v11, 0.0  ;;  %v13538_v24 = vld [vmem:[#allocation11_spill] sm:$0xff] }
 0x85e   :  { %v5133_v56 = vpop.f32.mrf.mxu2 }
 0x85f   :  { %v5134_v23 = vadd.f32 %v5133_v56, %v11578_v43  ;;  %v7838_v43 = vld [vmem:[%s12686_s2 + $0x104] sm:$0xf] }
 0x860   :  { %v5314_v59 = vpop.f32.mrf.mxu0  ;;  %v7425_v56 = vor.u32 %v7838_v43, %v7422_v5 }
 0x861   :  { %v5222_v30 = vpop.f32.mrf.mxu3  ;;  %v5315_v2 = vadd.f32 %v5314_v59, %v11906_v55  ;;  %v5403_v19 = vpop.f32.mrf.mxu1 }
 0x862   :  { %v5223_v4 = vadd.f32 %v5222_v30, %v5134_v23  ;;  %v12032_v23 = vsel %vm5653_vm13, %v5221_v11, %v5717_v44  ;;  %5470 = vmatpush.bf16.msrb.mxu2 %v7425_v56 }
 0x863   :  { %v12014_v13 = vadd.f32 %v5403_v19, %v5315_v2  ;;  %5175 = vmatmul.bf16.gmra.mxu2 %v13537_v33  ;;  %5353 = vmatmul.bf16.gmra.mxu0 %v13471_v32  ;;  %v7486_v32 = vld [vmem:[%s12686_s2 + $0x188] sm:$0xf0] }
 0x864   :  { %vm5655_vm14 = vcmp.gt.f32.partialorder %v5223_v4, 0.0  ;;  %v5719_v15 = vmul.f32 0.1, %v5223_v4  ;;  %5442 = vmatmul.bf16.gmra.mxu1 %v13538_v24  ;;  %v7489_v2 = vor.u32 %v7854_v40, %v7486_v32  ;;  %v13539_v24 = vld [vmem:[#allocation21_spill] sm:$0xff] }
 0x865   :  { %13536 = vst [vmem:[#allocation10_spill] sm:$0xff] %v12014_v13 }
 0x866   :  { %5264 = vmatmul.bf16.gmra.mxu3 %v11851_v41  ;;  %v12034_v30 = vsel %vm5655_vm14, %v5223_v4, %v5719_v15  ;;  %v5136_v59 = vpop.f32.mrf.mxu2  ;;  %v7874_v4 = vld [vmem:[%s12687_s3 + $0x20] sm:$0xff] }
 0x867   :  { %v5137_v34 = vadd.f32 %v5136_v59, %v13539_v24  ;;  %5559 = vmatpush.bf16.msrb.mxu3 %v7489_v2  ;;  %6000 = vmatpush.bf16.msrb.mxu0 %v7874_v4  ;;  %v13541_v2 = vld [vmem:[#allocation13_spill] sm:$0xff] }
 0x868   :  { %v12039_v41 = vpop.f32.mrf.mxu0  ;;  %v13542_v4 = vld [vmem:[#allocation53_spill] sm:$0xff] }
 0x869   :  { %v5225_v13 = vpop.f32.mrf.mxu3  ;;  %v12041_v5 = vpop.f32.mrf.mxu1 }
 0x86a   :  { %v5226_v43 = vadd.f32 %v5225_v13, %v5137_v34 }
 0x86c   :  { %v5721_v40 = vmul.f32 0.1, %v5226_v43  ;;  %vm5657_vm15 = vcmp.gt.f32.partialorder %v5226_v43, 0.0 }
 0x86e   :  { %v5138_v33 = vpop.f32.mrf.mxu2 }
 0x86f   :  { %v5139_v11 = vadd.f32 %v5138_v33, %v11617_v27  ;;  %v7873_v27 = vld [vmem:[%s12687_s3 + $0x18] sm:$0xff]  ;;  %v12057_v33 = vsel %vm5657_vm15, %v5226_v43, %v5721_v40  ;;  %v7882_v43 = vld [vmem:[%s12687_s3 + $0x60] sm:$0xff]  ;;  %v7871_v40 = vld [vmem:[%s12687_s3 + $0x8] sm:$0xff] }
 0x870   :  { %v5319_v15 = vpop.f32.mrf.mxu0  ;;  %6001 = vmatpush.bf16.msrb.mxu0 %v7873_v27  ;;  %6089 = vmatpush.bf16.msrb.mxu1 %v7882_v43 }
 0x871   :  { %v5227_v44 = vpop.f32.mrf.mxu3  ;;  %v5320_v59 = vadd.f32 %v5319_v15, %v11906_v55  ;;  %v5408_v56 = vpop.f32.mrf.mxu1 }
 0x872   :  { %v5228_v32 = vadd.f32 %v5227_v44, %v5139_v11 }
 0x873   :  { %v12048_v13 = vadd.f32 %v5408_v56, %v5320_v59  ;;  %5180 = vmatmul.bf16.gmra.mxu2 %v13541_v2  ;;  %5358 = vmatmul.bf16.gmra.mxu0 %v13474_v21  ;;  %v7872_v59 = vld [vmem:[%s12687_s3 + $0x10] sm:$0xff] }
 0x874   :  { %vm5659_vm1 = vcmp.gt.f32.partialorder %v5228_v32, 0.0  ;;  %v5723_v34 = vmul.f32 0.1, %v5228_v32  ;;  %5447 = vmatmul.bf16.gmra.mxu1 %v13476_v8  ;;  %6002 = vmatpush.bf16.msrb.mxu0 %v7872_v59 }
 0x875   :  { %13540 = vst [vmem:[#allocation81_spill] sm:$0xff] %v12048_v13 }
 0x876   :  { %5269 = vmatmul.bf16.gmra.mxu3 %v11877_v46  ;;  %v12059_v24 = vsel %vm5659_vm1, %v5228_v32, %v5723_v34  ;;  %v5141_v11 = vpop.f32.mrf.mxu2  ;;  %v13545_v34 = vld [vmem:[#allocation52_spill] sm:$0xff] }
 0x877   :  { %v5142_v15 = vadd.f32 %v5141_v11, %v13542_v4  ;;  %v7870_v4 = vld [vmem:[%s12687_s3] sm:$0xff] }
 0x878   :  { %v12067_v56 = vpop.f32.mrf.mxu0  ;;  %6003 = vmatpush.bf16.msrb.mxu0 %v7871_v40  ;;  %v13547_v40 = vld [vmem:[#allocation45_spill] sm:$0xff] }
 0x879   :  { %v5230_v21 = vpop.f32.mrf.mxu3  ;;  %13543 = vst [vmem:[#allocation79_spill] sm:$0xff] %v12067_v56  ;;  %v12069_v8 = vpop.f32.mrf.mxu1 }
 0x87a   :  { %v5231_v19 = vadd.f32 %v5230_v21, %v5142_v15  ;;  %13544 = vst [vmem:[#allocation28_spill] sm:$0xff] %v12069_v8 }
 0x87c   :  { %v5725_v21 = vmul.f32 0.1, %v5231_v19  ;;  %6004 = vmatpush.bf16.msrb.mxu0 %v7870_v4  ;;  %vm5661_vm2 = vcmp.gt.f32.partialorder %v5231_v19, 0.0 }
 0x87e   :  { %v5143_v32 = vpop.f32.mrf.mxu2  ;;  %v12088_v56 = vsel %vm5661_vm2, %v5231_v19, %v5725_v21 }
 0x87f   :  { %v5144_v27 = vadd.f32 %v5143_v32, %v13545_v34  ;;  %v13548_v32 = vld [vmem:[#allocation129_spill] sm:$0xff]  ;;  %v13549_v34 = vld [vmem:[#allocation19_spill] sm:$0xff] }
 0x880   :  { %v5324_v15 = vpop.f32.mrf.mxu0 }
 0x881   :  { %v5232_v11 = vpop.f32.mrf.mxu3  ;;  %v5325_v44 = vadd.f32 %v5324_v15, %v11906_v55  ;;  %v5413_v8 = vpop.f32.mrf.mxu1  ;;  %v13550_v15 = vld [vmem:[#allocation25_spill] sm:$0xff] }
 0x882   :  { %v5233_v59 = vadd.f32 %v5232_v11, %v5144_v27 }
 0x883   :  { %v12082_v43 = vadd.f32 %v5413_v8, %v5325_v44  ;;  %5185 = vmatmul.bf16.gmra.mxu2 %v13547_v40  ;;  %5363 = vmatmul.bf16.gmra.mxu0 %v13548_v32 }
 0x884   :  { %vm5663_vm3 = vcmp.gt.f32.partialorder %v5233_v59, 0.0  ;;  %v5727_v13 = vmul.f32 0.1, %v5233_v59  ;;  %5452 = vmatmul.bf16.gmra.mxu1 %v13549_v34 }
 0x885   :  { %13546 = vst [vmem:[#allocation36_spill] sm:$0xff] %v12082_v43 }
 0x886   :  { %5274 = vmatmul.bf16.gmra.mxu3 %v11891_v35  ;;  %v12090_v27 = vsel %vm5663_vm3, %v5233_v59, %v5727_v13  ;;  %v5146_v11 = vpop.f32.mrf.mxu2 }
 0x887   :  { %v5147_v46 = vadd.f32 %v5146_v11, %v13550_v15  ;;  %v13552_v15 = vld [vmem:[#allocation43_spill] sm:$0xff] }
 0x888   :  { %v12095_v8 = vpop.f32.mrf.mxu0 }
 0x889   :  { %v5235_v44 = vpop.f32.mrf.mxu3  ;;  %v12097_v40 = vpop.f32.mrf.mxu1 }
 0x88a   :  { %v5236_v43 = vadd.f32 %v5235_v44, %v5147_v46  ;;  %v13553_v46 = vld [vmem:[#allocation23_spill] sm:$0xff] }
 0x88c   :  { %v5729_v21 = vmul.f32 0.1, %v5236_v43  ;;  %vm5665_vm4 = vcmp.gt.f32.partialorder %v5236_v43, 0.0 }
 0x88e   :  { %v5148_v32 = vpop.f32.mrf.mxu2 }
 0x88f   :  { %v5149_v35 = vadd.f32 %v5148_v32, %v11720_v7  ;;  %v12107_v7 = vsel %vm5665_vm4, %v5236_v43, %v5729_v21 }
 0x890   :  { %v5329_v19 = vpop.f32.mrf.mxu0 }
 0x891   :  { %v5237_v34 = vpop.f32.mrf.mxu3  ;;  %v5330_v59 = vadd.f32 %v5329_v19, %v11906_v55  ;;  %v5418_v2 = vpop.f32.mrf.mxu1 }
 0x892   :  { %v5238_v13 = vadd.f32 %v5237_v34, %v5149_v35  ;;  %v13554_v34 = vld [vmem:[#allocation57_spill] sm:$0xff] }
 0x893   :  { %v12101_v11 = vadd.f32 %v5418_v2, %v5330_v59  ;;  %5190 = vmatmul.bf16.gmra.mxu2 %v13552_v15  ;;  %5368 = vmatmul.bf16.gmra.mxu0 %v13486_v58  ;;  %v7881_v58 = vld [vmem:[%s12687_s3 + $0x58] sm:$0xff] }
 0x894   :  { %vm5667_vm5 = vcmp.gt.f32.partialorder %v5238_v13, 0.0  ;;  %v5731_v4 = vmul.f32 0.1, %v5238_v13  ;;  %5457 = vmatmul.bf16.gmra.mxu1 %v13553_v46 }
 0x895   :  { %13551 = vst [vmem:[#allocation14_spill] sm:$0xff] %v12101_v11  ;;  %6090 = vmatpush.bf16.msrb.mxu1 %v7881_v58  ;;  %v13557_v58 = vpack.c.bf16 %v11944_v20, %v11942_v31 }
 0x896   :  { %5279 = vmatmul.bf16.gmra.mxu3 %v11928_v39  ;;  %v12109_v44 = vsel %vm5667_vm5, %v5238_v13, %v5731_v4  ;;  %v5151_v35 = vpop.f32.mrf.mxu2 }
 0x897   :  { %v5152_v19 = vadd.f32 %v5151_v35, %v13554_v34 }
 0x898   :  { %v12114_v59 = vpop.f32.mrf.mxu0 }
 0x899   :  { %v5240_v2 = vpop.f32.mrf.mxu3  ;;  %v12116_v15 = vpop.f32.mrf.mxu1 }
 0x89a   :  { %v5241_v11 = vadd.f32 %v5240_v2, %v5152_v19  ;;  %13555 = vst [vmem:[#allocation86_spill] sm:$0xff] %v12116_v15 }
 0x89c   :  { %v5733_v46 = vmul.f32 0.1, %v5241_v11  ;;  %vm5669_vm0 = vcmp.gt.f32.partialorder %v5241_v11, 0.0 }
 0x89e   :  { %v5153_v43 = vpop.f32.mrf.mxu2 }
 0x89f   :  { %v5154_v4 = vadd.f32 %v5153_v43, %v11735_v50  ;;  %v12130_v50 = vsel %vm5669_vm0, %v5241_v11, %v5733_v46 }
 0x8a0   :  { %v5334_v13 = vpop.f32.mrf.mxu0 }
 0x8a1   :  { %v5242_v21 = vpop.f32.mrf.mxu3  ;;  %v5335_v35 = vadd.f32 %v5334_v13, %v11906_v55  ;;  %v5423_v34 = vpop.f32.mrf.mxu1  ;;  %v13558_v13 = vld [vmem:[#allocation56_spill] sm:$0xff] }
 0x8a2   :  { %v5243_v32 = vadd.f32 %v5242_v21, %v5154_v4 }
 0x8a3   :  { %v12123_v2 = vadd.f32 %v5423_v34, %v5335_v35  ;;  %5471 = vmatmul.bf16.vlgmr.msrb.gmra.mxu2 %v13491_v1  ;;  %6005 = vmatmul.bf16.vlgmr.msrb.gmra.mxu0 %v13557_v58 }
 0x8a4   :  { %vm5671_vm6 = vcmp.gt.f32.partialorder %v5243_v32, 0.0  ;;  %v5735_v19 = vmul.f32 0.1, %v5243_v32 }
 0x8a5   :  { %13556 = vst [vmem:[#allocation84_spill] sm:$0xff] %v12123_v2 }
 0x8a6   :  { %5560 = vmatmul.bf16.vlgmr.msrb.gmra.mxu3 %v11520_v17  ;;  %v12132_v43 = vsel %vm5671_vm6, %v5243_v32, %v5735_v19  ;;  %v5156_v4 = vpop.f32.mrf.mxu2 }
 0x8a7   :  { %v5157_v15 = vadd.f32 %v5156_v4, %v13558_v13 }
 0x8a8   :  { %v12137_v34 = vpop.f32.mrf.mxu0 }
 0x8a9   :  { %v5245_v35 = vpop.f32.mrf.mxu3  ;;  %v12139_v2 = vpop.f32.mrf.mxu1 }
 0x8aa   :  { %v5246_v1 = vadd.f32 %v5245_v35, %v5157_v15  ;;  %v13559_v15 = vpack.c.bf16 %v11980_v62, %v11978_v61 }
 0x8ac   :  { %v5737_v46 = vmul.f32 0.1, %v5246_v1  ;;  %vm5673_vm7 = vcmp.gt.f32.partialorder %v5246_v1, 0.0 }
 0x8ae   :  { %v5158_v31 = vpop.f32.mrf.mxu2 }
 0x8af   :  { %v5159_v20 = vadd.f32 %v5158_v31, %v11761_v16  ;;  %v12150_v16 = vsel %vm5673_vm7, %v5246_v1, %v5737_v46 }
 0x8b0   :  { %v5339_v11 = vpop.f32.mrf.mxu0 }
 0x8b1   :  { %v5247_v17 = vpop.f32.mrf.mxu3  ;;  %v5340_v19 = vadd.f32 %v5339_v11, %v11906_v55  ;;  %v5428_v58 = vpop.f32.mrf.mxu1 }
 0x8b2   :  { %v5248_v32 = vadd.f32 %v5247_v17, %v5159_v20 }
 0x8b3   :  { %v12143_v4 = vadd.f32 %v5428_v58, %v5340_v19  ;;  %5476 = vmatmul.bf16.gmra.mxu2 %v13492_v12  ;;  %6010 = vmatmul.bf16.gmra.mxu0 %v13559_v15 }
 0x8b4   :  { %vm5675_vm8 = vcmp.gt.f32.partialorder %v5248_v32, 0.0  ;;  %v5739_v21 = vmul.f32 0.1, %v5248_v32 }
 0x8b6   :  { %5565 = vmatmul.bf16.gmra.mxu3 %v11559_v36  ;;  %v12152_v13 = vsel %vm5675_vm8, %v5248_v32, %v5739_v21  ;;  %v5161_v35 = vpop.f32.mrf.mxu2  ;;  %v7880_v36 = vld [vmem:[%s12687_s3 + $0x50] sm:$0xff] }
 0x8b7   :  { %v5162_v20 = vadd.f32 %v5161_v35, %v11765_v42  ;;  %6091 = vmatpush.bf16.msrb.mxu1 %v7880_v36 }
 0x8b8   :  { %v12157_v11 = vpop.f32.mrf.mxu0 }
 0x8b9   :  { %v5250_v17 = vpop.f32.mrf.mxu3  ;;  %v12159_v19 = vpop.f32.mrf.mxu1 }
 0x8ba   :  { %v5251_v12 = vadd.f32 %v5250_v17, %v5162_v20  ;;  %v13560_v20 = vpack.c.bf16 %v11998_v3, %v11996_v53 }
 0x8bc   :  { %v5741_v46 = vmul.f32 0.1, %v5251_v12  ;;  %vm5677_vm9 = vcmp.gt.f32.partialorder %v5251_v12, 0.0 }
 0x8be   :  { %v5163_v61 = vpop.f32.mrf.mxu2 }
 0x8bf   :  { %v5164_v62 = vadd.f32 %v5163_v61, %v11775_v22  ;;  %v12173_v22 = vsel %vm5677_vm9, %v5251_v12, %v5741_v46 }
 0x8c0   :  { %v5344_v1 = vpop.f32.mrf.mxu0 }
 0x8c1   :  { %v5252_v21 = vpop.f32.mrf.mxu3  ;;  %v5345_v42 = vadd.f32 %v5344_v1, %v11906_v55  ;;  %v5433_v58 = vpop.f32.mrf.mxu1 }
 0x8c2   :  { %v5253_v32 = vadd.f32 %v5252_v21, %v5164_v62  ;;  %v13561_v62 = vld [vmem:[#allocation16_spill] sm:$0xff] }
 0x8c3   :  { %v12166_v35 = vadd.f32 %v5433_v58, %v5345_v42  ;;  %5481 = vmatmul.bf16.gmra.mxu2 %v13495_v37  ;;  %6015 = vmatmul.bf16.gmra.mxu0 %v13560_v20 }
 0x8c4   :  { %vm5679_vm10 = vcmp.gt.f32.partialorder %v5253_v32, 0.0  ;;  %v5743_v15 = vmul.f32 0.1, %v5253_v32 }
 0x8c6   :  { %5570 = vmatmul.bf16.gmra.mxu3 %v11574_v45  ;;  %v12175_v17 = vsel %vm5679_vm10, %v5253_v32, %v5743_v15  ;;  %v5166_v36 = vpop.f32.mrf.mxu2 }
 0x8c7   :  { %v5167_v21 = vadd.f32 %v5166_v36, %v13561_v62  ;;  %v13562_v62 = vpack.c.bf16 %v12034_v30, %v12032_v23 }
 0x8c8   :  { %v12180_v42 = vpop.f32.mrf.mxu0 }
 0x8c9   :  { %v5255_v1 = vpop.f32.mrf.mxu3  ;;  %v12182_v58 = vpop.f32.mrf.mxu1 }
 0x8ca   :  { %v5256_v37 = vadd.f32 %v5255_v1, %v5167_v21 }
 0x8cc   :  { %v5745_v46 = vmul.f32 0.1, %v5256_v37  ;;  %vm5681_vm11 = vcmp.gt.f32.partialorder %v5256_v37, 0.0 }
 0x8ce   :  { %v5168_v53 = vpop.f32.mrf.mxu2 }
 0x8cf   :  { %v5169_v3 = vadd.f32 %v5168_v53, %v11801_v28  ;;  %v12193_v28 = vsel %vm5681_vm11, %v5256_v37, %v5745_v46  ;;  %v13567_v53 = vld [vmem:[#allocation51_spill] sm:$0xff] }
 0x8d0   :  { %v5349_v12 = vpop.f32.mrf.mxu0 }
 0x8d1   :  { %v5257_v45 = vpop.f32.mrf.mxu3  ;;  %v5350_v15 = vadd.f32 %v5349_v12, %v11906_v55  ;;  %v5438_v20 = vpop.f32.mrf.mxu1 }
 0x8d2   :  { %v5258_v32 = vadd.f32 %v5257_v45, %v5169_v3  ;;  %v13563_v3 = vld [vmem:[#allocation63_spill] sm:$0xff] }
 0x8d3   :  { %v12186_v36 = vadd.f32 %v5438_v20, %v5350_v15  ;;  %5486 = vmatmul.bf16.gmra.mxu2 %v13499_v54  ;;  %6020 = vmatmul.bf16.gmra.mxu0 %v13562_v62 }
 0x8d4   :  { %vm5683_vm12 = vcmp.gt.f32.partialorder %v5258_v32, 0.0  ;;  %v5747_v61 = vmul.f32 0.1, %v5258_v32 }
 0x8d6   :  { %5575 = vmatmul.bf16.gmra.mxu3 %v11613_v47  ;;  %v12195_v21 = vsel %vm5683_vm12, %v5258_v32, %v5747_v61  ;;  %v5171_v1 = vpop.f32.mrf.mxu2  ;;  %v7879_v47 = vld [vmem:[%s12687_s3 + $0x48] sm:$0xff] }
 0x8d7   :  { %v5172_v45 = vadd.f32 %v5171_v1, %v13563_v3  ;;  %6092 = vmatpush.bf16.msrb.mxu1 %v7879_v47  ;;  %v13566_v47 = vpack.c.bf16 %v12059_v24, %v12057_v33 }
 0x8d8   :  { %v12200_v15 = vpop.f32.mrf.mxu0 }
 0x8d9   :  { %v5260_v12 = vpop.f32.mrf.mxu3  ;;  %v12202_v20 = vpop.f32.mrf.mxu1 }
 0x8da   :  { %v5261_v54 = vadd.f32 %v5260_v12, %v5172_v45  ;;  %v13565_v12 = vld [vmem:[#allocation99_spill] sm:$0xff] }
 0x8dc   :  { %v5749_v46 = vmul.f32 0.1, %v5261_v54  ;;  %vm5685_vm13 = vcmp.gt.f32.partialorder %v5261_v54, 0.0 }
 0x8de   :  { %v5173_v23 = vpop.f32.mrf.mxu2 }
 0x8df   :  { %v5174_v30 = vadd.f32 %v5173_v23, %v11815_v48  ;;  %v12216_v48 = vsel %vm5685_vm13, %v5261_v54, %v5749_v46 }
 0x8e0   :  { %v5354_v37 = vpop.f32.mrf.mxu0 }
 0x8e1   :  { %v5262_v61 = vpop.f32.mrf.mxu3  ;;  %v5355_v62 = vadd.f32 %v5354_v37, %v11906_v55  ;;  %v5443_v1 = vpop.f32.mrf.mxu1  ;;  %v13568_v37 = vld [vmem:[#allocation62_spill] sm:$0xff] }
 0x8e2   :  { %v5263_v32 = vadd.f32 %v5262_v61, %v5174_v30 }
 0x8e3   :  { %v12209_v45 = vadd.f32 %v5443_v1, %v5355_v62  ;;  %5491 = vmatmul.bf16.gmra.mxu2 %v13565_v12  ;;  %6025 = vmatmul.bf16.gmra.mxu0 %v13566_v47 }
 0x8e4   :  { %vm5687_vm14 = vcmp.gt.f32.partialorder %v5263_v32, 0.0  ;;  %v5751_v3 = vmul.f32 0.1, %v5263_v32 }
 0x8e5   :  { %13564 = vst [vmem:[#allocation85_spill] sm:$0xff] %v12209_v45 }
 0x8e6   :  { %5580 = vmatmul.bf16.gmra.mxu3 %v13567_v53  ;;  %v12218_v23 = vsel %vm5687_vm14, %v5263_v32, %v5751_v3  ;;  %v5176_v30 = vpop.f32.mrf.mxu2 }
 0x8e7   :  { %v5177_v31 = vadd.f32 %v5176_v30, %v13568_v37 }
 0x8e8   :  { %v12223_v1 = vpop.f32.mrf.mxu0 }
 0x8e9   :  { %v5265_v62 = vpop.f32.mrf.mxu3  ;;  %v12225_v45 = vpop.f32.mrf.mxu1 }
 0x8ea   :  { %v5266_v12 = vadd.f32 %v5265_v62, %v5177_v31  ;;  %v13569_v31 = vpack.c.bf16 %v12090_v27, %v12088_v56 }
 0x8ec   :  { %v5753_v46 = vmul.f32 0.1, %v5266_v12  ;;  %vm5689_vm15 = vcmp.gt.f32.partialorder %v5266_v12, 0.0 }
 0x8ee   :  { %v5178_v33 = vpop.f32.mrf.mxu2 }
 0x8ef   :  { %v5179_v24 = vadd.f32 %v5178_v33, %v11841_v60  ;;  %v12236_v60 = vsel %vm5689_vm15, %v5266_v12, %v5753_v46  ;;  %v13575_v33 = vld [vmem:[#allocation55_spill] sm:$0xff] }
 0x8f0   :  { %v5359_v54 = vpop.f32.mrf.mxu0 }
 0x8f1   :  { %v5267_v53 = vpop.f32.mrf.mxu3  ;;  %v5360_v3 = vadd.f32 %v5359_v54, %v11906_v55  ;;  %v5448_v47 = vpop.f32.mrf.mxu1 }
 0x8f2   :  { %v5268_v32 = vadd.f32 %v5267_v53, %v5179_v24  ;;  %v13570_v24 = vld [vmem:[#allocation33_spill] sm:$0xff] }
 0x8f3   :  { %v12229_v30 = vadd.f32 %v5448_v47, %v5360_v3  ;;  %5496 = vmatmul.bf16.gmra.mxu2 %v13508_v29  ;;  %6030 = vmatmul.bf16.gmra.mxu0 %v13569_v31 }
 0x8f4   :  { %vm5691_vm1 = vcmp.gt.f32.partialorder %v5268_v32, 0.0  ;;  %v5755_v61 = vmul.f32 0.1, %v5268_v32 }
 0x8f6   :  { %5585 = vmatmul.bf16.gmra.mxu3 %v11716_v18  ;;  %v12238_v37 = vsel %vm5691_vm1, %v5268_v32, %v5755_v61  ;;  %v5181_v62 = vpop.f32.mrf.mxu2  ;;  %v7878_v18 = vld [vmem:[%s12687_s3 + $0x40] sm:$0xff] }
 0x8f7   :  { %v5182_v53 = vadd.f32 %v5181_v62, %v13570_v24  ;;  %6093 = vmatpush.bf16.msrb.mxu1 %v7878_v18  ;;  %v13574_v18 = vpack.c.bf16 %v12109_v44, %v12107_v7 }
 0x8f8   :  { %v12243_v3 = vpop.f32.mrf.mxu0 }
 0x8f9   :  { %v5270_v54 = vpop.f32.mrf.mxu3  ;;  %v12245_v47 = vpop.f32.mrf.mxu1 }
 0x8fa   :  { %v5271_v29 = vadd.f32 %v5270_v54, %v5182_v53  ;;  %13571 = vst [vmem:[#allocation68_spill] sm:$0xff] %v12245_v47  ;;  %v13573_v54 = vld [vmem:[#allocation104_spill] sm:$0xff] }
 0x8fc   :  { %v5757_v46 = vmul.f32 0.1, %v5271_v29  ;;  %vm5693_vm2 = vcmp.gt.f32.partialorder %v5271_v29, 0.0 }
 0x8fe   :  { %v5183_v56 = vpop.f32.mrf.mxu2 }
 0x8ff   :  { %v5184_v27 = vadd.f32 %v5183_v56, %v11855_v38  ;;  %v12259_v38 = vsel %vm5693_vm2, %v5271_v29, %v5757_v46 }
 0x900   :  { %v5364_v12 = vpop.f32.mrf.mxu0 }
 0x901   :  { %v5272_v61 = vpop.f32.mrf.mxu3  ;;  %v5365_v31 = vadd.f32 %v5364_v12, %v11906_v55  ;;  %v5453_v62 = vpop.f32.mrf.mxu1  ;;  %v13576_v12 = vld [vmem:[#allocation67_spill] sm:$0xff] }
 0x902   :  { %v5273_v32 = vadd.f32 %v5272_v61, %v5184_v27 }
 0x903   :  { %v12252_v53 = vadd.f32 %v5453_v62, %v5365_v31  ;;  %5501 = vmatmul.bf16.gmra.mxu2 %v13573_v54  ;;  %6035 = vmatmul.bf16.gmra.mxu0 %v13574_v18 }
 0x904   :  { %vm5695_vm3 = vcmp.gt.f32.partialorder %v5273_v32, 0.0  ;;  %v5759_v24 = vmul.f32 0.1, %v5273_v32 }
 0x905   :  { %13572 = vst [vmem:[#allocation18_spill] sm:$0xff] %v12252_v53 }
 0x906   :  { %5590 = vmatmul.bf16.gmra.mxu3 %v13575_v33  ;;  %v12261_v56 = vsel %vm5695_vm3, %v5273_v32, %v5759_v24  ;;  %v5186_v27 = vpop.f32.mrf.mxu2 }
 0x907   :  { %v5187_v47 = vadd.f32 %v5186_v27, %v13576_v12 }
 0x908   :  { %v12266_v62 = vpop.f32.mrf.mxu0 }
 0x909   :  { %v5275_v31 = vpop.f32.mrf.mxu3  ;;  %v12268_v53 = vpop.f32.mrf.mxu1 }
 0x90a   :  { %v5276_v54 = vadd.f32 %v5275_v31, %v5187_v47  ;;  %v13577_v47 = vpack.c.bf16 %v12132_v43, %v12130_v50 }
 0x90c   :  { %v5761_v46 = vmul.f32 0.1, %v5276_v54  ;;  %vm5697_vm4 = vcmp.gt.f32.partialorder %v5276_v54, 0.0 }
 0x90e   :  { %v5188_v7 = vpop.f32.mrf.mxu2 }
 0x90f   :  { %v5189_v44 = vadd.f32 %v5188_v7, %v11881_v0  ;;  %v12279_v0 = vsel %vm5697_vm4, %v5276_v54, %v5761_v46  ;;  %v13579_v54 = vld [vmem:[#allocation12_spill] sm:$0xff] }
 0x910   :  { %v5369_v29 = vpop.f32.mrf.mxu0 }
 0x911   :  { %v5277_v33 = vpop.f32.mrf.mxu3  ;;  %v5370_v24 = vadd.f32 %v5369_v29, %v11906_v55  ;;  %v5458_v18 = vpop.f32.mrf.mxu1 }
 0x912   :  { %v5278_v32 = vadd.f32 %v5277_v33, %v5189_v44 }
 0x913   :  { %v12272_v27 = vadd.f32 %v5458_v18, %v5370_v24  ;;  %5506 = vmatmul.bf16.gmra.mxu2 %v13517_v10  ;;  %6040 = vmatmul.bf16.gmra.mxu0 %v13577_v47 }
 0x914   :  { %vm5699_vm5 = vcmp.gt.f32.partialorder %v5278_v32, 0.0  ;;  %v5763_v61 = vmul.f32 0.1, %v5278_v32 }
 0x916   :  { %5595 = vmatmul.bf16.gmra.mxu3 %v11757_v26  ;;  %v12281_v12 = vsel %vm5699_vm5, %v5278_v32, %v5763_v61  ;;  %v5191_v31 = vpop.f32.mrf.mxu2  ;;  %v13578_v61 = vpack.c.bf16 %v12152_v13, %v12150_v16 }
 0x917   :  { %v5192_v44 = vadd.f32 %v5191_v31, %v11885_v6  ;;  %v13580_v31 = vld [vmem:[#allocation75_spill] sm:$0xff] }
 0x919   :  { %v5280_v33 = vpop.f32.mrf.mxu3 }
 0x91a   :  { %v5281_v29 = vadd.f32 %v5280_v33, %v5192_v44 }
 0x91c   :  { %v5765_v50 = vmul.f32 0.1, %v5281_v29  ;;  %vm5701_vm0 = vcmp.gt.f32.partialorder %v5281_v29, 0.0 }
 0x91e   :  { %v5193_v24 = vpop.f32.mrf.mxu2  ;;  %v12292_v6 = vsel %vm5701_vm0, %v5281_v29, %v5765_v50  ;;  %v13582_v50 = vpack.c.bf16 %v12175_v17, %v12173_v22  ;;  %v12307_v22 = vpop.f32.mrf.mxu0 }
 0x91f   :  { %v5194_v10 = vadd.f32 %v5193_v24, %v11895_v57 }
 0x921   :  { %v5282_v18 = vpop.f32.mrf.mxu3 }
 0x922   :  { %v5283_v43 = vadd.f32 %v5282_v18, %v5194_v10  ;;  %v13581_v18 = vld [vmem:[#allocation39_spill] sm:$0xff] }
 0x923   :  { %5511 = vmatmul.bf16.gmra.mxu2 %v13522_v51  ;;  %6045 = vmatmul.bf16.gmra.mxu0 %v13578_v61 }
 0x924   :  { %vm5703_vm6 = vcmp.gt.f32.partialorder %v5283_v43, 0.0  ;;  %v5767_v26 = vmul.f32 0.1, %v5283_v43 }
 0x926   :  { %5600 = vmatmul.bf16.gmra.mxu3 %v13579_v54  ;;  %v12294_v46 = vsel %vm5703_vm6, %v5283_v43, %v5767_v26  ;;  %v5472_v32 = vpop.f32.mrf.mxu2  ;;  %v13583_v43 = vld [vmem:[#allocation29_spill] sm:$0xff] }
 0x927   :  { %v5473_v44 = vadd.f32 %v5472_v32, %v13580_v31 }
 0x929   :  { %v5561_v47 = vpop.f32.mrf.mxu3 }
 0x92a   :  { %v5562_v33 = vadd.f32 %v5561_v47, %v5473_v44 }
 0x92c   :  { %v5706_v16 = vmul.f32 0.1, %v5562_v33  ;;  %vm5642_vm7 = vcmp.gt.f32.partialorder %v5562_v33, 0.0 }
 0x92e   :  { %v5474_v24 = vpop.f32.mrf.mxu2  ;;  %v5770_v26 = vsel %vm5642_vm7, %v5562_v33, %v5706_v16  ;;  %v13586_v33 = vld [vmem:[#allocation40_spill] sm:$0xff]  ;;  %v13587_v16 = vpack.c.bf16 %v12195_v21, %v12193_v28 }
 0x92f   :  { %v5475_v51 = vadd.f32 %v5474_v24, %v11932_v14  ;;  %v13584_v14 = vld [vmem:[#allocation73_spill] sm:$0xff] }
 0x931   :  { %v5563_v10 = vpop.f32.mrf.mxu3 }
 0x932   :  { %v5564_v13 = vadd.f32 %v5563_v10, %v5475_v51  ;;  %v13585_v51 = vld [vmem:[#allocation74_spill] sm:$0xff] }
 0x933   :  { %5516 = vmatmul.bf16.gmra.mxu2 %v13581_v18  ;;  %6050 = vmatmul.bf16.gmra.mxu0 %v13582_v50 }
 0x934   :  { %vm5644_vm8 = vcmp.gt.f32.partialorder %v5564_v13, 0.0  ;;  %v5708_v29 = vmul.f32 0.1, %v5564_v13 }
 0x936   :  { %5605 = vmatmul.bf16.gmra.mxu3 %v13583_v43  ;;  %v5772_v61 = vsel %vm5644_vm8, %v5564_v13, %v5708_v29  ;;  %v5477_v32 = vpop.f32.mrf.mxu2  ;;  %v13588_v13 = vld [vmem:[#allocation61_spill] sm:$0xff] }
 0x937   :  { %v5834_v54 = vpack.c.bf16 %v5772_v61, %v5770_v26  ;;  %v5478_v31 = vadd.f32 %v5477_v32, %v13584_v14  ;;  %v12315_v32 = vpop.f32.mrf.mxu0 }
 0x939   :  { %v5566_v47 = vpop.f32.mrf.mxu3  ;;  %6094 = vmatmul.bf16.vlgmr.msrb.gmra.mxu1 %v5834_v54 }
 0x93a   :  { %v5567_v44 = vadd.f32 %v5566_v47, %v5478_v31 }
 0x93c   :  { %v5710_v18 = vmul.f32 0.1, %v5567_v44  ;;  %vm5646_vm9 = vcmp.gt.f32.partialorder %v5567_v44, 0.0 }
 0x93e   :  { %v5479_v24 = vpop.f32.mrf.mxu2  ;;  %v5774_v29 = vsel %vm5646_vm9, %v5567_v44, %v5710_v18 }
 0x93f   :  { %v5480_v10 = vadd.f32 %v5479_v24, %v13585_v51 }
 0x941   :  { %v5568_v57 = vpop.f32.mrf.mxu3 }
 0x942   :  { %v5569_v7 = vadd.f32 %v5568_v57, %v5480_v10  ;;  %v13589_v57 = vld [vmem:[#allocation20_spill] sm:$0xff] }
 0x943   :  { %5521 = vmatmul.bf16.gmra.mxu2 %v13586_v33  ;;  %6055 = vmatmul.bf16.gmra.mxu0 %v13587_v16  ;;  %v12323_v33 = vpop.f32.mrf.mxu0 }
 0x944   :  { %vm5648_vm10 = vcmp.gt.f32.partialorder %v5569_v7, 0.0  ;;  %v5712_v17 = vmul.f32 0.1, %v5569_v7 }
 0x946   :  { %5610 = vmatmul.bf16.gmra.mxu3 %v13588_v13  ;;  %v5776_v50 = vsel %vm5648_vm10, %v5569_v7, %v5712_v17  ;;  %v5482_v43 = vpop.f32.mrf.mxu2  ;;  %v13590_v7 = vpack.c.bf16 %v12218_v23, %v12216_v48 }
 0x947   :  { %v5836_v26 = vpack.c.bf16 %v5776_v50, %v5774_v29  ;;  %v5483_v54 = vadd.f32 %v5482_v43, %v13589_v57  ;;  %v13593_v57 = vld [vmem:[#allocation69_spill] sm:$0xff] }
 0x949   :  { %v5571_v61 = vpop.f32.mrf.mxu3  ;;  %6099 = vmatmul.bf16.gmra.mxu1 %v5836_v26  ;;  %v13591_v26 = vld [vmem:[#allocation31_spill] sm:$0xff] }
 0x94a   :  { %v5572_v47 = vadd.f32 %v5571_v61, %v5483_v54  ;;  %v13592_v61 = vpack.c.bf16 %v12238_v37, %v12236_v60 }
 0x94b   :  { %v12327_v43 = vpop.f32.mrf.mxu0 }
 0x94c   :  { %v5714_v51 = vmul.f32 0.1, %v5572_v47  ;;  %vm5650_vm11 = vcmp.gt.f32.partialorder %v5572_v47, 0.0 }
 0x94e   :  { %v5484_v14 = vpop.f32.mrf.mxu2  ;;  %v5778_v44 = vsel %vm5650_vm11, %v5572_v47, %v5714_v51 }
 0x94f   :  { %v5485_v31 = vadd.f32 %v5484_v14, %v11986_v25 }
 0x951   :  { %v5573_v24 = vpop.f32.mrf.mxu3 }
 0x952   :  { %v5574_v28 = vadd.f32 %v5573_v24, %v5485_v31  ;;  %v5317_v31 = vadd.f32 %v12039_v41, %v11906_v55  ;;  %v13594_v24 = vld [vmem:[#allocation10_spill] sm:$0xff]  ;;  %v13596_v41 = vpack.c.bf16 %v12261_v56, %v12259_v38 }
 0x953   :  { %5526 = vmatmul.bf16.gmra.mxu2 %v13535_v52  ;;  %6060 = vmatmul.bf16.gmra.mxu0 %v13590_v7 }
 0x954   :  { %vm5652_vm12 = vcmp.gt.f32.partialorder %v5574_v28, 0.0  ;;  %v5716_v21 = vmul.f32 0.1, %v5574_v28 }
 0x956   :  { %5615 = vmatmul.bf16.gmra.mxu3 %v11837_v49  ;;  %v5780_v10 = vsel %vm5652_vm12, %v5574_v28, %v5716_v21  ;;  %v5487_v18 = vpop.f32.mrf.mxu2  ;;  %v12337_v28 = vpop.f32.mrf.mxu0  ;;  %v5406_v21 = vadd.f32 %v12041_v5, %v5317_v31 }
 0x957   :  { %v5838_v17 = vpack.c.bf16 %v5780_v10, %v5778_v44  ;;  %v5488_v16 = vadd.f32 %v5487_v18, %v11990_v63 }
 0x959   :  { %v5576_v25 = vpop.f32.mrf.mxu3  ;;  %6104 = vmatmul.bf16.gmra.mxu1 %v5838_v17 }
 0x95a   :  { %v5577_v13 = vadd.f32 %v5576_v25, %v5488_v16  ;;  %v13595_v25 = vld [vmem:[#allocation13_spill] sm:$0xff]  ;;  %v13597_v16 = vld [vmem:[#allocation24_spill] sm:$0xff] }
 0x95c   :  { %v5718_v48 = vmul.f32 0.1, %v5577_v13  ;;  %vm5654_vm13 = vcmp.gt.f32.partialorder %v5577_v13, 0.0 }
 0x95e   :  { %v5489_v29 = vpop.f32.mrf.mxu2  ;;  %v5782_v63 = vsel %vm5654_vm13, %v5577_v13, %v5718_v48  ;;  %v12345_v13 = vpop.f32.mrf.mxu0 }
 0x95f   :  { %v5490_v52 = vadd.f32 %v5489_v29, %v12004_v9 }
 0x961   :  { %v5578_v50 = vpop.f32.mrf.mxu3 }
 0x962   :  { %v5579_v23 = vadd.f32 %v5578_v50, %v5490_v52 }
 0x963   :  { %5531 = vmatmul.bf16.gmra.mxu2 %v13591_v26  ;;  %6065 = vmatmul.bf16.gmra.mxu0 %v13592_v61  ;;  %v13599_v26 = vld [vmem:[#allocation81_spill] sm:$0xff] }
 0x964   :  { %vm5656_vm14 = vcmp.gt.f32.partialorder %v5579_v23, 0.0  ;;  %v5720_v49 = vmul.f32 0.1, %v5579_v23 }
 0x966   :  { %5620 = vmatmul.bf16.gmra.mxu3 %v13593_v57  ;;  %v5784_v54 = vsel %vm5656_vm14, %v5579_v23, %v5720_v49  ;;  %v5492_v47 = vpop.f32.mrf.mxu2  ;;  %v13598_v23 = vld [vmem:[#allocation79_spill] sm:$0xff]  ;;  %v13600_v57 = vld [vmem:[#allocation28_spill] sm:$0xff]  ;;  %v12351_v56 = vpop.f32.mrf.mxu0 }
 0x967   :  { %v5840_v9 = vpack.c.bf16 %v5784_v54, %v5782_v63  ;;  %v5493_v51 = vadd.f32 %v5492_v47, %v13594_v24  ;;  %v5322_v49 = vadd.f32 %v13598_v23, %v11906_v55 }
 0x969   :  { %v5581_v14 = vpop.f32.mrf.mxu3  ;;  %6109 = vmatmul.bf16.gmra.mxu1 %v5840_v9  ;;  %v5411_v63 = vadd.f32 %v13600_v57, %v5322_v49 }
 0x96a   :  { %v5582_v7 = vadd.f32 %v5581_v14, %v5493_v51  ;;  %v13601_v51 = vld [vmem:[#allocation45_spill] sm:$0xff] }
 0x96c   :  { %v5722_v10 = vmul.f32 0.1, %v5582_v7  ;;  %vm5658_vm15 = vcmp.gt.f32.partialorder %v5582_v7, 0.0 }
 0x96e   :  { %v5494_v60 = vpop.f32.mrf.mxu2  ;;  %v5786_v5 = vsel %vm5658_vm15, %v5582_v7, %v5722_v10  ;;  %v13603_v7 = vld [vmem:[#allocation6_spill] sm:$0xff] }
 0x96f   :  { %v5495_v37 = vadd.f32 %v5494_v60, %v5406_v21  ;;  %v13602_v21 = vpack.c.bf16 %v12281_v12, %v12279_v0 }
 0x971   :  { %v5583_v44 = vpop.f32.mrf.mxu3 }
 0x972   :  { %v5584_v18 = vadd.f32 %v5583_v44, %v5495_v37 }
 0x973   :  { %5536 = vmatmul.bf16.gmra.mxu2 %v13595_v25  ;;  %6070 = vmatmul.bf16.gmra.mxu0 %v13596_v41  ;;  %v12360_v25 = vpop.f32.mrf.mxu0  ;;  %v13604_v41 = vld [vmem:[#allocation36_spill] sm:$0xff] }
 0x974   :  { %vm5660_vm1 = vcmp.gt.f32.partialorder %v5584_v18, 0.0  ;;  %v5724_v17 = vmul.f32 0.1, %v5584_v18 }
 0x976   :  { %5625 = vmatmul.bf16.gmra.mxu3 %v13597_v16  ;;  %v5788_v29 = vsel %vm5660_vm1, %v5584_v18, %v5724_v17  ;;  %v5497_v52 = vpop.f32.mrf.mxu2  ;;  %v5327_v17 = vadd.f32 %v12095_v8, %v11906_v55  ;;  %v13606_v8 = vpack.c.bf16 %v12294_v46, %v12292_v6 }
 0x977   :  { %v5842_v50 = vpack.c.bf16 %v5788_v29, %v5786_v5  ;;  %v5498_v61 = vadd.f32 %v5497_v52, %v13599_v26  ;;  %v13605_v26 = vld [vmem:[#allocation43_spill] sm:$0xff] }
 0x978   :  { %v5416_v5 = vadd.f32 %v12097_v40, %v5327_v17  ;;  %v13609_v17 = vld [vmem:[#allocation84_spill] sm:$0xff] }
 0x979   :  { %v5586_v48 = vpop.f32.mrf.mxu3  ;;  %6114 = vmatmul.bf16.gmra.mxu1 %v5842_v50 }
 0x97a   :  { %v5587_v54 = vadd.f32 %v5586_v48, %v5498_v61 }
 0x97b   :  { %v12364_v23 = vpop.f32.mrf.mxu0 }
 0x97c   :  { %v5726_v14 = vmul.f32 0.1, %v5587_v54  ;;  %vm5662_vm2 = vcmp.gt.f32.partialorder %v5587_v54, 0.0 }
 0x97e   :  { %v5499_v38 = vpop.f32.mrf.mxu2  ;;  %v5790_v60 = vsel %vm5662_vm2, %v5587_v54, %v5726_v14  ;;  %v13608_v14 = vld [vmem:[#allocation86_spill] sm:$0xff] }
 0x97f   :  { %v5500_v47 = vadd.f32 %v5499_v38, %v5411_v63  ;;  %v5332_v38 = vadd.f32 %v12114_v59, %v11906_v55  ;;  %v5337_v59 = vadd.f32 %v12137_v34, %v11906_v55 }
 0x981   :  { %v5588_v9 = vpop.f32.mrf.mxu3 }
 0x982   :  { %v5589_v31 = vadd.f32 %v5588_v9, %v5500_v47  ;;  %v13607_v47 = vld [vmem:[#allocation14_spill] sm:$0xff] }
 0x983   :  { %5541 = vmatmul.bf16.gmra.mxu2 %v13601_v51  ;;  %6075 = vmatmul.bf16.gmra.mxu0 %v13602_v21 }
 0x984   :  { %vm5664_vm3 = vcmp.gt.f32.partialorder %v5589_v31, 0.0  ;;  %v5728_v24 = vmul.f32 0.1, %v5589_v31 }
 0x986   :  { %5630 = vmatmul.bf16.gmra.mxu3 %v13603_v7  ;;  %v5792_v37 = vsel %vm5664_vm3, %v5589_v31, %v5728_v24  ;;  %v5502_v44 = vpop.f32.mrf.mxu2  ;;  %v5421_v31 = vadd.f32 %v13608_v14, %v5332_v38  ;;  %v12391_v38 = vld [vmem:[%s12688_s4] ss:$0 sm:$0xff] }
 0x987   :  { %v5844_v10 = vpack.c.bf16 %v5792_v37, %v5790_v60  ;;  %v5503_v16 = vadd.f32 %v5502_v44, %v13604_v41 }
 0x989   :  { %v5591_v18 = vpop.f32.mrf.mxu3  ;;  %6119 = vmatmul.bf16.gmra.mxu1 %v5844_v10 }
 0x98a   :  { %v5592_v29 = vadd.f32 %v5591_v18, %v5503_v16  ;;  %v5426_v16 = vadd.f32 %v12139_v2, %v5337_v59 }
 0x98c   :  { %v5730_v50 = vmul.f32 0.1, %v5592_v29  ;;  %vm5666_vm4 = vcmp.gt.f32.partialorder %v5592_v29, 0.0 }
 0x98e   :  { %v5504_v0 = vpop.f32.mrf.mxu2  ;;  %v5794_v40 = vsel %vm5666_vm4, %v5592_v29, %v5730_v50  ;;  %v12384_v50 = vld [vmem:[%s12684_s5 + $0x6] ss:$0 sm:$0xff] }
 0x98f   :  { %v5505_v12 = vadd.f32 %v5504_v0, %v5416_v5  ;;  %v12379_v5 = vpop.f32.mrf.mxu1 }
 0x991   :  { %v5593_v52 = vpop.f32.mrf.mxu3 }
 0x992   :  { %v5594_v48 = vadd.f32 %v5593_v52, %v5505_v12 }
 0x993   :  { %5546 = vmatmul.bf16.gmra.mxu2 %v13605_v26  ;;  %6080 = vmatmul.bf16.gmra.mxu0 %v13606_v8  ;;  %v6007_v26 = vadd.f32 %v12384_v50, %v12315_v32 }
 0x994   :  { %vm5668_vm5 = vcmp.gt.f32.partialorder %v5594_v48, 0.0  ;;  %v5732_v49 = vmul.f32 0.1, %v5594_v48 }
 0x996   :  { %5635 = vmatmul.bf16.gmra.mxu3 %v11928_v39  ;;  %v5796_v61 = vsel %vm5668_vm5, %v5594_v48, %v5732_v49  ;;  %v5507_v57 = vpop.f32.mrf.mxu2 }
 0x997   :  { %v5846_v63 = vpack.c.bf16 %v5796_v61, %v5794_v40  ;;  %v5508_v9 = vadd.f32 %v5507_v57, %v13607_v47 }
 0x999   :  { %v5596_v54 = vpop.f32.mrf.mxu3  ;;  %6124 = vmatmul.bf16.gmra.mxu1 %v5846_v63 }
 0x99a   :  { %v5597_v24 = vadd.f32 %v5596_v54, %v5508_v9  ;;  %v5342_v9 = vadd.f32 %v12157_v11, %v11906_v55 }
 0x99c   :  { %v5734_v46 = vmul.f32 0.1, %v5597_v24  ;;  %vm5670_vm0 = vcmp.gt.f32.partialorder %v5597_v24, 0.0 }
 0x99e   :  { %v5509_v51 = vpop.f32.mrf.mxu2  ;;  %v5798_v60 = vsel %vm5670_vm0, %v5597_v24, %v5734_v46  ;;  %v6009_v24 = vadd.f32 %v12384_v50, %v12323_v33 }
 0x99f   :  { %v5510_v21 = vadd.f32 %v5509_v51, %v5421_v31  ;;  %v5431_v51 = vadd.f32 %v12159_v19, %v5342_v9  ;;  %v6012_v19 = vadd.f32 %v12384_v50, %v12327_v43  ;;  %v6014_v43 = vadd.f32 %v12384_v50, %v12337_v28 }
 0x9a1   :  { %v5598_v6 = vpop.f32.mrf.mxu3 }
 0x9a2   :  { %v5599_v7 = vadd.f32 %v5598_v6, %v5510_v21 }
 0x9a4   :  { %vm5672_vm6 = vcmp.gt.f32.partialorder %v5599_v7, 0.0  ;;  %v5736_v39 = vmul.f32 0.1, %v5599_v7 }
 0x9a6   :  { %v5800_v37 = vsel %vm5672_vm6, %v5599_v7, %v5736_v39  ;;  %v5512_v44 = vpop.f32.mrf.mxu2 }
 0x9a7   :  { %v5848_v10 = vpack.c.bf16 %v5800_v37, %v5798_v60  ;;  %v5513_v41 = vadd.f32 %v5512_v44, %v13609_v17 }
 0x9a9   :  { %v5601_v18 = vpop.f32.mrf.mxu3  ;;  %6129 = vmatmul.bf16.gmra.mxu1 %v5848_v10  ;;  %v12400_v10 = vpop.f32.mrf.mxu0 }
 0x9aa   :  { %v5602_v29 = vadd.f32 %v5601_v18, %v5513_v41 }
 0x9ac   :  { %v5738_v48 = vmul.f32 0.1, %v5602_v29  ;;  %vm5674_vm7 = vcmp.gt.f32.partialorder %v5602_v29, 0.0 }
 0x9ae   :  { %v5514_v0 = vpop.f32.mrf.mxu2  ;;  %v5802_v8 = vsel %vm5674_vm7, %v5602_v29, %v5738_v48  ;;  %v5347_v48 = vadd.f32 %v12180_v42, %v11906_v55 }
 0x9af   :  { %v5515_v12 = vadd.f32 %v5514_v0, %v5426_v16 }
 0x9b1   :  { %v5603_v52 = vpop.f32.mrf.mxu3 }
 0x9b2   :  { %v5604_v49 = vadd.f32 %v5603_v52, %v5515_v12 }
 0x9b4   :  { %vm5676_vm8 = vcmp.gt.f32.partialorder %v5604_v49, 0.0  ;;  %v5740_v34 = vmul.f32 0.1, %v5604_v49 }
 0x9b6   :  { %v6095_v2 = vpop.f32.mrf.mxu1  ;;  %v5804_v40 = vsel %vm5676_vm8, %v5604_v49, %v5740_v34  ;;  %v5517_v57 = vpop.f32.mrf.mxu2 }
 0x9b7   :  { %v6096_v61 = vadd.f32 %v6095_v2, %v6007_v26  ;;  %v5850_v63 = vpack.c.bf16 %v5804_v40, %v5802_v8  ;;  %v5518_v32 = vadd.f32 %v5517_v57, %v12143_v4  ;;  %v5436_v2 = vadd.f32 %v12182_v58, %v5347_v48  ;;  %v12412_v8 = vpop.f32.mrf.mxu0 }
 0x9b8   :  { %v6017_v58 = vadd.f32 %v12384_v50, %v12345_v13 }
 0x9b9   :  { %v5606_v54 = vpop.f32.mrf.mxu3  ;;  %v6207_v47 = vmul.f32 0.1, %v6096_v61  ;;  %6134 = vmatmul.bf16.gmra.mxu1 %v5850_v63  ;;  %vm6175_vm9 = vcmp.gt.f32.partialorder %v6096_v61, 0.0 }
 0x9ba   :  { %v5607_v21 = vadd.f32 %v5606_v54, %v5518_v32 }
 0x9bb   :  { %v6239_v14 = vsel %vm6175_vm9, %v6096_v61, %v6207_v47 }
 0x9bc   :  { %v6275_v31 = vmul.f32 %v12391_v38, %v6239_v14  ;;  %v5742_v11 = vmul.f32 0.1, %v5607_v21  ;;  %vm5678_vm11 = vcmp.gt.f32.partialorder %v5607_v21, 0.0 }
 0x9be   :  { %v6097_v6 = vpop.f32.mrf.mxu1  ;;  %6307 = vadd.xlane.f32.xlu0 %v6275_v31  ;;  %v5519_v7 = vpop.f32.mrf.mxu2  ;;  %v5806_v17 = vsel %vm5678_vm11, %v5607_v21, %v5742_v11 }
 0x9bf   :  { %v6098_v46 = vadd.f32 %v6097_v6, %v6009_v24  ;;  %v5520_v39 = vadd.f32 %v5519_v7, %v5431_v51  ;;  %v12417_v7 = vpop.f32.mrf.mxu0 }
 0x9c1   :  { %v5608_v60 = vpop.f32.mrf.mxu3  ;;  %v6208_v37 = vmul.f32 0.1, %v6098_v46  ;;  %vm6176_vm10 = vcmp.gt.f32.partialorder %v6098_v46, 0.0 }
 0x9c2   :  { %v5609_v44 = vadd.f32 %v5608_v60, %v5520_v39 }
 0x9c3   :  { %v6240_v4 = vsel %vm6176_vm10, %v6098_v46, %v6208_v37  ;;  %v5352_v37 = vadd.f32 %v12200_v15, %v11906_v55 }
 0x9c4   :  { %vm5680_vm12 = vcmp.gt.f32.partialorder %v5609_v44, 0.0  ;;  %v5744_v18 = vmul.f32 0.1, %v5609_v44  ;;  %v6276_v33 = vmul.f32 %v12391_v38, %v6240_v4  ;;  %v6019_v4 = vadd.f32 %v12384_v50, %v12351_v56 }
 0x9c6   :  { %v6100_v59 = vpop.f32.mrf.mxu1  ;;  %6309 = vadd.xlane.f32.xlu0 %v6276_v33  ;;  %v5808_v41 = vsel %vm5680_vm12, %v5609_v44, %v5744_v18  ;;  %v5522_v29 = vpop.f32.mrf.mxu2  ;;  %v5441_v18 = vadd.f32 %v12202_v20, %v5352_v37  ;;  %v6022_v20 = vadd.f32 %v12384_v50, %v12360_v25 }
 0x9c7   :  { %v6101_v16 = vadd.f32 %v6100_v59, %v6012_v19  ;;  %v5852_v0 = vpack.c.bf16 %v5808_v41, %v5806_v17  ;;  %v5523_v49 = vadd.f32 %v5522_v29, %v12166_v35  ;;  %v12426_v15 = vpop.f32.mrf.mxu0 }
 0x9c9   :  { %v5611_v12 = vpop.f32.mrf.mxu3  ;;  %v6209_v52 = vmul.f32 0.1, %v6101_v16  ;;  %6139 = vmatmul.bf16.gmra.mxu1 %v5852_v0  ;;  %vm6177_vm13 = vcmp.gt.f32.partialorder %v6101_v16, 0.0 }
 0x9ca   :  { %v5612_v40 = vadd.f32 %v5611_v12, %v5523_v49 }
 0x9cb   :  { %v6241_v34 = vsel %vm6177_vm13, %v6101_v16, %v6209_v52 }
 0x9cc   :  { %v6277_v26 = vmul.f32 %v12391_v38, %v6241_v34  ;;  %v5746_v35 = vmul.f32 0.1, %v5612_v40  ;;  %vm5682_vm15 = vcmp.gt.f32.partialorder %v5612_v40, 0.0 }
 0x9ce   :  { %v6102_v61 = vpop.f32.mrf.mxu1  ;;  %6311 = vadd.xlane.f32.xlu1 %v6277_v26  ;;  %v5524_v63 = vpop.f32.mrf.mxu2  ;;  %v5810_v24 = vsel %vm5682_vm15, %v5612_v40, %v5746_v35  ;;  %v6024_v35 = vadd.f32 %v12384_v50, %v12364_v23 }
 0x9cf   :  { %v6103_v57 = vadd.f32 %v6102_v61, %v6014_v43  ;;  %v5525_v54 = vadd.f32 %v5524_v63, %v5436_v2  ;;  %v13610_v63 = vld [vmem:[#allocation85_spill] sm:$0xff] }
 0x9d1   :  { %v5613_v47 = vpop.f32.mrf.mxu3  ;;  %v6210_v42 = vmul.f32 0.1, %v6103_v57  ;;  %vm6178_vm14 = vcmp.gt.f32.partialorder %v6103_v57, 0.0 }
 0x9d2   :  { %v5614_v9 = vadd.f32 %v5613_v47, %v5525_v54 }
 0x9d3   :  { %v6242_v32 = vsel %vm6178_vm14, %v6103_v57, %v6210_v42  ;;  %v5357_v57 = vadd.f32 %v12223_v1, %v11906_v55  ;;  %v12434_v42 = vpop.f32.mrf.mxu0 }
 0x9d4   :  { %vm5684_vm1 = vcmp.gt.f32.partialorder %v5614_v9, 0.0  ;;  %v5748_v14 = vmul.f32 0.1, %v5614_v9  ;;  %v6278_v28 = vmul.f32 %v12391_v38, %v6242_v32 }
 0x9d6   :  { %v6105_v31 = vpop.f32.mrf.mxu1  ;;  %6313 = vadd.xlane.f32.xlu1 %v6278_v28  ;;  %v5812_v51 = vsel %vm5684_vm1, %v5614_v9, %v5748_v14  ;;  %v5527_v6 = vpop.f32.mrf.mxu2  ;;  %v5446_v9 = vadd.f32 %v12225_v45, %v5357_v57  ;;  %v6027_v45 = vadd.f32 %v12384_v50, %v12400_v10 }
 0x9d7   :  { %v6106_v21 = vadd.f32 %v6105_v31, %v6017_v58  ;;  %v5854_v46 = vpack.c.bf16 %v5812_v51, %v5810_v24  ;;  %v5528_v11 = vadd.f32 %v5527_v6, %v12186_v36 }
 0x9d9   :  { %v5616_v39 = vpop.f32.mrf.mxu3  ;;  %v6211_v60 = vmul.f32 0.1, %v6106_v21  ;;  %6144 = vmatmul.bf16.gmra.mxu1 %v5854_v46  ;;  %vm6179_vm2 = vcmp.gt.f32.partialorder %v6106_v21, 0.0 }
 0x9da   :  { %v5617_v33 = vadd.f32 %v5616_v39, %v5528_v11 }
 0x9db   :  { %v6243_v44 = vsel %vm6179_vm2, %v6106_v21, %v6211_v60  ;;  %v12443_v23 = vpop.f32.mrf.mxu0 }
 0x9dc   :  { %v6279_v13 = vmul.f32 %v12391_v38, %v6243_v44  ;;  %v5750_v36 = vmul.f32 0.1, %v5617_v33  ;;  %vm5686_vm4 = vcmp.gt.f32.partialorder %v5617_v33, 0.0 }
 0x9de   :  { %v6107_v19 = vpop.f32.mrf.mxu1  ;;  %6315 = vadd.xlane.f32.xlu2 %v6279_v13  ;;  %v5529_v17 = vpop.f32.mrf.mxu2  ;;  %v5814_v49 = vsel %vm5686_vm4, %v5617_v33, %v5750_v36 }
 0x9df   :  { %v6108_v59 = vadd.f32 %v6107_v19, %v6019_v4  ;;  %v5530_v41 = vadd.f32 %v5529_v17, %v5441_v18  ;;  %v5362_v19 = vadd.f32 %v12243_v3, %v11906_v55 }
 0x9e1   :  { %v5618_v16 = vpop.f32.mrf.mxu3  ;;  %v6212_v29 = vmul.f32 0.1, %v6108_v59  ;;  %vm6180_vm3 = vcmp.gt.f32.partialorder %v6108_v59, 0.0 }
 0x9e2   :  { %v5619_v0 = vadd.f32 %v5618_v16, %v5530_v41  ;;  %v6029_v41 = vadd.f32 %v12384_v50, %v12412_v8  ;;  %v13611_v16 = vld [vmem:[#allocation68_spill] sm:$0xff] }
 0x9e3   :  { %v6244_v12 = vsel %vm6180_vm3, %v6108_v59, %v6212_v29  ;;  %v5451_v29 = vadd.f32 %v13611_v16, %v5362_v19 }
 0x9e4   :  { %vm5688_vm5 = vcmp.gt.f32.partialorder %v5619_v0, 0.0  ;;  %v5752_v52 = vmul.f32 0.1, %v5619_v0  ;;  %v6280_v56 = vmul.f32 %v12391_v38, %v6244_v12 }
 0x9e6   :  { %v6110_v48 = vpop.f32.mrf.mxu1  ;;  %6317 = vadd.xlane.f32.xlu2 %v6280_v56  ;;  %v5816_v34 = vsel %vm5688_vm5, %v5619_v0, %v5752_v52  ;;  %v5532_v43 = vpop.f32.mrf.mxu2 }
 0x9e7   :  { %v6111_v26 = vadd.f32 %v6110_v48, %v6022_v20  ;;  %v5856_v2 = vpack.c.bf16 %v5816_v34, %v5814_v49  ;;  %v5533_v54 = vadd.f32 %v5532_v43, %v13610_v63  ;;  %v12452_v56 = vpop.f32.mrf.mxu0  ;;  %v6032_v43 = vadd.f32 %v12384_v50, %v12417_v7 }
 0x9e9   :  { %v5621_v40 = vpop.f32.mrf.mxu3  ;;  %v6213_v61 = vmul.f32 0.1, %v6111_v26  ;;  %6149 = vmatmul.bf16.gmra.mxu1 %v5856_v2  ;;  %vm6181_vm0 = vcmp.gt.f32.partialorder %v6111_v26, 0.0 }
 0x9ea   :  { %v5622_v32 = vadd.f32 %v5621_v40, %v5533_v54 }
 0x9eb   :  { %v6245_v47 = vsel %vm6181_vm0, %v6111_v26, %v6213_v61 }
 0x9ec   :  { %v6281_v25 = vmul.f32 %v12391_v38, %v6245_v47  ;;  %v5754_v51 = vmul.f32 0.1, %v5622_v32  ;;  %vm5690_vm7 = vcmp.gt.f32.partialorder %v5622_v32, 0.0 }
 0x9ee   :  { %v6112_v14 = vpop.f32.mrf.mxu1  ;;  %6319 = vadd.xlane.f32.xlu0 %v6281_v25  ;;  %v5534_v58 = vpop.f32.mrf.mxu2  ;;  %v5818_v37 = vsel %vm5690_vm7, %v5622_v32, %v5754_v51  ;;  %v13612_v32 = vld [vmem:[#allocation18_spill] sm:$0xff] }
 0x9ef   :  { %v6113_v28 = vadd.f32 %v6112_v14, %v6024_v35  ;;  %v5535_v31 = vadd.f32 %v5534_v58, %v5446_v9  ;;  %v5367_v35 = vadd.f32 %v12266_v62, %v11906_v55  ;;  %v12459_v9 = vpop.f32.mrf.mxu0  ;;  %v6034_v58 = vadd.f32 %v12384_v50, %v12426_v15 }
 0x9f1   :  { %v5623_v24 = vpop.f32.mrf.mxu3  ;;  %v6214_v1 = vmul.f32 0.1, %v6113_v28  ;;  %vm6182_vm6 = vcmp.gt.f32.partialorder %v6113_v28, 0.0 }
 0x9f2   :  { %v5624_v21 = vadd.f32 %v5623_v24, %v5535_v31  ;;  %v5456_v31 = vadd.f32 %v12268_v53, %v5367_v35  ;;  %v6037_v53 = vadd.f32 %v12384_v50, %v12434_v42  ;;  %v6039_v42 = vadd.f32 %v12384_v50, %v12443_v23 }
 0x9f3   :  { %v6246_v6 = vsel %vm6182_vm6, %v6113_v28, %v6214_v1  ;;  %vm6405_vm6 = vcmask 7168  }
 0x9f4   :  { %vm5692_vm8 = vcmp.gt.f32.partialorder %v5624_v21, 0.0  ;;  %v5756_v46 = vmul.f32 0.1, %v5624_v21  ;;  %v6282_v39 = vmul.f32 %v12391_v38, %v6246_v6 }
 0x9f6   :  { %v6115_v60 = vpop.f32.mrf.mxu1  ;;  %6321 = vadd.xlane.f32.xlu1 %v6282_v39  ;;  %v5820_v11 = vsel %vm5692_vm8, %v5624_v21, %v5756_v46  ;;  %v5537_v13 = vpop.f32.mrf.mxu2 }
 0x9f7   :  { %v6116_v44 = vadd.f32 %v6115_v60, %v6027_v45  ;;  %v5858_v4 = vpack.c.bf16 %v5820_v11, %v5818_v37  ;;  %v5538_v59 = vadd.f32 %v5537_v13, %v12229_v30  ;;  %v12466_v37 = vpop.f32.mrf.mxu0 }
 0x9f9   :  { %v5626_v18 = vpop.f32.mrf.mxu3  ;;  %v6215_v33 = vmul.f32 0.1, %v6116_v44  ;;  %6154 = vmatmul.bf16.gmra.mxu1 %v5858_v4  ;;  %vm6183_vm9 = vcmp.gt.f32.partialorder %v6116_v44, 0.0 }
 0x9fa   :  { %v5627_v36 = vadd.f32 %v5626_v18, %v5538_v59 }
 0x9fb   :  { %v6247_v17 = vsel %vm6183_vm9, %v6116_v44, %v6215_v33 }
 0x9fc   :  { %v6283_v10 = vmul.f32 %v12391_v38, %v6247_v17  ;;  %v5758_v30 = vmul.f32 0.1, %v5627_v36  ;;  %vm5694_vm11 = vcmp.gt.f32.partialorder %v5627_v36, 0.0 }
 0x9fe   :  { %v6117_v0 = vpop.f32.mrf.mxu1  ;;  %6323 = vadd.xlane.f32.xlu2 %v6283_v10  ;;  %v5539_v52 = vpop.f32.mrf.mxu2  ;;  %v5822_v40 = vsel %vm5694_vm11, %v5627_v36, %v5758_v30  ;;  %v5372_v10 = vadd.f32 %v12307_v22, %v11906_v55 }
 0x9ff   :  { %v6118_v12 = vadd.f32 %v6117_v0, %v6029_v41  ;;  %v5540_v20 = vadd.f32 %v5539_v52, %v5451_v29  ;;  %v6048_v0 = vpop.f32.mrf.mxu0 }
 0xa00   :  { %v5461_v36 = vadd.f32 %v12379_v5, %v5372_v10  ;;  %v6042_v5 = vadd.f32 %v12384_v50, %v12452_v56  ;;  %v12487_v56 = vstv %s12689_s6 }
 0xa01   :  { %v5628_v48 = vpop.f32.mrf.mxu3  ;;  %v6216_v3 = vmul.f32 0.1, %v6118_v12  ;;  %vm6184_vm10 = vcmp.gt.f32.partialorder %v6118_v12, 0.0 }
 0xa02   :  { %v5629_v49 = vadd.f32 %v5628_v48, %v5540_v20 }
 0xa03   :  { %v6248_v34 = vsel %vm6184_vm10, %v6118_v12, %v6216_v3 }
 0xa04   :  { %vm5696_vm12 = vcmp.gt.f32.partialorder %v5629_v49, 0.0  ;;  %v5760_v26 = vmul.f32 0.1, %v5629_v49  ;;  %v6284_v8 = vmul.f32 %v12391_v38, %v6248_v34 }
 0xa06   :  { %v6120_v2 = vpop.f32.mrf.mxu1  ;;  %6325 = vadd.xlane.f32.xlu0 %v6284_v8  ;;  %v5824_v61 = vsel %vm5696_vm12, %v5629_v49, %v5760_v26  ;;  %v5542_v63 = vpop.f32.mrf.mxu2 }
 0xa07   :  { %v6121_v57 = vadd.f32 %v6120_v2, %v6032_v43  ;;  %v5860_v54 = vpack.c.bf16 %v5824_v61, %v5822_v40  ;;  %v5543_v14 = vadd.f32 %v5542_v63, %v13612_v32  ;;  %v6051_v61 = vpop.f32.mrf.mxu0 }
 0xa09   :  { %v5631_v47 = vpop.f32.mrf.mxu3  ;;  %v6217_v25 = vmul.f32 0.1, %v6121_v57  ;;  %6159 = vmatmul.bf16.gmra.mxu1 %v5860_v54  ;;  %vm6185_vm13 = vcmp.gt.f32.partialorder %v6121_v57, 0.0 }
 0xa0a   :  { %v5632_v24 = vadd.f32 %v5631_v47, %v5543_v14  ;;  %v6044_v47 = vadd.f32 %v12384_v50, %v12459_v9 }
 0xa0b   :  { %v6249_v28 = vsel %vm6185_vm13, %v6121_v57, %v6217_v25 }
 0xa0c   :  { %v6285_v7 = vmul.f32 %v12391_v38, %v6249_v28  ;;  %v5762_v39 = vmul.f32 0.1, %v5632_v24  ;;  %vm5698_vm15 = vcmp.gt.f32.partialorder %v5632_v24, 0.0 }
 0xa0e   :  { %v6122_v1 = vpop.f32.mrf.mxu1  ;;  %6327 = vadd.xlane.f32.xlu1 %v6285_v7  ;;  %v5544_v21 = vpop.f32.mrf.mxu2  ;;  %v5826_v13 = vsel %vm5698_vm15, %v5632_v24, %v5762_v39 }
 0xa0f   :  { %v6123_v51 = vadd.f32 %v6122_v1, %v6034_v58  ;;  %v5545_v6 = vadd.f32 %v5544_v21, %v5456_v31  ;;  %v6053_v28 = vpop.f32.mrf.mxu0  ;;  %v6047_v31 = vadd.f32 %v12384_v50, %v12466_v37 }
 0xa11   :  { %v5633_v46 = vpop.f32.mrf.mxu3  ;;  %v6218_v62 = vmul.f32 0.1, %v6123_v51  ;;  %vm6186_vm14 = vcmp.gt.f32.partialorder %v6123_v51, 0.0 }
 0xa12   :  { %v5634_v45 = vadd.f32 %v5633_v46, %v5545_v6 }
 0xa13   :  { %v6250_v60 = vsel %vm6186_vm14, %v6123_v51, %v6218_v62 }
 0xa14   :  { %vm5700_vm1 = vcmp.gt.f32.partialorder %v5634_v45, 0.0  ;;  %v5764_v11 = vmul.f32 0.1, %v5634_v45  ;;  %v6286_v15 = vmul.f32 %v12391_v38, %v6250_v60 }
 0xa16   :  { %v6125_v44 = vpop.f32.mrf.mxu1  ;;  %6329 = vadd.xlane.f32.xlu2 %v6286_v15  ;;  %v5828_v4 = vsel %vm5700_vm1, %v5634_v45, %v5764_v11  ;;  %v5547_v33 = vpop.f32.mrf.mxu2  ;;  %v6049_v45 = vadd.f32 %v12384_v50, %v6048_v0 }
 0xa17   :  { %v6126_v18 = vadd.f32 %v6125_v44, %v6037_v53  ;;  %v5862_v19 = vpack.c.bf16 %v5828_v4, %v5826_v13  ;;  %v5548_v41 = vadd.f32 %v5547_v33, %v12272_v27  ;;  %v6056_v62 = vpop.f32.mrf.mxu0  ;;  %v6052_v4 = vadd.f32 %v12384_v50, %v6051_v61 }
 0xa19   :  { %v5636_v59 = vpop.f32.mrf.mxu3  ;;  %v6219_v17 = vmul.f32 0.1, %v6126_v18  ;;  %6164 = vmatmul.bf16.gmra.mxu1 %v5862_v19  ;;  %vm6187_vm2 = vcmp.gt.f32.partialorder %v6126_v18, 0.0 }
 0xa1a   :  { %v5637_v12 = vadd.f32 %v5636_v59, %v5548_v41 }
 0xa1b   :  { %v6251_v16 = vsel %vm6187_vm2, %v6126_v18, %v6219_v17 }
 0xa1c   :  { %v6287_v29 = vmul.f32 %v12391_v38, %v6251_v16  ;;  %v5766_v55 = vmul.f32 0.1, %v5637_v12  ;;  %vm5702_vm4 = vcmp.gt.f32.partialorder %v5637_v12, 0.0 }
 0xa1e   :  { %v6127_v52 = vpop.f32.mrf.mxu1  ;;  %6331 = vadd.xlane.f32.xlu0 %v6287_v29  ;;  %v5549_v48 = vpop.f32.mrf.mxu2  ;;  %v5830_v8 = vsel %vm5702_vm4, %v5637_v12, %v5766_v55  ;;  %v6054_v29 = vadd.f32 %v12384_v50, %v6053_v28 }
 0xa1f   :  { %v6128_v20 = vadd.f32 %v6127_v52, %v6039_v42  ;;  %v5550_v3 = vadd.f32 %v5549_v48, %v5461_v36  ;;  %v6058_v18 = vpop.f32.mrf.mxu0 }
 0xa21   :  { %v6220_v30 = vmul.f32 0.1, %v6128_v20  ;;  %v5638_v49 = vpop.f32.mrf.mxu3  ;;  %vm6188_vm3 = vcmp.gt.f32.partialorder %v6128_v20, 0.0 }
 0xa22   :  { %v5639_v27 = vadd.f32 %v5638_v49, %v5550_v3 }
 0xa23   :  { %v6252_v22 = vsel %vm6188_vm3, %v6128_v20, %v6220_v30  ;;  %v6057_v30 = vadd.f32 %v12384_v50, %v6056_v62 }
 0xa24   :  { %vm5704_vm5 = vcmp.gt.f32.partialorder %v5639_v27, 0.0  ;;  %v5768_v34 = vmul.f32 0.1, %v5639_v27  ;;  %v6288_v23 = vmul.f32 %v12391_v38, %v6252_v22 }
 0xa26   :  { %v6130_v26 = vpop.f32.mrf.mxu1  ;;  %6333 = vadd.xlane.f32.xlu1 %v6288_v23  ;;  %v5832_v43 = vsel %vm5704_vm5, %v5639_v27, %v5768_v34 }
 0xa27   :  { %v6131_v2 = vadd.f32 %v6130_v26, %v6042_v5  ;;  %v5864_v40 = vpack.c.bf16 %v5832_v43, %v5830_v8  ;;  %v6061_v0 = vpop.f32.mrf.mxu0  ;;  %v6059_v8 = vadd.f32 %v12384_v50, %v6058_v18 }
 0xa29   :  { %v6221_v57 = vmul.f32 0.1, %v6131_v2  ;;  %6169 = vmatmul.bf16.gmra.mxu1 %v5864_v40  ;;  %vm6189_vm0 = vcmp.gt.f32.partialorder %v6131_v2, 0.0 }
 0xa2b   :  { %v6253_v63 = vsel %vm6189_vm0, %v6131_v2, %v6221_v57 }
 0xa2c   :  { %v6289_v54 = vmul.f32 %v12391_v38, %v6253_v63 }
 0xa2e   :  { %v6132_v25 = vpop.f32.mrf.mxu1  ;;  %6335 = vadd.xlane.f32.xlu2 %v6289_v54 }
 0xa2f   :  { %v6133_v35 = vadd.f32 %v6132_v25, %v6044_v47  ;;  %v6063_v34 = vpop.f32.mrf.mxu0  ;;  %v6062_v25 = vadd.f32 %v12384_v50, %v6061_v0 }
 0xa31   :  { %v6222_v32 = vmul.f32 0.1, %v6133_v35  ;;  %v6308_v14 = vpop.xlane.xlu0 %6307  ;;  %vm6190_vm7 = vcmp.gt.f32.partialorder %v6133_v35, 0.0 }
 0xa32   :  { %v6373_v7 = vadd.f32 %v12487_v56, %v6308_v14 }
 0xa33   :  { %v6254_v58 = vsel %vm6190_vm7, %v6133_v35, %v6222_v32 }
 0xa34   :  { %6406 = vst.msk [vmem:[%s12690_s7] sm:$0xff] %vm6405_vm6, %v6373_v7  ;;  %v6290_v9 = vmul.f32 %v12391_v38, %v6254_v58 }
 0xa36   :  { %v6135_v24 = vpop.f32.mrf.mxu1  ;;  %6337 = vadd.xlane.f32.xlu0 %v6290_v9 }
 0xa37   :  { %v6136_v1 = vadd.f32 %v6135_v24, %v6047_v31  ;;  %v6066_v54 = vpop.f32.mrf.mxu0  ;;  %v6064_v31 = vadd.f32 %v12384_v50, %v6063_v34 }
 0xa39   :  { %v6223_v51 = vmul.f32 0.1, %v6136_v1  ;;  %v6310_v21 = vpop.xlane.xlu0 %6309  ;;  %vm6191_vm8 = vcmp.gt.f32.partialorder %v6136_v1, 0.0 }
 0xa3a   :  { %v6374_v6 = vadd.f32 %v12487_v56, %v6310_v21 }
 0xa3b   :  { %v6255_v46 = vsel %vm6191_vm8, %v6136_v1, %v6223_v51 }
 0xa3c   :  { %6407 = vst.msk [vmem:[%s12690_s7 + $0x8] sm:$0xff] %vm6405_vm6, %v6374_v6  ;;  %v6291_v39 = vmul.f32 %v12391_v38, %v6255_v46 }
 0xa3e   :  { %v6137_v60 = vpop.f32.mrf.mxu1  ;;  %6339 = vadd.xlane.f32.xlu1 %v6291_v39 }
 0xa3f   :  { %v6138_v37 = vadd.f32 %v6137_v60, %v6049_v45  ;;  %v6068_v24 = vpop.f32.mrf.mxu0  ;;  %v6067_v45 = vadd.f32 %v12384_v50, %v6066_v54 }
 0xa40   :  { %v6069_v18 = vadd.f32 %v12384_v50, %v6068_v24 }
 0xa41   :  { %v6224_v11 = vmul.f32 0.1, %v6138_v37  ;;  %v6312_v15 = vpop.xlane.xlu1 %6311  ;;  %vm6192_vm9 = vcmp.gt.f32.partialorder %v6138_v37, 0.0 }
 0xa42   :  { %v6375_v53 = vadd.f32 %v12487_v56, %v6312_v15 }
 0xa43   :  { %v6256_v44 = vsel %vm6192_vm9, %v6138_v37, %v6224_v11 }
 0xa44   :  { %6408 = vst.msk [vmem:[%s12690_s7 + $0x10] sm:$0xff] %vm6405_vm6, %v6375_v53  ;;  %v6292_v13 = vmul.f32 %v12391_v38, %v6256_v44 }
 0xa46   :  { %v6140_v33 = vpop.f32.mrf.mxu1  ;;  %6341 = vadd.xlane.f32.xlu2 %v6292_v13 }
 0xa47   :  { %v6141_v19 = vadd.f32 %v6140_v33, %v6052_v4  ;;  %v6071_v11 = vpop.f32.mrf.mxu0 }
 0xa49   :  { %v6225_v59 = vmul.f32 0.1, %v6141_v19  ;;  %v6314_v17 = vpop.xlane.xlu1 %6313  ;;  %vm6193_vm10 = vcmp.gt.f32.partialorder %v6141_v19, 0.0 }
 0xa4a   :  { %v6376_v10 = vadd.f32 %v12487_v56, %v6314_v17 }
 0xa4b   :  { %v6257_v41 = vsel %vm6193_vm10, %v6141_v19, %v6225_v59 }
 0xa4c   :  { %6409 = vst.msk [vmem:[%s12690_s7 + $0x18] sm:$0xff] %vm6405_vm6, %v6376_v10  ;;  %v6293_v16 = vmul.f32 %v12391_v38, %v6257_v41 }
 0xa4e   :  { %v6142_v42 = vpop.f32.mrf.mxu1  ;;  %6343 = vadd.xlane.f32.xlu0 %v6293_v16 }
 0xa4f   :  { %v6143_v36 = vadd.f32 %v6142_v42, %v6054_v29  ;;  %v6073_v10 = vpop.f32.mrf.mxu0  ;;  %v6072_v42 = vadd.f32 %v12384_v50, %v6071_v11 }
 0xa51   :  { %v6226_v12 = vmul.f32 0.1, %v6143_v36  ;;  %v6316_v52 = vpop.xlane.xlu2 %6315  ;;  %vm6194_vm11 = vcmp.gt.f32.partialorder %v6143_v36, 0.0 }
 0xa52   :  { %v6377_v20 = vadd.f32 %v12487_v56, %v6316_v52 }
 0xa53   :  { %v6258_v48 = vsel %vm6194_vm11, %v6143_v36, %v6226_v12 }
 0xa54   :  { %6410 = vst.msk [vmem:[%s12690_s7 + $0x20] sm:$0xff] %vm6405_vm6, %v6377_v20  ;;  %v6294_v3 = vmul.f32 %v12391_v38, %v6258_v48 }
 0xa56   :  { %v6145_v49 = vpop.f32.mrf.mxu1  ;;  %6345 = vadd.xlane.f32.xlu1 %v6294_v3 }
 0xa57   :  { %v6146_v55 = vadd.f32 %v6145_v49, %v6057_v30  ;;  %v6076_v3 = vpop.f32.mrf.mxu0  ;;  %v6074_v49 = vadd.f32 %v12384_v50, %v6073_v10 }
 0xa59   :  { %v6227_v27 = vmul.f32 0.1, %v6146_v55  ;;  %v6318_v22 = vpop.xlane.xlu2 %6317  ;;  %vm6195_vm12 = vcmp.gt.f32.partialorder %v6146_v55, 0.0 }
 0xa5a   :  { %v6378_v23 = vadd.f32 %v12487_v56, %v6318_v22 }
 0xa5b   :  { %v6259_v5 = vsel %vm6195_vm12, %v6146_v55, %v6227_v27 }
 0xa5c   :  { %6411 = vst.msk [vmem:[%s12690_s7 + $0x28] sm:$0xff] %vm6405_vm6, %v6378_v23  ;;  %v6295_v26 = vmul.f32 %v12391_v38, %v6259_v5 }
 0xa5e   :  { %v6147_v43 = vpop.f32.mrf.mxu1  ;;  %6347 = vadd.xlane.f32.xlu2 %v6295_v26 }
 0xa5f   :  { %v6148_v2 = vadd.f32 %v6147_v43, %v6059_v8  ;;  %v6077_v8 = vadd.f32 %v12384_v50, %v6076_v3  ;;  %v6078_v43 = vpop.f32.mrf.mxu0 }
 0xa61   :  { %v6228_v40 = vmul.f32 0.1, %v6148_v2  ;;  %v6320_v61 = vpop.xlane.xlu0 %6319  ;;  %vm6196_vm13 = vcmp.gt.f32.partialorder %v6148_v2, 0.0 }
 0xa62   :  { %v6379_v57 = vadd.f32 %v12487_v56, %v6320_v61 }
 0xa63   :  { %v6260_v63 = vsel %vm6196_vm13, %v6148_v2, %v6228_v40 }
 0xa64   :  { %6412 = vst.msk [vmem:[%s12690_s7 + $0x30] sm:$0xff] %vm6405_vm6, %v6379_v57  ;;  %v6296_v47 = vmul.f32 %v12391_v38, %v6260_v63 }
 0xa66   :  { %v6150_v35 = vpop.f32.mrf.mxu1  ;;  %6349 = vadd.xlane.f32.xlu0 %v6296_v47 }
 0xa67   :  { %v6151_v32 = vadd.f32 %v6150_v35, %v6062_v25  ;;  %v6079_v25 = vadd.f32 %v12384_v50, %v6078_v43 }
 0xa69   :  { %v6229_v14 = vmul.f32 0.1, %v6151_v32  ;;  %v6322_v28 = vpop.xlane.xlu1 %6321  ;;  %vm6197_vm14 = vcmp.gt.f32.partialorder %v6151_v32, 0.0 }
 0xa6a   :  { %v6380_v7 = vadd.f32 %v12487_v56, %v6322_v28 }
 0xa6b   :  { %v6261_v58 = vsel %vm6197_vm14, %v6151_v32, %v6229_v14  ;;  %v6081_v14 = vpop.f32.mrf.mxu0 }
 0xa6c   :  { %6413 = vst.msk [vmem:[%s12690_s7 + $0x38] sm:$0xff] %vm6405_vm6, %v6380_v7  ;;  %v6297_v9 = vmul.f32 %v12391_v38, %v6261_v58  ;;  %v6082_v24 = vadd.f32 %v12384_v50, %v6081_v14 }
 0xa6e   :  { %v6152_v1 = vpop.f32.mrf.mxu1  ;;  %6351 = vadd.xlane.f32.xlu1 %v6297_v9 }
 0xa6f   :  { %v6153_v51 = vadd.f32 %v6152_v1, %v6064_v31 }
 0xa71   :  { %v6230_v21 = vmul.f32 0.1, %v6153_v51  ;;  %v6324_v6 = vpop.xlane.xlu2 %6323  ;;  %vm6198_vm15 = vcmp.gt.f32.partialorder %v6153_v51, 0.0 }
 0xa72   :  { %v6381_v46 = vadd.f32 %v12487_v56, %v6324_v6 }
 0xa73   :  { %v6262_v62 = vsel %vm6198_vm15, %v6153_v51, %v6230_v21 }
 0xa74   :  { %6414 = vst.msk [vmem:[%s12690_s7 + $0x40] sm:$0xff] %vm6405_vm6, %v6381_v46  ;;  %v6298_v39 = vmul.f32 %v12391_v38, %v6262_v62  ;;  %v6083_v46 = vpop.f32.mrf.mxu0 }
 0xa76   :  { %v6155_v60 = vpop.f32.mrf.mxu1  ;;  %6353 = vadd.xlane.f32.xlu2 %v6298_v39 }
 0xa77   :  { %v6156_v37 = vadd.f32 %v6155_v60, %v6067_v45  ;;  %v6084_v60 = vadd.f32 %v12384_v50, %v6083_v46 }
 0xa79   :  { %v6231_v15 = vmul.f32 0.1, %v6156_v37  ;;  %v6326_v53 = vpop.xlane.xlu0 %6325  ;;  %vm6199_vm1 = vcmp.gt.f32.partialorder %v6156_v37, 0.0 }
 0xa7a   :  { %v6382_v44 = vadd.f32 %v12487_v56, %v6326_v53 }
 0xa7b   :  { %v6263_v13 = vsel %vm6199_vm1, %v6156_v37, %v6231_v15 }
 0xa7c   :  { %6415 = vst.msk [vmem:[%s12690_s7 + $0x48] sm:$0xff] %vm6405_vm6, %v6382_v44  ;;  %v6299_v4 = vmul.f32 %v12391_v38, %v6263_v13 }
 0xa7e   :  { %v6157_v33 = vpop.f32.mrf.mxu1  ;;  %6355 = vadd.xlane.f32.xlu0 %v6299_v4 }
 0xa7f   :  { %v6158_v19 = vadd.f32 %v6157_v33, %v6069_v18 }
 0xa81   :  { %v6232_v59 = vmul.f32 0.1, %v6158_v19  ;;  %v6328_v17 = vpop.xlane.xlu1 %6327  ;;  %vm6200_vm2 = vcmp.gt.f32.partialorder %v6158_v19, 0.0 }
 0xa82   :  { %v6383_v41 = vadd.f32 %v12487_v56, %v6328_v17 }
 0xa83   :  { %v6264_v16 = vsel %vm6200_vm2, %v6158_v19, %v6232_v59 }
 0xa84   :  { %6416 = vst.msk [vmem:[%s12690_s7 + $0x50] sm:$0xff] %vm6405_vm6, %v6383_v41  ;;  %v6300_v29 = vmul.f32 %v12391_v38, %v6264_v16 }
 0xa86   :  { %v6160_v36 = vpop.f32.mrf.mxu1  ;;  %6357 = vadd.xlane.f32.xlu1 %v6300_v29 }
 0xa87   :  { %v6161_v0 = vadd.f32 %v6160_v36, %v6072_v42 }
 0xa89   :  { %v6233_v12 = vmul.f32 0.1, %v6161_v0  ;;  %v6330_v52 = vpop.xlane.xlu2 %6329  ;;  %vm6201_vm3 = vcmp.gt.f32.partialorder %v6161_v0, 0.0 }
 0xa8a   :  { %v6384_v20 = vadd.f32 %v12487_v56, %v6330_v52 }
 0xa8b   :  { %v6265_v48 = vsel %vm6201_vm3, %v6161_v0, %v6233_v12 }
 0xa8c   :  { %6417 = vst.msk [vmem:[%s12690_s7 + $0x58] sm:$0xff] %vm6405_vm6, %v6384_v20  ;;  %v6301_v30 = vmul.f32 %v12391_v38, %v6265_v48 }
 0xa8e   :  { %v6162_v55 = vpop.f32.mrf.mxu1  ;;  %6359 = vadd.xlane.f32.xlu2 %v6301_v30 }
 0xa8f   :  { %v6163_v27 = vadd.f32 %v6162_v55, %v6074_v49 }
 0xa91   :  { %v6234_v22 = vmul.f32 0.1, %v6163_v27  ;;  %v6332_v34 = vpop.xlane.xlu0 %6331  ;;  %vm6202_vm4 = vcmp.gt.f32.partialorder %v6163_v27, 0.0 }
 0xa92   :  { %v6385_v23 = vadd.f32 %v12487_v56, %v6332_v34 }
 0xa93   :  { %v6266_v5 = vsel %vm6202_vm4, %v6163_v27, %v6234_v22 }
 0xa94   :  { %6418 = vst.msk [vmem:[%s12690_s7 + $0x60] sm:$0xff] %vm6405_vm6, %v6385_v23  ;;  %v6302_v26 = vmul.f32 %v12391_v38, %v6266_v5 }
 0xa96   :  { %v6165_v2 = vpop.f32.mrf.mxu1  ;;  %6361 = vadd.xlane.f32.xlu0 %v6302_v26 }
 0xa97   :  { %v6166_v40 = vadd.f32 %v6165_v2, %v6077_v8 }
 0xa99   :  { %v6235_v61 = vmul.f32 0.1, %v6166_v40  ;;  %v6334_v57 = vpop.xlane.xlu1 %6333  ;;  %vm6203_vm5 = vcmp.gt.f32.partialorder %v6166_v40, 0.0 }
 0xa9a   :  { %v6386_v63 = vadd.f32 %v12487_v56, %v6334_v57 }
 0xa9b   :  { %v6267_v54 = vsel %vm6203_vm5, %v6166_v40, %v6235_v61 }
 0xa9c   :  { %6419 = vst.msk [vmem:[%s12690_s7 + $0x68] sm:$0xff] %vm6405_vm6, %v6386_v63  ;;  %v6303_v47 = vmul.f32 %v12391_v38, %v6267_v54 }
 0xa9e   :  { %v6167_v35 = vpop.f32.mrf.mxu1  ;;  %6363 = vadd.xlane.f32.xlu1 %v6303_v47 }
 0xa9f   :  { %v6168_v32 = vadd.f32 %v6167_v35, %v6079_v25 }
 0xaa1   :  { %v6236_v28 = vmul.f32 0.1, %v6168_v32  ;;  %v6336_v7 = vpop.xlane.xlu2 %6335  ;;  %vm6204_vm0 = vcmp.gt.f32.partialorder %v6168_v32, 0.0 }
 0xaa2   :  { %v6387_v58 = vadd.f32 %v12487_v56, %v6336_v7 }
 0xaa3   :  { %v6268_v9 = vsel %vm6204_vm0, %v6168_v32, %v6236_v28 }
 0xaa4   :  { %6420 = vst.msk [vmem:[%s12690_s7 + $0x70] sm:$0xff] %vm6405_vm6, %v6387_v58  ;;  %v6304_v31 = vmul.f32 %v12391_v38, %v6268_v9 }
 0xaa6   :  { %v6170_v1 = vpop.f32.mrf.mxu1  ;;  %6365 = vadd.xlane.f32.xlu2 %v6304_v31 }
 0xaa7   :  { %v6171_v51 = vadd.f32 %v6170_v1, %v6082_v24 }
 0xaa9   :  { %v6237_v21 = vmul.f32 0.1, %v6171_v51  ;;  %v6338_v6 = vpop.xlane.xlu0 %6337  ;;  %vm6205_vm7 = vcmp.gt.f32.partialorder %v6171_v51, 0.0 }
 0xaaa   :  { %v6388_v62 = vadd.f32 %v12487_v56, %v6338_v6 }
 0xaab   :  { %v6269_v39 = vsel %vm6205_vm7, %v6171_v51, %v6237_v21 }
 0xaac   :  { %6421 = vst.msk [vmem:[%s12690_s7 + $0x78] sm:$0xff] %vm6405_vm6, %v6388_v62  ;;  %v6305_v45 = vmul.f32 %v12391_v38, %v6269_v39 }
 0xaae   :  { %v6172_v37 = vpop.f32.mrf.mxu1  ;;  %6367 = vadd.xlane.f32.xlu0 %v6305_v45 }
 0xaaf   :  { %v6173_v11 = vadd.f32 %v6172_v37, %v6084_v60 }
 0xab1   :  { %v6238_v15 = vmul.f32 0.1, %v6173_v11  ;;  %v6340_v53 = vpop.xlane.xlu1 %6339  ;;  %vm6206_vm8 = vcmp.gt.f32.partialorder %v6173_v11, 0.0 }
 0xab2   :  { %v6389_v44 = vadd.f32 %v12487_v56, %v6340_v53 }
 0xab3   :  { %v6270_v13 = vsel %vm6206_vm8, %v6173_v11, %v6238_v15 }
 0xab4   :  { %6422 = vst.msk [vmem:[%s12690_s7 + $0x80] sm:$0xff] %vm6405_vm6, %v6389_v44  ;;  %v6306_v4 = vmul.f32 %v12391_v38, %v6270_v13 }
 0xab6   :  { %6369 = vadd.xlane.f32.xlu1 %v6306_v4 }
 0xab9   :  { %v6342_v18 = vpop.xlane.xlu2 %6341 }
 0xaba   :  { %v6390_v50 = vadd.f32 %v12487_v56, %v6342_v18 }
 0xabc   :  { %6423 = vst.msk [vmem:[%s12690_s7 + $0x88] sm:$0xff] %vm6405_vm6, %v6390_v50 }
 0xac1   :  { %v6344_v33 = vpop.xlane.xlu0 %6343 }
 0xac2   :  { %v6391_v19 = vadd.f32 %v12487_v56, %v6344_v33 }
 0xac4   :  { %6424 = vst.msk [vmem:[%s12690_s7 + $0x90] sm:$0xff] %vm6405_vm6, %v6391_v19 }
 0xac9   :  { %v6346_v59 = vpop.xlane.xlu1 %6345 }
 0xaca   :  { %v6392_v38 = vadd.f32 %v12487_v56, %v6346_v59 }
 0xacc   :  { %6425 = vst.msk [vmem:[%s12690_s7 + $0x98] sm:$0xff] %vm6405_vm6, %v6392_v38 }
 0xad1   :  { %v6348_v17 = vpop.xlane.xlu2 %6347 }
 0xad2   :  { %v6393_v10 = vadd.f32 %v12487_v56, %v6348_v17 }
 0xad4   :  { %6426 = vst.msk [vmem:[%s12690_s7 + $0xa0] sm:$0xff] %vm6405_vm6, %v6393_v10 }
 0xad9   :  { %v6350_v41 = vpop.xlane.xlu0 %6349 }
 0xada   :  { %v6394_v16 = vadd.f32 %v12487_v56, %v6350_v41 }
 0xadc   :  { %6427 = vst.msk [vmem:[%s12690_s7 + $0xa8] sm:$0xff] %vm6405_vm6, %v6394_v16 }
 0xae1   :  { %v6352_v29 = vpop.xlane.xlu1 %6351 }
 0xae2   :  { %v6395_v42 = vadd.f32 %v12487_v56, %v6352_v29 }
 0xae4   :  { %6428 = vst.msk [vmem:[%s12690_s7 + $0xb0] sm:$0xff] %vm6405_vm6, %v6395_v42 }
 0xae9   :  { %v6354_v36 = vpop.xlane.xlu2 %6353 }
 0xaea   :  { %v6396_v0 = vadd.f32 %v12487_v56, %v6354_v36 }
 0xaec   :  { %6429 = vst.msk [vmem:[%s12690_s7 + $0xb8] sm:$0xff] %vm6405_vm6, %v6396_v0 }
 0xaf1   :  { %v6356_v12 = vpop.xlane.xlu0 %6355 }
 0xaf2   :  { %v6397_v52 = vadd.f32 %v12487_v56, %v6356_v12 }
 0xaf4   :  { %6430 = vst.msk [vmem:[%s12690_s7 + $0xc0] sm:$0xff] %vm6405_vm6, %v6397_v52 }
 0xaf9   :  { %v6358_v20 = vpop.xlane.xlu1 %6357 }
 0xafa   :  { %v6398_v48 = vadd.f32 %v12487_v56, %v6358_v20 }
 0xafc   :  { %6431 = vst.msk [vmem:[%s12690_s7 + $0xc8] sm:$0xff] %vm6405_vm6, %v6398_v48 }
 0xb01   :  { %v6360_v3 = vpop.xlane.xlu2 %6359 }
 0xb02   :  { %v6399_v30 = vadd.f32 %v12487_v56, %v6360_v3 }
 0xb04   :  { %6432 = vst.msk [vmem:[%s12690_s7 + $0xd0] sm:$0xff] %vm6405_vm6, %v6399_v30 }
 0xb09   :  { %v6362_v49 = vpop.xlane.xlu0 %6361 }
 0xb0a   :  { %v6400_v55 = vadd.f32 %v12487_v56, %v6362_v49 }
 0xb0c   :  { %6433 = vst.msk [vmem:[%s12690_s7 + $0xd8] sm:$0xff] %vm6405_vm6, %v6400_v55 }
 0xb11   :  { %v6364_v27 = vpop.xlane.xlu1 %6363 }
 0xb12   :  { %v6401_v22 = vadd.f32 %v12487_v56, %v6364_v27 }
 0xb14   :  { %6434 = vst.msk [vmem:[%s12690_s7 + $0xe0] sm:$0xff] %vm6405_vm6, %v6401_v22 }
 0xb19   :  { %v6366_v34 = vpop.xlane.xlu2 %6365 }
 0xb1a   :  { %v6402_v23 = vadd.f32 %v12487_v56, %v6366_v34 }
 0xb1c   :  { %6435 = vst.msk [vmem:[%s12690_s7 + $0xe8] sm:$0xff] %vm6405_vm6, %v6402_v23 }
 0xb21   :  { %v6368_v5 = vpop.xlane.xlu0 %6367 }
 0xb22   :  { %v6403_v26 = vadd.f32 %v12487_v56, %v6368_v5 }
 0xb24   :  { %6436 = vst.msk [vmem:[%s12690_s7 + $0xf0] sm:$0xff] %vm6405_vm6, %v6403_v26 }
 0xb29   :  { %v6370_v8 = vpop.xlane.xlu1 %6369 }
 0xb2a   :  { %v6404_v43 = vadd.f32 %v12487_v56, %v6370_v8 }
 0xb2c   :  { %6437 = vst.msk [vmem:[%s12690_s7 + $0xf8] sm:$0xff] %vm6405_vm6, %v6404_v43 }

</bundles_post_ra>
